<compile_context>
chip_gen: v6e
topology: v6e:2x2x1
jax: 0.10.0
libtpu: 0.0.40
codegen_flags: <defaults>
</compile_context>

<pallas_src>
import jax
import jax.numpy as jnp
from jax.experimental import pallas as pl
from jax.experimental.pallas import tpu as pltpu

VMEM_LIMIT = 32 * 1024 * 1024  # safe scoped-VMEM budget on v5e / v6e / v7x


# ----------------------------------------------------------------------------
# Pallas kernels
# ----------------------------------------------------------------------------
def _make_mm_kernel(has_residual, relu):
    """Fused 1x1-conv: out = [relu]( x @ W + bias [+ residual] )."""
    def kernel(*refs):
        if has_residual:
            x_ref, w_ref, b_ref, r_ref, o_ref = refs
        else:
            x_ref, w_ref, b_ref, o_ref = refs
        y = jnp.dot(x_ref[...], w_ref[...], preferred_element_type=jnp.float32)
        y = y + b_ref[...]
        if has_residual:
            y = y + r_ref[...].astype(jnp.float32)
        if relu:
            y = jnp.maximum(y, 0.0)
        o_ref[...] = y.astype(o_ref.dtype)
    return kernel


def _make_conv3x3_kernel(H, W, relu_input):
    """3x3 stride-1 pad-1 conv + bias + ReLU.

    x_ref : (1, (H+2)*W, 3*Cin)   column-tap-concatenated, row-padded input
    w_ref : (3, 3*Cin, TN)        one [3*Cin, TN] weight slab per row tap
    The 3 row taps are shifted, fully contiguous slices of the same block, so
    no im2col matrix ever exists in HBM and no in-kernel reshapes are needed.
    """
    HW = H * W

    def kernel(x_ref, w_ref, b_ref, o_ref):
        acc = None
        for di in range(3):
            xs = x_ref[0, di * W:di * W + HW, :]
            if relu_input:  # ReLU of the producer folded into this consumer
                xs = jnp.maximum(xs, 0)
            part = jnp.dot(xs, w_ref[di], preferred_element_type=jnp.float32)
            acc = part if acc is None else acc + part
        y = jnp.maximum(acc + b_ref[...], 0.0)
        o_ref[0] = y.astype(o_ref.dtype)
    return kernel


def _make_maxpool_kernel(Ho, Wo):
    """3x3/stride-2 max pool as an unrolled elementwise max tree (VPU only)."""
    def kernel(x00, x01, x10, x11, o_ref):
        parts = ((x00, x01), (x10, x11))
        m = None
        for di in range(3):
            for dj in range(3):
                ref = parts[di % 2][dj % 2]
                v = ref[0, di // 2:di // 2 + Ho, dj // 2:dj // 2 + Wo, :]
                m = v if m is None else jnp.maximum(m, v)
        o_ref[0] = m
    return kernel


def _head_kernel(x_ref, w_ref, b_ref, o_ref):
    # Global average pool + Linear.  f32 epilogue / output.
    pooled = jnp.mean(x_ref[...].astype(jnp.float32), axis=1)          # [N, C]
    o_ref[...] = jnp.dot(pooled, w_ref[...],
                         preferred_element_type=jnp.float32) + b_ref[...]


# ----------------------------------------------------------------------------
# Layer wrappers (pallas_call + BlockSpecs)
# ----------------------------------------------------------------------------
def _pick_tm(m):
    for t in (512, 256, 128, 64, 32, 16, 8):
        if m % t == 0:
            return t
    return m


def matmul_conv(x2d, w2d, bias, residual=None, relu=True):
    """1x1 conv (+folded BN) (+residual) (+ReLU) as a tiled bf16 matmul.

    x2d      : [M, K]        bf16
    w2d      : [K, Cout]     bf16 (BN scale folded in)
    bias     : [1, Cout]     f32
    residual : [M, >=Cout]   bf16 (only the first Cout columns are read)
    """
    M, K = x2d.shape
    Cout = w2d.shape[1]
    TN = 128 if Cout % 128 == 0 else Cout
    TM = _pick_tm(M)
    grid = (M // TM, Cout // TN)

    in_specs = [
        pl.BlockSpec((TM, K), lambda i, j: (i, 0)),
        pl.BlockSpec((K, TN), lambda i, j: (0, j)),
        pl.BlockSpec((1, TN), lambda i, j: (0, j)),
    ]
    args = [x2d, w2d, bias]
    if residual is not None:
        in_specs.append(pl.BlockSpec((TM, TN), lambda i, j: (i, j)))
        args.append(residual)

    return pl.pallas_call(
        _make_mm_kernel(residual is not None, relu),
        out_shape=jax.ShapeDtypeStruct((M, Cout), jnp.bfloat16),
        grid=grid,
        in_specs=in_specs,
        out_specs=pl.BlockSpec((TM, TN), lambda i, j: (i, j)),
        compiler_params=pltpu.CompilerParams(
            dimension_semantics=("parallel", "parallel"),
            vmem_limit_bytes=VMEM_LIMIT),
    )(*args)


def conv3x3_bn_relu(x, w3, bias, relu_input=False):
    """3x3 / stride-1 / pad-1 conv + folded BN + ReLU.  x: [N, H, W, Cin] bf16."""
    N, H, W, C = x.shape
    Cout = w3.shape[-1]
    TN = 128 if Cout % 128 == 0 else Cout

    # Spatial pad, then column-tap concat only (3x, not 9x); row taps stay
    # in-kernel as shifted slices of the resident block.
    xp = jnp.pad(x, ((0, 0), (1, 1), (1, 1), (0, 0)))
    xc = jnp.concatenate([xp[:, :, dj:dj + W, :] for dj in range(3)], axis=-1)
    xc = xc.reshape(N, (H + 2) * W, 3 * C)

    out = pl.pallas_call(
        _make_conv3x3_kernel(H, W, relu_input),
        out_shape=jax.ShapeDtypeStruct((N, H * W, Cout), jnp.bfloat16),
        grid=(N, Cout // TN),
        in_specs=[
            pl.BlockSpec((1, (H + 2) * W, 3 * C), lambda n, j: (n, 0, 0)),
            pl.BlockSpec((3, 3 * C, TN), lambda n, j: (0, 0, j)),
            pl.BlockSpec((1, TN), lambda n, j: (0, j)),
        ],
        out_specs=pl.BlockSpec((1, H * W, TN), lambda n, j: (n, 0, j)),
        compiler_params=pltpu.CompilerParams(
            dimension_semantics=("parallel", "parallel"),
            vmem_limit_bytes=VMEM_LIMIT),
    )(xc, w3, bias)
    return out                                            # [N, H*W, Cout]


def maxpool2d_3x3s2(x):
    """MaxPool2d(kernel=3, stride=2, padding=1) on NHWC (H, W even)."""
    N, H, W, C = x.shape
    Ho, Wo = H // 2, W // 2
    xp = jnp.pad(x, ((0, 0), (1, 1), (1, 1), (0, 0)),
                 constant_values=-jnp.inf)
    # Parity split (zero duplication): stride-2 taps become contiguous slices.
    parts = [xp[:, p::2, q::2, :] for p in range(2) for q in range(2)]
    Hh, Wh = (H + 2) // 2, (W + 2) // 2

    part_spec = pl.BlockSpec((1, Hh, Wh, C), lambda n: (n, 0, 0, 0))
    out = pl.pallas_call(
        _make_maxpool_kernel(Ho, Wo),
        out_shape=jax.ShapeDtypeStruct((N, Ho, Wo, C), x.dtype),
        grid=(N,),
        in_specs=[part_spec] * 4,
        out_specs=pl.BlockSpec((1, Ho, Wo, C), lambda n: (n, 0, 0, 0)),
        compiler_params=pltpu.CompilerParams(
            dimension_semantics=("parallel",),
            vmem_limit_bytes=VMEM_LIMIT),
    )(*parts)
    return out


def head(x3d, head_params):
    """AvgPool(full spatial) + Flatten + Linear."""
    # TODO(synk): single-block call is only appropriate at toy sizes (N=2,
    #             HW=16 -> ~128 KiB); tile N / keep W resident for real batches.
    N = x3d.shape[0]
    nc = head_params["w"].shape[1]
    return pl.pallas_call(
        _head_kernel,
        out_shape=jax.ShapeDtypeStruct((N, nc), jnp.float32),
    )(x3d, head_params["w"], head_params["b"])


# ----------------------------------------------------------------------------
# Glue: im2col for the stem only
# ----------------------------------------------------------------------------
def _im2col(x, kh, kw, stride, pad):
    """x: [N, H, W, C] -> flat patches [N*Ho*Wo, kh*kw*C] (stem only: C=3)."""
    N, H, W, C = x.shape
    xp = jnp.pad(x, ((0, 0), (pad, pad), (pad, pad), (0, 0)))
    Ho = (H + 2 * pad - kh) // stride + 1
    Wo = (W + 2 * pad - kw) // stride + 1
    cols = []
    for i in range(kh):
        for j in range(kw):
            cols.append(xp[:, i:i + stride * Ho:stride,
                           j:j + stride * Wo:stride, :])
    p = jnp.stack(cols, axis=3)                        # [N, Ho, Wo, kh*kw, C]
    return p.reshape(N * Ho * Wo, kh * kw * C), (N, Ho, Wo)


# ----------------------------------------------------------------------------
# Deterministic synthetic parameters (BN folded, channel-padded, bf16 weights)
# ----------------------------------------------------------------------------
def _init_conv_bn(key, kh, kw, cin, cout, cin_pad=None, cout_pad=None, eps=1e-5):
    """Returns (w_taps [kh*kw, cin_pad, cout_pad] f32, bias [1, cout_pad] f32).

    BN scale is folded into the weights; padded channels are exact zeros, so
    they stay zero through ReLU/residual and never affect real channels.
    """
    cin_pad = cin if cin_pad is None else cin_pad
    cout_pad = cout if cout_pad is None else cout_pad
    k1, k2, k3, k4, k5 = jax.random.split(key, 5)
    w = jax.random.normal(k1, (kh, kw, cin, cout), jnp.float32)
    w = w * (1.0 / jnp.sqrt(jnp.float32(kh * kw * cin)))
    gamma = 1.0 + 0.1 * jax.random.normal(k2, (cout,), jnp.float32)
    beta = 0.1 * jax.random.normal(k3, (cout,), jnp.float32)
    mean = 0.1 * jax.random.normal(k4, (cout,), jnp.float32)
    var = jnp.abs(1.0 + 0.1 * jax.random.normal(k5, (cout,), jnp.float32))
    scale = gamma / jnp.sqrt(var + eps)
    bias = beta - mean * scale
    w = w * scale                                        # fold BN scale
    w = jnp.pad(w, ((0, 0), (0, 0), (0, cin_pad - cin), (0, cout_pad - cout)))
    bias = jnp.pad(bias, (0, cout_pad - cout))
    return w.reshape(kh * kw, cin_pad, cout_pad), bias.reshape(1, cout_pad)


def _rowtap(w_taps):
    """[9, Cin, Cout] -> [3, 3*Cin, Cout] bf16 (column taps concatenated on K)."""
    _, cin, cout = w_taps.shape
    return jnp.stack(
        [w_taps[di * 3:(di + 1) * 3].reshape(3 * cin, cout) for di in range(3)]
    ).astype(jnp.bfloat16)


def init_params(key, num_classes=10):
    keys = jax.random.split(key, 10)
    bf16 = jnp.bfloat16
    P = {}

    # stem: Conv(3, 64, k=7, s=2, p=3) + BN + ReLU       (Cout padded 64 -> 128)
    w, b = _init_conv_bn(keys[0], 7, 7, 3, 64, cout_pad=128)
    P["stem"] = {"w2d": w.reshape(7 * 7 * 3, 128).astype(bf16), "bias": b}

    # Bottleneck(64 -> 64), mid = 16 (padded to 128), identity shortcut
    w, b = _init_conv_bn(keys[1], 1, 1, 64, 16, cin_pad=128, cout_pad=128)
    P["b1_c1"] = {"w2d": w.reshape(128, 128).astype(bf16), "bias": b}
    w, b = _init_conv_bn(keys[2], 3, 3, 16, 16, cin_pad=128, cout_pad=128)
    P["b1_c2"] = {"w3": _rowtap(w), "bias": b}
    w, b = _init_conv_bn(keys[3], 1, 1, 16, 64, cin_pad=128, cout_pad=128)
    P["b1_c3"] = {"w2d": w.reshape(128, 128).astype(bf16), "bias": b}

    # Bottleneck(64 -> 2048), mid = 512, conv shortcut; shortcut + c1 fused
    wsc, bsc = _init_conv_bn(keys[4], 1, 1, 64, 2048, cin_pad=128)
    wc1, bc1 = _init_conv_bn(keys[5], 1, 1, 64, 512, cin_pad=128)
    P["b2_sc_c1"] = {
        "w2d": jnp.concatenate([wsc.reshape(128, 2048),
                                wc1.reshape(128, 512)], axis=1).astype(bf16),
        "bias": jnp.concatenate([bsc, bc1], axis=1),
    }
    w, b = _init_conv_bn(keys[6], 3, 3, 512, 512)
    P["b2_c2"] = {"w3": _rowtap(w), "bias": b}
    w, b = _init_conv_bn(keys[7], 1, 1, 512, 2048)
    P["b2_c3"] = {"w2d": w.reshape(512, 2048).astype(bf16), "bias": b}

    # head: Linear(2048, num_classes)  (kept in f32)
    lw = jax.random.normal(keys[8], (2048, num_classes), jnp.float32)
    lw = lw * (1.0 / jnp.sqrt(2048.0))
    lb = 0.1 * jax.random.normal(keys[9], (1, num_classes), jnp.float32)
    P["head"] = {"w": lw, "b": lb}
    return P


# ----------------------------------------------------------------------------
# Forward pass (matches the PyTorch module with sz=16, down_sample=False)
# ----------------------------------------------------------------------------
def resnet50_forward(x_nhwc, params):
    x = x_nhwc.astype(jnp.bfloat16)

    # stem: Conv(3,64,k7,s2,p3)+BN+ReLU, then MaxPool(3, s2, p1)
    patches, (N, Ho, Wo) = _im2col(x, 7, 7, 2, 3)
    h = matmul_conv(patches, params["stem"]["w2d"], params["stem"]["bias"],
                    relu=True)
    h = maxpool2d_3x3s2(h.reshape(N, Ho, Wo, -1))
    N, H, W, C = h.shape
    M = N * H * W
    h2 = h.reshape(M, C)

    # Bottleneck(64 -> 64): identity shortcut
    y = matmul_conv(h2, params["b1_c1"]["w2d"], params["b1_c1"]["bias"],
                    relu=True)
    y = conv3x3_bn_relu(y.reshape(N, H, W, -1),
                        params["b1_c2"]["w3"], params["b1_c2"]["bias"])
    h2 = matmul_conv(y.reshape(M, -1), params["b1_c3"]["w2d"],
                     params["b1_c3"]["bias"], residual=h2, relu=True)

    # Bottleneck(64 -> 2048): conv shortcut; shortcut + first 1x1 fused
    fused = matmul_conv(h2, params["b2_sc_c1"]["w2d"],
                        params["b2_sc_c1"]["bias"], relu=False)  # [M, 2048+512]
    c1 = fused.reshape(N, H, W, -1)[..., 2048:]   # pre-ReLU; ReLU folded into c2
    y = conv3x3_bn_relu(c1, params["b2_c2"]["w3"], params["b2_c2"]["bias"],
                        relu_input=True)
    out = matmul_conv(y.reshape(M, -1), params["b2_c3"]["w2d"],
                      params["b2_c3"]["bias"],
                      residual=fused,             # shortcut = columns [0, 2048)
                      relu=True)

    # head: AvgPool(sz//4) + Flatten + Linear(2048, num_classes)
    return head(out.reshape(N, H * W, -1), params["head"])


if __name__ == "__main__":
    num_classes = 10
    sz = 16  # small spatial size consistent with the module (spatial /4 after stem)
    key = jax.random.PRNGKey(0)
    kx, kp = jax.random.split(key)

    # PyTorch-convention NCHW input, transposed once to the kernels' NHWC layout.
    x_nchw = jax.random.normal(kx, (2, 3, sz, sz), jnp.float32)
    x_nhwc = jnp.transpose(x_nchw, (0, 2, 3, 1))

    params = init_params(kp, num_classes=num_classes)

    forward = jax.jit(resnet50_forward)
    logits = forward(x_nhwc, params)
    logits = jax.block_until_ready(logits)

    assert logits.shape == (2, num_classes), logits.shape
    assert jnp.all(jnp.isfinite(logits))
    print("KERNEL_OK")
</pallas_src>

<mosaic_0001>
module attributes {stable_mosaic.version = 11 : i64} {
  func.func @kernel(%arg0: i32, %arg1: i32, %arg2: memref<128x147xbf16, #tpu.memory_space<vmem>>, %arg3: memref<147x128xbf16, #tpu.memory_space<vmem>>, %arg4: memref<1x128xf32, #tpu.memory_space<vmem>>, %arg5: memref<128x128xbf16, #tpu.memory_space<vmem>>) attributes {dimension_semantics = [#tpu.dimension_semantics<parallel>, #tpu.dimension_semantics<parallel>], iteration_bounds = array<i64: 1, 1>, scalar_prefetch = 0 : i64, scratch_operands = 0 : i64, tpu.core_type = #tpu.core_type<tc>, window_params = [{transform_indices = @transform_0, window_bounds = array<i64: 128, 147>}, {transform_indices = @transform_1, window_bounds = array<i64: 147, 128>}, {transform_indices = @transform_2, window_bounds = array<i64: 1, 128>}, {transform_indices = @transform_3, window_bounds = array<i64: 128, 128>}]} {
    %c0 = arith.constant 0 : index
    %c0_0 = arith.constant 0 : index
    %0 = vector.load %arg2[%c0, %c0_0] : memref<128x147xbf16, #tpu.memory_space<vmem>>, vector<128x147xbf16>
    %c0_1 = arith.constant 0 : index
    %c0_2 = arith.constant 0 : index
    %1 = vector.load %arg3[%c0_1, %c0_2] : memref<147x128xbf16, #tpu.memory_space<vmem>>, vector<147x128xbf16>
    %cst = arith.constant dense<0.000000e+00> : vector<128x128xf32>
    %2 = tpu.matmul %0, %1, %cst {dimension_numbers = #tpu.dot_dimension_numbers<[1], [0], [0], [1], [0, 0, 1, 1], [], []>} : vector<128x147xbf16>, vector<147x128xbf16>, vector<128x128xf32> -> vector<128x128xf32>
    %c0_3 = arith.constant 0 : index
    %c0_4 = arith.constant 0 : index
    %3 = vector.load %arg4[%c0_3, %c0_4] : memref<1x128xf32, #tpu.memory_space<vmem>>, vector<1x128xf32>
    %4 = vector.broadcast %3 : vector<1x128xf32> to vector<128x128xf32>
    %5 = arith.addf %2, %4 : vector<128x128xf32>
    %cst_5 = arith.constant 0.000000e+00 : f32
    %6 = vector.broadcast %cst_5 : f32 to vector<128x128xf32>
    %7 = arith.maximumf %5, %6 : vector<128x128xf32>
    %8 = arith.truncf %7 : vector<128x128xf32> to vector<128x128xbf16>
    %c0_6 = arith.constant 0 : index
    %c0_7 = arith.constant 0 : index
    %9 = vector.load %arg5[%c0_6, %c0_7] : memref<128x128xbf16, #tpu.memory_space<vmem>>, vector<128x128xbf16>
    tpu.vector_store %arg5[%c0_6, %c0_7], %8 {strides = array<i32>} : memref<128x128xbf16, #tpu.memory_space<vmem>>, vector<128x128xbf16>,
    return
  }
  func.func @transform_0(%arg0: i32, %arg1: i32) -> (i32, i32) {
    %c0_i32 = arith.constant 0 : i32
    %c0_i32_0 = arith.constant 0 : i32
    return %arg0, %c0_i32 : i32, i32
  }
  func.func @transform_1(%arg0: i32, %arg1: i32) -> (i32, i32) {
    %c0_i32 = arith.constant 0 : i32
    %c0_i32_0 = arith.constant 0 : i32
    return %c0_i32, %arg1 : i32, i32
  }
  func.func @transform_2(%arg0: i32, %arg1: i32) -> (i32, i32) {
    %c0_i32 = arith.constant 0 : i32
    %c0_i32_0 = arith.constant 0 : i32
    return %c0_i32, %arg1 : i32, i32
  }
  func.func @transform_3(%arg0: i32, %arg1: i32) -> (i32, i32) {
    %c0_i32 = arith.constant 0 : i32
    return %arg0, %arg1 : i32, i32
  }
}

module attributes {stable_mosaic.version = 11 : i64} {
  func.func @kernel(%arg0: i32, %arg1: i32, %arg2: memref<32x128xbf16, #tpu.memory_space<vmem>>, %arg3: memref<128x128xbf16, #tpu.memory_space<vmem>>, %arg4: memref<1x128xf32, #tpu.memory_space<vmem>>, %arg5: memref<32x128xbf16, #tpu.memory_space<vmem>>) attributes {dimension_semantics = [#tpu.dimension_semantics<parallel>, #tpu.dimension_semantics<parallel>], iteration_bounds = array<i64: 1, 1>, scalar_prefetch = 0 : i64, scratch_operands = 0 : i64, tpu.core_type = #tpu.core_type<tc>, window_params = [{transform_indices = @transform_0, window_bounds = array<i64: 32, 128>}, {transform_indices = @transform_1, window_bounds = array<i64: 128, 128>}, {transform_indices = @transform_2, window_bounds = array<i64: 1, 128>}, {transform_indices = @transform_3, window_bounds = array<i64: 32, 128>}]} {
    %c0 = arith.constant 0 : index
    %c0_0 = arith.constant 0 : index
    %0 = vector.load %arg2[%c0, %c0_0] : memref<32x128xbf16, #tpu.memory_space<vmem>>, vector<32x128xbf16>
    %c0_1 = arith.constant 0 : index
    %c0_2 = arith.constant 0 : index
    %1 = vector.load %arg3[%c0_1, %c0_2] : memref<128x128xbf16, #tpu.memory_space<vmem>>, vector<128x128xbf16>
    %cst = arith.constant dense<0.000000e+00> : vector<32x128xf32>
    %2 = tpu.matmul %0, %1, %cst {dimension_numbers = #tpu.dot_dimension_numbers<[1], [0], [0], [1], [0, 0, 1, 1], [], []>} : vector<32x128xbf16>, vector<128x128xbf16>, vector<32x128xf32> -> vector<32x128xf32>
    %c0_3 = arith.constant 0 : index
    %c0_4 = arith.constant 0 : index
    %3 = vector.load %arg4[%c0_3, %c0_4] : memref<1x128xf32, #tpu.memory_space<vmem>>, vector<1x128xf32>
    %4 = vector.broadcast %3 : vector<1x128xf32> to vector<32x128xf32>
    %5 = arith.addf %2, %4 : vector<32x128xf32>
    %cst_5 = arith.constant 0.000000e+00 : f32
    %6 = vector.broadcast %cst_5 : f32 to vector<32x128xf32>
    %7 = arith.maximumf %5, %6 : vector<32x128xf32>
    %8 = arith.truncf %7 : vector<32x128xf32> to vector<32x128xbf16>
    %c0_6 = arith.constant 0 : index
    %c0_7 = arith.constant 0 : index
    %9 = vector.load %arg5[%c0_6, %c0_7] : memref<32x128xbf16, #tpu.memory_space<vmem>>, vector<32x128xbf16>
    tpu.vector_store %arg5[%c0_6, %c0_7], %8 {strides = array<i32>} : memref<32x128xbf16, #tpu.memory_space<vmem>>, vector<32x128xbf16>,
    return
  }
  func.func @transform_0(%arg0: i32, %arg1: i32) -> (i32, i32) {
    %c0_i32 = arith.constant 0 : i32
    %c0_i32_0 = arith.constant 0 : i32
    return %arg0, %c0_i32 : i32, i32
  }
  func.func @transform_1(%arg0: i32, %arg1: i32) -> (i32, i32) {
    %c0_i32 = arith.constant 0 : i32
    %c0_i32_0 = arith.constant 0 : i32
    return %c0_i32, %arg1 : i32, i32
  }
  func.func @transform_2(%arg0: i32, %arg1: i32) -> (i32, i32) {
    %c0_i32 = arith.constant 0 : i32
    %c0_i32_0 = arith.constant 0 : i32
    return %c0_i32, %arg1 : i32, i32
  }
  func.func @transform_3(%arg0: i32, %arg1: i32) -> (i32, i32) {
    %c0_i32 = arith.constant 0 : i32
    return %arg0, %arg1 : i32, i32
  }
}

module attributes {stable_mosaic.version = 11 : i64} {
  func.func @kernel(%arg0: i32, %arg1: memref<1x5x5x128xbf16, #tpu.memory_space<vmem>>, %arg2: memref<1x5x5x128xbf16, #tpu.memory_space<vmem>>, %arg3: memref<1x5x5x128xbf16, #tpu.memory_space<vmem>>, %arg4: memref<1x5x5x128xbf16, #tpu.memory_space<vmem>>, %arg5: memref<1x4x4x128xbf16, #tpu.memory_space<vmem>>) attributes {dimension_semantics = [#tpu.dimension_semantics<parallel>], iteration_bounds = array<i64: 2>, scalar_prefetch = 0 : i64, scratch_operands = 0 : i64, tpu.core_type = #tpu.core_type<tc>, window_params = [{transform_indices = @transform_0, window_bounds = array<i64: 1, 5, 5, 128>}, {transform_indices = @transform_1, window_bounds = array<i64: 1, 5, 5, 128>}, {transform_indices = @transform_2, window_bounds = array<i64: 1, 5, 5, 128>}, {transform_indices = @transform_3, window_bounds = array<i64: 1, 5, 5, 128>}, {transform_indices = @transform_4, window_bounds = array<i64: 1, 4, 4, 128>}]} {
    %c0 = arith.constant 0 : index
    %c0_0 = arith.constant 0 : index
    %c0_1 = arith.constant 0 : index
    %c0_2 = arith.constant 0 : index
    %0 = vector.load %arg1[%c0, %c0_0, %c0_1, %c0_2] : memref<1x5x5x128xbf16, #tpu.memory_space<vmem>>, vector<1x4x4x128xbf16>
    %1 = vector.shape_cast %0 : vector<1x4x4x128xbf16> to vector<4x4x128xbf16>
    %c0_3 = arith.constant 0 : index
    %c0_4 = arith.constant 0 : index
    %c0_5 = arith.constant 0 : index
    %c0_6 = arith.constant 0 : index
    %2 = vector.load %arg2[%c0_3, %c0_4, %c0_5, %c0_6] : memref<1x5x5x128xbf16, #tpu.memory_space<vmem>>, vector<1x4x4x128xbf16>
    %3 = vector.shape_cast %2 : vector<1x4x4x128xbf16> to vector<4x4x128xbf16>
    %4 = arith.maximumf %1, %3 : vector<4x4x128xbf16>
    %c0_7 = arith.constant 0 : index
    %c0_8 = arith.constant 0 : index
    %c1 = arith.constant 1 : index
    %c0_9 = arith.constant 0 : index
    %5 = vector.load %arg1[%c0_7, %c0_8, %c1, %c0_9] : memref<1x5x5x128xbf16, #tpu.memory_space<vmem>>, vector<1x4x4x128xbf16>
    %6 = vector.shape_cast %5 : vector<1x4x4x128xbf16> to vector<4x4x128xbf16>
    %7 = arith.maximumf %4, %6 : vector<4x4x128xbf16>
    %c0_10 = arith.constant 0 : index
    %c0_11 = arith.constant 0 : index
    %c0_12 = arith.constant 0 : index
    %c0_13 = arith.constant 0 : index
    %8 = vector.load %arg3[%c0_10, %c0_11, %c0_12, %c0_13] : memref<1x5x5x128xbf16, #tpu.memory_space<vmem>>, vector<1x4x4x128xbf16>
    %9 = vector.shape_cast %8 : vector<1x4x4x128xbf16> to vector<4x4x128xbf16>
    %10 = arith.maximumf %7, %9 : vector<4x4x128xbf16>
    %c0_14 = arith.constant 0 : index
    %c0_15 = arith.constant 0 : index
    %c0_16 = arith.constant 0 : index
    %c0_17 = arith.constant 0 : index
    %11 = vector.load %arg4[%c0_14, %c0_15, %c0_16, %c0_17] : memref<1x5x5x128xbf16, #tpu.memory_space<vmem>>, vector<1x4x4x128xbf16>
    %12 = vector.shape_cast %11 : vector<1x4x4x128xbf16> to vector<4x4x128xbf16>
    %13 = arith.maximumf %10, %12 : vector<4x4x128xbf16>
    %c0_18 = arith.constant 0 : index
    %c0_19 = arith.constant 0 : index
    %c1_20 = arith.constant 1 : index
    %c0_21 = arith.constant 0 : index
    %14 = vector.load %arg3[%c0_18, %c0_19, %c1_20, %c0_21] : memref<1x5x5x128xbf16, #tpu.memory_space<vmem>>, vector<1x4x4x128xbf16>
    %15 = vector.shape_cast %14 : vector<1x4x4x128xbf16> to vector<4x4x128xbf16>
    %16 = arith.maximumf %13, %15 : vector<4x4x128xbf16>
    %c0_22 = arith.constant 0 : index
    %c1_23 = arith.constant 1 : index
    %c0_24 = arith.constant 0 : index
    %c0_25 = arith.constant 0 : index
    %17 = vector.load %arg1[%c0_22, %c1_23, %c0_24, %c0_25] : memref<1x5x5x128xbf16, #tpu.memory_space<vmem>>, vector<1x4x4x128xbf16>
    %18 = vector.shape_cast %17 : vector<1x4x4x128xbf16> to vector<4x4x128xbf16>
    %19 = arith.maximumf %16, %18 : vector<4x4x128xbf16>
    %c0_26 = arith.constant 0 : index
    %c1_27 = arith.constant 1 : index
    %c0_28 = arith.constant 0 : index
    %c0_29 = arith.constant 0 : index
    %20 = vector.load %arg2[%c0_26, %c1_27, %c0_28, %c0_29] : memref<1x5x5x128xbf16, #tpu.memory_space<vmem>>, vector<1x4x4x128xbf16>
    %21 = vector.shape_cast %20 : vector<1x4x4x128xbf16> to vector<4x4x128xbf16>
    %22 = arith.maximumf %19, %21 : vector<4x4x128xbf16>
    %c0_30 = arith.constant 0 : index
    %c1_31 = arith.constant 1 : index
    %c1_32 = arith.constant 1 : index
    %c0_33 = arith.constant 0 : index
    %23 = vector.load %arg1[%c0_30, %c1_31, %c1_32, %c0_33] : memref<1x5x5x128xbf16, #tpu.memory_space<vmem>>, vector<1x4x4x128xbf16>
    %24 = vector.shape_cast %23 : vector<1x4x4x128xbf16> to vector<4x4x128xbf16>
    %25 = arith.maximumf %22, %24 : vector<4x4x128xbf16>
    %c0_34 = arith.constant 0 : index
    %c0_35 = arith.constant 0 : index
    %c0_36 = arith.constant 0 : index
    %c0_37 = arith.constant 0 : index
    %26 = vector.load %arg5[%c0_34, %c0_35, %c0_36, %c0_37] : memref<1x4x4x128xbf16, #tpu.memory_space<vmem>>, vector<1x4x4x128xbf16>
    %27 = vector.shape_cast %26 : vector<1x4x4x128xbf16> to vector<4x4x128xbf16>
    %28 = vector.shape_cast %25 : vector<4x4x128xbf16> to vector<1x4x4x128xbf16>
    tpu.vector_store %arg5[%c0_34, %c0_35, %c0_36, %c0_37], %28 {strides = array<i32>} : memref<1x4x4x128xbf16, #tpu.memory_space<vmem>>, vector<1x4x4x128xbf16>,
    return
  }
  func.func @transform_0(%arg0: i32) -> (i32, i32, i32, i32) {
    %c0_i32 = arith.constant 0 : i32
    %c0_i32_0 = arith.constant 0 : i32
    %c0_i32_1 = arith.constant 0 : i32
    %c0_i32_2 = arith.constant 0 : i32
    return %arg0, %c0_i32, %c0_i32_0, %c0_i32_1 : i32, i32, i32, i32
  }
  func.func @transform_1(%arg0: i32) -> (i32, i32, i32, i32) {
    %c0_i32 = arith.constant 0 : i32
    %c0_i32_0 = arith.constant 0 : i32
    %c0_i32_1 = arith.constant 0 : i32
    %c0_i32_2 = arith.constant 0 : i32
    return %arg0, %c0_i32, %c0_i32_0, %c0_i32_1 : i32, i32, i32, i32
  }
  func.func @transform_2(%arg0: i32) -> (i32, i32, i32, i32) {
    %c0_i32 = arith.constant 0 : i32
    %c0_i32_0 = arith.constant 0 : i32
    %c0_i32_1 = arith.constant 0 : i32
    %c0_i32_2 = arith.constant 0 : i32
    return %arg0, %c0_i32, %c0_i32_0, %c0_i32_1 : i32, i32, i32, i32
  }
  func.func @transform_3(%arg0: i32) -> (i32, i32, i32, i32) {
    %c0_i32 = arith.constant 0 : i32
    %c0_i32_0 = arith.constant 0 : i32
    %c0_i32_1 = arith.constant 0 : i32
    %c0_i32_2 = arith.constant 0 : i32
    return %arg0, %c0_i32, %c0_i32_0, %c0_i32_1 : i32, i32, i32, i32
  }
  func.func @transform_4(%arg0: i32) -> (i32, i32, i32, i32) {
    %c0_i32 = arith.constant 0 : i32
    %c0_i32_0 = arith.constant 0 : i32
    %c0_i32_1 = arith.constant 0 : i32
    %c0_i32_2 = arith.constant 0 : i32
    return %arg0, %c0_i32, %c0_i32_0, %c0_i32_1 : i32, i32, i32, i32
  }
}

module attributes {stable_mosaic.version = 11 : i64} {
  func.func @kernel(%arg0: i32, %arg1: i32, %arg2: memref<32x128xbf16, #tpu.memory_space<vmem>>, %arg3: memref<128x128xbf16, #tpu.memory_space<vmem>>, %arg4: memref<1x128xf32, #tpu.memory_space<vmem>>, %arg5: memref<32x128xbf16, #tpu.memory_space<vmem>>) attributes {dimension_semantics = [#tpu.dimension_semantics<parallel>, #tpu.dimension_semantics<parallel>], iteration_bounds = array<i64: 1, 20>, scalar_prefetch = 0 : i64, scratch_operands = 0 : i64, tpu.core_type = #tpu.core_type<tc>, window_params = [{transform_indices = @transform_0, window_bounds = array<i64: 32, 128>}, {transform_indices = @transform_1, window_bounds = array<i64: 128, 128>}, {transform_indices = @transform_2, window_bounds = array<i64: 1, 128>}, {transform_indices = @transform_3, window_bounds = array<i64: 32, 128>}]} {
    %c0 = arith.constant 0 : index
    %c0_0 = arith.constant 0 : index
    %0 = vector.load %arg2[%c0, %c0_0] : memref<32x128xbf16, #tpu.memory_space<vmem>>, vector<32x128xbf16>
    %c0_1 = arith.constant 0 : index
    %c0_2 = arith.constant 0 : index
    %1 = vector.load %arg3[%c0_1, %c0_2] : memref<128x128xbf16, #tpu.memory_space<vmem>>, vector<128x128xbf16>
    %cst = arith.constant dense<0.000000e+00> : vector<32x128xf32>
    %2 = tpu.matmul %0, %1, %cst {dimension_numbers = #tpu.dot_dimension_numbers<[1], [0], [0], [1], [0, 0, 1, 1], [], []>} : vector<32x128xbf16>, vector<128x128xbf16>, vector<32x128xf32> -> vector<32x128xf32>
    %c0_3 = arith.constant 0 : index
    %c0_4 = arith.constant 0 : index
    %3 = vector.load %arg4[%c0_3, %c0_4] : memref<1x128xf32, #tpu.memory_space<vmem>>, vector<1x128xf32>
    %4 = vector.broadcast %3 : vector<1x128xf32> to vector<32x128xf32>
    %5 = arith.addf %2, %4 : vector<32x128xf32>
    %6 = arith.truncf %5 : vector<32x128xf32> to vector<32x128xbf16>
    %c0_5 = arith.constant 0 : index
    %c0_6 = arith.constant 0 : index
    %7 = vector.load %arg5[%c0_5, %c0_6] : memref<32x128xbf16, #tpu.memory_space<vmem>>, vector<32x128xbf16>
    tpu.vector_store %arg5[%c0_5, %c0_6], %6 {strides = array<i32>} : memref<32x128xbf16, #tpu.memory_space<vmem>>, vector<32x128xbf16>,
    return
  }
  func.func @transform_0(%arg0: i32, %arg1: i32) -> (i32, i32) {
    %c0_i32 = arith.constant 0 : i32
    %c0_i32_0 = arith.constant 0 : i32
    return %arg0, %c0_i32 : i32, i32
  }
  func.func @transform_1(%arg0: i32, %arg1: i32) -> (i32, i32) {
    %c0_i32 = arith.constant 0 : i32
    %c0_i32_0 = arith.constant 0 : i32
    return %c0_i32, %arg1 : i32, i32
  }
  func.func @transform_2(%arg0: i32, %arg1: i32) -> (i32, i32) {
    %c0_i32 = arith.constant 0 : i32
    %c0_i32_0 = arith.constant 0 : i32
    return %c0_i32, %arg1 : i32, i32
  }
  func.func @transform_3(%arg0: i32, %arg1: i32) -> (i32, i32) {
    %c0_i32 = arith.constant 0 : i32
    return %arg0, %arg1 : i32, i32
  }
}

module attributes {stable_mosaic.version = 11 : i64} {
  func.func @kernel(%arg0: i32, %arg1: i32, %arg2: memref<1x24x384xbf16, #tpu.memory_space<vmem>>, %arg3: memref<3x384x128xbf16, #tpu.memory_space<vmem>>, %arg4: memref<1x128xf32, #tpu.memory_space<vmem>>, %arg5: memref<1x16x128xbf16, #tpu.memory_space<vmem>>) attributes {dimension_semantics = [#tpu.dimension_semantics<parallel>, #tpu.dimension_semantics<parallel>], iteration_bounds = array<i64: 2, 1>, scalar_prefetch = 0 : i64, scratch_operands = 0 : i64, tpu.core_type = #tpu.core_type<tc>, window_params = [{transform_indices = @transform_0, window_bounds = array<i64: 1, 24, 384>}, {transform_indices = @transform_1, window_bounds = array<i64: 3, 384, 128>}, {transform_indices = @transform_2, window_bounds = array<i64: 1, 128>}, {transform_indices = @transform_3, window_bounds = array<i64: 1, 16, 128>}]} {
    %c0 = arith.constant 0 : index
    %c0_0 = arith.constant 0 : index
    %c0_1 = arith.constant 0 : index
    %0 = vector.load %arg2[%c0, %c0_0, %c0_1] : memref<1x24x384xbf16, #tpu.memory_space<vmem>>, vector<1x16x384xbf16>
    %1 = vector.shape_cast %0 : vector<1x16x384xbf16> to vector<16x384xbf16>
    %c0_2 = arith.constant 0 : index
    %c0_3 = arith.constant 0 : index
    %c0_4 = arith.constant 0 : index
    %2 = vector.load %arg3[%c0_2, %c0_3, %c0_4] : memref<3x384x128xbf16, #tpu.memory_space<vmem>>, vector<1x384x128xbf16>
    %3 = vector.shape_cast %2 : vector<1x384x128xbf16> to vector<384x128xbf16>
    %cst = arith.constant dense<0.000000e+00> : vector<16x128xf32>
    %4 = tpu.matmul %1, %3, %cst {dimension_numbers = #tpu.dot_dimension_numbers<[1], [0], [0], [1], [0, 0, 1, 1], [], []>} : vector<16x384xbf16>, vector<384x128xbf16>, vector<16x128xf32> -> vector<16x128xf32>
    %c0_5 = arith.constant 0 : index
    %c4 = arith.constant 4 : index
    %c0_6 = arith.constant 0 : index
    %5 = vector.load %arg2[%c0_5, %c4, %c0_6] : memref<1x24x384xbf16, #tpu.memory_space<vmem>>, vector<1x16x384xbf16>
    %6 = vector.shape_cast %5 : vector<1x16x384xbf16> to vector<16x384xbf16>
    %c1 = arith.constant 1 : index
    %c0_7 = arith.constant 0 : index
    %c0_8 = arith.constant 0 : index
    %7 = vector.load %arg3[%c1, %c0_7, %c0_8] : memref<3x384x128xbf16, #tpu.memory_space<vmem>>, vector<1x384x128xbf16>
    %8 = vector.shape_cast %7 : vector<1x384x128xbf16> to vector<384x128xbf16>
    %cst_9 = arith.constant dense<0.000000e+00> : vector<16x128xf32>
    %9 = tpu.matmul %6, %8, %cst_9 {dimension_numbers = #tpu.dot_dimension_numbers<[1], [0], [0], [1], [0, 0, 1, 1], [], []>} : vector<16x384xbf16>, vector<384x128xbf16>, vector<16x128xf32> -> vector<16x128xf32>
    %10 = arith.addf %4, %9 : vector<16x128xf32>
    %c0_10 = arith.constant 0 : index
    %c8 = arith.constant 8 : index
    %c0_11 = arith.constant 0 : index
    %11 = vector.load %arg2[%c0_10, %c8, %c0_11] : memref<1x24x384xbf16, #tpu.memory_space<vmem>>, vector<1x16x384xbf16>
    %12 = vector.shape_cast %11 : vector<1x16x384xbf16> to vector<16x384xbf16>
    %c2 = arith.constant 2 : index
    %c0_12 = arith.constant 0 : index
    %c0_13 = arith.constant 0 : index
    %13 = vector.load %arg3[%c2, %c0_12, %c0_13] : memref<3x384x128xbf16, #tpu.memory_space<vmem>>, vector<1x384x128xbf16>
    %14 = vector.shape_cast %13 : vector<1x384x128xbf16> to vector<384x128xbf16>
    %cst_14 = arith.constant dense<0.000000e+00> : vector<16x128xf32>
    %15 = tpu.matmul %12, %14, %cst_14 {dimension_numbers = #tpu.dot_dimension_numbers<[1], [0], [0], [1], [0, 0, 1, 1], [], []>} : vector<16x384xbf16>, vector<384x128xbf16>, vector<16x128xf32> -> vector<16x128xf32>
    %16 = arith.addf %10, %15 : vector<16x128xf32>
    %c0_15 = arith.constant 0 : index
    %c0_16 = arith.constant 0 : index
    %17 = vector.load %arg4[%c0_15, %c0_16] : memref<1x128xf32, #tpu.memory_space<vmem>>, vector<1x128xf32>
    %18 = vector.broadcast %17 : vector<1x128xf32> to vector<16x128xf32>
    %19 = arith.addf %16, %18 : vector<16x128xf32>
    %cst_17 = arith.constant 0.000000e+00 : f32
    %20 = vector.broadcast %cst_17 : f32 to vector<16x128xf32>
    %21 = arith.maximumf %19, %20 : vector<16x128xf32>
    %22 = arith.truncf %21 : vector<16x128xf32> to vector<16x128xbf16>
    %c0_18 = arith.constant 0 : index
    %c0_19 = arith.constant 0 : index
    %c0_20 = arith.constant 0 : index
    %23 = vector.load %arg5[%c0_18, %c0_19, %c0_20] : memref<1x16x128xbf16, #tpu.memory_space<vmem>>, vector<1x16x128xbf16>
    %24 = vector.shape_cast %23 : vector<1x16x128xbf16> to vector<16x128xbf16>
    %25 = vector.shape_cast %22 : vector<16x128xbf16> to vector<1x16x128xbf16>
    tpu.vector_store %arg5[%c0_18, %c0_19, %c0_20], %25 {strides = array<i32>} : memref<1x16x128xbf16, #tpu.memory_space<vmem>>, vector<1x16x128xbf16>,
    return
  }
  func.func @transform_0(%arg0: i32, %arg1: i32) -> (i32, i32, i32) {
    %c0_i32 = arith.constant 0 : i32
    %c0_i32_0 = arith.constant 0 : i32
    %c0_i32_1 = arith.constant 0 : i32
    return %arg0, %c0_i32, %c0_i32_0 : i32, i32, i32
  }
  func.func @transform_1(%arg0: i32, %arg1: i32) -> (i32, i32, i32) {
    %c0_i32 = arith.constant 0 : i32
    %c0_i32_0 = arith.constant 0 : i32
    %c0_i32_1 = arith.constant 0 : i32
    return %c0_i32, %c0_i32_0, %arg1 : i32, i32, i32
  }
  func.func @transform_2(%arg0: i32, %arg1: i32) -> (i32, i32) {
    %c0_i32 = arith.constant 0 : i32
    %c0_i32_0 = arith.constant 0 : i32
    return %c0_i32, %arg1 : i32, i32
  }
  func.func @transform_3(%arg0: i32, %arg1: i32) -> (i32, i32, i32) {
    %c0_i32 = arith.constant 0 : i32
    %c0_i32_0 = arith.constant 0 : i32
    return %arg0, %c0_i32, %arg1 : i32, i32, i32
  }
}

module attributes {stable_mosaic.version = 11 : i64} {
  func.func @kernel(%arg0: i32, %arg1: i32, %arg2: memref<32x128xbf16, #tpu.memory_space<vmem>>, %arg3: memref<128x128xbf16, #tpu.memory_space<vmem>>, %arg4: memref<1x128xf32, #tpu.memory_space<vmem>>, %arg5: memref<32x128xbf16, #tpu.memory_space<vmem>>, %arg6: memref<32x128xbf16, #tpu.memory_space<vmem>>) attributes {dimension_semantics = [#tpu.dimension_semantics<parallel>, #tpu.dimension_semantics<parallel>], iteration_bounds = array<i64: 1, 1>, scalar_prefetch = 0 : i64, scratch_operands = 0 : i64, tpu.core_type = #tpu.core_type<tc>, window_params = [{transform_indices = @transform_0, window_bounds = array<i64: 32, 128>}, {transform_indices = @transform_1, window_bounds = array<i64: 128, 128>}, {transform_indices = @transform_2, window_bounds = array<i64: 1, 128>}, {transform_indices = @transform_3, window_bounds = array<i64: 32, 128>}, {transform_indices = @transform_4, window_bounds = array<i64: 32, 128>}]} {
    %c0 = arith.constant 0 : index
    %c0_0 = arith.constant 0 : index
    %0 = vector.load %arg2[%c0, %c0_0] : memref<32x128xbf16, #tpu.memory_space<vmem>>, vector<32x128xbf16>
    %c0_1 = arith.constant 0 : index
    %c0_2 = arith.constant 0 : index
    %1 = vector.load %arg3[%c0_1, %c0_2] : memref<128x128xbf16, #tpu.memory_space<vmem>>, vector<128x128xbf16>
    %cst = arith.constant dense<0.000000e+00> : vector<32x128xf32>
    %2 = tpu.matmul %0, %1, %cst {dimension_numbers = #tpu.dot_dimension_numbers<[1], [0], [0], [1], [0, 0, 1, 1], [], []>} : vector<32x128xbf16>, vector<128x128xbf16>, vector<32x128xf32> -> vector<32x128xf32>
    %c0_3 = arith.constant 0 : index
    %c0_4 = arith.constant 0 : index
    %3 = vector.load %arg4[%c0_3, %c0_4] : memref<1x128xf32, #tpu.memory_space<vmem>>, vector<1x128xf32>
    %4 = vector.broadcast %3 : vector<1x128xf32> to vector<32x128xf32>
    %5 = arith.addf %2, %4 : vector<32x128xf32>
    %c0_5 = arith.constant 0 : index
    %c0_6 = arith.constant 0 : index
    %6 = vector.load %arg5[%c0_5, %c0_6] : memref<32x128xbf16, #tpu.memory_space<vmem>>, vector<32x128xbf16>
    %7 = arith.extf %6 : vector<32x128xbf16> to vector<32x128xf32>
    %8 = arith.addf %5, %7 : vector<32x128xf32>
    %cst_7 = arith.constant 0.000000e+00 : f32
    %9 = vector.broadcast %cst_7 : f32 to vector<32x128xf32>
    %10 = arith.maximumf %8, %9 : vector<32x128xf32>
    %11 = arith.truncf %10 : vector<32x128xf32> to vector<32x128xbf16>
    %c0_8 = arith.constant 0 : index
    %c0_9 = arith.constant 0 : index
    %12 = vector.load %arg6[%c0_8, %c0_9] : memref<32x128xbf16, #tpu.memory_space<vmem>>, vector<32x128xbf16>
    tpu.vector_store %arg6[%c0_8, %c0_9], %11 {strides = array<i32>} : memref<32x128xbf16, #tpu.memory_space<vmem>>, vector<32x128xbf16>,
    return
  }
  func.func @transform_0(%arg0: i32, %arg1: i32) -> (i32, i32) {
    %c0_i32 = arith.constant 0 : i32
    %c0_i32_0 = arith.constant 0 : i32
    return %arg0, %c0_i32 : i32, i32
  }
  func.func @transform_1(%arg0: i32, %arg1: i32) -> (i32, i32) {
    %c0_i32 = arith.constant 0 : i32
    %c0_i32_0 = arith.constant 0 : i32
    return %c0_i32, %arg1 : i32, i32
  }
  func.func @transform_2(%arg0: i32, %arg1: i32) -> (i32, i32) {
    %c0_i32 = arith.constant 0 : i32
    %c0_i32_0 = arith.constant 0 : i32
    return %c0_i32, %arg1 : i32, i32
  }
  func.func @transform_3(%arg0: i32, %arg1: i32) -> (i32, i32) {
    %c0_i32 = arith.constant 0 : i32
    return %arg0, %arg1 : i32, i32
  }
  func.func @transform_4(%arg0: i32, %arg1: i32) -> (i32, i32) {
    %c0_i32 = arith.constant 0 : i32
    return %arg0, %arg1 : i32, i32
  }
}

module attributes {stable_mosaic.version = 11 : i64} {
  func.func @kernel(%arg0: i32, %arg1: i32, %arg2: memref<1x24x1536xbf16, #tpu.memory_space<vmem>>, %arg3: memref<3x1536x128xbf16, #tpu.memory_space<vmem>>, %arg4: memref<1x128xf32, #tpu.memory_space<vmem>>, %arg5: memref<1x16x128xbf16, #tpu.memory_space<vmem>>) attributes {dimension_semantics = [#tpu.dimension_semantics<parallel>, #tpu.dimension_semantics<parallel>], iteration_bounds = array<i64: 2, 4>, scalar_prefetch = 0 : i64, scratch_operands = 0 : i64, tpu.core_type = #tpu.core_type<tc>, window_params = [{transform_indices = @transform_0, window_bounds = array<i64: 1, 24, 1536>}, {transform_indices = @transform_1, window_bounds = array<i64: 3, 1536, 128>}, {transform_indices = @transform_2, window_bounds = array<i64: 1, 128>}, {transform_indices = @transform_3, window_bounds = array<i64: 1, 16, 128>}]} {
    %c0 = arith.constant 0 : index
    %c0_0 = arith.constant 0 : index
    %c0_1 = arith.constant 0 : index
    %0 = vector.load %arg2[%c0, %c0_0, %c0_1] : memref<1x24x1536xbf16, #tpu.memory_space<vmem>>, vector<1x16x1536xbf16>
    %1 = vector.shape_cast %0 : vector<1x16x1536xbf16> to vector<16x1536xbf16>
    %cst = arith.constant 0.000000e+00 : bf16
    %2 = vector.broadcast %cst : bf16 to vector<16x1536xbf16>
    %3 = arith.maximumf %1, %2 : vector<16x1536xbf16>
    %c0_2 = arith.constant 0 : index
    %c0_3 = arith.constant 0 : index
    %c0_4 = arith.constant 0 : index
    %4 = vector.load %arg3[%c0_2, %c0_3, %c0_4] : memref<3x1536x128xbf16, #tpu.memory_space<vmem>>, vector<1x1536x128xbf16>
    %5 = vector.shape_cast %4 : vector<1x1536x128xbf16> to vector<1536x128xbf16>
    %cst_5 = arith.constant dense<0.000000e+00> : vector<16x128xf32>
    %6 = tpu.matmul %3, %5, %cst_5 {dimension_numbers = #tpu.dot_dimension_numbers<[1], [0], [0], [1], [0, 0, 1, 1], [], []>} : vector<16x1536xbf16>, vector<1536x128xbf16>, vector<16x128xf32> -> vector<16x128xf32>
    %c0_6 = arith.constant 0 : index
    %c4 = arith.constant 4 : index
    %c0_7 = arith.constant 0 : index
    %7 = vector.load %arg2[%c0_6, %c4, %c0_7] : memref<1x24x1536xbf16, #tpu.memory_space<vmem>>, vector<1x16x1536xbf16>
    %8 = vector.shape_cast %7 : vector<1x16x1536xbf16> to vector<16x1536xbf16>
    %cst_8 = arith.constant 0.000000e+00 : bf16
    %9 = vector.broadcast %cst_8 : bf16 to vector<16x1536xbf16>
    %10 = arith.maximumf %8, %9 : vector<16x1536xbf16>
    %c1 = arith.constant 1 : index
    %c0_9 = arith.constant 0 : index
    %c0_10 = arith.constant 0 : index
    %11 = vector.load %arg3[%c1, %c0_9, %c0_10] : memref<3x1536x128xbf16, #tpu.memory_space<vmem>>, vector<1x1536x128xbf16>
    %12 = vector.shape_cast %11 : vector<1x1536x128xbf16> to vector<1536x128xbf16>
    %cst_11 = arith.constant dense<0.000000e+00> : vector<16x128xf32>
    %13 = tpu.matmul %10, %12, %cst_11 {dimension_numbers = #tpu.dot_dimension_numbers<[1], [0], [0], [1], [0, 0, 1, 1], [], []>} : vector<16x1536xbf16>, vector<1536x128xbf16>, vector<16x128xf32> -> vector<16x128xf32>
    %14 = arith.addf %6, %13 : vector<16x128xf32>
    %c0_12 = arith.constant 0 : index
    %c8 = arith.constant 8 : index
    %c0_13 = arith.constant 0 : index
    %15 = vector.load %arg2[%c0_12, %c8, %c0_13] : memref<1x24x1536xbf16, #tpu.memory_space<vmem>>, vector<1x16x1536xbf16>
    %16 = vector.shape_cast %15 : vector<1x16x1536xbf16> to vector<16x1536xbf16>
    %cst_14 = arith.constant 0.000000e+00 : bf16
    %17 = vector.broadcast %cst_14 : bf16 to vector<16x1536xbf16>
    %18 = arith.maximumf %16, %17 : vector<16x1536xbf16>
    %c2 = arith.constant 2 : index
    %c0_15 = arith.constant 0 : index
    %c0_16 = arith.constant 0 : index
    %19 = vector.load %arg3[%c2, %c0_15, %c0_16] : memref<3x1536x128xbf16, #tpu.memory_space<vmem>>, vector<1x1536x128xbf16>
    %20 = vector.shape_cast %19 : vector<1x1536x128xbf16> to vector<1536x128xbf16>
    %cst_17 = arith.constant dense<0.000000e+00> : vector<16x128xf32>
    %21 = tpu.matmul %18, %20, %cst_17 {dimension_numbers = #tpu.dot_dimension_numbers<[1], [0], [0], [1], [0, 0, 1, 1], [], []>} : vector<16x1536xbf16>, vector<1536x128xbf16>, vector<16x128xf32> -> vector<16x128xf32>
    %22 = arith.addf %14, %21 : vector<16x128xf32>
    %c0_18 = arith.constant 0 : index
    %c0_19 = arith.constant 0 : index
    %23 = vector.load %arg4[%c0_18, %c0_19] : memref<1x128xf32, #tpu.memory_space<vmem>>, vector<1x128xf32>
    %24 = vector.broadcast %23 : vector<1x128xf32> to vector<16x128xf32>
    %25 = arith.addf %22, %24 : vector<16x128xf32>
    %cst_20 = arith.constant 0.000000e+00 : f32
    %26 = vector.broadcast %cst_20 : f32 to vector<16x128xf32>
    %27 = arith.maximumf %25, %26 : vector<16x128xf32>
    %28 = arith.truncf %27 : vector<16x128xf32> to vector<16x128xbf16>
    %c0_21 = arith.constant 0 : index
    %c0_22 = arith.constant 0 : index
    %c0_23 = arith.constant 0 : index
    %29 = vector.load %arg5[%c0_21, %c0_22, %c0_23] : memref<1x16x128xbf16, #tpu.memory_space<vmem>>, vector<1x16x128xbf16>
    %30 = vector.shape_cast %29 : vector<1x16x128xbf16> to vector<16x128xbf16>
    %31 = vector.shape_cast %28 : vector<16x128xbf16> to vector<1x16x128xbf16>
    tpu.vector_store %arg5[%c0_21, %c0_22, %c0_23], %31 {strides = array<i32>} : memref<1x16x128xbf16, #tpu.memory_space<vmem>>, vector<1x16x128xbf16>,
    return
  }
  func.func @transform_0(%arg0: i32, %arg1: i32) -> (i32, i32, i32) {
    %c0_i32 = arith.constant 0 : i32
    %c0_i32_0 = arith.constant 0 : i32
    %c0_i32_1 = arith.constant 0 : i32
    return %arg0, %c0_i32, %c0_i32_0 : i32, i32, i32
  }
  func.func @transform_1(%arg0: i32, %arg1: i32) -> (i32, i32, i32) {
    %c0_i32 = arith.constant 0 : i32
    %c0_i32_0 = arith.constant 0 : i32
    %c0_i32_1 = arith.constant 0 : i32
    return %c0_i32, %c0_i32_0, %arg1 : i32, i32, i32
  }
  func.func @transform_2(%arg0: i32, %arg1: i32) -> (i32, i32) {
    %c0_i32 = arith.constant 0 : i32
    %c0_i32_0 = arith.constant 0 : i32
    return %c0_i32, %arg1 : i32, i32
  }
  func.func @transform_3(%arg0: i32, %arg1: i32) -> (i32, i32, i32) {
    %c0_i32 = arith.constant 0 : i32
    %c0_i32_0 = arith.constant 0 : i32
    return %arg0, %c0_i32, %arg1 : i32, i32, i32
  }
}

module attributes {stable_mosaic.version = 11 : i64} {
  func.func @kernel(%arg0: i32, %arg1: i32, %arg2: memref<32x512xbf16, #tpu.memory_space<vmem>>, %arg3: memref<512x128xbf16, #tpu.memory_space<vmem>>, %arg4: memref<1x128xf32, #tpu.memory_space<vmem>>, %arg5: memref<32x128xbf16, #tpu.memory_space<vmem>>, %arg6: memref<32x128xbf16, #tpu.memory_space<vmem>>) attributes {dimension_semantics = [#tpu.dimension_semantics<parallel>, #tpu.dimension_semantics<parallel>], iteration_bounds = array<i64: 1, 16>, scalar_prefetch = 0 : i64, scratch_operands = 0 : i64, tpu.core_type = #tpu.core_type<tc>, window_params = [{transform_indices = @transform_0, window_bounds = array<i64: 32, 512>}, {transform_indices = @transform_1, window_bounds = array<i64: 512, 128>}, {transform_indices = @transform_2, window_bounds = array<i64: 1, 128>}, {transform_indices = @transform_3, window_bounds = array<i64: 32, 128>}, {transform_indices = @transform_4, window_bounds = array<i64: 32, 128>}]} {
    %c0 = arith.constant 0 : index
    %c0_0 = arith.constant 0 : index
    %0 = vector.load %arg2[%c0, %c0_0] : memref<32x512xbf16, #tpu.memory_space<vmem>>, vector<32x512xbf16>
    %c0_1 = arith.constant 0 : index
    %c0_2 = arith.constant 0 : index
    %1 = vector.load %arg3[%c0_1, %c0_2] : memref<512x128xbf16, #tpu.memory_space<vmem>>, vector<512x128xbf16>
    %cst = arith.constant dense<0.000000e+00> : vector<32x128xf32>
    %2 = tpu.matmul %0, %1, %cst {dimension_numbers = #tpu.dot_dimension_numbers<[1], [0], [0], [1], [0, 0, 1, 1], [], []>} : vector<32x512xbf16>, vector<512x128xbf16>, vector<32x128xf32> -> vector<32x128xf32>
    %c0_3 = arith.constant 0 : index
    %c0_4 = arith.constant 0 : index
    %3 = vector.load %arg4[%c0_3, %c0_4] : memref<1x128xf32, #tpu.memory_space<vmem>>, vector<1x128xf32>
    %4 = vector.broadcast %3 : vector<1x128xf32> to vector<32x128xf32>
    %5 = arith.addf %2, %4 : vector<32x128xf32>
    %c0_5 = arith.constant 0 : index
    %c0_6 = arith.constant 0 : index
    %6 = vector.load %arg5[%c0_5, %c0_6] : memref<32x128xbf16, #tpu.memory_space<vmem>>, vector<32x128xbf16>
    %7 = arith.extf %6 : vector<32x128xbf16> to vector<32x128xf32>
    %8 = arith.addf %5, %7 : vector<32x128xf32>
    %cst_7 = arith.constant 0.000000e+00 : f32
    %9 = vector.broadcast %cst_7 : f32 to vector<32x128xf32>
    %10 = arith.maximumf %8, %9 : vector<32x128xf32>
    %11 = arith.truncf %10 : vector<32x128xf32> to vector<32x128xbf16>
    %c0_8 = arith.constant 0 : index
    %c0_9 = arith.constant 0 : index
    %12 = vector.load %arg6[%c0_8, %c0_9] : memref<32x128xbf16, #tpu.memory_space<vmem>>, vector<32x128xbf16>
    tpu.vector_store %arg6[%c0_8, %c0_9], %11 {strides = array<i32>} : memref<32x128xbf16, #tpu.memory_space<vmem>>, vector<32x128xbf16>,
    return
  }
  func.func @transform_0(%arg0: i32, %arg1: i32) -> (i32, i32) {
    %c0_i32 = arith.constant 0 : i32
    %c0_i32_0 = arith.constant 0 : i32
    return %arg0, %c0_i32 : i32, i32
  }
  func.func @transform_1(%arg0: i32, %arg1: i32) -> (i32, i32) {
    %c0_i32 = arith.constant 0 : i32
    %c0_i32_0 = arith.constant 0 : i32
    return %c0_i32, %arg1 : i32, i32
  }
  func.func @transform_2(%arg0: i32, %arg1: i32) -> (i32, i32) {
    %c0_i32 = arith.constant 0 : i32
    %c0_i32_0 = arith.constant 0 : i32
    return %c0_i32, %arg1 : i32, i32
  }
  func.func @transform_3(%arg0: i32, %arg1: i32) -> (i32, i32) {
    %c0_i32 = arith.constant 0 : i32
    return %arg0, %arg1 : i32, i32
  }
  func.func @transform_4(%arg0: i32, %arg1: i32) -> (i32, i32) {
    %c0_i32 = arith.constant 0 : i32
    return %arg0, %arg1 : i32, i32
  }
}

module attributes {stable_mosaic.version = 11 : i64} {
  func.func @_head_kernel(%arg0: memref<2x16x2048xbf16, #tpu.memory_space<vmem>>, %arg1: memref<2048x10xf32, #tpu.memory_space<vmem>>, %arg2: memref<1x10xf32, #tpu.memory_space<vmem>>, %arg3: memref<2x10xf32, #tpu.memory_space<vmem>>) attributes {dimension_semantics = [], scalar_prefetch = 0 : i64, scratch_operands = 0 : i64, tpu.core_type = #tpu.core_type<tc>} {
    %c0 = arith.constant 0 : index
    %c0_0 = arith.constant 0 : index
    %c0_1 = arith.constant 0 : index
    %0 = vector.load %arg0[%c0, %c0_0, %c0_1] : memref<2x16x2048xbf16, #tpu.memory_space<vmem>>, vector<2x16x2048xbf16>
    %1 = arith.extf %0 : vector<2x16x2048xbf16> to vector<2x16x2048xf32>
    %cst = arith.constant dense<0.000000e+00> : vector<2x2048xf32>
    %2 = vector.multi_reduction <add>, %1, %cst [1] : vector<2x16x2048xf32> to vector<2x2048xf32>
    %cst_2 = arith.constant 1.600000e+01 : f32
    %3 = vector.broadcast %cst_2 : f32 to vector<2x2048xf32>
    %4 = arith.divf %2, %3 : vector<2x2048xf32>
    %c0_3 = arith.constant 0 : index
    %c0_4 = arith.constant 0 : index
    %5 = vector.load %arg1[%c0_3, %c0_4] : memref<2048x10xf32, #tpu.memory_space<vmem>>, vector<2048x10xf32>
    %cst_5 = arith.constant dense<0.000000e+00> : vector<2x10xf32>
    %6 = tpu.matmul %4, %5, %cst_5 {dimension_numbers = #tpu.dot_dimension_numbers<[1], [0], [0], [1], [0, 0, 1, 1], [], []>} : vector<2x2048xf32>, vector<2048x10xf32>, vector<2x10xf32> -> vector<2x10xf32>
    %c0_6 = arith.constant 0 : index
    %c0_7 = arith.constant 0 : index
    %7 = vector.load %arg2[%c0_6, %c0_7] : memref<1x10xf32, #tpu.memory_space<vmem>>, vector<1x10xf32>
    %8 = vector.broadcast %7 : vector<1x10xf32> to vector<2x10xf32>
    %9 = arith.addf %6, %8 : vector<2x10xf32>
    %c0_8 = arith.constant 0 : index
    %c0_9 = arith.constant 0 : index
    %10 = vector.load %arg3[%c0_8, %c0_9] : memref<2x10xf32, #tpu.memory_space<vmem>>, vector<2x10xf32>
    tpu.vector_store %arg3[%c0_8, %c0_9], %9 {strides = array<i32>} : memref<2x10xf32, #tpu.memory_space<vmem>>, vector<2x10xf32>,
    return
  }
}

</mosaic_0001>

<bundles_post_ra>
// kernel: resnet50_forward.11
= control target key start
LH: loop header
LB: loop body
LE: loop exit
PB: predicated region body
PF: predicated region fallthrough
CT: control target
= control target key end

     0   :  { %s308_s1 = inlined_call_operand.vmem [shape: bf16[128,128], index: 1, kind: input, shape index: {}]   ;;  %s309_s0 = inlined_call_operand.vmem [shape: bf16[32,128], index: 0, kind: input, shape index: {}]   ;;  %s310_s2 = inlined_call_operand.vmem [shape: f32[1,128], index: 2, kind: input, shape index: {}]   ;;  %s311_s3 = inlined_call_operand.vmem [shape: bf16[32,128], index: 3, kind: output, shape index: {}]  }
   0x1   :  { %v239_v0 = vld [vmem:[%s308_s1 + $0x38] sm:$0xff]   ;;  %v240_v1 = vld [vmem:[%s308_s1 + $0x30] sm:$0xff]   ;;  %v241_v2 = vld [vmem:[%s308_s1 + $0x28] sm:$0xff]  }
   0x2   :  { %219 = vmatprep.subr.bf16.mxu0 %v239_v0  ;;  %v242_v3 = vld [vmem:[%s308_s1 + $0x20] sm:$0xff]   ;;  %v243_v5 = vld [vmem:[%s308_s1 + $0x18] sm:$0xff]   ;;  %v244_v6 = vld [vmem:[%s308_s1 + $0x10] sm:$0xff]  }
   0x3   :  { %220 = vmatpush3.bf16.msra.mxu0 %v239_v0  ;;  %v247_v4 = vld [vmem:[%s309_s0] sm:$0xff]   ;;  %v245_v7 = vld [vmem:[%s308_s1 + $0x8] sm:$0xff]  }
   0x4   :  { %221 = vmatprep.subr.bf16.mxu0 %v240_v1  ;;  %235 = vmatprep.mubr.bf16.mxu0 %v247_v4  ;;  %v246_v8 = vld [vmem:[%s308_s1] sm:$0xff]   ;;  %v248_v9 = vld [vmem:[%s309_s0 + $0x8] sm:$0xff]  }
   0x5   :  { %v179_v11 = vld [vmem:[%s310_s2] ss:$0 sm:$0xff] }
   0x7   :  { %222 = vmatpush3.bf16.msra.mxu0 %v240_v1 }
   0x8   :  { %223 = vmatprep.subr.bf16.mxu0 %v241_v2 }
   0xb   :  { %224 = vmatpush3.bf16.msra.mxu0 %v241_v2 }
   0xc   :  { %225 = vmatprep.subr.bf16.mxu0 %v242_v3 }
   0xf   :  { %226 = vmatpush3.bf16.msra.mxu0 %v242_v3 }
  0x10   :  { %227 = vmatprep.subr.bf16.mxu0 %v243_v5 }
  0x13   :  { %228 = vmatpush3.bf16.msra.mxu0 %v243_v5 }
  0x14   :  { %229 = vmatprep.subr.bf16.mxu0 %v244_v6 }
  0x17   :  { %230 = vmatpush3.bf16.msra.mxu0 %v244_v6 }
  0x18   :  { %231 = vmatprep.subr.bf16.mxu0 %v245_v7 }
  0x1b   :  { %232 = vmatpush3.bf16.msra.mxu0 %v245_v7 }
  0x1c   :  { %233 = vmatprep.subr.bf16.mxu0 %v246_v8 }
  0x1f   :  { %234 = vmatpush3.bf16.msra.mxu0 %v246_v8 }
  0x22   :  { %236 = vmatmul.mubr.bf16.vlgmr.msra.gmra.mxu0 %v248_v9 }
  0xe2   :  { %v237_v10 = vpop.f32.mrf.mxu0 }
  0xe3   :  { %v145_v13 = vadd.f32 %v237_v10, %v179_v11 }
  0xe4   :  { %v136_v12 = vpop.f32.mrf.mxu0 }
  0xe5   :  { %v137_v15 = vadd.f32 %v179_v11, %v136_v12  ;;  %v153_v18 = vmax.f32 %v145_v13, 0.0 }
  0xe6   :  { %v238_v14 = vpop.f32.mrf.mxu0 }
  0xe7   :  { %v148_v16 = vadd.f32 %v238_v14, %v179_v11  ;;  %v151_v21 = vmax.f32 %v137_v15, 0.0 }
  0xe8   :  { %v139_v17 = vpop.f32.mrf.mxu0 }
  0xe9   :  { %v154_v19 = vmax.f32 %v148_v16, 0.0  ;;  %v140_v20 = vadd.f32 %v179_v11, %v139_v17 }
  0xeb   :  { %v206_v22 = vpack.c.bf16 %v154_v19, %v153_v18  ;;  %v152_v23 = vmax.f32 %v140_v20, 0.0 }
  0xed   :  { %208 = vst [vmem:[%s311_s3 + $0x8] sm:$0xff] %v206_v22   ;;  %v201_v24 = vpack.c.bf16 %v152_v23, %v151_v21 }
  0xef   :  { %202 = vst [vmem:[%s311_s3] sm:$0xff] %v201_v24  }

// kernel: resnet50_forward.9
= control target key start
LH: loop header
LB: loop body
LE: loop exit
PB: predicated region body
PF: predicated region fallthrough
CT: control target
= control target key end

     0   :  { %8 = vsyncpa [#allocation3], 0  ;;  %s791_s0 = inlined_call_operand.vmem [shape: bf16[128,147], index: 0, kind: input, shape index: {}]   ;;  %s792_s1 = inlined_call_operand.hbm [shape: bf16[147,128], index: 1, kind: input, shape index: {}]   ;;  %s793_s2 = inlined_call_operand.hbm [shape: f32[1,128], index: 2, kind: input, shape index: {}]   ;;  %s794_s3 = inlined_call_operand.vmem [shape: bf16[128,128], index: 3, kind: output, shape index: {}]  }
   0x1   :  { %9 = vsyncpa [#allocation5], 0  ;;  %s661_s12 = smov [#allocation2]  }
   0x2   :  { %s17_s13 = sshll.u32 %s661_s12, 4  ;;  %s18_s13 = int_to_ptr.vmem [resolvable:$true] %s17_s13 }
   0x3   :  { %s625_s14 = scalar_lea.vmem %s18_s13, 1216  ;;  %p630_p1 = scmp.lt.s32.totalorder %s18_s13, %s18_s13 }
   0x4   :  { %p626_p0 = scmp.ne.s32.totalorder %s18_s13, %s625_s14  ;;  %p631_p2 = scmp.lt.s32.totalorder %s625_s14, %s625_s14 }
   0x6   :  { %p632_p3 = por %p631_p2, %p630_p1 }
   0x8   :  { %p633_p4 = pnand %p632_p3, %p626_p0 }
   0xa   :  { %636 = shalt.err (!%p633_p4)
}
   0xb   :  { %s662_s15 = smov 64   ;;  %s663_s16 = smov 4  }
   0xc   :  { %23 = dma.hbm_to_vmem [thread:$0]  %s792_s1, 1216, %s18_s13, [#allocation3], %s662_s15, %s662_s15, %s663_s16  }
   0xd   :  { %s664_s19 = smov [#allocation4]  }
   0xe   :  { %s30_s20 = sshll.u32 %s664_s19, 4  ;;  %s31_s20 = int_to_ptr.vmem [resolvable:$true] %s30_s20 }
   0xf   :  { %s645_s21 = scalar_lea.vmem %s31_s20, 16  ;;  %s649_s22 = scalar_lea.vmem %s31_s20, 32 }
  0x10   :  { %p646_p5 = scmp.ne.s32.totalorder %s31_s20, %s645_s21  ;;  %p650_p6 = scmp.lt.s32.totalorder %s31_s20, %s31_s20 }
  0x11   :  { %p651_p7 = scmp.lt.s32.totalorder %s649_s22, %s645_s21 }
  0x13   :  { %p652_p8 = por %p651_p7, %p650_p6 }
  0x15   :  { %p653_p9 = pnand %p652_p8, %p646_p5 }
  0x17   :  { %656 = shalt.err (!%p653_p9)
}
  0x18   :  { %33 = dma.hbm_to_vmem [thread:$0]  %s793_s2, 16, %s31_s20, [#allocation5]  }
  0x19   :  { %657 = dma.done.wait [#allocation3], 1216  }
  0x1a   :  { %658 = vsyncadd [#allocation3], 4294966080 }
  0x1b   :  { %659 = dma.done.wait [#allocation5], 16  }
  0x1c   :  { %660 = vsyncadd [#allocation5], 4294967280  ;;  %v665_v0 = vmov 0   ;;  %v583_v1 = vld [vmem:[#allocation2 + $0x38] sm:$0xff]   ;;  %v584_v2 = vld [vmem:[#allocation2 + $0x30] sm:$0xff]   ;;  %vm212_vm0 = vcmask 154624  }
  0x1d   :  { %244 = vmatprep.subr.bf16.mxu0 %v665_v0  ;;  %557 = vmatprep.subr.bf16.mxu1 %v665_v0  ;;  %v585_v3 = vld [vmem:[#allocation2 + $0x28] sm:$0xff]   ;;  %v586_v4 = vld [vmem:[#allocation2 + $0x20] sm:$0xff]   ;;  %v587_v7 = vld [vmem:[#allocation2 + $0x18] sm:$0xff]   ;;  %vm237_vm1 = vcmask 1040384   ;;  %vm238_vm2 = vcmask 1041408   ;;  %v666_v10 = vmov 65535  }
  0x1e   :  { %245 = vmatpush1.bf16.msra.mxu0 %v583_v1  ;;  %567 = vmatpush1.bf16.msra.mxu1 %v583_v1  ;;  %v595_v5 = vld [vmem:[%s791_s0 + $0x4] ss:$8 sps:$4 sm:$0xff]   ;;  %v588_v8 = vld [vmem:[#allocation2 + $0x10] sm:$0xff]   ;;  %v239_v11 = vsel %vm237_vm1, 4294967295, %v666_v10  ;;  %v593_v17 = vld [vmem:[%s791_s0] ss:$8 sps:$4 sm:$0xff]  }
  0x1f   :  { %246 = vmatprep.subr.bf16.mxu0 %v665_v0  ;;  %558 = vmatprep.subr.bf16.mxu1 %v665_v0  ;;  %v598_v6 = vld [vmem:[%s791_s0 + $0x44] ss:$8 sps:$4 sm:$0xff]   ;;  %v591_v13 = vld [vmem:[#allocation2 + $0x48] ss:$0 sps:$4 sm:$0x33]   ;;  %v240_v14 = vsel %vm238_vm2, %v239_v11, 0 }
  0x20   :  { %470 = vmatprep.mubr.msk.bf16.mxu0 %vm212_vm0, %v595_v5  ;;  %474 = vmatprep.mubr.msk.bf16.mxu1 %vm212_vm0, %v598_v6  ;;  %v589_v9 = vld [vmem:[#allocation2 + $0x8] sm:$0xff]   ;;  %v590_v12 = vld [vmem:[#allocation2] sm:$0xff]   ;;  %v242_v15 = vand.u32 %v591_v13, %v240_v14  ;;  %v599_v19 = vld [vmem:[%s791_s0 + $0x14] ss:$8 sps:$4 sm:$0xff]  }
  0x21   :  { %v592_v16 = vld [vmem:[#allocation2 + $0x40] sm:$0xff]   ;;  %v601_v20 = vld [vmem:[%s791_s0 + $0x54] ss:$8 sps:$4 sm:$0xff]   ;;  %v603_v21 = vld [vmem:[%s791_s0 + $0x10] ss:$8 sps:$4 sm:$0xff]  }
  0x22   :  { %247 = vmatpush1.bf16.msra.mxu0 %v584_v2  ;;  %568 = vmatpush1.bf16.msra.mxu1 %v584_v2  ;;  %v596_v18 = vld [vmem:[%s791_s0 + $0x40] ss:$8 sps:$4 sm:$0xff]   ;;  %v604_v22 = vld [vmem:[%s791_s0 + $0x50] ss:$8 sps:$4 sm:$0xff]   ;;  %v605_v23 = vld [vmem:[%s791_s0 + $0x24] ss:$8 sps:$4 sm:$0xff]  }
  0x23   :  { %248 = vmatprep.subr.bf16.mxu0 %v665_v0  ;;  %559 = vmatprep.subr.bf16.mxu1 %v665_v0  ;;  %v607_v24 = vld [vmem:[%s791_s0 + $0x64] ss:$8 sps:$4 sm:$0xff]   ;;  %v609_v25 = vld [vmem:[%s791_s0 + $0x20] ss:$8 sps:$4 sm:$0xff]   ;;  %v611_v27 = vld [vmem:[%s791_s0 + $0x34] ss:$8 sps:$4 sm:$0xff]  }
  0x24   :  { %v610_v26 = vld [vmem:[%s791_s0 + $0x60] ss:$8 sps:$4 sm:$0xff]   ;;  %v613_v28 = vld [vmem:[%s791_s0 + $0x74] ss:$8 sps:$4 sm:$0xff]   ;;  %v615_v29 = vld [vmem:[%s791_s0 + $0x30] ss:$8 sps:$4 sm:$0xff]  }
  0x25   :  { %v616_v30 = vld [vmem:[%s791_s0 + $0x70] ss:$8 sps:$4 sm:$0xff]   ;;  %v749_v31 = vld [vmem:[#allocation4] ss:$0 sm:$0xff] }
  0x26   :  { %249 = vmatpush1.bf16.msra.mxu0 %v585_v3  ;;  %569 = vmatpush1.bf16.msra.mxu1 %v585_v3 }
  0x27   :  { %250 = vmatprep.subr.bf16.mxu0 %v665_v0  ;;  %560 = vmatprep.subr.bf16.mxu1 %v665_v0 }
  0x2a   :  { %251 = vmatpush1.bf16.msra.mxu0 %v586_v4  ;;  %570 = vmatpush1.bf16.msra.mxu1 %v586_v4 }
  0x2b   :  { %252 = vmatprep.subr.bf16.mxu0 %v665_v0  ;;  %561 = vmatprep.subr.bf16.mxu1 %v665_v0 }
  0x2e   :  { %253 = vmatpush1.bf16.msra.mxu0 %v587_v7  ;;  %571 = vmatpush1.bf16.msra.mxu1 %v587_v7 }
  0x2f   :  { %254 = vmatprep.subr.bf16.mxu0 %v665_v0  ;;  %562 = vmatprep.subr.bf16.mxu1 %v665_v0 }
  0x32   :  { %255 = vmatpush1.bf16.msra.mxu0 %v588_v8  ;;  %572 = vmatpush1.bf16.msra.mxu1 %v588_v8 }
  0x33   :  { %256 = vmatprep.subr.bf16.mxu0 %v665_v0  ;;  %563 = vmatprep.subr.bf16.mxu1 %v665_v0 }
  0x36   :  { %257 = vmatpush1.bf16.msra.mxu0 %v589_v9  ;;  %573 = vmatpush1.bf16.msra.mxu1 %v589_v9 }
  0x37   :  { %258 = vmatprep.subr.bf16.mxu0 %v665_v0  ;;  %564 = vmatprep.subr.bf16.mxu1 %v665_v0 }
  0x3a   :  { %259 = vmatpush1.bf16.msra.mxu0 %v590_v12  ;;  %574 = vmatpush1.bf16.msra.mxu1 %v590_v12 }
  0x3b   :  { %272 = vmatprep.subr.bf16.mxu0 %v665_v0  ;;  %565 = vmatprep.subr.bf16.mxu1 %v665_v0 }
  0x3e   :  { %273 = vmatpush2.bf16.msra.mxu0 %v242_v15  ;;  %575 = vmatpush2.bf16.msra.mxu1 %v242_v15 }
  0x3f   :  { %274 = vmatprep.subr.bf16.mxu0 %v665_v0  ;;  %566 = vmatprep.subr.bf16.mxu1 %v665_v0 }
  0x42   :  { %275 = vmatpush2.bf16.msra.mxu0 %v592_v16  ;;  %576 = vmatpush2.bf16.msra.mxu1 %v592_v16 }
  0x45   :  { %277 = vmatmul.mubr.bf16.vlgmr.msra.gmra.mxu0 %v593_v17  ;;  %309 = vmatmul.mubr.bf16.vlgmr.msra.gmra.mxu1 %v596_v18 }
  0x46   :  { %471 = vmatprep.mubr.msk.bf16.mxu0 %vm212_vm0, %v599_v19  ;;  %475 = vmatprep.mubr.msk.bf16.mxu1 %vm212_vm0, %v601_v20 }
  0x4d   :  { %285 = vmatmul.mubr.bf16.gmra.mxu0 %v603_v21  ;;  %317 = vmatmul.mubr.bf16.gmra.mxu1 %v604_v22 }
  0x4e   :  { %472 = vmatprep.mubr.msk.bf16.mxu0 %vm212_vm0, %v605_v23  ;;  %476 = vmatprep.mubr.msk.bf16.mxu1 %vm212_vm0, %v607_v24 }
  0x55   :  { %293 = vmatmul.mubr.bf16.gmra.mxu0 %v609_v25  ;;  %325 = vmatmul.mubr.bf16.gmra.mxu1 %v610_v26 }
  0x56   :  { %473 = vmatprep.mubr.msk.bf16.mxu0 %vm212_vm0, %v611_v27  ;;  %477 = vmatprep.mubr.msk.bf16.mxu1 %vm212_vm0, %v613_v28 }
  0x5d   :  { %301 = vmatmul.mubr.bf16.gmra.mxu0 %v615_v29  ;;  %333 = vmatmul.mubr.bf16.gmra.mxu1 %v616_v30 }
 0x105   :  { %v278_v32 = vpop.f32.mrf.mxu0  ;;  %v310_v33 = vpop.f32.mrf.mxu1 }
 0x106   :  { %v279_v36 = vadd.f32 %v749_v31, %v278_v32  ;;  %v311_v37 = vadd.f32 %v749_v31, %v310_v33 }
 0x107   :  { %v280_v34 = vpop.f32.mrf.mxu0  ;;  %v312_v35 = vpop.f32.mrf.mxu1 }
 0x108   :  { %v341_v44 = vmax.f32 %v279_v36, 0.0  ;;  %v349_v45 = vmax.f32 %v311_v37, 0.0 }
 0x109   :  { %v281_v38 = vpop.f32.mrf.mxu0  ;;  %v313_v39 = vpop.f32.mrf.mxu1 }
 0x10a   :  { %v282_v40 = vadd.f32 %v749_v31, %v281_v38  ;;  %v314_v41 = vadd.f32 %v749_v31, %v313_v39 }
 0x10b   :  { %v283_v42 = vpop.f32.mrf.mxu0  ;;  %v315_v43 = vpop.f32.mrf.mxu1 }
 0x10c   :  { %v342_v46 = vmax.f32 %v282_v40, 0.0  ;;  %v350_v47 = vmax.f32 %v314_v41, 0.0 }
 0x10d   :  { %v286_v48 = vpop.f32.mrf.mxu0  ;;  %v318_v49 = vpop.f32.mrf.mxu1 }
 0x10e   :  { %v513_v50 = vpack.c.bf16 %v342_v46, %v341_v44  ;;  %v533_v51 = vpack.c.bf16 %v350_v47, %v349_v45  ;;  %v287_v54 = vadd.f32 %v749_v31, %v286_v48  ;;  %v319_v55 = vadd.f32 %v749_v31, %v318_v49 }
 0x10f   :  { %v288_v52 = vpop.f32.mrf.mxu0  ;;  %v320_v53 = vpop.f32.mrf.mxu1 }
 0x110   :  { %514 = vst [vmem:[%s794_s3] sm:$0xff] %v513_v50   ;;  %553 = vst [vmem:[%s794_s3 + $0x20] sm:$0xff] %v533_v51   ;;  %v343_v62 = vmax.f32 %v287_v54, 0.0  ;;  %v351_v63 = vmax.f32 %v319_v55, 0.0 }
 0x111   :  { %v289_v56 = vpop.f32.mrf.mxu0  ;;  %v321_v57 = vpop.f32.mrf.mxu1 }
 0x112   :  { %v290_v58 = vadd.f32 %v749_v31, %v289_v56  ;;  %v322_v59 = vadd.f32 %v749_v31, %v321_v57 }
 0x113   :  { %v291_v60 = vpop.f32.mrf.mxu0  ;;  %v323_v61 = vpop.f32.mrf.mxu1 }
 0x114   :  { %v344_v0 = vmax.f32 %v290_v58, 0.0  ;;  %v352_v1 = vmax.f32 %v322_v59, 0.0 }
 0x115   :  { %v294_v2 = vpop.f32.mrf.mxu0  ;;  %v326_v3 = vpop.f32.mrf.mxu1 }
 0x116   :  { %v518_v4 = vpack.c.bf16 %v344_v0, %v343_v62  ;;  %v538_v5 = vpack.c.bf16 %v352_v1, %v351_v63  ;;  %v295_v8 = vadd.f32 %v749_v31, %v294_v2  ;;  %v327_v9 = vadd.f32 %v749_v31, %v326_v3 }
 0x117   :  { %v296_v6 = vpop.f32.mrf.mxu0  ;;  %v328_v7 = vpop.f32.mrf.mxu1 }
 0x118   :  { %550 = vst [vmem:[%s794_s3 + $0x8] sm:$0xff] %v518_v4   ;;  %554 = vst [vmem:[%s794_s3 + $0x28] sm:$0xff] %v538_v5   ;;  %v345_v16 = vmax.f32 %v295_v8, 0.0  ;;  %v353_v17 = vmax.f32 %v327_v9, 0.0 }
 0x119   :  { %v297_v10 = vpop.f32.mrf.mxu0  ;;  %v329_v11 = vpop.f32.mrf.mxu1 }
 0x11a   :  { %v298_v12 = vadd.f32 %v749_v31, %v297_v10  ;;  %v330_v13 = vadd.f32 %v749_v31, %v329_v11 }
 0x11b   :  { %v299_v14 = vpop.f32.mrf.mxu0  ;;  %v331_v15 = vpop.f32.mrf.mxu1 }
 0x11c   :  { %v346_v18 = vmax.f32 %v298_v12, 0.0  ;;  %v354_v19 = vmax.f32 %v330_v13, 0.0 }
 0x11d   :  { %v302_v20 = vpop.f32.mrf.mxu0  ;;  %v334_v21 = vpop.f32.mrf.mxu1 }
 0x11e   :  { %v523_v22 = vpack.c.bf16 %v346_v18, %v345_v16  ;;  %v543_v23 = vpack.c.bf16 %v354_v19, %v353_v17  ;;  %v303_v26 = vadd.f32 %v749_v31, %v302_v20  ;;  %v335_v27 = vadd.f32 %v749_v31, %v334_v21 }
 0x11f   :  { %v304_v24 = vpop.f32.mrf.mxu0  ;;  %v336_v25 = vpop.f32.mrf.mxu1 }
 0x120   :  { %551 = vst [vmem:[%s794_s3 + $0x10] sm:$0xff] %v523_v22   ;;  %555 = vst [vmem:[%s794_s3 + $0x30] sm:$0xff] %v543_v23   ;;  %v347_v35 = vmax.f32 %v303_v26, 0.0  ;;  %v355_v36 = vmax.f32 %v335_v27, 0.0 }
 0x121   :  { %v305_v28 = vpop.f32.mrf.mxu0  ;;  %v337_v29 = vpop.f32.mrf.mxu1 }
 0x122   :  { %v306_v30 = vadd.f32 %v749_v31, %v305_v28  ;;  %v338_v32 = vadd.f32 %v749_v31, %v337_v29 }
 0x123   :  { %v307_v33 = vpop.f32.mrf.mxu0  ;;  %v339_v34 = vpop.f32.mrf.mxu1 }
 0x124   :  { %v348_v37 = vmax.f32 %v306_v30, 0.0  ;;  %v356_v38 = vmax.f32 %v338_v32, 0.0 }
 0x126   :  { %v528_v39 = vpack.c.bf16 %v348_v37, %v347_v35  ;;  %v548_v40 = vpack.c.bf16 %v356_v38, %v355_v36 }
 0x128   :  { %552 = vst [vmem:[%s794_s3 + $0x18] sm:$0xff] %v528_v39   ;;  %556 = vst [vmem:[%s794_s3 + $0x38] sm:$0xff] %v548_v40  }
 0x129   :  { %441 = vsyncpa [#allocation3], 1 }
 0x12a   :  { %442 = vsyncpa [#allocation5], 1 }

// kernel: resnet50_forward.10
= control target key start
LH: loop header
LB: loop body
LE: loop exit
PB: predicated region body
PF: predicated region fallthrough
CT: control target
= control target key end

     0   :  { %s611_s15 = smov 0   ;;  %s691_s0 = inlined_call_operand.vmem [shape: bf16[2,5,5,128], index: 0, kind: input, shape index: {}]   ;;  %s692_s1 = inlined_call_operand.vmem [shape: bf16[2,5,5,128], index: 1, kind: input, shape index: {}]   ;;  %s693_s2 = inlined_call_operand.vmem [shape: bf16[2,5,5,128], index: 2, kind: input, shape index: {}]   ;;  %s694_s3 = inlined_call_operand.vmem [shape: bf16[2,5,5,128], index: 3, kind: input, shape index: {}]   ;;  %s695_s4 = inlined_call_operand.vmem [shape: bf16[2,4,4,128], index: 4, kind: output, shape index: {}]  }
   0x1 LB: > { %s543_s16 = sadd.s32 4294967295, %s584_s15   ;;  %p547_p0 = scmp.ge.s32.totalorder %s584_s15, 1  ;;  %s584_s15 = sphi %s611_s15, %s14_s15  }
   0x2   : > { %p192_p1 = scmp.lt.s32.totalorder %s584_s15, 3 }
   0x4   : > { %p193_p2 = pnand %p547_p0, %p192_p1 }
   0x5   : > { %p233_p3 = scmp.lt.s32.totalorder (!%p193_p2), %s543_s16, 1 }
   0x6   : > { %196 = sbr.rel (%p193_p2) target bundleno = 55 (0x37), region = 36 }
   0xb   : > { %s697_s16 = smov (!%p233_p3, %s543_s16), 1 }
   0xc   : > { %s569_s17 = smul.u32 20, %s697_s16  ;;  %s568_s30 = sshll.u32 %s697_s16, 3 }
   0xd   : > { %s673_s7 = scalar_lea.vmem %s695_s4, %s568_s30 }
   0xe   : > { %s625_s20 = scalar_lea.vmem %s691_s0, %s569_s17  ;;  %s630_s23 = scalar_lea.vmem %s692_s1, %s569_s17 }
   0xf   : > { %s635_s26 = scalar_lea.vmem %s693_s2, %s569_s17  ;;  %v270_v0 = vld [vmem:[%s625_s20] sm:$0x7]  ;;  %v562_v10 = vld [vmem:[%s625_s20 + $0x4] sm:$0x7]  ;;  %s648_s29 = scalar_lea.vmem %s694_s3, %s569_s17  ;;  %v563_v35 = vld [vmem:[%s625_s20 + $0x8] sm:$0x7] }
  0x10   : > { %v275_v1 = vshrl.u32 %v270_v0, 16  ;;  %v278_v2 = vshll.u32 %v270_v0, 16  ;;  %v258_v3 = vld [vmem:[%s625_s20] sm:$0x3]  ;;  %v405_v11 = vshrl.u32 %v562_v10, 16  ;;  %v408_v12 = vshll.u32 %v562_v10, 16 }
  0x11   : > { %v262_v4 = vld [vmem:[%s630_s23] sm:$0x3]  ;;  %v259_v17 = vld [vmem:[%s625_s20 + $0x4] sm:$0x3]  ;;  %v414_v40 = vshrl.u32 %v563_v35, 16  ;;  %v417_v43 = vshll.u32 %v563_v35, 16 }
  0x12   : > { %v334_v5 = vld [vmem:[%s635_s26] sm:$0x7]  ;;  %v277_v6 = vrot.slane %v275_v1, 4  ;;  %v280_v7 = vrot.slane %v278_v2, 5  ;;  %v266_v13 = vmax.bf16 %v262_v4, %v258_v3  ;;  %v271_v18 = vld [vmem:[%s625_s20 + $0x4] sm:$0x7] }
  0x13   : > { %v339_v8 = vshrl.u32 %v334_v5, 16  ;;  %v342_v9 = vshll.u32 %v334_v5, 16  ;;  %v407_v19 = vrot.slane %v405_v11, 4  ;;  %v410_v20 = vrot.slane %v408_v12, 5  ;;  %v263_v21 = vld [vmem:[%s630_s23 + $0x4] sm:$0x3] }
  0x14   : > { %v281_v14 = vor.u32 %v280_v7, %v277_v6  ;;  %v284_v22 = vshrl.u32 %v271_v18, 16  ;;  %v287_v23 = vshll.u32 %v271_v18, 16  ;;  %v335_v26 = vld [vmem:[%s635_s26 + $0x4] sm:$0x7]  ;;  %v318_v27 = vld [vmem:[%s635_s26] sm:$0x3]  ;;  %v267_v33 = vmax.bf16 %v263_v21, %v259_v17 }
  0x15   : > { %v341_v15 = vrot.slane %v339_v8, 4  ;;  %v344_v16 = vrot.slane %v342_v9, 5  ;;  %v411_v28 = vor.u32 %v410_v20, %v407_v19  ;;  %v348_v31 = vshrl.u32 %v335_v26, 16  ;;  %v326_v36 = vld [vmem:[%s648_s29] sm:$0x3] }
  0x16   : > { %v282_v24 = vrot.slane %v281_v14, 4  ;;  %v286_v29 = vrot.slane %v284_v22, 4  ;;  %v289_v30 = vrot.slane %v287_v23, 5  ;;  %v351_v34 = vshll.u32 %v335_v26, 16  ;;  %v260_v44 = vld [vmem:[%s625_s20 + $0x8] sm:$0x3] }
  0x17   : > { %v345_v25 = vor.u32 %v344_v16, %v341_v15  ;;  %v350_v39 = vrot.slane %v348_v31, 4  ;;  %v272_v45 = vld [vmem:[%s625_s20 + $0x8] sm:$0x7]  ;;  %v412_v46 = vrot.slane %v411_v28, 4  ;;  %v319_v52 = vld [vmem:[%s635_s26 + $0x4] sm:$0x3] }
  0x18   : > { %v314_v32 = vmax.bf16 %v282_v24, %v266_v13  ;;  %v290_v38 = vor.u32 %v289_v30, %v286_v29  ;;  %v353_v42 = vrot.slane %v351_v34, 5  ;;  %v264_v48 = vld [vmem:[%s630_s23 + $0x8] sm:$0x3]  ;;  %v293_v49 = vshrl.u32 %v272_v45, 16  ;;  %v554_v57 = vld [vmem:[%s625_s20 + $0x4] sm:$0x3] }
  0x19   : > { %v346_v37 = vrot.slane %v345_v25, 4  ;;  %v296_v50 = vshll.u32 %v272_v45, 16  ;;  %v416_v54 = vrot.slane %v414_v40, 4  ;;  %v419_v55 = vrot.slane %v417_v43, 5  ;;  %v336_v56 = vld [vmem:[%s635_s26 + $0x8] sm:$0x7] }
  0x1a   : > { %v322_v41 = vmax.bf16 %v318_v27, %v314_v32  ;;  %v291_v47 = vrot.slane %v290_v38, 4  ;;  %v354_v53 = vor.u32 %v353_v42, %v350_v39  ;;  %v295_v59 = vrot.slane %v293_v49, 4  ;;  %v327_v63 = vld [vmem:[%s648_s29 + $0x4] sm:$0x3]  ;;  %v564_v3 = vld [vmem:[%s625_s20 + $0xc] sm:$0x7] }
  0x1b   : > { %v298_v60 = vrot.slane %v296_v50, 5  ;;  %v357_v61 = vshrl.u32 %v336_v56, 16  ;;  %v268_v1 = vmax.bf16 %v264_v48, %v260_v44  ;;  %v360_v2 = vshll.u32 %v336_v56, 16  ;;  %v558_v4 = vld [vmem:[%s630_s23 + $0x4] sm:$0x3] }
  0x1c   : > { %v330_v51 = vmax.bf16 %v326_v36, %v322_v41  ;;  %v315_v58 = vmax.bf16 %v291_v47, %v267_v33  ;;  %v355_v0 = vrot.slane %v354_v53, 4  ;;  %v423_v8 = vshrl.u32 %v564_v3, 16  ;;  %v273_v9 = vld [vmem:[%s625_s20 + $0xc] sm:$0x7]  ;;  %v555_v21 = vld [vmem:[%s625_s20 + $0x8] sm:$0x3] }
  0x1d   : > { %v299_v6 = vor.u32 %v298_v60, %v295_v59  ;;  %v359_v7 = vrot.slane %v357_v61, 4  ;;  %v420_v11 = vor.u32 %v419_v55, %v416_v54  ;;  %v362_v12 = vrot.slane %v360_v2, 5  ;;  %v261_v14 = vld [vmem:[%s625_s20 + $0xc] sm:$0x3]  ;;  %v320_v22 = vld [vmem:[%s635_s26 + $0x8] sm:$0x3] }
  0x1e   : > { %v378_v62 = vmax.bf16 %v346_v37, %v330_v51  ;;  %v323_v5 = vmax.bf16 %v319_v52, %v315_v58  ;;  %v426_v13 = vshll.u32 %v564_v3, 16  ;;  %v425_v17 = vrot.slane %v423_v8, 4  ;;  %v265_v18 = vld [vmem:[%s630_s23 + $0xc] sm:$0x3]  ;;  %v565_v30 = vld [vmem:[%s625_s20 + $0x10] sm:$0x7] }
  0x1f   : > { %v300_v16 = vrot.slane %v299_v6, 4  ;;  %v337_v19 = vld [vmem:[%s635_s26 + $0xc] sm:$0x7]  ;;  %v363_v23 = vor.u32 %v362_v12, %v359_v7  ;;  %v302_v25 = vshrl.u32 %v273_v9, 16  ;;  %v305_v28 = vshll.u32 %v273_v9, 16 }
  0x20   : > { %v387_v10 = vmax.bf16 %v554_v57, %v378_v62  ;;  %v331_v15 = vmax.bf16 %v327_v63, %v323_v5  ;;  %v428_v24 = vrot.slane %v426_v13, 5  ;;  %v366_v29 = vshrl.u32 %v337_v19, 16  ;;  %v559_v32 = vld [vmem:[%s630_s23 + $0x8] sm:$0x3]  ;;  %v556_v49 = vld [vmem:[%s625_s20 + $0xc] sm:$0x3] }
  0x21   : > { %v316_v27 = vmax.bf16 %v300_v16, %v268_v1  ;;  %v421_v33 = vrot.slane %v420_v11, 4  ;;  %v328_v34 = vld [vmem:[%s648_s29 + $0x8] sm:$0x3]  ;;  %v269_v35 = vmax.bf16 %v265_v18, %v261_v14  ;;  %v304_v36 = vrot.slane %v302_v25, 4  ;;  %v560_v54 = vld [vmem:[%s630_s23 + $0xc] sm:$0x3] }
  0x22   : > { %v396_v20 = vmax.bf16 %v558_v4, %v387_v10  ;;  %v379_v26 = vmax.bf16 %v355_v0, %v331_v15  ;;  %v364_v39 = vrot.slane %v363_v23, 4  ;;  %v307_v40 = vrot.slane %v305_v28, 5  ;;  %v321_v56 = vld [vmem:[%s635_s26 + $0xc] sm:$0x3]  ;;  %v557_v5 = vld [vmem:[%s625_s20 + $0x10] sm:$0x3] }
  0x23   : > { %v324_v38 = vmax.bf16 %v320_v22, %v316_v27  ;;  %v429_v41 = vor.u32 %v428_v24, %v425_v17  ;;  %v368_v42 = vrot.slane %v366_v29, 4  ;;  %v369_v43 = vshll.u32 %v337_v19, 16  ;;  %v329_v62 = vld [vmem:[%s648_s29 + $0xc] sm:$0x3]  ;;  %v561_v7 = vld [vmem:[%s630_s23 + $0x10] sm:$0x3] }
  0x24   : > { %v444_v31 = vmax.bf16 %v412_v46, %v396_v20  ;;  %v388_v37 = vmax.bf16 %v555_v21, %v379_v26  ;;  %v432_v44 = vshrl.u32 %v565_v30, 16  ;;  %v308_v47 = vor.u32 %v307_v40, %v304_v36 }
  0x25   : > { %v332_v46 = vmax.bf16 %v328_v34, %v324_v38  ;;  %v435_v48 = vshll.u32 %v565_v30, 16  ;;  %v371_v50 = vrot.slane %v369_v43, 5  ;;  %v430_v55 = vrot.slane %v429_v41, 4 }
  0x26   : > { %448 = vst [vmem:[%s673_s7] sm:$0x3] %v444_v31  ;;  %v397_v45 = vmax.bf16 %v559_v32, %v388_v37  ;;  %v309_v53 = vrot.slane %v308_v47, 4  ;;  %v434_v60 = vrot.slane %v432_v44, 4 }
  0x27   : > { %v380_v52 = vmax.bf16 %v364_v39, %v332_v46  ;;  %v372_v57 = vor.u32 %v371_v50, %v368_v42  ;;  %v437_v61 = vrot.slane %v435_v48, 5 }
  0x28   : > { %v445_v51 = vmax.bf16 %v421_v33, %v397_v45  ;;  %v317_v59 = vmax.bf16 %v309_v53, %v269_v35 }
  0x29   : > { %v389_v58 = vmax.bf16 %v556_v49, %v380_v52  ;;  %v373_v1 = vrot.slane %v372_v57, 4  ;;  %v438_v4 = vor.u32 %v437_v61, %v434_v60 }
  0x2a   : > { %449 = vst [vmem:[%s673_s7 + $0x2] sm:$0x3] %v445_v51  ;;  %v325_v0 = vmax.bf16 %v321_v56, %v317_v59 }
  0x2b   : > { %v398_v63 = vmax.bf16 %v560_v54, %v389_v58  ;;  %v439_v9 = vrot.slane %v438_v4, 4 }
  0x2c   : > { %v333_v3 = vmax.bf16 %v329_v62, %v325_v0 }
  0x2d   : > { %v446_v2 = vmax.bf16 %v430_v55, %v398_v63 }
  0x2e   : > { %v381_v6 = vmax.bf16 %v373_v1, %v333_v3 }
  0x2f   : > { %450 = vst [vmem:[%s673_s7 + $0x4] sm:$0x3] %v446_v2 }
  0x30   : > { %v390_v8 = vmax.bf16 %v557_v5, %v381_v6 }
  0x32   : > { %v399_v10 = vmax.bf16 %v561_v7, %v390_v8 }
  0x34   : > { %v447_v11 = vmax.bf16 %v439_v9, %v399_v10 }
  0x36   : > { %451 = vst [vmem:[%s673_s7 + $0x6] sm:$0x3] %v447_v11 }
  0x37 PF: > { %s14_s15 = sadd.s32 1, %s584_s15  }
  0x38   : > { %p11_p4 = scmp.ge.s32.totalorder %s14_s15, 4  }
  0x3a   :  { %13 = sbr.rel (!%p11_p4) target bundleno = 1 (0x1), region = 77 }

// kernel: resnet50_forward.14
= control target key start
LH: loop header
LB: loop body
LE: loop exit
PB: predicated region body
PF: predicated region fallthrough
CT: control target
= control target key end

     0   :  { %s816_s12 = smov 0   ;;  %s818_s13 = smov 0   ;;  %s921_s0 = inlined_call_operand.vmem [shape: bf16[32,128], index: 0, kind: input, shape index: {}]   ;;  %s922_s1 = inlined_call_operand.vmem [shape: bf16[128,2560], index: 1, kind: input, shape index: {}]   ;;  %s923_s2 = inlined_call_operand.vmem [shape: f32[1,2560], index: 2, kind: input, shape index: {}]   ;;  %s924_s3 = inlined_call_operand.vmem [shape: bf16[32,2560], index: 3, kind: output, shape index: {}]  }
   0x1   :  { %s820_s14 = smov 0   ;;  %s822_s15 = smov 0  }
   0x2   :  { %s824_s16 = smov 0  }
   0x3 LB: > { %s22_s17 = sadd.s32 1, %s790_s15  ;;  %s632_s18 = sadd.s32 4294967295, %s794_s16   ;;  %s794_s16 = sphi %s824_s16, %s13_s16   ;;  %s790_s15 = sphi %s822_s15, %s929_s15   ;;  %s786_s14 = sphi %s820_s14, %s928_s14   ;;  %s782_s13 = sphi %s818_s13, %s927_s13   ;;  %s778_s12 = sphi %s816_s12, %s926_s12  }
   0x4   : > { %p23_p0 = scmp.ge.s32.totalorder %s22_s17, 20  ;;  %p65_p1 = scmp.ne.s32.totalorder %s782_s13, %s778_s12 }
   0x5   : > { %p66_p2 = scmp.eq.s32.totalorder %s794_s16, 0  ;;  %p123_p4 = scmp.eq.s32.totalorder %s632_s18, 19 }
   0x6   : > { %s931_s17 = smov (%p23_p0, %s22_s17), 0  ;;  %s58_s20 = sadd.s32 1, %s782_s13 }
   0x7   : > { %p67_p3 = por %p66_p2, %p65_p1  ;;  %s55_s19 = ssub.s32 %s790_s15, %s931_s17 }
   0x8   : > { %p56_p5 = scmp.eq.s32.totalorder %s55_s19, 0  ;;  %p851_p6 = por %p123_p4, %p65_p1 }
   0x9   : > { %p636_p7 = scmp.ge.s32.totalorder %s794_s16, 20 }
   0xa   : > { %s856_s22 = scalar_select %p56_p5, %s782_s13, %s58_s20  }
   0xb   : > { %154 = sbr.rel (%p636_p7) target bundleno = 31 (0x1f), region = 20 }
  0x10   : > { %157 = sbr.rel (!%p67_p3) target bundleno = 31 (0x1f), region = 24  ;;  %s159_s23 = sand.u32 (%p67_p3), 1, %s782_s13  }
  0x11   : > { %s638_s24 = sshll.u32 (%p67_p3), %s790_s15, 2  ;;  %s637_s25 = sshll.u32 (%p67_p3), %s159_s23, 6 }
  0x12   : > { %s864_s28 = scalar_lea.vmem (%p67_p3), %s922_s1, %s638_s24  ;;  %s161_s29 = scalar_lea.vmem (%p67_p3), [#allocation2], %s637_s25 }
  0x13   : > { %v180_v0 = vld [vmem:[%s864_s28] sm:$0xf] (%p67_p3)  ;;  %v182_v1 = vld [vmem:[%s864_s28 + $0x50] sm:$0xf] (%p67_p3) }
  0x14   : > { %181 = vst [vmem:[%s161_s29] sm:$0xf] (%p67_p3), %v180_v0  ;;  %183 = vst [vmem:[%s161_s29 + $0x4] sm:$0xf] (%p67_p3), %v182_v1  ;;  %v184_v2 = vld [vmem:[%s864_s28 + $0xa0] sm:$0xf] (%p67_p3) }
  0x15   : > { %v186_v3 = vld [vmem:[%s864_s28 + $0xf0] sm:$0xf]  ;;  %v188_v4 = vld [vmem:[%s864_s28 + $0x140] sm:$0xf]  ;;  %185 = vst [vmem:[%s161_s29 + $0x8] sm:$0xf] %v184_v2 }
  0x16   : > { %187 = vst [vmem:[%s161_s29 + $0xc] sm:$0xf] %v186_v3  ;;  %189 = vst [vmem:[%s161_s29 + $0x10] sm:$0xf] %v188_v4  ;;  %v190_v5 = vld [vmem:[%s864_s28 + $0x190] sm:$0xf] }
  0x17   : > { %v192_v6 = vld [vmem:[%s864_s28 + $0x1e0] sm:$0xf]  ;;  %v194_v7 = vld [vmem:[%s864_s28 + $0x230] sm:$0xf]  ;;  %191 = vst [vmem:[%s161_s29 + $0x14] sm:$0xf] %v190_v5 }
  0x18   : > { %193 = vst [vmem:[%s161_s29 + $0x18] sm:$0xf] %v192_v6  ;;  %195 = vst [vmem:[%s161_s29 + $0x1c] sm:$0xf] %v194_v7  ;;  %v196_v8 = vld [vmem:[%s864_s28 + $0x280] sm:$0xf] }
  0x19   : > { %v198_v9 = vld [vmem:[%s864_s28 + $0x2d0] sm:$0xf]  ;;  %v200_v10 = vld [vmem:[%s864_s28 + $0x320] sm:$0xf]  ;;  %197 = vst [vmem:[%s161_s29 + $0x20] sm:$0xf] %v196_v8 }
  0x1a   : > { %199 = vst [vmem:[%s161_s29 + $0x24] sm:$0xf] %v198_v9  ;;  %201 = vst [vmem:[%s161_s29 + $0x28] sm:$0xf] %v200_v10  ;;  %v202_v11 = vld [vmem:[%s864_s28 + $0x370] sm:$0xf] }
  0x1b   : > { %v204_v12 = vld [vmem:[%s864_s28 + $0x3c0] sm:$0xf]  ;;  %v206_v13 = vld [vmem:[%s864_s28 + $0x410] sm:$0xf]  ;;  %203 = vst [vmem:[%s161_s29 + $0x2c] sm:$0xf] %v202_v11 }
  0x1c   : > { %205 = vst [vmem:[%s161_s29 + $0x30] sm:$0xf] %v204_v12  ;;  %207 = vst [vmem:[%s161_s29 + $0x34] sm:$0xf] %v206_v13  ;;  %v208_v14 = vld [vmem:[%s864_s28 + $0x460] sm:$0xf] }
  0x1d   : > { %v210_v15 = vld [vmem:[%s864_s28 + $0x4b0] sm:$0xf]  ;;  %209 = vst [vmem:[%s161_s29 + $0x38] sm:$0xf] %v208_v14 }
  0x1e   : > { %211 = vst [vmem:[%s161_s29 + $0x3c] sm:$0xf] %v210_v15 }
  0x1f PF: > { %p639_p8 = scmp.ge.s32.totalorder %s794_s16, 1  ;;  %p272_p9 = scmp.lt.s32.totalorder %s794_s16, 21 }
  0x21   : > { %p273_p10 = pnand %p639_p8, %p272_p9 }
  0x22   : > { %s279_s30 = sand.u32 (!%p273_p10), 1, %s778_s12   ;;  %p315_p11 = scmp.lt.s32.totalorder (!%p273_p10), %s786_s14, 19 }
  0x23   : > { %276 = sbr.rel (%p273_p10) target bundleno = 285 (0x11d), region = 69  ;;  %s640_s6 = sshll.u32 (!%p273_p10), %s279_s30, 6 }
  0x24   : > { %s281_s7 = scalar_lea.vmem (!%p273_p10), [#allocation2], %s640_s6  ;;  %s641_s20 = sshll.u32 (!%p273_p10), %s279_s30, 4 }
  0x25   : > { %s308_s23 = scalar_lea.vmem (!%p273_p10), [#allocation3], %s641_s20 }
  0x28   : > { %v754_v16 = vld [vmem:[%s921_s0] sm:$0xff]   ;;  %v746_v17 = vld [vmem:[%s281_s7 + $0x38] sm:$0xff]   ;;  %v747_v18 = vld [vmem:[%s281_s7 + $0x30] sm:$0xff]   ;;  %s316_s10 = scalar_select %p315_p11, %s786_s14, 19 }
  0x29   : > { %702 = vmatprep.mubr.bf16.mxu0 %v754_v16  ;;  %686 = vmatprep.subr.bf16.mxu0 %v746_v17  ;;  %v748_v19 = vld [vmem:[%s281_s7 + $0x28] sm:$0xff]   ;;  %v749_v20 = vld [vmem:[%s281_s7 + $0x20] sm:$0xff]   ;;  %v750_v21 = vld [vmem:[%s281_s7 + $0x18] sm:$0xff]   ;;  %s658_s24 = sshll.u32 (%p851_p6), %s786_s14, 2 }
  0x2a   : > { %687 = vmatpush3.bf16.msra.mxu0 %v746_v17  ;;  %v751_v22 = vld [vmem:[%s281_s7 + $0x10] sm:$0xff]   ;;  %v752_v23 = vld [vmem:[%s281_s7 + $0x8] sm:$0xff]   ;;  %v753_v24 = vld [vmem:[%s281_s7] sm:$0xff]   ;;  %s317_s19 = scalar_lea.vmem %s923_s2, %s316_s10  ;;  %s487_s26 = scalar_lea.vmem (%p851_p6), %s924_s3, %s658_s24 }
  0x2b   : > { %688 = vmatprep.subr.bf16.mxu0 %v747_v18  ;;  %v755_v25 = vld [vmem:[%s921_s0 + $0x8] sm:$0xff]   ;;  %v642_v27 = vld [vmem:[%s317_s19] ss:$0 sm:$0xff] }
  0x2e   : > { %689 = vmatpush3.bf16.msra.mxu0 %v747_v18 }
  0x2f   : > { %690 = vmatprep.subr.bf16.mxu0 %v748_v19 }
  0x32   : > { %691 = vmatpush3.bf16.msra.mxu0 %v748_v19 }
  0x33   : > { %692 = vmatprep.subr.bf16.mxu0 %v749_v20 }
  0x36   : > { %693 = vmatpush3.bf16.msra.mxu0 %v749_v20 }
  0x37   : > { %694 = vmatprep.subr.bf16.mxu0 %v750_v21 }
  0x3a   : > { %695 = vmatpush3.bf16.msra.mxu0 %v750_v21 }
  0x3b   : > { %696 = vmatprep.subr.bf16.mxu0 %v751_v22 }
  0x3e   : > { %697 = vmatpush3.bf16.msra.mxu0 %v751_v22 }
  0x3f   : > { %698 = vmatprep.subr.bf16.mxu0 %v752_v23 }
  0x42   : > { %699 = vmatpush3.bf16.msra.mxu0 %v752_v23 }
  0x43   : > { %700 = vmatprep.subr.bf16.mxu0 %v753_v24 }
  0x46   : > { %701 = vmatpush3.bf16.msra.mxu0 %v753_v24 }
  0x49   : > { %703 = vmatmul.mubr.bf16.vlgmr.msra.gmra.mxu0 %v755_v25 }
 0x109   : > { %v704_v26 = vpop.f32.mrf.mxu0 }
 0x10a   : > { %v450_v30 = vadd.f32 %v704_v26, %v642_v27 }
 0x10b   : > { %v441_v28 = vpop.f32.mrf.mxu0 }
 0x10c   : > { %v442_v33 = vadd.f32 %v642_v27, %v441_v28 }
 0x10d   : > { %v705_v29 = vpop.f32.mrf.mxu0 }
 0x10e   : > { %v453_v31 = vadd.f32 %v705_v29, %v642_v27 }
 0x10f   : > { %v444_v32 = vpop.f32.mrf.mxu0 }
 0x110   : > { %v673_v34 = vpack.c.bf16 %v453_v31, %v450_v30  ;;  %v445_v35 = vadd.f32 %v642_v27, %v444_v32  ;;  %482 = sbr.rel (!%p851_p6) target bundleno = 285 (0x11d), region = 77 }
 0x112   : > { %675 = vst [vmem:[%s308_s23 + $0x8] sm:$0xff] %v673_v34   ;;  %v668_v36 = vpack.c.bf16 %v445_v35, %v442_v33 }
 0x114   : > { %669 = vst [vmem:[%s308_s23] sm:$0xff] %v668_v36  }
 0x119   : > { %v508_v39 = vld [vmem:[%s308_s23 + $0x8] sm:$0xf]  ;;  %v510_v40 = vld [vmem:[%s308_s23 + $0xc] sm:$0xf] }
 0x11a   : > { %509 = vst [vmem:[%s487_s26 + $0xa0] sm:$0xf] %v508_v39  ;;  %511 = vst [vmem:[%s487_s26 + $0xf0] sm:$0xf] %v510_v40 }
 0x11b   : > { %v504_v37 = vld [vmem:[%s308_s23] sm:$0xf]  ;;  %v506_v38 = vld [vmem:[%s308_s23 + $0x4] sm:$0xf] }
 0x11c   : > { %505 = vst [vmem:[%s487_s26] sm:$0xf] %v504_v37  ;;  %507 = vst [vmem:[%s487_s26 + $0x50] sm:$0xf] %v506_v38 }
 0x11d PF: > { %s13_s16 = sadd.s32 1, %s794_s16   ;;  %s926_s12 = smov %s782_s13 }
 0x11e   : > { %p10_p12 = scmp.ge.s32.totalorder %s13_s16, 22   ;;  %s927_s13 = smov %s856_s22 }
 0x11f   : > { %s928_s14 = smov %s790_s15  ;;  %s929_s15 = smov %s931_s17 }
 0x120   :  { %12 = sbr.rel (!%p10_p12) target bundleno = 3 (0x3), region = 155 }

// kernel: resnet50_forward.13
= control target key start
LH: loop header
LB: loop body
LE: loop exit
PB: predicated region body
PF: predicated region fallthrough
CT: control target
= control target key end

     0   :  { %s343_s1 = inlined_call_operand.vmem [shape: bf16[128,128], index: 1, kind: input, shape index: {}]   ;;  %s344_s0 = inlined_call_operand.vmem [shape: bf16[32,128], index: 0, kind: input, shape index: {}]   ;;  %s345_s2 = inlined_call_operand.vmem [shape: f32[1,128], index: 2, kind: input, shape index: {}]   ;;  %s346_s3 = inlined_call_operand.vmem [shape: bf16[32,128], index: 3, kind: input, shape index: {}]   ;;  %s347_s4 = inlined_call_operand.vmem [shape: bf16[32,128], index: 4, kind: output, shape index: {}]  }
   0x1   :  { %v263_v0 = vld [vmem:[%s343_s1 + $0x38] sm:$0xff]   ;;  %v264_v1 = vld [vmem:[%s343_s1 + $0x30] sm:$0xff]   ;;  %v265_v2 = vld [vmem:[%s343_s1 + $0x28] sm:$0xff]  }
   0x2   :  { %243 = vmatprep.subr.bf16.mxu0 %v263_v0  ;;  %v266_v3 = vld [vmem:[%s343_s1 + $0x20] sm:$0xff]   ;;  %v267_v5 = vld [vmem:[%s343_s1 + $0x18] sm:$0xff]   ;;  %v268_v6 = vld [vmem:[%s343_s1 + $0x10] sm:$0xff]  }
   0x3   :  { %244 = vmatpush3.bf16.msra.mxu0 %v263_v0  ;;  %v271_v4 = vld [vmem:[%s344_s0] sm:$0xff]   ;;  %v269_v7 = vld [vmem:[%s343_s1 + $0x8] sm:$0xff]  }
   0x4   :  { %245 = vmatprep.subr.bf16.mxu0 %v264_v1  ;;  %259 = vmatprep.mubr.bf16.mxu0 %v271_v4  ;;  %v270_v8 = vld [vmem:[%s343_s1] sm:$0xff]   ;;  %v272_v9 = vld [vmem:[%s344_s0 + $0x8] sm:$0xff]  }
   0x5   :  { %v194_v10 = vld [vmem:[%s345_s2] ss:$0 sm:$0xff]  ;;  %v231_v11 = vld [vmem:[%s346_s3 + $0x8] sm:$0xff]  }
   0x6   :  { %v214_v13 = vld [vmem:[%s346_s3] sm:$0xff]   ;;  %v219_v15 = vunpack.c.l.bf16 %v231_v11  ;;  %v220_v19 = vunpack.c.h.bf16 %v231_v11 }
   0x7   :  { %246 = vmatpush3.bf16.msra.mxu0 %v264_v1  ;;  %v215_v18 = vunpack.c.l.bf16 %v214_v13  ;;  %v216_v23 = vunpack.c.h.bf16 %v214_v13 }
   0x8   :  { %247 = vmatprep.subr.bf16.mxu0 %v265_v2 }
   0xb   :  { %248 = vmatpush3.bf16.msra.mxu0 %v265_v2 }
   0xc   :  { %249 = vmatprep.subr.bf16.mxu0 %v266_v3 }
   0xf   :  { %250 = vmatpush3.bf16.msra.mxu0 %v266_v3 }
  0x10   :  { %251 = vmatprep.subr.bf16.mxu0 %v267_v5 }
  0x13   :  { %252 = vmatpush3.bf16.msra.mxu0 %v267_v5 }
  0x14   :  { %253 = vmatprep.subr.bf16.mxu0 %v268_v6 }
  0x17   :  { %254 = vmatpush3.bf16.msra.mxu0 %v268_v6 }
  0x18   :  { %255 = vmatprep.subr.bf16.mxu0 %v269_v7 }
  0x1b   :  { %256 = vmatpush3.bf16.msra.mxu0 %v269_v7 }
  0x1c   :  { %257 = vmatprep.subr.bf16.mxu0 %v270_v8 }
  0x1f   :  { %258 = vmatpush3.bf16.msra.mxu0 %v270_v8 }
  0x22   :  { %260 = vmatmul.mubr.bf16.vlgmr.msra.gmra.mxu0 %v272_v9 }
  0xe2   :  { %v261_v12 = vpop.f32.mrf.mxu0 }
  0xe3   :  { %v148_v14 = vadd.f32 %v261_v12, %v194_v10 }
  0xe4   :  { %v139_v16 = vpop.f32.mrf.mxu0 }
  0xe5   :  { %v140_v17 = vadd.f32 %v194_v10, %v139_v16  ;;  %v164_v21 = vadd.f32 %v219_v15, %v148_v14 }
  0xe6   :  { %v262_v20 = vpop.f32.mrf.mxu0 }
  0xe7   :  { %v151_v22 = vadd.f32 %v262_v20, %v194_v10  ;;  %v162_v25 = vadd.f32 %v215_v18, %v140_v17  ;;  %v168_v28 = vmax.f32 %v164_v21, 0.0 }
  0xe8   :  { %v142_v24 = vpop.f32.mrf.mxu0 }
  0xe9   :  { %v165_v26 = vadd.f32 %v220_v19, %v151_v22  ;;  %v143_v27 = vadd.f32 %v194_v10, %v142_v24  ;;  %v166_v31 = vmax.f32 %v162_v25, 0.0 }
  0xeb   :  { %v169_v29 = vmax.f32 %v165_v26, 0.0  ;;  %v163_v30 = vadd.f32 %v216_v23, %v143_v27 }
  0xed   :  { %v229_v32 = vpack.c.bf16 %v169_v29, %v168_v28  ;;  %v167_v33 = vmax.f32 %v163_v30, 0.0 }
  0xef   :  { %232 = vst [vmem:[%s347_s4 + $0x8] sm:$0xff] %v229_v32   ;;  %v224_v34 = vpack.c.bf16 %v167_v33, %v166_v31 }
  0xf1   :  { %225 = vst [vmem:[%s347_s4] sm:$0xff] %v224_v34  }

// kernel: resnet50_forward.12
= control target key start
LH: loop header
LB: loop body
LE: loop exit
PB: predicated region body
PF: predicated region fallthrough
CT: control target
= control target key end

     0   :  { %s1761_s12 = smov 0   ;;  %s1763_s13 = smov 0   ;;  %s2078_s0 = inlined_call_operand.vmem [shape: bf16[2,24,384], index: 0, kind: input, shape index: {}]   ;;  %s2079_s1 = inlined_call_operand.vmem [shape: bf16[3,384,128], index: 1, kind: input, shape index: {}]   ;;  %s2080_s2 = inlined_call_operand.vmem [shape: f32[1,128], index: 2, kind: input, shape index: {}]   ;;  %s2081_s3 = inlined_call_operand.vmem [shape: bf16[2,16,128], index: 3, kind: output, shape index: {}]  }
   0x1   :  { %s1765_s14 = smov 0  }
   0x2 LB: > { %s25_s15 = sadd.s32 1, %s1733_s13  ;;  %p1254_p0 = scmp.ge.s32.totalorder %s1737_s14, 1  ;;  %s1737_s14 = sphi %s1765_s14, %s13_s14   ;;  %s1733_s13 = sphi %s1763_s13, %s2083_s13   ;;  %s1729_s12 = sphi %s1761_s12, %s2082_s12  }
   0x3   : > { %p27_p1 = scmp.ge.s32.totalorder %s25_s15, 2  ;;  %p168_p2 = scmp.lt.s32.totalorder %s1737_s14, 3 }
   0x5   : > { %s2085_s15 = smov (%p27_p1, %s25_s15), 0  ;;  %p169_p3 = pnand %p1254_p0, %p168_p2 }
   0x6   : > { %p202_p4 = scmp.lt.s32.totalorder (!%p169_p3), %s1729_s12, 1 }
   0x7   : > { %172 = sbr.rel (%p169_p3) target bundleno = 322 (0x142), region = 32 }
   0xc   : > { %v1631_v0 = vld [vmem:[%s2079_s1 + $0x138] sm:$0xff]   ;;  %v1739_v1 = vmov 0.0   ;;  %vm1740_vm0 = vmmov 0   ;;  %v1634_v4 = vld [vmem:[%s2079_s1 + $0x130] sm:$0xff]   ;;  %v1637_v7 = vld [vmem:[%s2079_s1 + $0x128] sm:$0xff]   ;;  %s2087_s12 = smov (!%p202_p4, %s1729_s12), 1 }
   0xd   : > { %1544 = vmatprep.subr.bf16.mxu1 %v1739_v1  ;;  %v1632_v2 = vld [vmem:[%s2079_s1 + $0x178] sm:$0xff]   ;;  %1451 = vmatprep.subr.bf16.mxu0 %v1631_v0  ;;  %v1635_v5 = vld [vmem:[%s2079_s1 + $0x170] sm:$0xff]   ;;  %v1638_v8 = vld [vmem:[%s2079_s1 + $0x168] sm:$0xff]   ;;  %s1604_s25 = smul.u32 36, %s2087_s12  ;;  %vm351_vm1 = vcmask 1045504   ;;  %s1443_s4 = sshll.u32 %s2087_s12, 3 }
   0xe   : > { %v1633_v3 = vld [vmem:[%s2079_s1 + $0xf8] sm:$0xff]   ;;  %1560 = vmatprep.mubr.msk.bf16.mxu1 %vm1740_vm0, %v1739_v1  ;;  %1545 = vmatpush3.bf16.msra.mxu1 %v1632_v2  ;;  %v1636_v6 = vld [vmem:[%s2079_s1 + $0xf0] sm:$0xff]   ;;  %v1639_v9 = vld [vmem:[%s2079_s1 + $0xe8] sm:$0xff]   ;;  %s221_s7 = scalar_lea.vmem %s2081_s3, %s1443_s4 }
   0xf   : > { %1452 = vmatpush3.bf16.msra.mxu0 %v1633_v3  ;;  %1546 = vmatprep.subr.bf16.mxu1 %v1739_v1  ;;  %v1640_v10 = vld [vmem:[%s2079_s1 + $0x120] sm:$0xff]   ;;  %v1643_v13 = vld [vmem:[%s2079_s1 + $0x118] sm:$0xff]   ;;  %v1646_v16 = vld [vmem:[%s2079_s1 + $0x110] sm:$0xff]   ;;  %s1857_s9 = scalar_lea.vmem %s2078_s0, %s1604_s25 }
  0x10   : > { %1453 = vmatprep.subr.bf16.mxu0 %v1634_v4  ;;  %v1641_v11 = vld [vmem:[%s2079_s1 + $0x160] sm:$0xff]   ;;  %v1644_v14 = vld [vmem:[%s2079_s1 + $0x158] sm:$0xff]   ;;  %v1647_v17 = vld [vmem:[%s2079_s1 + $0x150] sm:$0xff]  }
  0x11   : > { %v1642_v12 = vld [vmem:[%s2079_s1 + $0xe0] sm:$0xff]   ;;  %v1645_v15 = vld [vmem:[%s2079_s1 + $0xd8] sm:$0xff]   ;;  %v1648_v18 = vld [vmem:[%s2079_s1 + $0xd0] sm:$0xff]  }
  0x12   : > { %1547 = vmatpush3.bf16.msra.mxu1 %v1635_v5  ;;  %v1649_v19 = vld [vmem:[%s2079_s1 + $0x108] sm:$0xff]   ;;  %v1652_v22 = vld [vmem:[%s2079_s1 + $0x100] sm:$0xff]   ;;  %v279_v25 = vld [vmem:[%s1857_s9 + $0x18] sm:$0x33] }
  0x13   : > { %1454 = vmatpush3.bf16.msra.mxu0 %v1636_v6  ;;  %1548 = vmatprep.subr.bf16.mxu1 %v1739_v1  ;;  %v1650_v20 = vld [vmem:[%s2079_s1 + $0x148] sm:$0xff]   ;;  %v275_v23 = vld [vmem:[%s1857_s9] sm:$0xcc]  ;;  %v1310_v28 = vcombine.high %v279_v25, %v279_v25  ;;  %v1877_v30 = vld [vmem:[%s1857_s9 + $0x14] sm:$0xf]  ;;  %v1309_v32 = vcombine.low %v279_v25, %v279_v25 }
  0x14   : > { %1455 = vmatprep.subr.bf16.mxu0 %v1637_v7  ;;  %v1651_v21 = vld [vmem:[%s2079_s1 + $0xc8] sm:$0xff]   ;;  %v1653_v26 = vld [vmem:[%s2079_s1 + $0x140] sm:$0xff]   ;;  %v1661_v43 = vld [vmem:[%s2079_s1 + $0x78] sm:$0xff]  }
  0x15   : > { %v1868_v24 = vld [vmem:[%s1857_s9 + $0xc] sm:$0xff]  ;;  %v276_v29 = vld [vmem:[%s1857_s9 + $0x8] sm:$0xc]  ;;  %v1654_v33 = vld [vmem:[%s2079_s1 + $0xc0] sm:$0xff]   ;;  %v356_v37 = vrot.slane %v1310_v28, 2  ;;  %v353_v39 = vrot.slane %v1309_v32, 2 }
  0x16   : > { %1549 = vmatpush3.bf16.msra.mxu1 %v1638_v8  ;;  %v1307_v27 = vcombine.high %v275_v23, %v1868_v24  ;;  %v1306_v31 = vcombine.low %v275_v23, %v1868_v24  ;;  %v1308_v34 = vcombine.low %v276_v29, %v1877_v30  ;;  %v1658_v35 = vld [vmem:[%s1857_s9 + $0x20] ss:$0 sps:$4 sm:$0x33]   ;;  %v1662_v45 = vld [vmem:[%s2079_s1 + $0xb8] sm:$0xff]   ;;  %v1664_v48 = vld [vmem:[%s2079_s1 + $0x70] sm:$0xff]  }
  0x17   : > { %1456 = vmatpush3.bf16.msra.mxu0 %v1639_v9  ;;  %1550 = vmatprep.subr.bf16.mxu1 %v1739_v1  ;;  %v359_v41 = vrot.slane %v1658_v35, 2  ;;  %v1663_v47 = vld [vmem:[%s2079_s1 + $0x38] sm:$0xff]   ;;  %v1665_v49 = vld [vmem:[%s2079_s1 + $0xb0] sm:$0xff]   ;;  %v1667_v51 = vld [vmem:[%s2079_s1 + $0x68] sm:$0xff]  }
  0x18   : > { %1457 = vmatprep.subr.bf16.mxu0 %v1640_v10  ;;  %v355_v36 = vrot.slane %v1307_v27, 2  ;;  %v352_v38 = vrot.slane %v1306_v31, 2  ;;  %v358_v40 = vrot.slane %v1308_v34, 2  ;;  %v1666_v50 = vld [vmem:[%s2079_s1 + $0x30] sm:$0xff]   ;;  %v1668_v52 = vld [vmem:[%s2079_s1 + $0xa8] sm:$0xff]   ;;  %v1670_v54 = vld [vmem:[%s2079_s1 + $0x60] sm:$0xff]  }
  0x19   : > { %v1669_v53 = vld [vmem:[%s2079_s1 + $0x28] sm:$0xff]   ;;  %v1671_v55 = vld [vmem:[%s2079_s1 + $0xa0] sm:$0xff]   ;;  %v1673_v57 = vld [vmem:[%s2079_s1 + $0x58] sm:$0xff]  }
  0x1a   : > { %1551 = vmatpush3.bf16.msra.mxu1 %v1641_v11  ;;  %v357_v42 = vsel %vm351_vm1, %v355_v36, %v356_v37  ;;  %v360_v44 = vsel %vm351_vm1, %v358_v40, %v359_v41  ;;  %v354_v46 = vsel %vm351_vm1, %v352_v38, %v353_v39  ;;  %v1672_v56 = vld [vmem:[%s2079_s1 + $0x20] sm:$0xff]   ;;  %v1674_v58 = vld [vmem:[%s2079_s1 + $0x98] sm:$0xff]   ;;  %v1676_v60 = vld [vmem:[%s2079_s1 + $0x50] sm:$0xff]  }
  0x1b   : > { %1458 = vmatpush3.bf16.msra.mxu0 %v1642_v12  ;;  %1552 = vmatprep.subr.bf16.mxu1 %v1739_v1  ;;  %v1675_v59 = vld [vmem:[%s2079_s1 + $0x18] sm:$0xff]   ;;  %v1677_v61 = vld [vmem:[%s2079_s1 + $0x90] sm:$0xff]   ;;  %v223_v62 = vld [vmem:[%s1857_s9] sm:$0xff] }
  0x1c   : > { %1459 = vmatprep.subr.bf16.mxu0 %v1643_v13  ;;  %540 = vmatprep.mubr.bf16.mxu0 %v357_v42  ;;  %v1678_v63 = vld [vmem:[%s2079_s1 + $0x10] sm:$0xff]   ;;  %v1337_v0 = vcombine.high %v223_v62, %v1868_v24  ;;  %v1679_v2 = vld [vmem:[%s2079_s1 + $0x48] sm:$0xff]   ;;  %v1682_v5 = vld [vmem:[%s2079_s1 + $0x40] sm:$0xff]   ;;  %v1336_v10 = vcombine.low %v223_v62, %v1868_v24 }
  0x1d   : > { %v1680_v3 = vld [vmem:[%s2079_s1 + $0x88] sm:$0xff]   ;;  %v1683_v6 = vld [vmem:[%s2079_s1 + $0x80] sm:$0xff]   ;;  %v1688_v8 = vld [vmem:[%s2079_s1 + $0x1f8] sm:$0xff]  }
  0x1e   : > { %1553 = vmatpush3.bf16.msra.mxu1 %v1644_v14  ;;  %v1681_v4 = vld [vmem:[%s2079_s1 + $0x8] sm:$0xff]   ;;  %v1684_v7 = vld [vmem:[%s2079_s1] sm:$0xff]   ;;  %v1689_v11 = vld [vmem:[%s2079_s1 + $0x238] sm:$0xff]  }
  0x1f   : > { %1460 = vmatpush3.bf16.msra.mxu0 %v1645_v15  ;;  %1554 = vmatprep.subr.bf16.mxu1 %v1739_v1  ;;  %v1687_v9 = vld [vmem:[%s1857_s9 + $0x8] ss:$12 sps:$4 sm:$0xff]   ;;  %v1690_v12 = vld [vmem:[%s2079_s1 + $0x1b8] sm:$0xff]   ;;  %v1709_v36 = vld [vmem:[%s2079_s1 + $0x1c0] sm:$0xff]  }
  0x20   : > { %1461 = vmatprep.subr.bf16.mxu0 %v1646_v16  ;;  %v1691_v13 = vld [vmem:[%s2079_s1 + $0x1f0] sm:$0xff]   ;;  %v1694_v16 = vld [vmem:[%s2079_s1 + $0x1e8] sm:$0xff]   ;;  %v1700_v23 = vld [vmem:[%s2079_s1 + $0x1d8] sm:$0xff]  }
  0x21   : > { %v1692_v14 = vld [vmem:[%s2079_s1 + $0x230] sm:$0xff]   ;;  %v1701_v28 = vld [vmem:[%s2079_s1 + $0x218] sm:$0xff]   ;;  %v1707_v34 = vld [vmem:[%s2079_s1 + $0x208] sm:$0xff]  }
  0x22   : > { %1555 = vmatpush3.bf16.msra.mxu1 %v1647_v17  ;;  %v1693_v15 = vld [vmem:[%s2079_s1 + $0x1b0] sm:$0xff]   ;;  %v1695_v17 = vld [vmem:[%s2079_s1 + $0x228] sm:$0xff]   ;;  %v1702_v29 = vld [vmem:[%s2079_s1 + $0x198] sm:$0xff]  }
  0x23   : > { %1462 = vmatpush3.bf16.msra.mxu0 %v1648_v18  ;;  %1556 = vmatprep.subr.bf16.mxu1 %v1739_v1  ;;  %v1696_v18 = vld [vmem:[%s2079_s1 + $0x1a8] sm:$0xff]   ;;  %v1703_v31 = vld [vmem:[%s2079_s1 + $0x1d0] sm:$0xff]   ;;  %v1710_v37 = vld [vmem:[%s2079_s1 + $0x200] sm:$0xff]  }
  0x24   : > { %1463 = vmatprep.subr.bf16.mxu0 %v1649_v19  ;;  %v1697_v19 = vld [vmem:[%s2079_s1 + $0x1e0] sm:$0xff]   ;;  %v1705_v32 = vld [vmem:[%s2079_s1 + $0x190] sm:$0xff]   ;;  %v1708_v35 = vld [vmem:[%s2079_s1 + $0x188] sm:$0xff]  }
  0x25   : > { %v1711_v38 = vld [vmem:[%s2079_s1 + $0x180] sm:$0xff]  }
  0x26   : > { %1557 = vmatpush3.bf16.msra.mxu1 %v1650_v20  ;;  %v1698_v20 = vld [vmem:[%s2079_s1 + $0x220] sm:$0xff]  }
  0x27   : > { %1464 = vmatpush3.bf16.msra.mxu0 %v1651_v21  ;;  %1558 = vmatprep.subr.bf16.mxu1 %v1739_v1  ;;  %v1699_v21 = vld [vmem:[%s2079_s1 + $0x1a0] sm:$0xff]  }
  0x28   : > { %1465 = vmatprep.subr.bf16.mxu0 %v1652_v22  ;;  %v832_v22 = vld [vmem:[%s1857_s9 + $0x18] sm:$0xff] }
  0x29   : > { %v1412_v25 = vcombine.high %v1868_v24, %v832_v22  ;;  %v1411_v39 = vcombine.low %v1868_v24, %v832_v22 }
  0x2a   : > { %1559 = vmatpush3.bf16.msra.mxu1 %v1653_v26  ;;  %v833_v26 = vld [vmem:[%s1857_s9 + $0x20] sm:$0xf] }
  0x2b   : > { %1466 = vmatpush3.bf16.msra.mxu0 %v1654_v33  ;;  %1564 = vmatprep.subr.bf16.mxu1 %v1739_v1  ;;  %v1413_v27 = vcombine.low %v1877_v30, %v833_v26  ;;  %v1704_v30 = vld [vmem:[%s2079_s1 + $0x210] sm:$0xff]   ;;  %v1706_v33 = vld [vmem:[%s2079_s1 + $0x1c8] sm:$0xff]  }
  0x2c   : > { %1482 = vmatprep.subr.bf16.mxu0 %v1661_v43 }
  0x2d   : > { %1561 = vmatmul.mubr.bf16.vlgmr.msra.gmra.mxu1 %v360_v44 }
  0x2e   : > { %541 = vmatmul.mubr.bf16.vlgmr.msra.gmra.mxu0 %v354_v46  ;;  %1565 = vmatpush3.bf16.msra.mxu1 %v1662_v45 }
  0x2f   : > { %1483 = vmatpush3.bf16.msra.mxu0 %v1663_v47  ;;  %1566 = vmatprep.subr.bf16.mxu1 %v1739_v1 }
  0x30   : > { %1484 = vmatprep.subr.bf16.mxu0 %v1664_v48  ;;  %1580 = vmatprep.mubr.msk.bf16.mxu1 %vm1740_vm0, %v1739_v1 }
  0x31   : > { %782 = vmatprep.mubr.bf16.mxu0 %v1337_v0 }
  0x32   : > { %1567 = vmatpush3.bf16.msra.mxu1 %v1665_v49 }
  0x33   : > { %1485 = vmatpush3.bf16.msra.mxu0 %v1666_v50  ;;  %1568 = vmatprep.subr.bf16.mxu1 %v1739_v1 }
  0x34   : > { %1486 = vmatprep.subr.bf16.mxu0 %v1667_v51 }
  0x36   : > { %1569 = vmatpush3.bf16.msra.mxu1 %v1668_v52 }
  0x37   : > { %1487 = vmatpush3.bf16.msra.mxu0 %v1669_v53  ;;  %1570 = vmatprep.subr.bf16.mxu1 %v1739_v1 }
  0x38   : > { %1488 = vmatprep.subr.bf16.mxu0 %v1670_v54 }
  0x3a   : > { %1571 = vmatpush3.bf16.msra.mxu1 %v1671_v55 }
  0x3b   : > { %1489 = vmatpush3.bf16.msra.mxu0 %v1672_v56  ;;  %1572 = vmatprep.subr.bf16.mxu1 %v1739_v1 }
  0x3c   : > { %1490 = vmatprep.subr.bf16.mxu0 %v1673_v57 }
  0x3e   : > { %1573 = vmatpush3.bf16.msra.mxu1 %v1674_v58 }
  0x3f   : > { %1491 = vmatpush3.bf16.msra.mxu0 %v1675_v59  ;;  %1574 = vmatprep.subr.bf16.mxu1 %v1739_v1 }
  0x40   : > { %1492 = vmatprep.subr.bf16.mxu0 %v1676_v60 }
  0x42   : > { %1575 = vmatpush3.bf16.msra.mxu1 %v1677_v61 }
  0x43   : > { %1493 = vmatpush3.bf16.msra.mxu0 %v1678_v63  ;;  %1576 = vmatprep.subr.bf16.mxu1 %v1739_v1 }
  0x44   : > { %1494 = vmatprep.subr.bf16.mxu0 %v1679_v2 }
  0x46   : > { %1577 = vmatpush3.bf16.msra.mxu1 %v1680_v3 }
  0x47   : > { %1495 = vmatpush3.bf16.msra.mxu0 %v1681_v4  ;;  %1578 = vmatprep.subr.bf16.mxu1 %v1739_v1 }
  0x48   : > { %1496 = vmatprep.subr.bf16.mxu0 %v1682_v5 }
  0x4a   : > { %1579 = vmatpush3.bf16.msra.mxu1 %v1683_v6 }
  0x4b   : > { %1497 = vmatpush3.bf16.msra.mxu0 %v1684_v7  ;;  %1584 = vmatprep.subr.bf16.mxu1 %v1739_v1 }
  0x4c   : > { %1513 = vmatprep.subr.bf16.mxu0 %v1688_v8 }
  0x4d   : > { %1581 = vmatmul.mubr.bf16.vlgmr.msra.gmra.mxu1 %v1687_v9 }
  0x4e   : > { %783 = vmatmul.mubr.bf16.vlgmr.msra.gmra.mxu0 %v1336_v10  ;;  %1585 = vmatpush3.bf16.msra.mxu1 %v1689_v11 }
  0x4f   : > { %1514 = vmatpush3.bf16.msra.mxu0 %v1690_v12  ;;  %1586 = vmatprep.subr.bf16.mxu1 %v1739_v1  ;;  %v1438_v12 = vld [vmem:[%s2080_s2] ss:$0 sm:$0xff] }
  0x50   : > { %1515 = vmatprep.subr.bf16.mxu0 %v1691_v13  ;;  %1600 = vmatprep.mubr.msk.bf16.mxu1 %vm1740_vm0, %v1739_v1 }
  0x51   : > { %1070 = vmatprep.mubr.bf16.mxu0 %v1412_v25 }
  0x52   : > { %1587 = vmatpush3.bf16.msra.mxu1 %v1692_v14 }
  0x53   : > { %1516 = vmatpush3.bf16.msra.mxu0 %v1693_v15  ;;  %1588 = vmatprep.subr.bf16.mxu1 %v1739_v1 }
  0x54   : > { %1517 = vmatprep.subr.bf16.mxu0 %v1694_v16 }
  0x56   : > { %1589 = vmatpush3.bf16.msra.mxu1 %v1695_v17 }
  0x57   : > { %1518 = vmatpush3.bf16.msra.mxu0 %v1696_v18  ;;  %1590 = vmatprep.subr.bf16.mxu1 %v1739_v1 }
  0x58   : > { %1519 = vmatprep.subr.bf16.mxu0 %v1697_v19 }
  0x5a   : > { %1591 = vmatpush3.bf16.msra.mxu1 %v1698_v20 }
  0x5b   : > { %1520 = vmatpush3.bf16.msra.mxu0 %v1699_v21  ;;  %1592 = vmatprep.subr.bf16.mxu1 %v1739_v1 }
  0x5c   : > { %1521 = vmatprep.subr.bf16.mxu0 %v1700_v23 }
  0x5e   : > { %1593 = vmatpush3.bf16.msra.mxu1 %v1701_v28 }
  0x5f   : > { %1522 = vmatpush3.bf16.msra.mxu0 %v1702_v29  ;;  %1594 = vmatprep.subr.bf16.mxu1 %v1739_v1 }
  0x60   : > { %1523 = vmatprep.subr.bf16.mxu0 %v1703_v31 }
  0x62   : > { %1595 = vmatpush3.bf16.msra.mxu1 %v1704_v30 }
  0x63   : > { %1524 = vmatpush3.bf16.msra.mxu0 %v1705_v32  ;;  %1596 = vmatprep.subr.bf16.mxu1 %v1739_v1 }
  0x64   : > { %1525 = vmatprep.subr.bf16.mxu0 %v1706_v33 }
  0x66   : > { %1597 = vmatpush3.bf16.msra.mxu1 %v1707_v34 }
  0x67   : > { %1526 = vmatpush3.bf16.msra.mxu0 %v1708_v35  ;;  %1598 = vmatprep.subr.bf16.mxu1 %v1739_v1 }
  0x68   : > { %1527 = vmatprep.subr.bf16.mxu0 %v1709_v36 }
  0x6a   : > { %1599 = vmatpush3.bf16.msra.mxu1 %v1710_v37 }
  0x6b   : > { %1528 = vmatpush3.bf16.msra.mxu0 %v1711_v38 }
  0x6d   : > { %1601 = vmatmul.mubr.bf16.vlgmr.msra.gmra.mxu1 %v1413_v27 }
  0x6e   : > { %1071 = vmatmul.mubr.bf16.vlgmr.msra.gmra.mxu0 %v1411_v39 }
  0xed   : > { %v583_v40 = vpop.f32.mrf.mxu1 }
  0xee   : > { %v1467_v47 = vpop.f32.mrf.mxu0 }
  0xef   : > { %v1562_v41 = vpop.f32.mrf.mxu1 }
  0xf0   : > { %v1468_v48 = vpop.f32.mrf.mxu0 }
  0xf1   : > { %v586_v42 = vpop.f32.mrf.mxu1  ;;  %v1469_v54 = vadd.f32 %v1468_v48, %v1467_v47 }
  0xf2   : > { %v1470_v49 = vpop.f32.mrf.mxu0 }
  0xf3   : > { %v1563_v43 = vpop.f32.mrf.mxu1  ;;  %v584_v56 = vadd.f32 %v1469_v54, %v583_v40 }
  0xf4   : > { %v1471_v50 = vpop.f32.mrf.mxu0 }
  0xf5   : > { %v1472_v57 = vadd.f32 %v1471_v50, %v1470_v49 }
  0xf7   : > { %v587_v0 = vadd.f32 %v1472_v57, %v586_v42 }
 0x10d   : > { %v825_v44 = vpop.f32.mrf.mxu1 }
 0x10e   : > { %v1498_v51 = vpop.f32.mrf.mxu0 }
 0x10f   : > { %v1582_v45 = vpop.f32.mrf.mxu1 }
 0x110   : > { %v1499_v52 = vpop.f32.mrf.mxu0 }
 0x111   : > { %v828_v46 = vpop.f32.mrf.mxu1  ;;  %v1500_v24 = vadd.f32 %v1499_v52, %v1498_v51 }
 0x112   : > { %v1501_v53 = vpop.f32.mrf.mxu0 }
 0x113   : > { %v1583_v1 = vpop.f32.mrf.mxu1  ;;  %v785_v60 = vadd.f32 %v1500_v24, %v584_v56 }
 0x114   : > { %v1502_v55 = vpop.f32.mrf.mxu0 }
 0x115   : > { %v1503_v61 = vadd.f32 %v1502_v55, %v1501_v53  ;;  %v826_v5 = vadd.f32 %v825_v44, %v785_v60 }
 0x117   : > { %v788_v6 = vadd.f32 %v1503_v61, %v587_v0 }
 0x119   : > { %v829_v13 = vadd.f32 %v828_v46, %v788_v6 }
 0x12d   : > { %v1113_v58 = vpop.f32.mrf.mxu1 }
 0x12e   : > { %v1529_v59 = vpop.f32.mrf.mxu0 }
 0x12f   : > { %v1602_v62 = vpop.f32.mrf.mxu1 }
 0x130   : > { %v1530_v63 = vpop.f32.mrf.mxu0 }
 0x131   : > { %v1531_v2 = vadd.f32 %v1530_v63, %v1529_v59  ;;  %v1116_v3 = vpop.f32.mrf.mxu1 }
 0x132   : > { %v1532_v4 = vpop.f32.mrf.mxu0 }
 0x133   : > { %v1114_v7 = vadd.f32 %v1531_v2, %v1113_v58  ;;  %v1603_v8 = vpop.f32.mrf.mxu1 }
 0x134   : > { %v1533_v9 = vpop.f32.mrf.mxu0 }
 0x135   : > { %v1120_v10 = vadd.f32 %v1114_v7, %v826_v5  ;;  %v1534_v11 = vadd.f32 %v1533_v9, %v1532_v4 }
 0x137   : > { %v1117_v14 = vadd.f32 %v1534_v11, %v1116_v3  ;;  %v1129_v15 = vadd.f32 %v1438_v12, %v1120_v10 }
 0x139   : > { %v1121_v16 = vadd.f32 %v1117_v14, %v829_v13  ;;  %v1131_v18 = vmax.f32 %v1129_v15, 0.0 }
 0x13b   : > { %v1130_v17 = vadd.f32 %v1438_v12, %v1121_v16 }
 0x13d   : > { %v1132_v19 = vmax.f32 %v1130_v17, 0.0 }
 0x13f   : > { %v1449_v20 = vpack.c.bf16 %v1132_v19, %v1131_v18 }
 0x141   : > { %1450 = vst [vmem:[%s221_s7] sm:$0xff] %v1449_v20  }
 0x142 PF: > { %s13_s14 = sadd.s32 1, %s1737_s14   ;;  %s2082_s12 = smov %s1733_s13 }
 0x143   : > { %p10_p5 = scmp.ge.s32.totalorder %s13_s14, 4   ;;  %s2083_s13 = smov %s2085_s15 }
 0x145   :  { %12 = sbr.rel (!%p10_p5) target bundleno = 2 (0x2), region = 70 }

// kernel: resnet50_forward.16
= control target key start
LH: loop header
LB: loop body
LE: loop exit
PB: predicated region body
PF: predicated region fallthrough
CT: control target
= control target key end

     0   :  { %s1535_s15 = smov 0   ;;  %s1537_s16 = smov 0   ;;  %s1823_s0 = inlined_call_operand.vmem [shape: bf16[32,512], index: 0, kind: input, shape index: {}]   ;;  %s1824_s1 = inlined_call_operand.vmem [shape: bf16[512,2048], index: 1, kind: input, shape index: {}]   ;;  %s1825_s2 = inlined_call_operand.vmem [shape: f32[1,2048], index: 2, kind: input, shape index: {}]   ;;  %s1826_s3 = inlined_call_operand.vmem [shape: bf16[32,2560], index: 3, kind: input, shape index: {}]   ;;  %s1827_s4 = inlined_call_operand.vmem [shape: bf16[32,2048], index: 4, kind: output, shape index: {}]  }
   0x1   :  { %s1539_s17 = smov 0   ;;  %s1541_s18 = smov 0  }
   0x2   :  { %s1543_s19 = smov 0  }
   0x3 LB: > { %s23_s20 = sadd.s32 1, %s1504_s18  ;;  %s1244_s21 = sadd.s32 4294967295, %s1508_s19   ;;  %s1508_s19 = sphi %s1543_s19, %s14_s19   ;;  %s1504_s18 = sphi %s1541_s18, %s1833_s18   ;;  %s1500_s17 = sphi %s1539_s17, %s1832_s17   ;;  %s1496_s16 = sphi %s1537_s16, %s1831_s16   ;;  %s1492_s15 = sphi %s1535_s15, %s1830_s15  }
   0x4   : > { %p24_p0 = scmp.ge.s32.totalorder %s23_s20, 16  ;;  %p66_p1 = scmp.ne.s32.totalorder %s1496_s16, %s1492_s15 }
   0x5   : > { %p67_p2 = scmp.eq.s32.totalorder %s1508_s19, 0  ;;  %p152_p4 = scmp.eq.s32.totalorder %s1244_s21, 15 }
   0x6   : > { %s1835_s20 = smov (%p24_p0, %s23_s20), 0  ;;  %s59_s24 = sadd.s32 1, %s1496_s16 }
   0x7   : > { %p1567_p3 = por %p67_p2, %p66_p1  ;;  %s56_s23 = ssub.s32 %s1504_s18, %s1835_s20 }
   0x8   : > { %p57_p5 = scmp.eq.s32.totalorder %s56_s23, 0  ;;  %p1574_p6 = por %p152_p4, %p66_p1 }
   0x9   : > { %p1248_p7 = scmp.ge.s32.totalorder %s1508_s19, 16 }
   0xa   : > { %s1579_s26 = scalar_select %p57_p5, %s1496_s16, %s59_s24  }
   0xb   : > { %184 = sbr.rel (%p1248_p7) target bundleno = 91 (0x5b), region = 20 }
  0x10   : > { %187 = sbr.rel (!%p1567_p3) target bundleno = 84 (0x54), region = 24  ;;  %s189_s27 = sand.u32 (%p1567_p3), 1, %s1496_s16  }
  0x11   : > { %s1250_s28 = sshll.u32 (%p1567_p3), %s1504_s18, 2  ;;  %s1249_s29 = sshll.u32 (%p1567_p3), %s189_s27, 8 }
  0x12   : > { %s1589_s6 = scalar_lea.vmem (%p1567_p3), %s1824_s1, %s1250_s28  ;;  %s1593_s7 = scalar_lea.vmem (%p1567_p3), [#allocation2], %s1249_s29 }
  0x13   : > { %v210_v0 = vld [vmem:[%s1589_s6] sm:$0xf] (%p1567_p3) }
  0x14   : > { %v212_v1 = vld [vmem:[%s1589_s6 + $0x40] sm:$0xf] (%p1567_p3)  ;;  %211 = vst [vmem:[%s1593_s7] sm:$0xf] (%p1567_p3), %v210_v0 }
  0x15   : > { %213 = vst [vmem:[%s1593_s7 + $0x4] sm:$0xf] %v212_v1  ;;  %v214_v2 = vld [vmem:[%s1589_s6 + $0x80] sm:$0xf] }
  0x16   : > { %v216_v3 = vld [vmem:[%s1589_s6 + $0xc0] sm:$0xf]  ;;  %215 = vst [vmem:[%s1593_s7 + $0x8] sm:$0xf] %v214_v2 }
  0x17   : > { %v218_v4 = vld [vmem:[%s1589_s6 + $0x100] sm:$0xf]  ;;  %217 = vst [vmem:[%s1593_s7 + $0xc] sm:$0xf] %v216_v3 }
  0x18   : > { %219 = vst [vmem:[%s1593_s7 + $0x10] sm:$0xf] %v218_v4  ;;  %v220_v5 = vld [vmem:[%s1589_s6 + $0x140] sm:$0xf] }
  0x19   : > { %v222_v6 = vld [vmem:[%s1589_s6 + $0x180] sm:$0xf]  ;;  %221 = vst [vmem:[%s1593_s7 + $0x14] sm:$0xf] %v220_v5 }
  0x1a   : > { %v224_v7 = vld [vmem:[%s1589_s6 + $0x1c0] sm:$0xf]  ;;  %223 = vst [vmem:[%s1593_s7 + $0x18] sm:$0xf] %v222_v6 }
  0x1b   : > { %225 = vst [vmem:[%s1593_s7 + $0x1c] sm:$0xf] %v224_v7  ;;  %v226_v8 = vld [vmem:[%s1589_s6 + $0x200] sm:$0xf] }
  0x1c   : > { %v228_v9 = vld [vmem:[%s1589_s6 + $0x240] sm:$0xf]  ;;  %227 = vst [vmem:[%s1593_s7 + $0x20] sm:$0xf] %v226_v8 }
  0x1d   : > { %v230_v10 = vld [vmem:[%s1589_s6 + $0x280] sm:$0xf]  ;;  %229 = vst [vmem:[%s1593_s7 + $0x24] sm:$0xf] %v228_v9 }
  0x1e   : > { %231 = vst [vmem:[%s1593_s7 + $0x28] sm:$0xf] %v230_v10  ;;  %v232_v11 = vld [vmem:[%s1589_s6 + $0x2c0] sm:$0xf] }
  0x1f   : > { %v234_v12 = vld [vmem:[%s1589_s6 + $0x300] sm:$0xf]  ;;  %233 = vst [vmem:[%s1593_s7 + $0x2c] sm:$0xf] %v232_v11 }
  0x20   : > { %v236_v13 = vld [vmem:[%s1589_s6 + $0x340] sm:$0xf]  ;;  %235 = vst [vmem:[%s1593_s7 + $0x30] sm:$0xf] %v234_v12 }
  0x21   : > { %237 = vst [vmem:[%s1593_s7 + $0x34] sm:$0xf] %v236_v13  ;;  %v238_v14 = vld [vmem:[%s1589_s6 + $0x380] sm:$0xf] }
  0x22   : > { %v240_v15 = vld [vmem:[%s1589_s6 + $0x3c0] sm:$0xf]  ;;  %239 = vst [vmem:[%s1593_s7 + $0x38] sm:$0xf] %v238_v14 }
  0x23   : > { %v242_v16 = vld [vmem:[%s1589_s6 + $0x400] sm:$0xf]  ;;  %241 = vst [vmem:[%s1593_s7 + $0x3c] sm:$0xf] %v240_v15 }
  0x24   : > { %243 = vst [vmem:[%s1593_s7 + $0x40] sm:$0xf] %v242_v16  ;;  %v244_v17 = vld [vmem:[%s1589_s6 + $0x440] sm:$0xf] }
  0x25   : > { %v246_v18 = vld [vmem:[%s1589_s6 + $0x480] sm:$0xf]  ;;  %245 = vst [vmem:[%s1593_s7 + $0x44] sm:$0xf] %v244_v17 }
  0x26   : > { %v248_v19 = vld [vmem:[%s1589_s6 + $0x4c0] sm:$0xf]  ;;  %247 = vst [vmem:[%s1593_s7 + $0x48] sm:$0xf] %v246_v18 }
  0x27   : > { %249 = vst [vmem:[%s1593_s7 + $0x4c] sm:$0xf] %v248_v19  ;;  %v250_v20 = vld [vmem:[%s1589_s6 + $0x500] sm:$0xf] }
  0x28   : > { %v252_v21 = vld [vmem:[%s1589_s6 + $0x540] sm:$0xf]  ;;  %251 = vst [vmem:[%s1593_s7 + $0x50] sm:$0xf] %v250_v20 }
  0x29   : > { %v254_v22 = vld [vmem:[%s1589_s6 + $0x580] sm:$0xf]  ;;  %253 = vst [vmem:[%s1593_s7 + $0x54] sm:$0xf] %v252_v21 }
  0x2a   : > { %255 = vst [vmem:[%s1593_s7 + $0x58] sm:$0xf] %v254_v22  ;;  %v256_v23 = vld [vmem:[%s1589_s6 + $0x5c0] sm:$0xf] }
  0x2b   : > { %v258_v24 = vld [vmem:[%s1589_s6 + $0x600] sm:$0xf]  ;;  %257 = vst [vmem:[%s1593_s7 + $0x5c] sm:$0xf] %v256_v23 }
  0x2c   : > { %v260_v25 = vld [vmem:[%s1589_s6 + $0x640] sm:$0xf]  ;;  %259 = vst [vmem:[%s1593_s7 + $0x60] sm:$0xf] %v258_v24 }
  0x2d   : > { %261 = vst [vmem:[%s1593_s7 + $0x64] sm:$0xf] %v260_v25  ;;  %v262_v26 = vld [vmem:[%s1589_s6 + $0x680] sm:$0xf] }
  0x2e   : > { %v264_v27 = vld [vmem:[%s1589_s6 + $0x6c0] sm:$0xf]  ;;  %263 = vst [vmem:[%s1593_s7 + $0x68] sm:$0xf] %v262_v26 }
  0x2f   : > { %v266_v28 = vld [vmem:[%s1589_s6 + $0x700] sm:$0xf]  ;;  %265 = vst [vmem:[%s1593_s7 + $0x6c] sm:$0xf] %v264_v27 }
  0x30   : > { %267 = vst [vmem:[%s1593_s7 + $0x70] sm:$0xf] %v266_v28  ;;  %v268_v29 = vld [vmem:[%s1589_s6 + $0x740] sm:$0xf] }
  0x31   : > { %v270_v30 = vld [vmem:[%s1589_s6 + $0x780] sm:$0xf]  ;;  %269 = vst [vmem:[%s1593_s7 + $0x74] sm:$0xf] %v268_v29 }
  0x32   : > { %v272_v31 = vld [vmem:[%s1589_s6 + $0x7c0] sm:$0xf]  ;;  %271 = vst [vmem:[%s1593_s7 + $0x78] sm:$0xf] %v270_v30 }
  0x33   : > { %273 = vst [vmem:[%s1593_s7 + $0x7c] sm:$0xf] %v272_v31  ;;  %v274_v32 = vld [vmem:[%s1589_s6 + $0x800] sm:$0xf] }
  0x34   : > { %v276_v33 = vld [vmem:[%s1589_s6 + $0x840] sm:$0xf]  ;;  %275 = vst [vmem:[%s1593_s7 + $0x80] sm:$0xf] %v274_v32 }
  0x35   : > { %v278_v34 = vld [vmem:[%s1589_s6 + $0x880] sm:$0xf]  ;;  %277 = vst [vmem:[%s1593_s7 + $0x84] sm:$0xf] %v276_v33 }
  0x36   : > { %279 = vst [vmem:[%s1593_s7 + $0x88] sm:$0xf] %v278_v34  ;;  %v280_v35 = vld [vmem:[%s1589_s6 + $0x8c0] sm:$0xf] }
  0x37   : > { %v282_v36 = vld [vmem:[%s1589_s6 + $0x900] sm:$0xf]  ;;  %281 = vst [vmem:[%s1593_s7 + $0x8c] sm:$0xf] %v280_v35 }
  0x38   : > { %v284_v37 = vld [vmem:[%s1589_s6 + $0x940] sm:$0xf]  ;;  %283 = vst [vmem:[%s1593_s7 + $0x90] sm:$0xf] %v282_v36 }
  0x39   : > { %285 = vst [vmem:[%s1593_s7 + $0x94] sm:$0xf] %v284_v37  ;;  %v286_v38 = vld [vmem:[%s1589_s6 + $0x980] sm:$0xf] }
  0x3a   : > { %v288_v39 = vld [vmem:[%s1589_s6 + $0x9c0] sm:$0xf]  ;;  %287 = vst [vmem:[%s1593_s7 + $0x98] sm:$0xf] %v286_v38 }
  0x3b   : > { %v290_v40 = vld [vmem:[%s1589_s6 + $0xa00] sm:$0xf]  ;;  %289 = vst [vmem:[%s1593_s7 + $0x9c] sm:$0xf] %v288_v39 }
  0x3c   : > { %291 = vst [vmem:[%s1593_s7 + $0xa0] sm:$0xf] %v290_v40  ;;  %v292_v41 = vld [vmem:[%s1589_s6 + $0xa40] sm:$0xf] }
  0x3d   : > { %v294_v42 = vld [vmem:[%s1589_s6 + $0xa80] sm:$0xf]  ;;  %293 = vst [vmem:[%s1593_s7 + $0xa4] sm:$0xf] %v292_v41 }
  0x3e   : > { %v296_v43 = vld [vmem:[%s1589_s6 + $0xac0] sm:$0xf]  ;;  %295 = vst [vmem:[%s1593_s7 + $0xa8] sm:$0xf] %v294_v42 }
  0x3f   : > { %297 = vst [vmem:[%s1593_s7 + $0xac] sm:$0xf] %v296_v43  ;;  %v298_v44 = vld [vmem:[%s1589_s6 + $0xb00] sm:$0xf] }
  0x40   : > { %v300_v45 = vld [vmem:[%s1589_s6 + $0xb40] sm:$0xf]  ;;  %299 = vst [vmem:[%s1593_s7 + $0xb0] sm:$0xf] %v298_v44 }
  0x41   : > { %v302_v46 = vld [vmem:[%s1589_s6 + $0xb80] sm:$0xf]  ;;  %301 = vst [vmem:[%s1593_s7 + $0xb4] sm:$0xf] %v300_v45 }
  0x42   : > { %303 = vst [vmem:[%s1593_s7 + $0xb8] sm:$0xf] %v302_v46  ;;  %v304_v47 = vld [vmem:[%s1589_s6 + $0xbc0] sm:$0xf] }
  0x43   : > { %v306_v48 = vld [vmem:[%s1589_s6 + $0xc00] sm:$0xf]  ;;  %305 = vst [vmem:[%s1593_s7 + $0xbc] sm:$0xf] %v304_v47 }
  0x44   : > { %v308_v49 = vld [vmem:[%s1589_s6 + $0xc40] sm:$0xf]  ;;  %307 = vst [vmem:[%s1593_s7 + $0xc0] sm:$0xf] %v306_v48 }
  0x45   : > { %309 = vst [vmem:[%s1593_s7 + $0xc4] sm:$0xf] %v308_v49  ;;  %v310_v50 = vld [vmem:[%s1589_s6 + $0xc80] sm:$0xf] }
  0x46   : > { %v312_v51 = vld [vmem:[%s1589_s6 + $0xcc0] sm:$0xf]  ;;  %311 = vst [vmem:[%s1593_s7 + $0xc8] sm:$0xf] %v310_v50 }
  0x47   : > { %v314_v52 = vld [vmem:[%s1589_s6 + $0xd00] sm:$0xf]  ;;  %313 = vst [vmem:[%s1593_s7 + $0xcc] sm:$0xf] %v312_v51 }
  0x48   : > { %315 = vst [vmem:[%s1593_s7 + $0xd0] sm:$0xf] %v314_v52  ;;  %v316_v53 = vld [vmem:[%s1589_s6 + $0xd40] sm:$0xf] }
  0x49   : > { %v318_v54 = vld [vmem:[%s1589_s6 + $0xd80] sm:$0xf]  ;;  %317 = vst [vmem:[%s1593_s7 + $0xd4] sm:$0xf] %v316_v53 }
  0x4a   : > { %v320_v55 = vld [vmem:[%s1589_s6 + $0xdc0] sm:$0xf]  ;;  %319 = vst [vmem:[%s1593_s7 + $0xd8] sm:$0xf] %v318_v54 }
  0x4b   : > { %321 = vst [vmem:[%s1593_s7 + $0xdc] sm:$0xf] %v320_v55  ;;  %v322_v56 = vld [vmem:[%s1589_s6 + $0xe00] sm:$0xf] }
  0x4c   : > { %v324_v57 = vld [vmem:[%s1589_s6 + $0xe40] sm:$0xf]  ;;  %323 = vst [vmem:[%s1593_s7 + $0xe0] sm:$0xf] %v322_v56 }
  0x4d   : > { %v326_v58 = vld [vmem:[%s1589_s6 + $0xe80] sm:$0xf]  ;;  %325 = vst [vmem:[%s1593_s7 + $0xe4] sm:$0xf] %v324_v57 }
  0x4e   : > { %327 = vst [vmem:[%s1593_s7 + $0xe8] sm:$0xf] %v326_v58  ;;  %v328_v59 = vld [vmem:[%s1589_s6 + $0xec0] sm:$0xf] }
  0x4f   : > { %v330_v60 = vld [vmem:[%s1589_s6 + $0xf00] sm:$0xf]  ;;  %329 = vst [vmem:[%s1593_s7 + $0xec] sm:$0xf] %v328_v59 }
  0x50   : > { %v332_v61 = vld [vmem:[%s1589_s6 + $0xf40] sm:$0xf]  ;;  %331 = vst [vmem:[%s1593_s7 + $0xf0] sm:$0xf] %v330_v60 }
  0x51   : > { %333 = vst [vmem:[%s1593_s7 + $0xf4] sm:$0xf] %v332_v61  ;;  %v334_v62 = vld [vmem:[%s1589_s6 + $0xf80] sm:$0xf] }
  0x52   : > { %v336_v63 = vld [vmem:[%s1589_s6 + $0xfc0] sm:$0xf]  ;;  %335 = vst [vmem:[%s1593_s7 + $0xf8] sm:$0xf] %v334_v62 }
  0x53   : > { %337 = vst [vmem:[%s1593_s7 + $0xfc] sm:$0xf] %v336_v63 }
  0x54 PF: > { %495 = sbr.rel (!%p1567_p3) target bundleno = 91 (0x5b), region = 69  ;;  %s497_s8 = sand.u32 (%p1567_p3), 1, %s1496_s16  }
  0x55   : > { %s1252_s9 = sshll.u32 (%p1567_p3), %s1504_s18, 2  ;;  %s1251_s10 = sshll.u32 (%p1567_p3), %s497_s8, 4 }
  0x56   : > { %s504_s13 = scalar_lea.vmem (%p1567_p3), %s1826_s3, %s1252_s9  ;;  %s499_s14 = scalar_lea.vmem (%p1567_p3), [#allocation3], %s1251_s10 }
  0x57   : > { %v521_v0 = vld [vmem:[%s504_s13] sm:$0xf] (%p1567_p3)  ;;  %v523_v1 = vld [vmem:[%s504_s13 + $0x50] sm:$0xf] (%p1567_p3) }
  0x58   : > { %522 = vst [vmem:[%s499_s14] sm:$0xf] (%p1567_p3), %v521_v0  ;;  %524 = vst [vmem:[%s499_s14 + $0x4] sm:$0xf] (%p1567_p3), %v523_v1  ;;  %v525_v2 = vld [vmem:[%s504_s13 + $0xa0] sm:$0xf] (%p1567_p3) }
  0x59   : > { %v527_v3 = vld [vmem:[%s504_s13 + $0xf0] sm:$0xf]  ;;  %526 = vst [vmem:[%s499_s14 + $0x8] sm:$0xf] %v525_v2 }
  0x5a   : > { %528 = vst [vmem:[%s499_s14 + $0xc] sm:$0xf] %v527_v3 }
  0x5b PF: > { %p1253_p8 = scmp.ge.s32.totalorder %s1508_s19, 1  ;;  %p559_p9 = scmp.lt.s32.totalorder %s1508_s19, 17 }
  0x5d   : > { %p560_p10 = pnand %p1253_p8, %p559_p9 }
  0x5e   : > { %s566_s21 = sand.u32 (!%p560_p10), 1, %s1492_s15   ;;  %p617_p11 = scmp.lt.s32.totalorder (!%p560_p10), %s1500_s17, 15 }
  0x5f   : > { %563 = sbr.rel (%p560_p10) target bundleno = 363 (0x16b), region = 110  ;;  %s1254_s22 = sshll.u32 (!%p560_p10), %s566_s21, 8 }
  0x60   : > { %s1739_s29 = scalar_lea.vmem (!%p560_p10), [#allocation2], %s1254_s22  ;;  %s1795_s24 = sshll.u32 (!%p560_p10), %s566_s21, 4 }
  0x61   : > { %s575_s30 = scalar_lea.vmem (!%p560_p10), [#allocation3], %s1795_s24  ;;  %s609_s15 = scalar_lea.vmem (!%p560_p10), [#allocation4], %s1795_s24 }
  0x64   : > { %v1460_v4 = vld [vmem:[%s1823_s0 + $0x4] ss:$16 sps:$4 sm:$0xff]   ;;  %v1463_v5 = vld [vmem:[%s1823_s0 + $0xc] ss:$16 sps:$4 sm:$0xff]   ;;  %v1458_v36 = vld [vmem:[%s1823_s0] ss:$16 sps:$4 sm:$0xff]  }
  0x65   : > { %v1426_v6 = vld [vmem:[%s1739_s29 + $0x78] sm:$0xff]   ;;  %966 = vmatprep.mubr.bf16.mxu0 %v1460_v4  ;;  %1015 = vmatprep.mubr.bf16.mxu1 %v1463_v5  ;;  %v1430_v10 = vld [vmem:[%s1739_s29 + $0x70] sm:$0xff]   ;;  %v1434_v14 = vld [vmem:[%s1739_s29 + $0x68] sm:$0xff]   ;;  %s618_s23 = scalar_select %p617_p11, %s1500_s17, 15 }
  0x66   : > { %v1427_v7 = vld [vmem:[%s1739_s29 + $0xf8] sm:$0xff]   ;;  %1330 = vmatprep.subr.bf16.mxu0 %v1426_v6  ;;  %v1431_v11 = vld [vmem:[%s1739_s29 + $0xf0] sm:$0xff]   ;;  %v1435_v15 = vld [vmem:[%s1739_s29 + $0xe8] sm:$0xff]   ;;  %s1303_s21 = sshll.u32 (%p1574_p6), %s1500_s17, 2 }
  0x67   : > { %v1428_v8 = vld [vmem:[%s1739_s29 + $0x38] sm:$0xff]   ;;  %1358 = vmatprep.subr.bf16.mxu1 %v1427_v7  ;;  %v1432_v12 = vld [vmem:[%s1739_s29 + $0x30] sm:$0xff]   ;;  %v1436_v16 = vld [vmem:[%s1739_s29 + $0x28] sm:$0xff]   ;;  %s1079_s7 = scalar_lea.vmem (%p1574_p6), %s1827_s4, %s1303_s21 }
  0x68   : > { %v1429_v9 = vld [vmem:[%s1739_s29 + $0xb8] sm:$0xff]   ;;  %1331 = vmatpush3.bf16.msra.mxu0 %v1428_v8  ;;  %v1433_v13 = vld [vmem:[%s1739_s29 + $0xb0] sm:$0xff]   ;;  %v1437_v17 = vld [vmem:[%s1739_s29 + $0xa8] sm:$0xff]  }
  0x69   : > { %1359 = vmatpush3.bf16.msra.mxu1 %v1429_v9  ;;  %1332 = vmatprep.subr.bf16.mxu0 %v1430_v10  ;;  %v1438_v18 = vld [vmem:[%s1739_s29 + $0x60] sm:$0xff]   ;;  %v1442_v22 = vld [vmem:[%s1739_s29 + $0x58] sm:$0xff]   ;;  %v1446_v26 = vld [vmem:[%s1739_s29 + $0x50] sm:$0xff]  }
  0x6a   : > { %1360 = vmatprep.subr.bf16.mxu1 %v1431_v11  ;;  %v1439_v19 = vld [vmem:[%s1739_s29 + $0xe0] sm:$0xff]   ;;  %v1443_v23 = vld [vmem:[%s1739_s29 + $0xd8] sm:$0xff]   ;;  %v1447_v27 = vld [vmem:[%s1739_s29 + $0xd0] sm:$0xff]  }
  0x6b   : > { %v1440_v20 = vld [vmem:[%s1739_s29 + $0x20] sm:$0xff]   ;;  %v1444_v24 = vld [vmem:[%s1739_s29 + $0x18] sm:$0xff]   ;;  %v1448_v28 = vld [vmem:[%s1739_s29 + $0x10] sm:$0xff]  }
  0x6c   : > { %1333 = vmatpush3.bf16.msra.mxu0 %v1432_v12  ;;  %v1441_v21 = vld [vmem:[%s1739_s29 + $0xa0] sm:$0xff]   ;;  %v1445_v25 = vld [vmem:[%s1739_s29 + $0x98] sm:$0xff]   ;;  %v1449_v29 = vld [vmem:[%s1739_s29 + $0x90] sm:$0xff]  }
  0x6d   : > { %1361 = vmatpush3.bf16.msra.mxu1 %v1433_v13  ;;  %1334 = vmatprep.subr.bf16.mxu0 %v1434_v14  ;;  %v1450_v30 = vld [vmem:[%s1739_s29 + $0x48] sm:$0xff]   ;;  %v1454_v34 = vld [vmem:[%s1739_s29 + $0x40] sm:$0xff]  }
  0x6e   : > { %1362 = vmatprep.subr.bf16.mxu1 %v1435_v15  ;;  %v1451_v31 = vld [vmem:[%s1739_s29 + $0xc8] sm:$0xff]   ;;  %v1455_v35 = vld [vmem:[%s1739_s29 + $0xc0] sm:$0xff]  }
  0x6f   : > { %v1452_v32 = vld [vmem:[%s1739_s29 + $0x8] sm:$0xff]   ;;  %v1456_v37 = vld [vmem:[%s1739_s29] sm:$0xff]  }
  0x70   : > { %1335 = vmatpush3.bf16.msra.mxu0 %v1436_v16  ;;  %v1453_v33 = vld [vmem:[%s1739_s29 + $0x88] sm:$0xff]   ;;  %v1457_v39 = vld [vmem:[%s1739_s29 + $0x80] sm:$0xff]   ;;  %s619_s29 = scalar_lea.vmem %s1825_s2, %s618_s23 }
  0x71   : > { %1363 = vmatpush3.bf16.msra.mxu1 %v1437_v17  ;;  %1336 = vmatprep.subr.bf16.mxu0 %v1438_v18  ;;  %v1461_v38 = vld [vmem:[%s1823_s0 + $0x8] ss:$16 sps:$4 sm:$0xff]   ;;  %v1464_v40 = vld [vmem:[%s1823_s0 + $0x24] ss:$16 sps:$4 sm:$0xff]   ;;  %v1466_v41 = vld [vmem:[%s1823_s0 + $0x2c] ss:$16 sps:$4 sm:$0xff]  }
  0x72   : > { %1364 = vmatprep.subr.bf16.mxu1 %v1439_v19  ;;  %v1468_v42 = vld [vmem:[%s1823_s0 + $0x20] ss:$16 sps:$4 sm:$0xff]   ;;  %v1469_v43 = vld [vmem:[%s1823_s0 + $0x28] ss:$16 sps:$4 sm:$0xff]  }
  0x73   : > { %v1257_v46 = vld [vmem:[%s619_s29] ss:$0 sm:$0xff]  ;;  %v1328_v6 = vld [vmem:[%s575_s30 + $0x8] sm:$0xff]  }
  0x74   : > { %1337 = vmatpush3.bf16.msra.mxu0 %v1440_v20  ;;  %v1311_v50 = vld [vmem:[%s575_s30] sm:$0xff]   ;;  %v1316_v12 = vunpack.c.l.bf16 %v1328_v6 }
  0x75   : > { %1365 = vmatpush3.bf16.msra.mxu1 %v1441_v21  ;;  %1338 = vmatprep.subr.bf16.mxu0 %v1442_v22  ;;  %v1312_v57 = vunpack.c.l.bf16 %v1311_v50  ;;  %v1313_v63 = vunpack.c.h.bf16 %v1311_v50  ;;  %v1317_v22 = vunpack.c.h.bf16 %v1328_v6 }
  0x76   : > { %1366 = vmatprep.subr.bf16.mxu1 %v1443_v23 }
  0x78   : > { %1339 = vmatpush3.bf16.msra.mxu0 %v1444_v24 }
  0x79   : > { %1367 = vmatpush3.bf16.msra.mxu1 %v1445_v25  ;;  %1340 = vmatprep.subr.bf16.mxu0 %v1446_v26 }
  0x7a   : > { %1368 = vmatprep.subr.bf16.mxu1 %v1447_v27 }
  0x7c   : > { %1341 = vmatpush3.bf16.msra.mxu0 %v1448_v28 }
  0x7d   : > { %1369 = vmatpush3.bf16.msra.mxu1 %v1449_v29  ;;  %1342 = vmatprep.subr.bf16.mxu0 %v1450_v30 }
  0x7e   : > { %1370 = vmatprep.subr.bf16.mxu1 %v1451_v31 }
  0x80   : > { %1343 = vmatpush3.bf16.msra.mxu0 %v1452_v32 }
  0x81   : > { %1371 = vmatpush3.bf16.msra.mxu1 %v1453_v33  ;;  %1344 = vmatprep.subr.bf16.mxu0 %v1454_v34 }
  0x82   : > { %1372 = vmatprep.subr.bf16.mxu1 %v1455_v35 }
  0x84   : > { %1345 = vmatpush3.bf16.msra.mxu0 %v1456_v37 }
  0x85   : > { %1373 = vmatpush3.bf16.msra.mxu1 %v1457_v39 }
  0x87   : > { %967 = vmatmul.mubr.bf16.vlgmr.msra.gmra.mxu0 %v1458_v36 }
  0x88   : > { %1016 = vmatmul.mubr.bf16.vlgmr.msra.gmra.mxu1 %v1461_v38  ;;  %974 = vmatprep.mubr.bf16.mxu0 %v1464_v40 }
  0x89   : > { %1023 = vmatprep.mubr.bf16.mxu1 %v1466_v41 }
  0x8f   : > { %975 = vmatmul.mubr.bf16.gmra.mxu0 %v1468_v42 }
  0x90   : > { %1024 = vmatmul.mubr.bf16.gmra.mxu1 %v1469_v43 }
 0x147   : > { %v1346_v44 = vpop.f32.mrf.mxu0 }
 0x148   : > { %v1374_v45 = vpop.f32.mrf.mxu1 }
 0x149   : > { %v1347_v47 = vpop.f32.mrf.mxu0 }
 0x14a   : > { %v1348_v48 = vadd.f32 %v1347_v47, %v1346_v44  ;;  %v1375_v49 = vpop.f32.mrf.mxu1 }
 0x14b   : > { %v1349_v51 = vpop.f32.mrf.mxu0  ;;  %v1376_v53 = vadd.f32 %v1375_v49, %v1374_v45 }
 0x14c   : > { %v969_v52 = vadd.f32 %v1348_v48, %v1257_v46  ;;  %v1377_v54 = vpop.f32.mrf.mxu1 }
 0x14d   : > { %v1350_v55 = vpop.f32.mrf.mxu0 }
 0x14e   : > { %v1018_v56 = vadd.f32 %v1376_v53, %v969_v52  ;;  %v1351_v58 = vadd.f32 %v1350_v55, %v1349_v51  ;;  %v1378_v59 = vpop.f32.mrf.mxu1 }
 0x14f   : > { %v1352_v60 = vpop.f32.mrf.mxu0  ;;  %v1379_v62 = vadd.f32 %v1378_v59, %v1377_v54 }
 0x150   : > { %v972_v61 = vadd.f32 %v1351_v58, %v1257_v46  ;;  %v1380_v0 = vpop.f32.mrf.mxu1  ;;  %v1040_v2 = vadd.f32 %v1312_v57, %v1018_v56 }
 0x151   : > { %v1353_v1 = vpop.f32.mrf.mxu0 }
 0x152   : > { %v1021_v3 = vadd.f32 %v1379_v62, %v972_v61  ;;  %v1354_v4 = vadd.f32 %v1353_v1, %v1352_v60  ;;  %v1381_v5 = vpop.f32.mrf.mxu1  ;;  %v1044_v14 = vmax.f32 %v1040_v2, 0.0 }
 0x153   : > { %v1355_v7 = vpop.f32.mrf.mxu0  ;;  %v1382_v10 = vadd.f32 %v1381_v5, %v1380_v0 }
 0x154   : > { %v1041_v8 = vadd.f32 %v1313_v63, %v1021_v3  ;;  %v977_v9 = vadd.f32 %v1354_v4, %v1257_v46  ;;  %v1383_v11 = vpop.f32.mrf.mxu1 }
 0x155   : > { %v1356_v13 = vpop.f32.mrf.mxu0 }
 0x156   : > { %v1045_v15 = vmax.f32 %v1041_v8, 0.0  ;;  %v1026_v16 = vadd.f32 %v1382_v10, %v977_v9  ;;  %v1357_v17 = vadd.f32 %v1356_v13, %v1355_v7  ;;  %v1384_v18 = vpop.f32.mrf.mxu1 }
 0x157   : > { %v1385_v21 = vadd.f32 %v1384_v18, %v1383_v11 }
 0x158   : > { %v1321_v19 = vpack.c.bf16 %v1045_v15, %v1044_v14  ;;  %v980_v20 = vadd.f32 %v1357_v17, %v1257_v46  ;;  %v1042_v23 = vadd.f32 %v1316_v12, %v1026_v16 }
 0x15a   : > { %1322 = vst [vmem:[%s609_s15] sm:$0xff] %v1321_v19   ;;  %v1029_v24 = vadd.f32 %v1385_v21, %v980_v20  ;;  %v1046_v26 = vmax.f32 %v1042_v23, 0.0 }
 0x15c   : > { %v1043_v25 = vadd.f32 %v1317_v22, %v1029_v24 }
 0x15e   : > { %v1047_v27 = vmax.f32 %v1043_v25, 0.0  ;;  %1074 = sbr.rel (!%p1574_p6) target bundleno = 363 (0x16b), region = 122 }
 0x160   : > { %v1326_v28 = vpack.c.bf16 %v1047_v27, %v1046_v26 }
 0x161   : > { %v1096_v29 = vld [vmem:[%s609_s15] sm:$0xf] (%p1574_p6)  ;;  %v1098_v30 = vld [vmem:[%s609_s15 + $0x4] sm:$0xf] (%p1574_p6) }
 0x162   : > { %1329 = vst [vmem:[%s609_s15 + $0x8] sm:$0xff] %v1326_v28   ;;  %1097 = vst [vmem:[%s1079_s7] sm:$0xf] (%p1574_p6), %v1096_v29 }
 0x163   : > { %1099 = vst [vmem:[%s1079_s7 + $0x40] sm:$0xf] %v1098_v30 }
 0x169   : > { %v1100_v31 = vld [vmem:[%s609_s15 + $0x8] sm:$0xf]  ;;  %v1102_v32 = vld [vmem:[%s609_s15 + $0xc] sm:$0xf] }
 0x16a   : > { %1101 = vst [vmem:[%s1079_s7 + $0x80] sm:$0xf] %v1100_v31  ;;  %1103 = vst [vmem:[%s1079_s7 + $0xc0] sm:$0xf] %v1102_v32 }
 0x16b PF: > { %s14_s19 = sadd.s32 1, %s1508_s19   ;;  %s1830_s15 = smov %s1496_s16 }
 0x16c   : > { %p11_p12 = scmp.ge.s32.totalorder %s14_s19, 18   ;;  %s1831_s16 = smov %s1579_s26 }
 0x16d   : > { %s1832_s17 = smov %s1504_s18  ;;  %s1833_s18 = smov %s1835_s20 }
 0x16e   :  { %13 = sbr.rel (!%p11_p12) target bundleno = 3 (0x3), region = 208 }

// kernel: resnet50_forward.17
= control target key start
LH: loop header
LB: loop body
LE: loop exit
PB: predicated region body
PF: predicated region fallthrough
CT: control target
= control target key end

     0   :  { %vm663_vm0 = vcmask 1041409   ;;  %s2523_s0 = inlined_call_operand.vmem [shape: bf16[2,16,2048], index: 0, kind: input, shape index: {}]   ;;  %s2524_s1 = inlined_call_operand.vmem [shape: f32[2048,10], index: 1, kind: input, shape index: {}]   ;;  %s2525_s2 = inlined_call_operand.vmem [shape: f32[1,10], index: 2, kind: input, shape index: {}]   ;;  %s2526_s3 = inlined_call_operand.hbm [shape: f32[2,10], index: 3, kind: output, shape index: {}]  }
   0x1   :  { %v399_v0 = vld [vmem:[%s2524_s1 + $0xf8] sm:$0xff]  ;;  %v398_v4 = vld [vmem:[%s2524_s1 + $0xf0] sm:$0xff]  ;;  %v397_v8 = vld [vmem:[%s2524_s1 + $0xe8] sm:$0xff] }
   0x2   :  { %v431_v1 = vld [vmem:[%s2524_s1 + $0x1f8] sm:$0xff]  ;;  %1273 = vmatprep.subr.mxu0 %v399_v0  ;;  %v430_v5 = vld [vmem:[%s2524_s1 + $0x1f0] sm:$0xff]  ;;  %v429_v9 = vld [vmem:[%s2524_s1 + $0x1e8] sm:$0xff] }
   0x3   :  { %v383_v2 = vld [vmem:[%s2524_s1 + $0x78] sm:$0xff]  ;;  %1308 = vmatprep.subr.mxu1 %v431_v1  ;;  %v382_v6 = vld [vmem:[%s2524_s1 + $0x70] sm:$0xff]  ;;  %v381_v10 = vld [vmem:[%s2524_s1 + $0x68] sm:$0xff] }
   0x4   :  { %v415_v3 = vld [vmem:[%s2524_s1 + $0x178] sm:$0xff]  ;;  %1274 = vmatpush3.msra.mxu0 %v383_v2  ;;  %v414_v7 = vld [vmem:[%s2524_s1 + $0x170] sm:$0xff]  ;;  %v413_v11 = vld [vmem:[%s2524_s1 + $0x168] sm:$0xff] }
   0x5   :  { %1309 = vmatpush3.msra.mxu1 %v415_v3  ;;  %1275 = vmatprep.subr.mxu0 %v398_v4  ;;  %v396_v12 = vld [vmem:[%s2524_s1 + $0xe0] sm:$0xff]  ;;  %v395_v16 = vld [vmem:[%s2524_s1 + $0xd8] sm:$0xff]  ;;  %v394_v20 = vld [vmem:[%s2524_s1 + $0xd0] sm:$0xff] }
   0x6   :  { %1310 = vmatprep.subr.mxu1 %v430_v5  ;;  %1276 = vmatpush3.msra.mxu0 %v382_v6  ;;  %v428_v13 = vld [vmem:[%s2524_s1 + $0x1e0] sm:$0xff]  ;;  %v427_v17 = vld [vmem:[%s2524_s1 + $0x1d8] sm:$0xff]  ;;  %v426_v21 = vld [vmem:[%s2524_s1 + $0x1d0] sm:$0xff] }
   0x7   :  { %1311 = vmatpush3.msra.mxu1 %v414_v7  ;;  %1277 = vmatprep.subr.mxu0 %v397_v8  ;;  %v380_v14 = vld [vmem:[%s2524_s1 + $0x60] sm:$0xff]  ;;  %v379_v18 = vld [vmem:[%s2524_s1 + $0x58] sm:$0xff]  ;;  %v378_v22 = vld [vmem:[%s2524_s1 + $0x50] sm:$0xff] }
   0x8   :  { %1312 = vmatprep.subr.mxu1 %v429_v9  ;;  %v412_v15 = vld [vmem:[%s2524_s1 + $0x160] sm:$0xff]  ;;  %1278 = vmatpush3.msra.mxu0 %v381_v10  ;;  %v411_v19 = vld [vmem:[%s2524_s1 + $0x158] sm:$0xff]  ;;  %v410_v23 = vld [vmem:[%s2524_s1 + $0x150] sm:$0xff] }
   0x9   :  { %1313 = vmatpush3.msra.mxu1 %v413_v11  ;;  %1279 = vmatprep.subr.mxu0 %v396_v12  ;;  %v393_v24 = vld [vmem:[%s2524_s1 + $0xc8] sm:$0xff]  ;;  %v392_v28 = vld [vmem:[%s2524_s1 + $0xc0] sm:$0xff]  ;;  %v391_v32 = vld [vmem:[%s2524_s1 + $0xb8] sm:$0xff] }
   0xa   :  { %1314 = vmatprep.subr.mxu1 %v428_v13  ;;  %1280 = vmatpush3.msra.mxu0 %v380_v14  ;;  %v425_v25 = vld [vmem:[%s2524_s1 + $0x1c8] sm:$0xff]  ;;  %v424_v29 = vld [vmem:[%s2524_s1 + $0x1c0] sm:$0xff]  ;;  %v423_v33 = vld [vmem:[%s2524_s1 + $0x1b8] sm:$0xff] }
   0xb   :  { %1315 = vmatpush3.msra.mxu1 %v412_v15  ;;  %1281 = vmatprep.subr.mxu0 %v395_v16  ;;  %v377_v26 = vld [vmem:[%s2524_s1 + $0x48] sm:$0xff]  ;;  %v376_v30 = vld [vmem:[%s2524_s1 + $0x40] sm:$0xff]  ;;  %v375_v34 = vld [vmem:[%s2524_s1 + $0x38] sm:$0xff] }
   0xc   :  { %1316 = vmatprep.subr.mxu1 %v427_v17  ;;  %1282 = vmatpush3.msra.mxu0 %v379_v18  ;;  %v409_v27 = vld [vmem:[%s2524_s1 + $0x148] sm:$0xff]  ;;  %v408_v31 = vld [vmem:[%s2524_s1 + $0x140] sm:$0xff]  ;;  %v407_v35 = vld [vmem:[%s2524_s1 + $0x138] sm:$0xff] }
   0xd   :  { %1317 = vmatpush3.msra.mxu1 %v411_v19  ;;  %1283 = vmatprep.subr.mxu0 %v394_v20  ;;  %v390_v36 = vld [vmem:[%s2524_s1 + $0xb0] sm:$0xff]  ;;  %v389_v40 = vld [vmem:[%s2524_s1 + $0xa8] sm:$0xff]  ;;  %v388_v44 = vld [vmem:[%s2524_s1 + $0xa0] sm:$0xff] }
   0xe   :  { %1318 = vmatprep.subr.mxu1 %v426_v21  ;;  %1284 = vmatpush3.msra.mxu0 %v378_v22  ;;  %v422_v37 = vld [vmem:[%s2524_s1 + $0x1b0] sm:$0xff]  ;;  %v421_v41 = vld [vmem:[%s2524_s1 + $0x1a8] sm:$0xff]  ;;  %v420_v45 = vld [vmem:[%s2524_s1 + $0x1a0] sm:$0xff] }
   0xf   :  { %1319 = vmatpush3.msra.mxu1 %v410_v23  ;;  %1285 = vmatprep.subr.mxu0 %v393_v24  ;;  %v374_v38 = vld [vmem:[%s2524_s1 + $0x30] sm:$0xff]  ;;  %v373_v42 = vld [vmem:[%s2524_s1 + $0x28] sm:$0xff]  ;;  %v372_v46 = vld [vmem:[%s2524_s1 + $0x20] sm:$0xff] }
  0x10   :  { %1320 = vmatprep.subr.mxu1 %v425_v25  ;;  %1286 = vmatpush3.msra.mxu0 %v377_v26  ;;  %v406_v39 = vld [vmem:[%s2524_s1 + $0x130] sm:$0xff]  ;;  %v405_v43 = vld [vmem:[%s2524_s1 + $0x128] sm:$0xff]  ;;  %v404_v47 = vld [vmem:[%s2524_s1 + $0x120] sm:$0xff] }
  0x11   :  { %1321 = vmatpush3.msra.mxu1 %v409_v27  ;;  %1287 = vmatprep.subr.mxu0 %v392_v28  ;;  %v387_v48 = vld [vmem:[%s2524_s1 + $0x98] sm:$0xff]  ;;  %v15_v51 = vld [vmem:[%s2523_s0] sm:$0xff]  ;;  %v1768_v60 = vld [vmem:[%s2523_s0 + $0x8] sm:$0xff] }
  0x12   :  { %1322 = vmatprep.subr.mxu1 %v424_v29  ;;  %1288 = vmatpush3.msra.mxu0 %v376_v30  ;;  %v419_v49 = vld [vmem:[%s2524_s1 + $0x198] sm:$0xff]  ;;  %v23_v52 = vld [vmem:[%s2523_s0 + $0x40] sm:$0xff]  ;;  %v48_v56 = vunpack.c.h.bf16 %v15_v51  ;;  %v47_v59 = vunpack.c.l.bf16 %v15_v51  ;;  %v24_v1 = vld [vmem:[%s2523_s0 + $0x48] sm:$0xff]  ;;  %v50_v7 = vunpack.c.h.bf16 %v1768_v60  ;;  %v49_v20 = vunpack.c.l.bf16 %v1768_v60 }
  0x13   :  { %1323 = vmatpush3.msra.mxu1 %v408_v31  ;;  %1289 = vmatprep.subr.mxu0 %v391_v32  ;;  %v371_v50 = vld [vmem:[%s2524_s1 + $0x18] sm:$0xff]  ;;  %v31_v53 = vld [vmem:[%s2523_s0 + $0x80] sm:$0xff]  ;;  %v64_v57 = vunpack.c.h.bf16 %v23_v52  ;;  %v63_v62 = vunpack.c.l.bf16 %v23_v52  ;;  %v32_v2 = vld [vmem:[%s2523_s0 + $0x88] sm:$0xff]  ;;  %v66_v8 = vunpack.c.h.bf16 %v24_v1  ;;  %v65_v21 = vunpack.c.l.bf16 %v24_v1 }
  0x14   :  { %1324 = vmatprep.subr.mxu1 %v423_v33  ;;  %1290 = vmatpush3.msra.mxu0 %v375_v34  ;;  %v403_v54 = vld [vmem:[%s2524_s1 + $0x118] sm:$0xff]  ;;  %v39_v55 = vld [vmem:[%s2523_s0 + $0xc0] sm:$0xff]  ;;  %v80_v58 = vunpack.c.h.bf16 %v31_v53  ;;  %v79_v63 = vunpack.c.l.bf16 %v31_v53  ;;  %v40_v3 = vld [vmem:[%s2523_s0 + $0xc8] sm:$0xff]  ;;  %v82_v9 = vunpack.c.h.bf16 %v32_v2  ;;  %v81_v32 = vunpack.c.l.bf16 %v32_v2 }
  0x15   :  { %1325 = vmatpush3.msra.mxu1 %v407_v35  ;;  %1291 = vmatprep.subr.mxu0 %v390_v36  ;;  %v96_v61 = vunpack.c.h.bf16 %v39_v55  ;;  %v95_v0 = vunpack.c.l.bf16 %v39_v55  ;;  %v386_v4 = vld [vmem:[%s2524_s1 + $0x90] sm:$0xff]  ;;  %v118_v6 = vadd.f32 %v64_v57, %v48_v56  ;;  %v111_v13 = vadd.f32 %v63_v62, %v47_v59  ;;  %v385_v16 = vld [vmem:[%s2524_s1 + $0x88] sm:$0xff]  ;;  %v384_v28 = vld [vmem:[%s2524_s1 + $0x80] sm:$0xff] }
  0x16   :  { %1326 = vmatprep.subr.mxu1 %v422_v37  ;;  %1292 = vmatpush3.msra.mxu0 %v374_v38  ;;  %v418_v5 = vld [vmem:[%s2524_s1 + $0x190] sm:$0xff]  ;;  %v98_v15 = vunpack.c.h.bf16 %v40_v3  ;;  %v417_v17 = vld [vmem:[%s2524_s1 + $0x188] sm:$0xff]  ;;  %v132_v19 = vadd.f32 %v66_v8, %v50_v7  ;;  %v416_v29 = vld [vmem:[%s2524_s1 + $0x180] sm:$0xff]  ;;  %v97_v33 = vunpack.c.l.bf16 %v40_v3 }
  0x17   :  { %1327 = vmatpush3.msra.mxu1 %v406_v39  ;;  %1293 = vmatprep.subr.mxu0 %v389_v40  ;;  %v370_v10 = vld [vmem:[%s2524_s1 + $0x10] sm:$0xff]  ;;  %v230_v12 = vadd.f32 %v96_v61, %v80_v58  ;;  %v223_v14 = vadd.f32 %v95_v0, %v79_v63  ;;  %v119_v18 = vrot.slane %v118_v6, 4  ;;  %v369_v22 = vld [vmem:[%s2524_s1 + $0x8] sm:$0xff]  ;;  %v112_v25 = vrot.slane %v111_v13, 4  ;;  %v368_v34 = vld [vmem:[%s2524_s1] sm:$0xff] }
  0x18   :  { %1328 = vmatprep.subr.mxu1 %v421_v41  ;;  %1294 = vmatpush3.msra.mxu0 %v373_v42  ;;  %v402_v11 = vld [vmem:[%s2524_s1 + $0x110] sm:$0xff]  ;;  %v401_v23 = vld [vmem:[%s2524_s1 + $0x108] sm:$0xff]  ;;  %v244_v27 = vadd.f32 %v98_v15, %v82_v9  ;;  %v133_v31 = vrot.slane %v132_v19, 4  ;;  %v400_v36 = vld [vmem:[%s2524_s1 + $0x100] sm:$0xff] }
  0x19   :  { %1329 = vmatpush3.msra.mxu1 %v405_v43  ;;  %1295 = vmatprep.subr.mxu0 %v388_v44  ;;  %v231_v24 = vrot.slane %v230_v12, 4  ;;  %v224_v26 = vrot.slane %v223_v14, 4  ;;  %v120_v30 = vadd.f32 %v119_v18, %v118_v6  ;;  %v113_v37 = vadd.f32 %v112_v25, %v111_v13  ;;  %v463_v42 = vld [vmem:[%s2524_s1 + $0x2f8] sm:$0xff] }
  0x1a   :  { %1330 = vmatprep.subr.mxu1 %v420_v45  ;;  %1296 = vmatpush3.msra.mxu0 %v372_v46  ;;  %v245_v39 = vrot.slane %v244_v27, 4  ;;  %v134_v41 = vadd.f32 %v133_v31, %v132_v19  ;;  %v495_v43 = vld [vmem:[%s2524_s1 + $0x3f8] sm:$0xff]  ;;  %v125_v44 = vadd.f32 %v65_v21, %v49_v20  ;;  %v237_v45 = vadd.f32 %v97_v33, %v81_v32  ;;  %v494_v33 = vld [vmem:[%s2524_s1 + $0x3f0] sm:$0xff] }
  0x1b   :  { %1331 = vmatpush3.msra.mxu1 %v404_v47  ;;  %1297 = vmatprep.subr.mxu0 %v387_v48  ;;  %v232_v35 = vadd.f32 %v231_v24, %v230_v12  ;;  %v225_v38 = vadd.f32 %v224_v26, %v223_v14  ;;  %v121_v40 = vrot.slane %v120_v30, 2  ;;  %v114_v47 = vrot.slane %v113_v37, 2  ;;  %v447_v24 = vld [vmem:[%s2524_s1 + $0x278] sm:$0xff] }
  0x1c   :  { %1332 = vmatprep.subr.mxu1 %v419_v49  ;;  %1298 = vmatpush3.msra.mxu0 %v371_v50  ;;  %v246_v49 = vadd.f32 %v245_v39, %v244_v27  ;;  %v135_v51 = vrot.slane %v134_v41, 2  ;;  %v126_v52 = vrot.slane %v125_v44, 4  ;;  %v238_v53 = vrot.slane %v237_v45, 4  ;;  %v462_v27 = vld [vmem:[%s2524_s1 + $0x2f0] sm:$0xff] }
  0x1d   :  { %1333 = vmatpush3.msra.mxu1 %v403_v54  ;;  %1299 = vmatprep.subr.mxu0 %v386_v4  ;;  %v233_v46 = vrot.slane %v232_v35, 2  ;;  %v226_v48 = vrot.slane %v225_v38, 2  ;;  %v122_v50 = vadd.f32 %v121_v40, %v120_v30  ;;  %v115_v55 = vadd.f32 %v114_v47, %v113_v37  ;;  %v446_v30 = vld [vmem:[%s2524_s1 + $0x270] sm:$0xff]  ;;  %v1872_v47 = vld [vmem:[%s2523_s0 + $0x18] sm:$0xff] }
  0x1e   :  { %1334 = vmatprep.subr.mxu1 %v418_v5  ;;  %1300 = vmatpush3.msra.mxu0 %v370_v10  ;;  %v247_v57 = vrot.slane %v246_v49, 2  ;;  %v136_v59 = vadd.f32 %v135_v51, %v134_v41  ;;  %v127_v60 = vadd.f32 %v126_v52, %v125_v44  ;;  %v239_v61 = vadd.f32 %v238_v53, %v237_v45  ;;  %v478_v37 = vld [vmem:[%s2524_s1 + $0x370] sm:$0xff]  ;;  %v26_v52 = vld [vmem:[%s2523_s0 + $0x58] sm:$0xff] }
  0x1f   :  { %1335 = vmatpush3.msra.mxu1 %v402_v11  ;;  %1301 = vmatprep.subr.mxu0 %v385_v16  ;;  %v234_v54 = vadd.f32 %v233_v46, %v232_v35  ;;  %v227_v56 = vadd.f32 %v226_v48, %v225_v38  ;;  %v123_v58 = vrot.slane %v122_v50, 1  ;;  %v116_v63 = vrot.slane %v115_v55, 1  ;;  %v445_v35 = vld [vmem:[%s2524_s1 + $0x268] sm:$0xff]  ;;  %v17_v38 = vld [vmem:[%s2523_s0 + $0x10] sm:$0xff]  ;;  %v1880_v53 = vld [vmem:[%s2523_s0 + $0x98] sm:$0xff] }
  0x20   :  { %1336 = vmatprep.subr.mxu1 %v417_v17  ;;  %1302 = vmatpush3.msra.mxu0 %v369_v22  ;;  %v248_v1 = vadd.f32 %v247_v57, %v246_v49  ;;  %v137_v3 = vrot.slane %v136_v59, 1  ;;  %v128_v4 = vrot.slane %v127_v60, 2  ;;  %v240_v5 = vrot.slane %v239_v61, 2  ;;  %v25_v39 = vld [vmem:[%s2523_s0 + $0x50] sm:$0xff] }
  0x21   :  { %1337 = vmatpush3.msra.mxu1 %v401_v23  ;;  %1303 = vmatprep.subr.mxu0 %v384_v28  ;;  %v235_v62 = vrot.slane %v234_v54, 1  ;;  %v228_v0 = vrot.slane %v227_v56, 1  ;;  %v124_v2 = vadd.f32 %v123_v58, %v122_v50  ;;  %v117_v7 = vadd.f32 %v116_v63, %v115_v55  ;;  %v33_v40 = vld [vmem:[%s2523_s0 + $0x90] sm:$0xff]  ;;  %v493_v55 = vld [vmem:[%s2524_s1 + $0x3e8] sm:$0xff] }
  0x22   :  { %1338 = vmatprep.subr.mxu1 %v416_v29  ;;  %1304 = vmatpush3.msra.mxu0 %v368_v34  ;;  %v249_v9 = vrot.slane %v248_v1, 1  ;;  %v138_v11 = vadd.f32 %v137_v3, %v136_v59  ;;  %v129_v12 = vadd.f32 %v128_v4, %v127_v60  ;;  %v241_v13 = vadd.f32 %v240_v5, %v239_v61  ;;  %v479_v29 = vld [vmem:[%s2524_s1 + $0x378] sm:$0xff]  ;;  %v461_v34 = vld [vmem:[%s2524_s1 + $0x2e8] sm:$0xff]  ;;  %v492_v3 = vld [vmem:[%s2524_s1 + $0x3e0] sm:$0xff] }
  0x23   :  { %1339 = vmatpush3.msra.mxu1 %v400_v36  ;;  %1343 = vmatprep.subr.mxu0 %v463_v42  ;;  %v236_v6 = vadd.f32 %v235_v62, %v234_v54  ;;  %v229_v8 = vadd.f32 %v228_v0, %v227_v56  ;;  %v337_v10 = vmul.f32 0.0625, %v124_v2  ;;  %v336_v15 = vmul.f32 0.0625, %v117_v7  ;;  %v460_v36 = vld [vmem:[%s2524_s1 + $0x2e0] sm:$0xff]  ;;  %v1885_v54 = vld [vmem:[%s2523_s0 + $0xd8] sm:$0xff]  ;;  %v477_v61 = vld [vmem:[%s2524_s1 + $0x368] sm:$0xff] }
  0x24   :  { %1378 = vmatprep.subr.mxu1 %v495_v43  ;;  %v250_v17 = vadd.f32 %v249_v9, %v248_v1  ;;  %v339_v18 = vmul.f32 0.0625, %v138_v11  ;;  %v130_v19 = vrot.slane %v129_v12, 1  ;;  %v242_v20 = vrot.slane %v241_v13, 1  ;;  %v444_v42 = vld [vmem:[%s2524_s1 + $0x260] sm:$0xff]  ;;  %v41_v43 = vld [vmem:[%s2523_s0 + $0xd0] sm:$0xff]  ;;  %v459_v56 = vld [vmem:[%s2524_s1 + $0x2d8] sm:$0xff] }
  0x25   :  { %v353_v14 = vmul.f32 0.0625, %v236_v6  ;;  %v352_v16 = vmul.f32 0.0625, %v229_v8  ;;  %v52_v44 = vunpack.c.h.bf16 %v17_v38  ;;  %v68_v45 = vunpack.c.h.bf16 %v25_v39  ;;  %v443_v62 = vld [vmem:[%s2524_s1 + $0x258] sm:$0xff]  ;;  %v458_v4 = vld [vmem:[%s2524_s1 + $0x2d0] sm:$0xff]  ;;  %v476_v9 = vld [vmem:[%s2524_s1 + $0x360] sm:$0xff] }
  0x26   :  { %v355_v23 = vmul.f32 0.0625, %v250_v17  ;;  %v131_v25 = vadd.f32 %v130_v19, %v129_v12  ;;  %v243_v26 = vadd.f32 %v242_v20, %v241_v13  ;;  %v84_v46 = vunpack.c.h.bf16 %v33_v40 }
  0x27   :  { %v665_v21 = vsel %vm663_vm0, %v353_v14, %v337_v10  ;;  %v664_v22 = vsel %vm663_vm0, %v352_v16, %v336_v15  ;;  %v100_v48 = vunpack.c.h.bf16 %v41_v43  ;;  %v51_v49 = vunpack.c.l.bf16 %v17_v38  ;;  %v442_v10 = vld [vmem:[%s2524_s1 + $0x250] sm:$0xff]  ;;  %v491_v15 = vld [vmem:[%s2524_s1 + $0x3d8] sm:$0xff]  ;;  %v457_v16 = vld [vmem:[%s2524_s1 + $0x2c8] sm:$0xff] }
  0x28   :  { %760 = vmatprep.mubr.f32.mxu0 %v665_v21  ;;  %v667_v28 = vsel %vm663_vm0, %v355_v23, %v339_v18  ;;  %v338_v31 = vmul.f32 0.0625, %v131_v25  ;;  %v354_v32 = vmul.f32 0.0625, %v243_v26  ;;  %v67_v50 = vunpack.c.l.bf16 %v25_v39  ;;  %v475_v21 = vld [vmem:[%s2524_s1 + $0x358] sm:$0xff]  ;;  %v489_v39 = vld [vmem:[%s2524_s1 + $0x3c8] sm:$0xff] }
  0x29   :  { %761 = vmatmul.mubr.f32.vlgmr.msra.gmra.mxu0 %v664_v22  ;;  %830 = vmatprep.mubr.f32.mxu1 %v667_v28  ;;  %v83_v51 = vunpack.c.l.bf16 %v33_v40  ;;  %v146_v57 = vadd.f32 %v68_v45, %v52_v44  ;;  %v99_v58 = vunpack.c.l.bf16 %v41_v43  ;;  %v54_v59 = vunpack.c.h.bf16 %v1872_v47  ;;  %v441_v22 = vld [vmem:[%s2524_s1 + $0x248] sm:$0xff]  ;;  %v456_v28 = vld [vmem:[%s2524_s1 + $0x2c0] sm:$0xff]  ;;  %v455_v40 = vld [vmem:[%s2524_s1 + $0x2b8] sm:$0xff] }
  0x2a   :  { %1344 = vmatpush3.msra.mxu0 %v447_v24  ;;  %v666_v41 = vsel %vm663_vm0, %v354_v32, %v338_v31  ;;  %v70_v60 = vunpack.c.h.bf16 %v26_v52  ;;  %v258_v63 = vadd.f32 %v100_v48, %v84_v46  ;;  %v139_v0 = vadd.f32 %v67_v50, %v51_v49  ;;  %v473_v45 = vld [vmem:[%s2524_s1 + $0x348] sm:$0xff]  ;;  %v439_v46 = vld [vmem:[%s2524_s1 + $0x238] sm:$0xff] }
  0x2b   :  { %1345 = vmatprep.subr.mxu0 %v462_v27  ;;  %831 = vmatmul.mubr.f32.vlgmr.msra.gmra.mxu1 %v666_v41  ;;  %v86_v1 = vunpack.c.h.bf16 %v1880_v53  ;;  %v102_v2 = vunpack.c.h.bf16 %v1885_v54  ;;  %v147_v5 = vrot.slane %v146_v57, 4  ;;  %v251_v6 = vadd.f32 %v99_v58, %v83_v51  ;;  %v490_v27 = vld [vmem:[%s2524_s1 + $0x3d0] sm:$0xff]  ;;  %v488_v51 = vld [vmem:[%s2524_s1 + $0x3c0] sm:$0xff] }
  0x2c   :  { %1346 = vmatpush3.msra.mxu0 %v446_v30  ;;  %1379 = vmatpush3.msra.mxu1 %v479_v29  ;;  %v160_v7 = vadd.f32 %v70_v60, %v54_v59  ;;  %v53_v8 = vunpack.c.l.bf16 %v1872_v47  ;;  %v259_v11 = vrot.slane %v258_v63, 4  ;;  %v140_v12 = vrot.slane %v139_v0, 4  ;;  %v438_v58 = vld [vmem:[%s2524_s1 + $0x230] sm:$0xff] }
  0x2d   :  { %1347 = vmatprep.subr.mxu0 %v461_v34  ;;  %1380 = vmatprep.subr.mxu1 %v494_v33  ;;  %v272_v13 = vadd.f32 %v102_v2, %v86_v1  ;;  %v69_v14 = vunpack.c.l.bf16 %v26_v52  ;;  %v148_v17 = vadd.f32 %v147_v5, %v146_v57  ;;  %v252_v18 = vrot.slane %v251_v6, 4  ;;  %v474_v33 = vld [vmem:[%s2524_s1 + $0x350] sm:$0xff]  ;;  %v440_v34 = vld [vmem:[%s2524_s1 + $0x240] sm:$0xff]  ;;  %v471_v5 = vld [vmem:[%s2524_s1 + $0x338] sm:$0xff] }
  0x2e   :  { %1348 = vmatpush3.msra.mxu0 %v445_v35  ;;  %1381 = vmatpush3.msra.mxu1 %v478_v37  ;;  %v161_v19 = vrot.slane %v160_v7, 4  ;;  %v85_v20 = vunpack.c.l.bf16 %v1880_v53  ;;  %v260_v23 = vadd.f32 %v259_v11, %v258_v63  ;;  %v141_v24 = vadd.f32 %v140_v12, %v139_v0  ;;  %v454_v52 = vld [vmem:[%s2524_s1 + $0x2b0] sm:$0xff]  ;;  %v472_v57 = vld [vmem:[%s2524_s1 + $0x340] sm:$0xff]  ;;  %v487_v63 = vld [vmem:[%s2524_s1 + $0x3b8] sm:$0xff] }
  0x2f   :  { %1349 = vmatprep.subr.mxu0 %v460_v36  ;;  %1382 = vmatprep.subr.mxu1 %v493_v55  ;;  %v273_v25 = vrot.slane %v272_v13, 4  ;;  %v101_v26 = vunpack.c.l.bf16 %v1885_v54  ;;  %v149_v29 = vrot.slane %v148_v17, 2  ;;  %v253_v30 = vadd.f32 %v252_v18, %v251_v6  ;;  %v453_v0 = vld [vmem:[%s2524_s1 + $0x2a8] sm:$0xff]  ;;  %v486_v11 = vld [vmem:[%s2524_s1 + $0x3b0] sm:$0xff]  ;;  %v452_v12 = vld [vmem:[%s2524_s1 + $0x2a0] sm:$0xff] }
  0x30   :  { %1350 = vmatpush3.msra.mxu0 %v444_v42  ;;  %1383 = vmatpush3.msra.mxu1 %v477_v61  ;;  %v162_v31 = vadd.f32 %v161_v19, %v160_v7  ;;  %v153_v32 = vadd.f32 %v69_v14, %v53_v8  ;;  %v261_v35 = vrot.slane %v260_v23, 2  ;;  %v142_v36 = vrot.slane %v141_v24, 2  ;;  %v437_v6 = vld [vmem:[%s2524_s1 + $0x228] sm:$0xff] }
  0x31   :  { %1351 = vmatprep.subr.mxu0 %v459_v56  ;;  %1384 = vmatprep.subr.mxu1 %v492_v3  ;;  %v274_v37 = vadd.f32 %v273_v25, %v272_v13  ;;  %v265_v38 = vadd.f32 %v101_v26, %v85_v20  ;;  %v150_v41 = vadd.f32 %v149_v29, %v148_v17  ;;  %v254_v42 = vrot.slane %v253_v30, 2  ;;  %v436_v17 = vld [vmem:[%s2524_s1 + $0x220] sm:$0xff]  ;;  %v485_v20 = vld [vmem:[%s2524_s1 + $0x3a8] sm:$0xff] }
  0x32   :  { %1352 = vmatpush3.msra.mxu0 %v443_v62  ;;  %1385 = vmatpush3.msra.mxu1 %v476_v9  ;;  %v163_v43 = vrot.slane %v162_v31, 2  ;;  %v154_v44 = vrot.slane %v153_v32, 4  ;;  %v262_v47 = vadd.f32 %v261_v35, %v260_v23  ;;  %v143_v48 = vadd.f32 %v142_v36, %v141_v24  ;;  %v469_v26 = vld [vmem:[%s2524_s1 + $0x328] sm:$0xff]  ;;  %v483_v36 = vld [vmem:[%s2524_s1 + $0x398] sm:$0xff] }
  0x33   :  { %1353 = vmatprep.subr.mxu0 %v458_v4  ;;  %1386 = vmatprep.subr.mxu1 %v491_v15  ;;  %v275_v49 = vrot.slane %v274_v37, 2  ;;  %v266_v50 = vrot.slane %v265_v38, 4  ;;  %v151_v53 = vrot.slane %v150_v41, 1  ;;  %v255_v54 = vadd.f32 %v254_v42, %v253_v30  ;;  %v433_v42 = vld [vmem:[%s2524_s1 + $0x208] sm:$0xff] }
  0x34   :  { %1354 = vmatpush3.msra.mxu0 %v442_v10  ;;  %1387 = vmatpush3.msra.mxu1 %v475_v21  ;;  %v164_v55 = vadd.f32 %v163_v43, %v162_v31  ;;  %v155_v56 = vadd.f32 %v154_v44, %v153_v32  ;;  %v263_v59 = vrot.slane %v262_v47, 1  ;;  %v144_v60 = vrot.slane %v143_v48, 1  ;;  %v451_v21 = vld [vmem:[%s2524_s1 + $0x298] sm:$0xff]  ;;  %v484_v32 = vld [vmem:[%s2524_s1 + $0x3a0] sm:$0xff]  ;;  %v466_v44 = vld [vmem:[%s2524_s1 + $0x310] sm:$0xff] }
  0x35   :  { %1355 = vmatprep.subr.mxu0 %v457_v16  ;;  %1388 = vmatprep.subr.mxu1 %v490_v27  ;;  %v276_v61 = vadd.f32 %v275_v49, %v274_v37  ;;  %v267_v62 = vadd.f32 %v266_v50, %v265_v38  ;;  %v152_v1 = vadd.f32 %v151_v53, %v150_v41  ;;  %v256_v2 = vrot.slane %v255_v54, 1  ;;  %v470_v16 = vld [vmem:[%s2524_s1 + $0x330] sm:$0xff]  ;;  %v435_v27 = vld [vmem:[%s2524_s1 + $0x218] sm:$0xff]  ;;  %v449_v41 = vld [vmem:[%s2524_s1 + $0x288] sm:$0xff] }
  0x36   :  { %1356 = vmatpush3.msra.mxu0 %v441_v22  ;;  %1389 = vmatpush3.msra.mxu1 %v474_v33  ;;  %v165_v3 = vrot.slane %v164_v55, 1  ;;  %v156_v4 = vrot.slane %v155_v56, 2  ;;  %v264_v7 = vadd.f32 %v263_v59, %v262_v47  ;;  %v145_v8 = vadd.f32 %v144_v60, %v143_v48  ;;  %v468_v33 = vld [vmem:[%s2524_s1 + $0x320] sm:$0xff]  ;;  %v467_v37 = vld [vmem:[%s2524_s1 + $0x318] sm:$0xff]  ;;  %v434_v38 = vld [vmem:[%s2524_s1 + $0x210] sm:$0xff] }
  0x37   :  { %1357 = vmatprep.subr.mxu0 %v456_v28  ;;  %1390 = vmatprep.subr.mxu1 %v489_v39  ;;  %v277_v9 = vrot.slane %v276_v61, 1  ;;  %v268_v10 = vrot.slane %v267_v62, 2  ;;  %v257_v13 = vadd.f32 %v256_v2, %v255_v54  ;;  %v341_v22 = vmul.f32 0.0625, %v152_v1  ;;  %v448_v43 = vld [vmem:[%s2524_s1 + $0x280] sm:$0xff]  ;;  %v44_v1 = vld [vmem:[%s2523_s0 + $0xe8] sm:$0xff] }
  0x38   :  { %1358 = vmatpush3.msra.mxu0 %v440_v34  ;;  %1391 = vmatpush3.msra.mxu1 %v473_v45  ;;  %v166_v14 = vadd.f32 %v165_v3, %v164_v55  ;;  %v157_v15 = vadd.f32 %v156_v4, %v155_v56  ;;  %v357_v23 = vmul.f32 0.0625, %v264_v7  ;;  %v340_v24 = vmul.f32 0.0625, %v145_v8  ;;  %v450_v34 = vld [vmem:[%s2524_s1 + $0x290] sm:$0xff]  ;;  %v19_v49 = vld [vmem:[%s2523_s0 + $0x20] sm:$0xff]  ;;  %v481_v2 = vld [vmem:[%s2524_s1 + $0x388] sm:$0xff] }
  0x39   :  { %1359 = vmatprep.subr.mxu0 %v455_v40  ;;  %1392 = vmatprep.subr.mxu1 %v488_v51  ;;  %v278_v18 = vadd.f32 %v277_v9, %v276_v61  ;;  %v269_v19 = vadd.f32 %v268_v10, %v267_v62  ;;  %v356_v28 = vmul.f32 0.0625, %v257_v13  ;;  %v482_v40 = vld [vmem:[%s2524_s1 + $0x390] sm:$0xff]  ;;  %v27_v50 = vld [vmem:[%s2523_s0 + $0x60] sm:$0xff]  ;;  %v56_v54 = vunpack.c.h.bf16 %v19_v49  ;;  %v465_v7 = vld [vmem:[%s2524_s1 + $0x308] sm:$0xff] }
  0x3a   :  { %1360 = vmatpush3.msra.mxu0 %v439_v46  ;;  %1393 = vmatpush3.msra.mxu1 %v472_v57  ;;  %v158_v25 = vrot.slane %v157_v15, 1  ;;  %v343_v29 = vmul.f32 0.0625, %v166_v14  ;;  %v669_v45 = vsel %vm663_vm0, %v357_v23, %v341_v22  ;;  %v35_v51 = vld [vmem:[%s2523_s0 + $0xa0] sm:$0xff]  ;;  %v72_v55 = vunpack.c.h.bf16 %v27_v50  ;;  %v559_v22 = vld [vmem:[%s2524_s1 + $0x5f8] sm:$0xff] }
  0x3b   :  { %1361 = vmatprep.subr.mxu0 %v454_v52  ;;  %1394 = vmatprep.subr.mxu1 %v487_v63  ;;  %v359_v30 = vmul.f32 0.0625, %v278_v18  ;;  %v270_v31 = vrot.slane %v269_v19, 1  ;;  %v668_v46 = vsel %vm663_vm0, %v356_v28, %v340_v24  ;;  %v432_v52 = vld [vmem:[%s2524_s1 + $0x200] sm:$0xff]  ;;  %v88_v56 = vunpack.c.h.bf16 %v35_v51  ;;  %v28_v63 = vld [vmem:[%s2523_s0 + $0x68] sm:$0xff]  ;;  %v527_v18 = vld [vmem:[%s2524_s1 + $0x4f8] sm:$0xff] }
  0x3c   :  { %1362 = vmatpush3.msra.mxu0 %v438_v58  ;;  %1395 = vmatpush3.msra.mxu1 %v471_v5  ;;  %v159_v35 = vadd.f32 %v158_v25, %v157_v15  ;;  %v43_v53 = vld [vmem:[%s2523_s0 + $0xe0] sm:$0xff]  ;;  %v55_v57 = vunpack.c.l.bf16 %v19_v49  ;;  %v20_v58 = vld [vmem:[%s2523_s0 + $0x28] sm:$0xff]  ;;  %v71_v61 = vunpack.c.l.bf16 %v27_v50  ;;  %v87_v62 = vunpack.c.l.bf16 %v35_v51  ;;  %v511_v25 = vld [vmem:[%s2524_s1 + $0x478] sm:$0xff] }
  0x3d   :  { %1363 = vmatprep.subr.mxu0 %v453_v0  ;;  %1396 = vmatprep.subr.mxu1 %v486_v11  ;;  %v271_v39 = vadd.f32 %v270_v31, %v269_v19  ;;  %v671_v47 = vsel %vm663_vm0, %v359_v30, %v343_v29  ;;  %v104_v60 = vunpack.c.h.bf16 %v43_v53  ;;  %v36_v0 = vld [vmem:[%s2523_s0 + $0xa8] sm:$0xff]  ;;  %v174_v3 = vadd.f32 %v72_v55, %v56_v54  ;;  %v526_v29 = vld [vmem:[%s2524_s1 + $0x4f0] sm:$0xff] }
  0x3e   :  { %1364 = vmatpush3.msra.mxu0 %v437_v6  ;;  %1397 = vmatpush3.msra.mxu1 %v470_v16  ;;  %v342_v48 = vmul.f32 0.0625, %v159_v35  ;;  %v103_v4 = vunpack.c.l.bf16 %v43_v53  ;;  %v58_v5 = vunpack.c.h.bf16 %v20_v58  ;;  %v74_v6 = vunpack.c.h.bf16 %v28_v63  ;;  %v558_v30 = vld [vmem:[%s2524_s1 + $0x5f0] sm:$0xff]  ;;  %v540_v53 = vld [vmem:[%s2524_s1 + $0x560] sm:$0xff] }
  0x3f   :  { %1365 = vmatprep.subr.mxu0 %v452_v12  ;;  %1398 = vmatprep.subr.mxu1 %v485_v20  ;;  %v358_v59 = vmul.f32 0.0625, %v271_v39  ;;  %v286_v8 = vadd.f32 %v104_v60, %v88_v56  ;;  %v167_v9 = vadd.f32 %v71_v61, %v55_v57  ;;  %v90_v10 = vunpack.c.h.bf16 %v36_v0  ;;  %v480_v12 = vld [vmem:[%s2524_s1 + $0x380] sm:$0xff]  ;;  %v510_v35 = vld [vmem:[%s2524_s1 + $0x470] sm:$0xff]  ;;  %v507_v60 = vld [vmem:[%s2524_s1 + $0x458] sm:$0xff] }
  0x40   :  { %1366 = vmatpush3.msra.mxu0 %v436_v17  ;;  %1399 = vmatpush3.msra.mxu1 %v469_v26  ;;  %v106_v11 = vunpack.c.h.bf16 %v44_v1  ;;  %v175_v13 = vrot.slane %v174_v3, 4  ;;  %v279_v14 = vadd.f32 %v103_v4, %v87_v62  ;;  %v188_v15 = vadd.f32 %v74_v6, %v58_v5  ;;  %v464_v17 = vld [vmem:[%s2524_s1 + $0x300] sm:$0xff]  ;;  %v543_v26 = vld [vmem:[%s2524_s1 + $0x578] sm:$0xff]  ;;  %v522_v62 = vld [vmem:[%s2524_s1 + $0x4d0] sm:$0xff] }
  0x41   :  { %1367 = vmatprep.subr.mxu0 %v451_v21  ;;  %1400 = vmatprep.subr.mxu1 %v484_v32  ;;  %v57_v16 = vunpack.c.l.bf16 %v20_v58  ;;  %v287_v19 = vrot.slane %v286_v8, 4  ;;  %v73_v21 = vunpack.c.l.bf16 %v28_v63  ;;  %v670_v23 = vsel %vm663_vm0, %v358_v59, %v342_v48  ;;  %v523_v58 = vld [vmem:[%s2524_s1 + $0x4d8] sm:$0xff]  ;;  %v554_v63 = vld [vmem:[%s2524_s1 + $0x5d0] sm:$0xff] }
  0x42   :  { %1368 = vmatpush3.msra.mxu0 %v435_v27  ;;  %1401 = vmatpush3.msra.mxu1 %v468_v33  ;;  %v300_v20 = vadd.f32 %v106_v11, %v90_v10  ;;  %v89_v24 = vunpack.c.l.bf16 %v36_v0  ;;  %v168_v27 = vrot.slane %v167_v9, 4  ;;  %v105_v28 = vunpack.c.l.bf16 %v44_v1  ;;  %v555_v59 = vld [vmem:[%s2524_s1 + $0x5d8] sm:$0xff]  ;;  %v506_v4 = vld [vmem:[%s2524_s1 + $0x450] sm:$0xff]  ;;  %v521_v10 = vld [vmem:[%s2524_s1 + $0x4c8] sm:$0xff] }
  0x43   :  { %1369 = vmatprep.subr.mxu0 %v450_v34  ;;  %1402 = vmatprep.subr.mxu1 %v483_v36  ;;  %v176_v31 = vadd.f32 %v175_v13, %v174_v3  ;;  %v280_v32 = vrot.slane %v279_v14, 4  ;;  %v189_v33 = vrot.slane %v188_v15, 4  ;;  %v181_v34 = vadd.f32 %v73_v21, %v57_v16  ;;  %v542_v36 = vld [vmem:[%s2524_s1 + $0x570] sm:$0xff]  ;;  %v539_v61 = vld [vmem:[%s2524_s1 + $0x558] sm:$0xff]  ;;  %v553_v11 = vld [vmem:[%s2524_s1 + $0x5c8] sm:$0xff] }
  0x44   :  { %1370 = vmatpush3.msra.mxu0 %v434_v38  ;;  %1403 = vmatpush3.msra.mxu1 %v467_v37  ;;  %v288_v37 = vadd.f32 %v287_v19, %v286_v8  ;;  %v301_v38 = vrot.slane %v300_v20, 4  ;;  %v293_v39 = vadd.f32 %v105_v28, %v89_v24  ;;  %v169_v49 = vadd.f32 %v168_v27, %v167_v9  ;;  %v538_v5 = vld [vmem:[%s2524_s1 + $0x550] sm:$0xff]  ;;  %v537_v13 = vld [vmem:[%s2524_s1 + $0x548] sm:$0xff]  ;;  %v536_v21 = vld [vmem:[%s2524_s1 + $0x540] sm:$0xff] }
  0x45   :  { %1371 = vmatprep.subr.mxu0 %v449_v41  ;;  %1404 = vmatprep.subr.mxu1 %v482_v40  ;;  %v525_v40 = vld [vmem:[%s2524_s1 + $0x4e8] sm:$0xff]  ;;  %v177_v48 = vrot.slane %v176_v31, 2  ;;  %v281_v50 = vadd.f32 %v280_v32, %v279_v14  ;;  %v190_v51 = vadd.f32 %v189_v33, %v188_v15  ;;  %v520_v14 = vld [vmem:[%s2524_s1 + $0x4c0] sm:$0xff]  ;;  %v551_v27 = vld [vmem:[%s2524_s1 + $0x5b8] sm:$0xff] }
  0x46   :  { %1372 = vmatpush3.msra.mxu0 %v433_v42  ;;  %1405 = vmatpush3.msra.mxu1 %v466_v44  ;;  %v557_v41 = vld [vmem:[%s2524_s1 + $0x5e8] sm:$0xff]  ;;  %v182_v42 = vrot.slane %v181_v34, 4  ;;  %v289_v54 = vrot.slane %v288_v37, 2  ;;  %v302_v55 = vadd.f32 %v301_v38, %v300_v20  ;;  %v170_v1 = vrot.slane %v169_v49, 2  ;;  %v552_v15 = vld [vmem:[%s2524_s1 + $0x5c0] sm:$0xff]  ;;  %v503_v28 = vld [vmem:[%s2524_s1 + $0x438] sm:$0xff] }
  0x47   :  { %1373 = vmatprep.subr.mxu0 %v448_v43  ;;  %1406 = vmatprep.subr.mxu1 %v481_v2  ;;  %v509_v43 = vld [vmem:[%s2524_s1 + $0x468] sm:$0xff]  ;;  %v178_v0 = vadd.f32 %v177_v48, %v176_v31  ;;  %v282_v2 = vrot.slane %v281_v50, 2  ;;  %v191_v3 = vrot.slane %v190_v51, 2  ;;  %v504_v20 = vld [vmem:[%s2524_s1 + $0x440] sm:$0xff]  ;;  %v550_v31 = vld [vmem:[%s2524_s1 + $0x5b0] sm:$0xff] }
  0x48   :  { %1374 = vmatpush3.msra.mxu0 %v432_v52  ;;  %900 = vmatprep.mubr.f32.mxu0 %v669_v45  ;;  %v541_v44 = vld [vmem:[%s2524_s1 + $0x568] sm:$0xff]  ;;  %v294_v45 = vrot.slane %v293_v39, 4  ;;  %v508_v52 = vld [vmem:[%s2524_s1 + $0x460] sm:$0xff]  ;;  %v183_v56 = vadd.f32 %v182_v42, %v181_v34  ;;  %v290_v6 = vadd.f32 %v289_v54, %v288_v37  ;;  %v534_v37 = vld [vmem:[%s2524_s1 + $0x530] sm:$0xff] }
  0x49   :  { %1407 = vmatpush3.msra.mxu1 %v465_v7  ;;  %901 = vmatmul.mubr.f32.vlgmr.msra.gmra.mxu0 %v668_v46  ;;  %v524_v46 = vld [vmem:[%s2524_s1 + $0x4e0] sm:$0xff]  ;;  %v303_v7 = vrot.slane %v302_v55, 2  ;;  %v179_v16 = vrot.slane %v178_v0, 1  ;;  %v192_v19 = vadd.f32 %v191_v3, %v190_v51  ;;  %v517_v42 = vld [vmem:[%s2524_s1 + $0x4a8] sm:$0xff] }
  0x4a   :  { %1408 = vmatprep.subr.mxu1 %v480_v12  ;;  %970 = vmatprep.mubr.f32.mxu1 %v671_v47  ;;  %v556_v47 = vld [vmem:[%s2524_s1 + $0x5e0] sm:$0xff]  ;;  %v295_v57 = vadd.f32 %v294_v45, %v293_v39  ;;  %v184_v8 = vrot.slane %v183_v56, 2  ;;  %v505_v12 = vld [vmem:[%s2524_s1 + $0x448] sm:$0xff] }
  0x4b   :  { %1409 = vmatpush3.msra.mxu1 %v464_v17  ;;  %1413 = vmatprep.subr.mxu0 %v527_v18  ;;  %v171_v17 = vadd.f32 %v170_v1, %v169_v49  ;;  %v283_v18 = vadd.f32 %v282_v2, %v281_v50  ;;  %v180_v32 = vadd.f32 %v179_v16, %v178_v0 }
  0x4c   :  { %1448 = vmatprep.subr.mxu1 %v559_v22  ;;  %971 = vmatmul.mubr.f32.vlgmr.msra.gmra.mxu1 %v670_v23  ;;  %v296_v9 = vrot.slane %v295_v57, 2  ;;  %v291_v22 = vrot.slane %v290_v6, 1  ;;  %v304_v23 = vadd.f32 %v303_v7, %v302_v55  ;;  %v185_v24 = vadd.f32 %v184_v8, %v183_v56 }
  0x4d   :  { %1414 = vmatpush3.msra.mxu0 %v511_v25  ;;  %1449 = vmatpush3.msra.mxu1 %v543_v26  ;;  %v519_v26 = vld [vmem:[%s2524_s1 + $0x4b8] sm:$0xff]  ;;  %v172_v33 = vrot.slane %v171_v17, 1  ;;  %v284_v34 = vrot.slane %v283_v18, 1 }
  0x4e   :  { %1415 = vmatprep.subr.mxu0 %v526_v29  ;;  %1450 = vmatprep.subr.mxu1 %v558_v30  ;;  %v297_v25 = vadd.f32 %v296_v9, %v295_v57  ;;  %v535_v29 = vld [vmem:[%s2524_s1 + $0x538] sm:$0xff]  ;;  %v518_v30 = vld [vmem:[%s2524_s1 + $0x4b0] sm:$0xff]  ;;  %v292_v38 = vadd.f32 %v291_v22, %v290_v6  ;;  %v305_v39 = vrot.slane %v304_v23, 1 }
  0x4f   :  { %1416 = vmatpush3.msra.mxu0 %v510_v35  ;;  %1451 = vmatpush3.msra.mxu1 %v542_v36  ;;  %v193_v35 = vrot.slane %v192_v19, 1  ;;  %v502_v36 = vld [vmem:[%s2524_s1 + $0x430] sm:$0xff] }
  0x50   :  { %1417 = vmatprep.subr.mxu0 %v525_v40  ;;  %1452 = vmatprep.subr.mxu1 %v557_v41  ;;  %v186_v40 = vrot.slane %v185_v24, 1  ;;  %v298_v41 = vrot.slane %v297_v25, 1 }
  0x51   :  { %1418 = vmatpush3.msra.mxu0 %v509_v43  ;;  %1453 = vmatpush3.msra.mxu1 %v541_v44  ;;  %v549_v43 = vld [vmem:[%s2524_s1 + $0x5a8] sm:$0xff] }
  0x52   :  { %1419 = vmatprep.subr.mxu0 %v524_v46  ;;  %1454 = vmatprep.subr.mxu1 %v556_v47 }
  0x53   :  { %1420 = vmatpush3.msra.mxu0 %v508_v52  ;;  %1455 = vmatpush3.msra.mxu1 %v540_v53 }
  0x54   :  { %1421 = vmatprep.subr.mxu0 %v523_v58  ;;  %1456 = vmatprep.subr.mxu1 %v555_v59 }
  0x55   :  { %1422 = vmatpush3.msra.mxu0 %v507_v60  ;;  %1457 = vmatpush3.msra.mxu1 %v539_v61 }
  0x56   :  { %1423 = vmatprep.subr.mxu0 %v522_v62  ;;  %1458 = vmatprep.subr.mxu1 %v554_v63 }
  0x57   :  { %1424 = vmatpush3.msra.mxu0 %v506_v4  ;;  %1459 = vmatpush3.msra.mxu1 %v538_v5 }
  0x58   :  { %1425 = vmatprep.subr.mxu0 %v521_v10  ;;  %1460 = vmatprep.subr.mxu1 %v553_v11 }
  0x59   :  { %1426 = vmatpush3.msra.mxu0 %v505_v12  ;;  %1461 = vmatpush3.msra.mxu1 %v537_v13 }
  0x5a   :  { %1427 = vmatprep.subr.mxu0 %v520_v14  ;;  %1462 = vmatprep.subr.mxu1 %v552_v15 }
  0x5b   :  { %1428 = vmatpush3.msra.mxu0 %v504_v20  ;;  %1463 = vmatpush3.msra.mxu1 %v536_v21 }
  0x5c   :  { %1429 = vmatprep.subr.mxu0 %v519_v26  ;;  %1464 = vmatprep.subr.mxu1 %v551_v27 }
  0x5d   :  { %1430 = vmatpush3.msra.mxu0 %v503_v28  ;;  %1465 = vmatpush3.msra.mxu1 %v535_v29 }
  0x5e   :  { %8 = vsyncpa [#allocation3], 0  ;;  %1431 = vmatprep.subr.mxu0 %v518_v30  ;;  %1466 = vmatprep.subr.mxu1 %v550_v31  ;;  %v501_v44 = vld [vmem:[%s2524_s1 + $0x428] sm:$0xff]  ;;  %v516_v46 = vld [vmem:[%s2524_s1 + $0x4a0] sm:$0xff]  ;;  %v345_v50 = vmul.f32 0.0625, %v180_v32  ;;  %v173_v51 = vadd.f32 %v172_v33, %v171_v17  ;;  %v285_v52 = vadd.f32 %v284_v34, %v283_v18  ;;  %v194_v53 = vadd.f32 %v193_v35, %v192_v19 }
  0x5f   :  { %v533_v45 = vld [vmem:[%s2524_s1 + $0x528] sm:$0xff]  ;;  %1432 = vmatpush3.msra.mxu0 %v502_v36  ;;  %1467 = vmatpush3.msra.mxu1 %v534_v37  ;;  %v548_v47 = vld [vmem:[%s2524_s1 + $0x5a0] sm:$0xff]  ;;  %v515_v54 = vld [vmem:[%s2524_s1 + $0x498] sm:$0xff]  ;;  %v361_v57 = vmul.f32 0.0625, %v292_v38  ;;  %v306_v58 = vadd.f32 %v305_v39, %v304_v23  ;;  %v187_v59 = vadd.f32 %v186_v40, %v185_v24  ;;  %v299_v60 = vadd.f32 %v298_v41, %v297_v25 }
  0x60   :  { %v500_v48 = vld [vmem:[%s2524_s1 + $0x420] sm:$0xff]  ;;  %1433 = vmatprep.subr.mxu0 %v517_v42  ;;  %1468 = vmatprep.subr.mxu1 %v549_v43  ;;  %v547_v55 = vld [vmem:[%s2524_s1 + $0x598] sm:$0xff]  ;;  %v514_v62 = vld [vmem:[%s2524_s1 + $0x490] sm:$0xff]  ;;  %v344_v4 = vmul.f32 0.0625, %v173_v51  ;;  %v360_v5 = vmul.f32 0.0625, %v285_v52  ;;  %v347_v6 = vmul.f32 0.0625, %v194_v53 }
  0x61   :  { %v532_v49 = vld [vmem:[%s2524_s1 + $0x520] sm:$0xff]  ;;  %v499_v56 = vld [vmem:[%s2524_s1 + $0x418] sm:$0xff]  ;;  %1434 = vmatpush3.msra.mxu0 %v501_v44  ;;  %1469 = vmatpush3.msra.mxu1 %v533_v45  ;;  %v546_v63 = vld [vmem:[%s2524_s1 + $0x590] sm:$0xff]  ;;  %v673_v11 = vsel %vm663_vm0, %v361_v57, %v345_v50  ;;  %v363_v12 = vmul.f32 0.0625, %v306_v58  ;;  %v346_v13 = vmul.f32 0.0625, %v187_v59  ;;  %v362_v14 = vmul.f32 0.0625, %v299_v60 }
  0x62   :  { %v531_v61 = vld [vmem:[%s2524_s1 + $0x518] sm:$0xff]  ;;  %1435 = vmatprep.subr.mxu0 %v516_v46  ;;  %1470 = vmatprep.subr.mxu1 %v548_v47  ;;  %v498_v0 = vld [vmem:[%s2524_s1 + $0x410] sm:$0xff]  ;;  %v513_v17 = vld [vmem:[%s2524_s1 + $0x488] sm:$0xff]  ;;  %v672_v41 = vsel %vm663_vm0, %v360_v5, %v344_v4  ;;  %vm1256_vm1 = vcmask 74752  }
  0x63   :  { %v2245_v1 = vld [vmem:[%s2523_s0 + $0x30] sm:$0xff]  ;;  %1436 = vmatpush3.msra.mxu0 %v500_v48  ;;  %1471 = vmatpush3.msra.mxu1 %v532_v49  ;;  %v2265_v8 = vld [vmem:[%s2523_s0 + $0x38] sm:$0xff]  ;;  %v545_v18 = vld [vmem:[%s2524_s1 + $0x588] sm:$0xff]  ;;  %v675_v42 = vsel %vm663_vm0, %v363_v12, %v347_v6  ;;  %v674_v44 = vsel %vm663_vm0, %v362_v14, %v346_v13 }
  0x64   :  { %v2250_v2 = vld [vmem:[%s2523_s0 + $0x70] sm:$0xff]  ;;  %v2270_v9 = vld [vmem:[%s2523_s0 + $0x78] sm:$0xff]  ;;  %1437 = vmatprep.subr.mxu0 %v515_v54  ;;  %1472 = vmatprep.subr.mxu1 %v547_v55  ;;  %v60_v19 = vunpack.c.h.bf16 %v2245_v1  ;;  %v59_v22 = vunpack.c.l.bf16 %v2245_v1  ;;  %v497_v23 = vld [vmem:[%s2524_s1 + $0x408] sm:$0xff]  ;;  %v62_v26 = vunpack.c.h.bf16 %v2265_v8  ;;  %v61_v36 = vunpack.c.l.bf16 %v2265_v8 }
  0x65   :  { %v2255_v3 = vld [vmem:[%s2523_s0 + $0xb0] sm:$0xff]  ;;  %v38_v15 = vld [vmem:[%s2523_s0 + $0xb8] sm:$0xff]  ;;  %1438 = vmatpush3.msra.mxu0 %v499_v56  ;;  %1473 = vmatpush3.msra.mxu1 %v531_v61  ;;  %v76_v20 = vunpack.c.h.bf16 %v2250_v2  ;;  %v529_v24 = vld [vmem:[%s2524_s1 + $0x508] sm:$0xff]  ;;  %v78_v27 = vunpack.c.h.bf16 %v2270_v9  ;;  %v75_v28 = vunpack.c.l.bf16 %v2250_v2  ;;  %v77_v37 = vunpack.c.l.bf16 %v2270_v9 }
  0x66   :  { %v2260_v7 = vld [vmem:[%s2523_s0 + $0xf0] sm:$0xff]  ;;  %v46_v16 = vld [vmem:[%s2523_s0 + $0xf8] sm:$0xff]  ;;  %v92_v21 = vunpack.c.h.bf16 %v2255_v3  ;;  %1439 = vmatprep.subr.mxu0 %v514_v62  ;;  %1474 = vmatprep.subr.mxu1 %v546_v63  ;;  %v512_v29 = vld [vmem:[%s2524_s1 + $0x480] sm:$0xff]  ;;  %v94_v31 = vunpack.c.h.bf16 %v38_v15  ;;  %v91_v33 = vunpack.c.l.bf16 %v2255_v3  ;;  %v93_v38 = vunpack.c.l.bf16 %v38_v15 }
  0x67   :  { %v530_v10 = vld [vmem:[%s2524_s1 + $0x510] sm:$0xff]  ;;  %v108_v25 = vunpack.c.h.bf16 %v2260_v7  ;;  %1440 = vmatpush3.msra.mxu0 %v498_v0  ;;  %v544_v30 = vld [vmem:[%s2524_s1 + $0x580] sm:$0xff]  ;;  %v110_v32 = vunpack.c.h.bf16 %v46_v16  ;;  %v107_v34 = vunpack.c.l.bf16 %v2260_v7  ;;  %v109_v39 = vunpack.c.l.bf16 %v46_v16  ;;  %v591_v43 = vld [vmem:[%s2524_s1 + $0x6f8] sm:$0xff]  ;;  %1040 = vmatprep.mubr.f32.mxu0 %v673_v11 }
  0x68   :  { %1475 = vmatpush3.msra.mxu1 %v530_v10  ;;  %1441 = vmatprep.subr.mxu0 %v513_v17  ;;  %v496_v35 = vld [vmem:[%s2524_s1 + $0x400] sm:$0xff]  ;;  %v202_v45 = vadd.f32 %v76_v20, %v60_v19  ;;  %v623_v47 = vld [vmem:[%s2524_s1 + $0x7f8] sm:$0xff]  ;;  %v216_v48 = vadd.f32 %v78_v27, %v62_v26  ;;  %v195_v50 = vadd.f32 %v75_v28, %v59_v22  ;;  %v590_v56 = vld [vmem:[%s2524_s1 + $0x6f0] sm:$0xff] }
  0x69   :  { %1476 = vmatprep.subr.mxu1 %v545_v18  ;;  %1442 = vmatpush3.msra.mxu0 %v497_v23  ;;  %v528_v40 = vld [vmem:[%s2524_s1 + $0x500] sm:$0xff]  ;;  %v314_v46 = vadd.f32 %v108_v25, %v92_v21  ;;  %v328_v49 = vadd.f32 %v110_v32, %v94_v31  ;;  %v575_v51 = vld [vmem:[%s2524_s1 + $0x678] sm:$0xff]  ;;  %v307_v53 = vadd.f32 %v107_v34, %v91_v33  ;;  %v622_v57 = vld [vmem:[%s2524_s1 + $0x7f0] sm:$0xff] }
  0x6a   :  { %1477 = vmatpush3.msra.mxu1 %v529_v24  ;;  %1443 = vmatprep.subr.mxu0 %v512_v29  ;;  %v607_v52 = vld [vmem:[%s2524_s1 + $0x778] sm:$0xff]  ;;  %v209_v54 = vadd.f32 %v77_v37, %v61_v36  ;;  %v321_v55 = vadd.f32 %v109_v39, %v93_v38  ;;  %v574_v58 = vld [vmem:[%s2524_s1 + $0x670] sm:$0xff]  ;;  %v203_v60 = vrot.slane %v202_v45, 4  ;;  %v589_v62 = vld [vmem:[%s2524_s1 + $0x6e8] sm:$0xff]  ;;  %v217_v0 = vrot.slane %v216_v48, 4 }
  0x6b   :  { %1478 = vmatprep.subr.mxu1 %v544_v30  ;;  %1444 = vmatpush3.msra.mxu0 %v496_v35  ;;  %v606_v59 = vld [vmem:[%s2524_s1 + $0x770] sm:$0xff]  ;;  %v315_v61 = vrot.slane %v314_v46, 4  ;;  %v621_v63 = vld [vmem:[%s2524_s1 + $0x7e8] sm:$0xff]  ;;  %v329_v1 = vrot.slane %v328_v49, 4  ;;  %v196_v2 = vrot.slane %v195_v50, 4  ;;  %v308_v5 = vrot.slane %v307_v53, 4 }
  0x6c   :  { %1479 = vmatpush3.msra.mxu1 %v528_v40  ;;  %1041 = vmatmul.mubr.f32.vlgmr.msra.gmra.mxu0 %v672_v41  ;;  %v573_v3 = vld [vmem:[%s2524_s1 + $0x668] sm:$0xff]  ;;  %v210_v6 = vrot.slane %v209_v54, 4  ;;  %v322_v7 = vrot.slane %v321_v55, 4  ;;  %v588_v8 = vld [vmem:[%s2524_s1 + $0x6e0] sm:$0xff]  ;;  %v204_v12 = vadd.f32 %v203_v60, %v202_v45  ;;  %v587_v14 = vld [vmem:[%s2524_s1 + $0x6d8] sm:$0xff]  ;;  %v218_v16 = vadd.f32 %v217_v0, %v216_v48 }
  0x6d   :  { %1110 = vmatprep.mubr.f32.mxu1 %v675_v42  ;;  %1483 = vmatprep.subr.mxu0 %v591_v43  ;;  %v605_v4 = vld [vmem:[%s2524_s1 + $0x768] sm:$0xff]  ;;  %v620_v9 = vld [vmem:[%s2524_s1 + $0x7e0] sm:$0xff]  ;;  %v316_v13 = vadd.f32 %v315_v61, %v314_v46  ;;  %v619_v15 = vld [vmem:[%s2524_s1 + $0x7d8] sm:$0xff]  ;;  %v330_v17 = vadd.f32 %v329_v1, %v328_v49  ;;  %v197_v18 = vadd.f32 %v196_v2, %v195_v50 }
  0x6e   :  { %1518 = vmatprep.subr.mxu1 %v623_v47  ;;  %1111 = vmatmul.mubr.f32.vlgmr.msra.gmra.mxu1 %v674_v44  ;;  %v572_v10 = vld [vmem:[%s2524_s1 + $0x660] sm:$0xff]  ;;  %v571_v19 = vld [vmem:[%s2524_s1 + $0x658] sm:$0xff]  ;;  %v309_v21 = vadd.f32 %v308_v5, %v307_v53  ;;  %v211_v22 = vadd.f32 %v210_v6, %v209_v54  ;;  %v323_v23 = vadd.f32 %v322_v7, %v321_v55  ;;  %v586_v24 = vld [vmem:[%s2524_s1 + $0x6d0] sm:$0xff]  ;;  %v205_v28 = vrot.slane %v204_v12, 2 }
  0x6f   :  { %1484 = vmatpush3.msra.mxu0 %v575_v51  ;;  %1519 = vmatpush3.msra.mxu1 %v607_v52  ;;  %v604_v11 = vld [vmem:[%s2524_s1 + $0x760] sm:$0xff]  ;;  %v603_v20 = vld [vmem:[%s2524_s1 + $0x758] sm:$0xff]  ;;  %v618_v25 = vld [vmem:[%s2524_s1 + $0x7d0] sm:$0xff]  ;;  %v317_v29 = vrot.slane %v316_v13, 2  ;;  %v219_v32 = vrot.slane %v218_v16, 2  ;;  %v331_v33 = vrot.slane %v330_v17, 2 }
  0x70   :  { %1485 = vmatprep.subr.mxu0 %v590_v56  ;;  %1520 = vmatprep.subr.mxu1 %v622_v57  ;;  %v570_v26 = vld [vmem:[%s2524_s1 + $0x650] sm:$0xff]  ;;  %v585_v30 = vld [vmem:[%s2524_s1 + $0x6c8] sm:$0xff]  ;;  %v198_v34 = vrot.slane %v197_v18, 2  ;;  %v310_v37 = vrot.slane %v309_v21, 2  ;;  %v212_v38 = vrot.slane %v211_v22, 2  ;;  %v324_v39 = vrot.slane %v323_v23, 2 }
  0x71   :  { %1486 = vmatpush3.msra.mxu0 %v574_v58  ;;  %1521 = vmatpush3.msra.mxu1 %v606_v59  ;;  %v602_v27 = vld [vmem:[%s2524_s1 + $0x750] sm:$0xff]  ;;  %v617_v31 = vld [vmem:[%s2524_s1 + $0x7c8] sm:$0xff]  ;;  %v584_v40 = vld [vmem:[%s2524_s1 + $0x6c0] sm:$0xff]  ;;  %v206_v44 = vadd.f32 %v205_v28, %v204_v12  ;;  %v318_v45 = vadd.f32 %v317_v29, %v316_v13  ;;  %v220_v48 = vadd.f32 %v219_v32, %v218_v16 }
  0x72   :  { %1487 = vmatprep.subr.mxu0 %v589_v62  ;;  %1522 = vmatprep.subr.mxu1 %v621_v63  ;;  %v569_v35 = vld [vmem:[%s2524_s1 + $0x648] sm:$0xff]  ;;  %v616_v41 = vld [vmem:[%s2524_s1 + $0x7c0] sm:$0xff]  ;;  %v583_v46 = vld [vmem:[%s2524_s1 + $0x6b8] sm:$0xff]  ;;  %v332_v49 = vadd.f32 %v331_v33, %v330_v17  ;;  %v199_v50 = vadd.f32 %v198_v34, %v197_v18  ;;  %v311_v53 = vadd.f32 %v310_v37, %v309_v21 }
  0x73   :  { %1488 = vmatpush3.msra.mxu0 %v573_v3  ;;  %1523 = vmatpush3.msra.mxu1 %v605_v4  ;;  %v601_v36 = vld [vmem:[%s2524_s1 + $0x748] sm:$0xff]  ;;  %v568_v42 = vld [vmem:[%s2524_s1 + $0x640] sm:$0xff]  ;;  %v615_v47 = vld [vmem:[%s2524_s1 + $0x7b8] sm:$0xff]  ;;  %v213_v54 = vadd.f32 %v212_v38, %v211_v22  ;;  %v325_v55 = vadd.f32 %v324_v39, %v323_v23  ;;  %v207_v60 = vrot.slane %v206_v44, 1  ;;  %v319_v61 = vrot.slane %v318_v45, 1 }
  0x74   :  { %1489 = vmatprep.subr.mxu0 %v588_v8  ;;  %1524 = vmatprep.subr.mxu1 %v620_v9  ;;  %v600_v43 = vld [vmem:[%s2524_s1 + $0x740] sm:$0xff]  ;;  %v567_v51 = vld [vmem:[%s2524_s1 + $0x638] sm:$0xff]  ;;  %v582_v56 = vld [vmem:[%s2524_s1 + $0x6b0] sm:$0xff]  ;;  %v221_v0 = vrot.slane %v220_v48, 1  ;;  %v333_v1 = vrot.slane %v332_v49, 1  ;;  %v200_v2 = vrot.slane %v199_v50, 1 }
  0x75   :  { %1490 = vmatpush3.msra.mxu0 %v572_v10  ;;  %1525 = vmatpush3.msra.mxu1 %v604_v11  ;;  %v599_v52 = vld [vmem:[%s2524_s1 + $0x738] sm:$0xff]  ;;  %v614_v57 = vld [vmem:[%s2524_s1 + $0x7b0] sm:$0xff]  ;;  %v581_v62 = vld [vmem:[%s2524_s1 + $0x6a8] sm:$0xff]  ;;  %v312_v5 = vrot.slane %v311_v53, 1  ;;  %v214_v6 = vrot.slane %v213_v54, 1  ;;  %v326_v7 = vrot.slane %v325_v55, 1  ;;  %v208_v12 = vadd.f32 %v207_v60, %v206_v44 }
  0x76   :  { %1491 = vmatprep.subr.mxu0 %v587_v14  ;;  %1526 = vmatprep.subr.mxu1 %v619_v15  ;;  %v566_v58 = vld [vmem:[%s2524_s1 + $0x630] sm:$0xff]  ;;  %v613_v63 = vld [vmem:[%s2524_s1 + $0x7a8] sm:$0xff]  ;;  %v580_v8 = vld [vmem:[%s2524_s1 + $0x6a0] sm:$0xff]  ;;  %v320_v13 = vadd.f32 %v319_v61, %v318_v45  ;;  %v222_v16 = vadd.f32 %v221_v0, %v220_v48  ;;  %v334_v17 = vadd.f32 %v333_v1, %v332_v49 }
  0x77   :  { %1492 = vmatpush3.msra.mxu0 %v571_v19  ;;  %1527 = vmatpush3.msra.mxu1 %v603_v20  ;;  %v598_v59 = vld [vmem:[%s2524_s1 + $0x730] sm:$0xff]  ;;  %v565_v3 = vld [vmem:[%s2524_s1 + $0x628] sm:$0xff]  ;;  %v612_v9 = vld [vmem:[%s2524_s1 + $0x7a0] sm:$0xff]  ;;  %v201_v18 = vadd.f32 %v200_v2, %v199_v50  ;;  %v313_v21 = vadd.f32 %v312_v5, %v311_v53  ;;  %v215_v22 = vadd.f32 %v214_v6, %v213_v54  ;;  %v349_v28 = vmul.f32 0.0625, %v208_v12 }
  0x78   :  { %1493 = vmatprep.subr.mxu0 %v586_v24  ;;  %1528 = vmatprep.subr.mxu1 %v618_v25  ;;  %v597_v4 = vld [vmem:[%s2524_s1 + $0x728] sm:$0xff]  ;;  %v564_v10 = vld [vmem:[%s2524_s1 + $0x620] sm:$0xff]  ;;  %v579_v14 = vld [vmem:[%s2524_s1 + $0x698] sm:$0xff]  ;;  %v327_v23 = vadd.f32 %v326_v7, %v325_v55  ;;  %v365_v29 = vmul.f32 0.0625, %v320_v13  ;;  %v351_v32 = vmul.f32 0.0625, %v222_v16  ;;  %v367_v33 = vmul.f32 0.0625, %v334_v17 }
  0x79   :  { %1494 = vmatpush3.msra.mxu0 %v570_v26  ;;  %1529 = vmatpush3.msra.mxu1 %v602_v27  ;;  %v596_v11 = vld [vmem:[%s2524_s1 + $0x720] sm:$0xff]  ;;  %v611_v15 = vld [vmem:[%s2524_s1 + $0x798] sm:$0xff]  ;;  %v578_v24 = vld [vmem:[%s2524_s1 + $0x690] sm:$0xff]  ;;  %v364_v37 = vmul.f32 0.0625, %v313_v21  ;;  %v350_v38 = vmul.f32 0.0625, %v215_v22 }
  0x7a   :  { %1495 = vmatprep.subr.mxu0 %v585_v30  ;;  %1530 = vmatprep.subr.mxu1 %v617_v31  ;;  %v563_v19 = vld [vmem:[%s2524_s1 + $0x618] sm:$0xff]  ;;  %v610_v25 = vld [vmem:[%s2524_s1 + $0x790] sm:$0xff]  ;;  %v577_v30 = vld [vmem:[%s2524_s1 + $0x688] sm:$0xff]  ;;  %v366_v39 = vmul.f32 0.0625, %v327_v23  ;;  %v679_v45 = vsel %vm663_vm0, %v367_v33, %v351_v32 }
  0x7b   :  { %1496 = vmatpush3.msra.mxu0 %v569_v35  ;;  %1531 = vmatpush3.msra.mxu1 %v601_v36  ;;  %v595_v20 = vld [vmem:[%s2524_s1 + $0x718] sm:$0xff]  ;;  %v562_v26 = vld [vmem:[%s2524_s1 + $0x610] sm:$0xff]  ;;  %v609_v31 = vld [vmem:[%s2524_s1 + $0x788] sm:$0xff]  ;;  %v348_v36 = vmul.f32 0.0625, %v201_v18 }
  0x7c   :  { %1497 = vmatprep.subr.mxu0 %v584_v40  ;;  %1532 = vmatprep.subr.mxu1 %v616_v41  ;;  %v594_v27 = vld [vmem:[%s2524_s1 + $0x710] sm:$0xff]  ;;  %v561_v34 = vld [vmem:[%s2524_s1 + $0x608] sm:$0xff]  ;;  %v576_v40 = vld [vmem:[%s2524_s1 + $0x680] sm:$0xff] }
  0x7d   :  { %1498 = vmatpush3.msra.mxu0 %v568_v42  ;;  %1533 = vmatpush3.msra.mxu1 %v600_v43  ;;  %v593_v35 = vld [vmem:[%s2524_s1 + $0x708] sm:$0xff]  ;;  %v608_v41 = vld [vmem:[%s2524_s1 + $0x780] sm:$0xff]  ;;  %v677_v43 = vsel %vm663_vm0, %v365_v29, %v349_v28 }
  0x7e   :  { %1499 = vmatprep.subr.mxu0 %v583_v46  ;;  %1534 = vmatprep.subr.mxu1 %v615_v47  ;;  %v560_v42 = vld [vmem:[%s2524_s1 + $0x600] sm:$0xff]  ;;  %v676_v46 = vsel %vm663_vm0, %v364_v37, %v348_v36  ;;  %v678_v47 = vsel %vm663_vm0, %v366_v39, %v350_v38 }
  0x7f   :  { %1500 = vmatpush3.msra.mxu0 %v567_v51  ;;  %1535 = vmatpush3.msra.mxu1 %v599_v52  ;;  %v592_v44 = vld [vmem:[%s2524_s1 + $0x700] sm:$0xff] }
  0x80   :  { %1501 = vmatprep.subr.mxu0 %v582_v56  ;;  %1536 = vmatprep.subr.mxu1 %v614_v57  ;;  %v1272_v53 = vld [vmem:[%s2525_s2] ss:$0 sm:$0xff]  ;;  %s1576_s2 = smov [#allocation2]  }
  0x81   :  { %1502 = vmatpush3.msra.mxu0 %v566_v58  ;;  %1537 = vmatpush3.msra.mxu1 %v598_v59  ;;  %s1264_s16 = sshll.u32 %s1576_s2, 4  ;;  %s1265_s16 = int_to_ptr.vmem [resolvable:$true] %s1264_s16 }
  0x82   :  { %1503 = vmatprep.subr.mxu0 %v581_v62  ;;  %1538 = vmatprep.subr.mxu1 %v613_v63  ;;  %s1554_s17 = scalar_lea.vmem %s1265_s16, 32  ;;  %p1559_p1 = scmp.lt.s32.totalorder %s1265_s16, %s1265_s16 }
  0x83   :  { %1504 = vmatpush3.msra.mxu0 %v565_v3  ;;  %1539 = vmatpush3.msra.mxu1 %v597_v4  ;;  %p1555_p0 = scmp.ne.s32.totalorder %s1265_s16, %s1554_s17  ;;  %p1560_p2 = scmp.lt.s32.totalorder %s1554_s17, %s1554_s17 }
  0x84   :  { %1505 = vmatprep.subr.mxu0 %v580_v8  ;;  %1540 = vmatprep.subr.mxu1 %v612_v9 }
  0x85   :  { %1506 = vmatpush3.msra.mxu0 %v564_v10  ;;  %1541 = vmatpush3.msra.mxu1 %v596_v11  ;;  %p1561_p3 = por %p1560_p2, %p1559_p1 }
  0x86   :  { %1507 = vmatprep.subr.mxu0 %v579_v14  ;;  %1542 = vmatprep.subr.mxu1 %v611_v15 }
  0x87   :  { %1508 = vmatpush3.msra.mxu0 %v563_v19  ;;  %1543 = vmatpush3.msra.mxu1 %v595_v20  ;;  %p1562_p4 = pnand %p1561_p3, %p1555_p0 }
  0x88   :  { %1509 = vmatprep.subr.mxu0 %v578_v24  ;;  %1544 = vmatprep.subr.mxu1 %v610_v25 }
  0x89   :  { %1510 = vmatpush3.msra.mxu0 %v562_v26  ;;  %1545 = vmatpush3.msra.mxu1 %v594_v27 }
  0x8a   :  { %1511 = vmatprep.subr.mxu0 %v577_v30  ;;  %1546 = vmatprep.subr.mxu1 %v609_v31 }
  0x8b   :  { %1512 = vmatpush3.msra.mxu0 %v561_v34  ;;  %1547 = vmatpush3.msra.mxu1 %v593_v35 }
  0x8c   :  { %1513 = vmatprep.subr.mxu0 %v576_v40  ;;  %1548 = vmatprep.subr.mxu1 %v608_v41 }
  0x8d   :  { %1514 = vmatpush3.msra.mxu0 %v560_v42  ;;  %1180 = vmatprep.mubr.f32.mxu0 %v677_v43 }
  0x8e   :  { %1549 = vmatpush3.msra.mxu1 %v592_v44  ;;  %1250 = vmatprep.mubr.f32.mxu1 %v679_v45 }
  0x8f   :  { %1181 = vmatmul.mubr.f32.vlgmr.msra.gmra.mxu0 %v676_v46  ;;  %1251 = vmatmul.mubr.f32.vlgmr.msra.gmra.mxu1 %v678_v47 }
  0xe9   :  { %v1305_v48 = vpop.f32.mrf.mxu0 }
  0xeb   :  { %v1340_v49 = vpop.f32.mrf.mxu1  ;;  %v1306_v50 = vpop.f32.mrf.mxu0 }
  0xec   :  { %v1307_v52 = vadd.f32 %v1306_v50, %v1305_v48 }
  0xed   :  { %v1341_v54 = vpop.f32.mrf.mxu1 }
  0xee   :  { %v763_v57 = vadd.f32 %v1307_v52, %v1272_v53  ;;  %v1342_v58 = vadd.f32 %v1341_v54, %v1340_v49 }
  0xf0   :  { %v833_v62 = vadd.f32 %v1342_v58, %v763_v57 }
 0x109   :  { %v1375_v51 = vpop.f32.mrf.mxu0 }
 0x10b   :  { %v1376_v56 = vpop.f32.mrf.mxu0 }
 0x10c   :  { %v1410_v55 = vpop.f32.mrf.mxu1  ;;  %v1377_v60 = vadd.f32 %v1376_v56, %v1375_v51 }
 0x10e   :  { %v1411_v61 = vpop.f32.mrf.mxu1  ;;  %v903_v1 = vadd.f32 %v1377_v60, %v833_v62 }
 0x10f   :  { %v1412_v2 = vadd.f32 %v1411_v61, %v1410_v55 }
 0x111   :  { %v973_v5 = vadd.f32 %v1412_v2, %v903_v1 }
 0x12c   :  { %v1445_v59 = vpop.f32.mrf.mxu0 }
 0x12e   :  { %v1480_v63 = vpop.f32.mrf.mxu1  ;;  %v1446_v0 = vpop.f32.mrf.mxu0 }
 0x12f   :  { %v1447_v3 = vadd.f32 %v1446_v0, %v1445_v59 }
 0x130   :  { %v1481_v4 = vpop.f32.mrf.mxu1 }
 0x131   :  { %v1043_v6 = vadd.f32 %v1447_v3, %v973_v5  ;;  %v1482_v7 = vadd.f32 %v1481_v4, %v1480_v63 }
 0x133   :  { %v1113_v12 = vadd.f32 %v1482_v7, %v1043_v6 }
 0x14f   :  { %v1515_v8 = vpop.f32.mrf.mxu0  ;;  %v1550_v9 = vpop.f32.mrf.mxu1 }
 0x151   :  { %v1516_v10 = vpop.f32.mrf.mxu0  ;;  %v1551_v11 = vpop.f32.mrf.mxu1 }
 0x152   :  { %v1517_v13 = vadd.f32 %v1516_v10, %v1515_v8  ;;  %v1552_v15 = vadd.f32 %v1551_v11, %v1550_v9 }
 0x154   :  { %v1183_v14 = vadd.f32 %v1517_v13, %v1113_v12 }
 0x156   :  { %v1253_v16 = vadd.f32 %v1552_v15, %v1183_v14 }
 0x158   :  { %1257 = vst.msk [vmem:[#allocation2] sm:$0x3] %vm1256_vm1, %v1253_v16 }
 0x159   :  { %1565 = shalt.err (!%p1562_p4)
}
 0x15a   :  { %1267 = dma.vmem_to_hbm [thread:$0]  %s1265_s16, 32, %s2526_s3, [#allocation3]  }
 0x15b   :  { %1574 = dma.done.wait [#allocation3], 32  }
 0x15c   :  { %1575 = vsyncadd [#allocation3], 4294967264 }
 0x15d   :  { %1271 = vsyncpa [#allocation3], 1 }

// kernel: resnet50_forward.15
= control target key start
LH: loop header
LB: loop body
LE: loop exit
PB: predicated region body
PF: predicated region fallthrough
CT: control target
= control target key end

     0   :  { %s10010_s12 = smov 0   ;;  %s10012_s13 = smov 0   ;;  %s11741_s0 = inlined_call_operand.vmem [shape: bf16[2,24,1536], index: 0, kind: input, shape index: {}]   ;;  %s11742_s1 = inlined_call_operand.vmem [shape: bf16[3,1536,512], index: 1, kind: input, shape index: {}]   ;;  %s11743_s2 = inlined_call_operand.vmem [shape: f32[1,512], index: 2, kind: input, shape index: {}]   ;;  %s11744_s3 = inlined_call_operand.vmem [shape: bf16[2,16,512], index: 3, kind: output, shape index: {}]  }
   0x1   :  { %s10014_s14 = smov 0   ;;  %s10016_s15 = smov 0  }
   0x2   :  { %s10018_s16 = smov 0   ;;  %s10020_s17 = smov 0  }
   0x3   :  { %s10022_s18 = smov 0   ;;  %s10024_s19 = smov 0  }
   0x4   :  { %s10026_s20 = smov 0  }
   0x5 LB: > { %s8414_s21 = sadd.s32 4294967295, %s9987_s20   ;;  %s22_s22 = sadd.s32 1, %s9979_s18  ;;  %s9987_s20 = sphi %s10026_s20, %s13_s20   ;;  %s9983_s19 = sphi %s10024_s19, %s11763_s19   ;;  %s9979_s18 = sphi %s10022_s18, %s11762_s18   ;;  %s9975_s17 = sphi %s10020_s17, %s11761_s17   ;;  %s9971_s16 = sphi %s10018_s16, %s11760_s16   ;;  %s9967_s15 = sphi %s10016_s15, %s11759_s15   ;;  %s9963_s14 = sphi %s10014_s14, %s11758_s14   ;;  %s9959_s13 = sphi %s10012_s13, %s11757_s13   ;;  %s9955_s12 = sphi %s10010_s12, %s11756_s12  }
   0x6   : > { %p23_p0 = scmp.ge.s32.totalorder %s22_s22, 4  ;;  %s25_s23 = sadd.s32 1, %s9983_s19 }
   0x7   : > { %s58_s24 = sadd.s32 1, %s9967_s15  ;;  %p65_p1 = scmp.ne.s32.totalorder %s9967_s15, %s9963_s14 }
   0x8   : > { %s11765_s22 = smov (%p23_p0, %s22_s22), 0  ;;  %s11767_s23 = smov (!%p23_p0, %s25_s23), %s9983_s19 }
   0x9   : > { %s55_s25 = ssub.s32 %s9979_s18, %s11765_s22  ;;  %p66_p2 = scmp.eq.s32.totalorder %s9987_s20, 0 }
   0xa   : > { %p27_p3 = scmp.ge.s32.totalorder %s11767_s23, 2  ;;  %p56_p4 = scmp.eq.s32.totalorder %s55_s25, 0 }
   0xb   : > { %p67_p5 = por %p66_p2, %p65_p1  ;;  %s112_s26 = sadd.s32 1, %s9959_s13 }
   0xc   : > { %s11769_s23 = smov (%p27_p3, %s11767_s23), 0  ;;  %p122_p6 = scmp.ne.s32.totalorder %s9959_s13, %s9955_s12 }
   0xd   : > { %s10071_s27 = scalar_select %p56_p4, %s9967_s15, %s58_s24  }
   0xe   : > { %s107_s28 = ssub.s32 %s9983_s19, %s11769_s23  ;;  %p123_p7 = scmp.eq.s32.totalorder %s8414_s21, 7 }
   0xf   : > { %s109_s29 = sor.u32 %s107_s28, %s55_s25  ;;  %p8417_p10 = scmp.ge.s32.totalorder %s9987_s20, 8 }
  0x10   : > { %p110_p8 = scmp.eq.s32.totalorder %s109_s29, 0  ;;  %p10077_p9 = por %p123_p7, %p122_p6 }
  0x11   : > { %145 = sbr.rel (%p8417_p10) target bundleno = 410 (0x19a), region = 16 }
  0x12   : > { %s10082_s4 = scalar_select %p110_p8, %s9959_s13, %s112_s26  }
  0x16   : > { %156 = sbr.rel (!%p67_p5) target bundleno = 410 (0x19a), region = 24  ;;  %s158_s5 = sand.u32 (%p67_p5), 1, %s9967_s15  }
  0x17   : > { %s8418_s6 = sshll.u32 (%p67_p5), %s9979_s18, 2  ;;  %s9553_s7 = smul.u32 (%p67_p5), 2304, %s158_s5 }
  0x18   : > { %s10090_s10 = scalar_lea.vmem (%p67_p5), %s11742_s1, %s8418_s6 }
  0x19   : > { %v179_v0 = vld [vmem:[%s10090_s10] sm:$0xf] (%p67_p5)  ;;  %v181_v1 = vld [vmem:[%s10090_s10 + $0x10] sm:$0xf] (%p67_p5)  ;;  %s10097_s11 = scalar_lea.vmem (%p67_p5), [#allocation2], %s9553_s7 }
  0x1a   : > { %v183_v2 = vld [vmem:[%s10090_s10 + $0x20] sm:$0xf] (%p67_p5)  ;;  %v185_v3 = vld [vmem:[%s10090_s10 + $0x30] sm:$0xf] (%p67_p5)  ;;  %180 = vst [vmem:[%s10097_s11] sm:$0xf] (%p67_p5), %v179_v0 }
  0x1b   : > { %v187_v4 = vld [vmem:[%s10090_s10 + $0x40] sm:$0xf]  ;;  %182 = vst [vmem:[%s10097_s11 + $0x4] sm:$0xf] %v181_v1  ;;  %184 = vst [vmem:[%s10097_s11 + $0x8] sm:$0xf] %v183_v2 }
  0x1c   : > { %186 = vst [vmem:[%s10097_s11 + $0xc] sm:$0xf] %v185_v3  ;;  %188 = vst [vmem:[%s10097_s11 + $0x10] sm:$0xf] %v187_v4  ;;  %v189_v5 = vld [vmem:[%s10090_s10 + $0x50] sm:$0xf] }
  0x1d   : > { %v191_v6 = vld [vmem:[%s10090_s10 + $0x60] sm:$0xf]  ;;  %v193_v7 = vld [vmem:[%s10090_s10 + $0x70] sm:$0xf]  ;;  %190 = vst [vmem:[%s10097_s11 + $0x14] sm:$0xf] %v189_v5 }
  0x1e   : > { %192 = vst [vmem:[%s10097_s11 + $0x18] sm:$0xf] %v191_v6  ;;  %194 = vst [vmem:[%s10097_s11 + $0x1c] sm:$0xf] %v193_v7  ;;  %v195_v8 = vld [vmem:[%s10090_s10 + $0x80] sm:$0xf] }
  0x1f   : > { %v197_v9 = vld [vmem:[%s10090_s10 + $0x90] sm:$0xf]  ;;  %v199_v10 = vld [vmem:[%s10090_s10 + $0xa0] sm:$0xf]  ;;  %196 = vst [vmem:[%s10097_s11 + $0x20] sm:$0xf] %v195_v8 }
  0x20   : > { %198 = vst [vmem:[%s10097_s11 + $0x24] sm:$0xf] %v197_v9  ;;  %200 = vst [vmem:[%s10097_s11 + $0x28] sm:$0xf] %v199_v10  ;;  %v201_v11 = vld [vmem:[%s10090_s10 + $0xb0] sm:$0xf] }
  0x21   : > { %v203_v12 = vld [vmem:[%s10090_s10 + $0xc0] sm:$0xf]  ;;  %v205_v13 = vld [vmem:[%s10090_s10 + $0xd0] sm:$0xf]  ;;  %202 = vst [vmem:[%s10097_s11 + $0x2c] sm:$0xf] %v201_v11 }
  0x22   : > { %204 = vst [vmem:[%s10097_s11 + $0x30] sm:$0xf] %v203_v12  ;;  %206 = vst [vmem:[%s10097_s11 + $0x34] sm:$0xf] %v205_v13  ;;  %v207_v14 = vld [vmem:[%s10090_s10 + $0xe0] sm:$0xf] }
  0x23   : > { %v209_v15 = vld [vmem:[%s10090_s10 + $0xf0] sm:$0xf]  ;;  %v211_v16 = vld [vmem:[%s10090_s10 + $0x100] sm:$0xf]  ;;  %208 = vst [vmem:[%s10097_s11 + $0x38] sm:$0xf] %v207_v14 }
  0x24   : > { %210 = vst [vmem:[%s10097_s11 + $0x3c] sm:$0xf] %v209_v15  ;;  %212 = vst [vmem:[%s10097_s11 + $0x40] sm:$0xf] %v211_v16  ;;  %v213_v17 = vld [vmem:[%s10090_s10 + $0x110] sm:$0xf] }
  0x25   : > { %v215_v18 = vld [vmem:[%s10090_s10 + $0x120] sm:$0xf]  ;;  %v217_v19 = vld [vmem:[%s10090_s10 + $0x130] sm:$0xf]  ;;  %214 = vst [vmem:[%s10097_s11 + $0x44] sm:$0xf] %v213_v17 }
  0x26   : > { %216 = vst [vmem:[%s10097_s11 + $0x48] sm:$0xf] %v215_v18  ;;  %218 = vst [vmem:[%s10097_s11 + $0x4c] sm:$0xf] %v217_v19  ;;  %v219_v20 = vld [vmem:[%s10090_s10 + $0x140] sm:$0xf] }
  0x27   : > { %v221_v21 = vld [vmem:[%s10090_s10 + $0x150] sm:$0xf]  ;;  %v223_v22 = vld [vmem:[%s10090_s10 + $0x160] sm:$0xf]  ;;  %220 = vst [vmem:[%s10097_s11 + $0x50] sm:$0xf] %v219_v20 }
  0x28   : > { %222 = vst [vmem:[%s10097_s11 + $0x54] sm:$0xf] %v221_v21  ;;  %224 = vst [vmem:[%s10097_s11 + $0x58] sm:$0xf] %v223_v22  ;;  %v225_v23 = vld [vmem:[%s10090_s10 + $0x170] sm:$0xf] }
  0x29   : > { %v227_v24 = vld [vmem:[%s10090_s10 + $0x180] sm:$0xf]  ;;  %v229_v25 = vld [vmem:[%s10090_s10 + $0x190] sm:$0xf]  ;;  %226 = vst [vmem:[%s10097_s11 + $0x5c] sm:$0xf] %v225_v23 }
  0x2a   : > { %228 = vst [vmem:[%s10097_s11 + $0x60] sm:$0xf] %v227_v24  ;;  %230 = vst [vmem:[%s10097_s11 + $0x64] sm:$0xf] %v229_v25  ;;  %v231_v26 = vld [vmem:[%s10090_s10 + $0x1a0] sm:$0xf] }
  0x2b   : > { %v233_v27 = vld [vmem:[%s10090_s10 + $0x1b0] sm:$0xf]  ;;  %v235_v28 = vld [vmem:[%s10090_s10 + $0x1c0] sm:$0xf]  ;;  %232 = vst [vmem:[%s10097_s11 + $0x68] sm:$0xf] %v231_v26 }
  0x2c   : > { %234 = vst [vmem:[%s10097_s11 + $0x6c] sm:$0xf] %v233_v27  ;;  %236 = vst [vmem:[%s10097_s11 + $0x70] sm:$0xf] %v235_v28  ;;  %v237_v29 = vld [vmem:[%s10090_s10 + $0x1d0] sm:$0xf] }
  0x2d   : > { %v239_v30 = vld [vmem:[%s10090_s10 + $0x1e0] sm:$0xf]  ;;  %v241_v31 = vld [vmem:[%s10090_s10 + $0x1f0] sm:$0xf]  ;;  %238 = vst [vmem:[%s10097_s11 + $0x74] sm:$0xf] %v237_v29 }
  0x2e   : > { %240 = vst [vmem:[%s10097_s11 + $0x78] sm:$0xf] %v239_v30  ;;  %242 = vst [vmem:[%s10097_s11 + $0x7c] sm:$0xf] %v241_v31  ;;  %v243_v32 = vld [vmem:[%s10090_s10 + $0x200] sm:$0xf] }
  0x2f   : > { %v245_v33 = vld [vmem:[%s10090_s10 + $0x210] sm:$0xf]  ;;  %v247_v34 = vld [vmem:[%s10090_s10 + $0x220] sm:$0xf]  ;;  %244 = vst [vmem:[%s10097_s11 + $0x80] sm:$0xf] %v243_v32 }
  0x30   : > { %246 = vst [vmem:[%s10097_s11 + $0x84] sm:$0xf] %v245_v33  ;;  %248 = vst [vmem:[%s10097_s11 + $0x88] sm:$0xf] %v247_v34  ;;  %v249_v35 = vld [vmem:[%s10090_s10 + $0x230] sm:$0xf] }
  0x31   : > { %v251_v36 = vld [vmem:[%s10090_s10 + $0x240] sm:$0xf]  ;;  %v253_v37 = vld [vmem:[%s10090_s10 + $0x250] sm:$0xf]  ;;  %250 = vst [vmem:[%s10097_s11 + $0x8c] sm:$0xf] %v249_v35 }
  0x32   : > { %252 = vst [vmem:[%s10097_s11 + $0x90] sm:$0xf] %v251_v36  ;;  %254 = vst [vmem:[%s10097_s11 + $0x94] sm:$0xf] %v253_v37  ;;  %v255_v38 = vld [vmem:[%s10090_s10 + $0x260] sm:$0xf] }
  0x33   : > { %v257_v39 = vld [vmem:[%s10090_s10 + $0x270] sm:$0xf]  ;;  %v259_v40 = vld [vmem:[%s10090_s10 + $0x280] sm:$0xf]  ;;  %256 = vst [vmem:[%s10097_s11 + $0x98] sm:$0xf] %v255_v38 }
  0x34   : > { %258 = vst [vmem:[%s10097_s11 + $0x9c] sm:$0xf] %v257_v39  ;;  %260 = vst [vmem:[%s10097_s11 + $0xa0] sm:$0xf] %v259_v40  ;;  %v261_v41 = vld [vmem:[%s10090_s10 + $0x290] sm:$0xf] }
  0x35   : > { %v263_v42 = vld [vmem:[%s10090_s10 + $0x2a0] sm:$0xf]  ;;  %v265_v43 = vld [vmem:[%s10090_s10 + $0x2b0] sm:$0xf]  ;;  %262 = vst [vmem:[%s10097_s11 + $0xa4] sm:$0xf] %v261_v41 }
  0x36   : > { %264 = vst [vmem:[%s10097_s11 + $0xa8] sm:$0xf] %v263_v42  ;;  %266 = vst [vmem:[%s10097_s11 + $0xac] sm:$0xf] %v265_v43  ;;  %v267_v44 = vld [vmem:[%s10090_s10 + $0x2c0] sm:$0xf] }
  0x37   : > { %v269_v45 = vld [vmem:[%s10090_s10 + $0x2d0] sm:$0xf]  ;;  %v271_v46 = vld [vmem:[%s10090_s10 + $0x2e0] sm:$0xf]  ;;  %268 = vst [vmem:[%s10097_s11 + $0xb0] sm:$0xf] %v267_v44 }
  0x38   : > { %270 = vst [vmem:[%s10097_s11 + $0xb4] sm:$0xf] %v269_v45  ;;  %272 = vst [vmem:[%s10097_s11 + $0xb8] sm:$0xf] %v271_v46  ;;  %v273_v47 = vld [vmem:[%s10090_s10 + $0x2f0] sm:$0xf] }
  0x39   : > { %v275_v48 = vld [vmem:[%s10090_s10 + $0x300] sm:$0xf]  ;;  %v277_v49 = vld [vmem:[%s10090_s10 + $0x310] sm:$0xf]  ;;  %274 = vst [vmem:[%s10097_s11 + $0xbc] sm:$0xf] %v273_v47 }
  0x3a   : > { %276 = vst [vmem:[%s10097_s11 + $0xc0] sm:$0xf] %v275_v48  ;;  %278 = vst [vmem:[%s10097_s11 + $0xc4] sm:$0xf] %v277_v49  ;;  %v279_v50 = vld [vmem:[%s10090_s10 + $0x320] sm:$0xf] }
  0x3b   : > { %v281_v51 = vld [vmem:[%s10090_s10 + $0x330] sm:$0xf]  ;;  %v283_v52 = vld [vmem:[%s10090_s10 + $0x340] sm:$0xf]  ;;  %280 = vst [vmem:[%s10097_s11 + $0xc8] sm:$0xf] %v279_v50 }
  0x3c   : > { %282 = vst [vmem:[%s10097_s11 + $0xcc] sm:$0xf] %v281_v51  ;;  %284 = vst [vmem:[%s10097_s11 + $0xd0] sm:$0xf] %v283_v52  ;;  %v285_v53 = vld [vmem:[%s10090_s10 + $0x350] sm:$0xf] }
  0x3d   : > { %v287_v54 = vld [vmem:[%s10090_s10 + $0x360] sm:$0xf]  ;;  %v289_v55 = vld [vmem:[%s10090_s10 + $0x370] sm:$0xf]  ;;  %286 = vst [vmem:[%s10097_s11 + $0xd4] sm:$0xf] %v285_v53 }
  0x3e   : > { %288 = vst [vmem:[%s10097_s11 + $0xd8] sm:$0xf] %v287_v54  ;;  %290 = vst [vmem:[%s10097_s11 + $0xdc] sm:$0xf] %v289_v55  ;;  %v291_v56 = vld [vmem:[%s10090_s10 + $0x380] sm:$0xf] }
  0x3f   : > { %v293_v57 = vld [vmem:[%s10090_s10 + $0x390] sm:$0xf]  ;;  %v295_v58 = vld [vmem:[%s10090_s10 + $0x3a0] sm:$0xf]  ;;  %292 = vst [vmem:[%s10097_s11 + $0xe0] sm:$0xf] %v291_v56 }
  0x40   : > { %294 = vst [vmem:[%s10097_s11 + $0xe4] sm:$0xf] %v293_v57  ;;  %296 = vst [vmem:[%s10097_s11 + $0xe8] sm:$0xf] %v295_v58  ;;  %v297_v59 = vld [vmem:[%s10090_s10 + $0x3b0] sm:$0xf] }
  0x41   : > { %v299_v60 = vld [vmem:[%s10090_s10 + $0x3c0] sm:$0xf]  ;;  %v301_v61 = vld [vmem:[%s10090_s10 + $0x3d0] sm:$0xf]  ;;  %298 = vst [vmem:[%s10097_s11 + $0xec] sm:$0xf] %v297_v59 }
  0x42   : > { %300 = vst [vmem:[%s10097_s11 + $0xf0] sm:$0xf] %v299_v60  ;;  %302 = vst [vmem:[%s10097_s11 + $0xf4] sm:$0xf] %v301_v61  ;;  %v303_v62 = vld [vmem:[%s10090_s10 + $0x3e0] sm:$0xf] }
  0x43   : > { %v305_v63 = vld [vmem:[%s10090_s10 + $0x3f0] sm:$0xf]  ;;  %v307_v0 = vld [vmem:[%s10090_s10 + $0x400] sm:$0xf]  ;;  %304 = vst [vmem:[%s10097_s11 + $0xf8] sm:$0xf] %v303_v62 }
  0x44   : > { %306 = vst [vmem:[%s10097_s11 + $0xfc] sm:$0xf] %v305_v63  ;;  %308 = vst [vmem:[%s10097_s11 + $0x100] sm:$0xf] %v307_v0  ;;  %v309_v1 = vld [vmem:[%s10090_s10 + $0x410] sm:$0xf] }
  0x45   : > { %v311_v2 = vld [vmem:[%s10090_s10 + $0x420] sm:$0xf]  ;;  %v313_v3 = vld [vmem:[%s10090_s10 + $0x430] sm:$0xf]  ;;  %310 = vst [vmem:[%s10097_s11 + $0x104] sm:$0xf] %v309_v1 }
  0x46   : > { %312 = vst [vmem:[%s10097_s11 + $0x108] sm:$0xf] %v311_v2  ;;  %314 = vst [vmem:[%s10097_s11 + $0x10c] sm:$0xf] %v313_v3  ;;  %v315_v4 = vld [vmem:[%s10090_s10 + $0x440] sm:$0xf] }
  0x47   : > { %v317_v5 = vld [vmem:[%s10090_s10 + $0x450] sm:$0xf]  ;;  %v319_v6 = vld [vmem:[%s10090_s10 + $0x460] sm:$0xf]  ;;  %316 = vst [vmem:[%s10097_s11 + $0x110] sm:$0xf] %v315_v4 }
  0x48   : > { %318 = vst [vmem:[%s10097_s11 + $0x114] sm:$0xf] %v317_v5  ;;  %320 = vst [vmem:[%s10097_s11 + $0x118] sm:$0xf] %v319_v6  ;;  %v321_v7 = vld [vmem:[%s10090_s10 + $0x470] sm:$0xf] }
  0x49   : > { %v323_v8 = vld [vmem:[%s10090_s10 + $0x480] sm:$0xf]  ;;  %v325_v9 = vld [vmem:[%s10090_s10 + $0x490] sm:$0xf]  ;;  %322 = vst [vmem:[%s10097_s11 + $0x11c] sm:$0xf] %v321_v7 }
  0x4a   : > { %324 = vst [vmem:[%s10097_s11 + $0x120] sm:$0xf] %v323_v8  ;;  %326 = vst [vmem:[%s10097_s11 + $0x124] sm:$0xf] %v325_v9  ;;  %v327_v10 = vld [vmem:[%s10090_s10 + $0x4a0] sm:$0xf] }
  0x4b   : > { %v329_v11 = vld [vmem:[%s10090_s10 + $0x4b0] sm:$0xf]  ;;  %v331_v12 = vld [vmem:[%s10090_s10 + $0x4c0] sm:$0xf]  ;;  %328 = vst [vmem:[%s10097_s11 + $0x128] sm:$0xf] %v327_v10 }
  0x4c   : > { %330 = vst [vmem:[%s10097_s11 + $0x12c] sm:$0xf] %v329_v11  ;;  %332 = vst [vmem:[%s10097_s11 + $0x130] sm:$0xf] %v331_v12  ;;  %v333_v13 = vld [vmem:[%s10090_s10 + $0x4d0] sm:$0xf] }
  0x4d   : > { %v335_v14 = vld [vmem:[%s10090_s10 + $0x4e0] sm:$0xf]  ;;  %v337_v15 = vld [vmem:[%s10090_s10 + $0x4f0] sm:$0xf]  ;;  %334 = vst [vmem:[%s10097_s11 + $0x134] sm:$0xf] %v333_v13 }
  0x4e   : > { %336 = vst [vmem:[%s10097_s11 + $0x138] sm:$0xf] %v335_v14  ;;  %338 = vst [vmem:[%s10097_s11 + $0x13c] sm:$0xf] %v337_v15  ;;  %v339_v16 = vld [vmem:[%s10090_s10 + $0x500] sm:$0xf] }
  0x4f   : > { %v341_v17 = vld [vmem:[%s10090_s10 + $0x510] sm:$0xf]  ;;  %v343_v18 = vld [vmem:[%s10090_s10 + $0x520] sm:$0xf]  ;;  %340 = vst [vmem:[%s10097_s11 + $0x140] sm:$0xf] %v339_v16 }
  0x50   : > { %342 = vst [vmem:[%s10097_s11 + $0x144] sm:$0xf] %v341_v17  ;;  %344 = vst [vmem:[%s10097_s11 + $0x148] sm:$0xf] %v343_v18  ;;  %v345_v19 = vld [vmem:[%s10090_s10 + $0x530] sm:$0xf] }
  0x51   : > { %v347_v20 = vld [vmem:[%s10090_s10 + $0x540] sm:$0xf]  ;;  %v349_v21 = vld [vmem:[%s10090_s10 + $0x550] sm:$0xf]  ;;  %346 = vst [vmem:[%s10097_s11 + $0x14c] sm:$0xf] %v345_v19 }
  0x52   : > { %348 = vst [vmem:[%s10097_s11 + $0x150] sm:$0xf] %v347_v20  ;;  %350 = vst [vmem:[%s10097_s11 + $0x154] sm:$0xf] %v349_v21  ;;  %v351_v22 = vld [vmem:[%s10090_s10 + $0x560] sm:$0xf] }
  0x53   : > { %v353_v23 = vld [vmem:[%s10090_s10 + $0x570] sm:$0xf]  ;;  %v355_v24 = vld [vmem:[%s10090_s10 + $0x580] sm:$0xf]  ;;  %352 = vst [vmem:[%s10097_s11 + $0x158] sm:$0xf] %v351_v22 }
  0x54   : > { %354 = vst [vmem:[%s10097_s11 + $0x15c] sm:$0xf] %v353_v23  ;;  %356 = vst [vmem:[%s10097_s11 + $0x160] sm:$0xf] %v355_v24  ;;  %v357_v25 = vld [vmem:[%s10090_s10 + $0x590] sm:$0xf] }
  0x55   : > { %v359_v26 = vld [vmem:[%s10090_s10 + $0x5a0] sm:$0xf]  ;;  %v361_v27 = vld [vmem:[%s10090_s10 + $0x5b0] sm:$0xf]  ;;  %358 = vst [vmem:[%s10097_s11 + $0x164] sm:$0xf] %v357_v25 }
  0x56   : > { %360 = vst [vmem:[%s10097_s11 + $0x168] sm:$0xf] %v359_v26  ;;  %362 = vst [vmem:[%s10097_s11 + $0x16c] sm:$0xf] %v361_v27  ;;  %v363_v28 = vld [vmem:[%s10090_s10 + $0x5c0] sm:$0xf] }
  0x57   : > { %v365_v29 = vld [vmem:[%s10090_s10 + $0x5d0] sm:$0xf]  ;;  %v367_v30 = vld [vmem:[%s10090_s10 + $0x5e0] sm:$0xf]  ;;  %364 = vst [vmem:[%s10097_s11 + $0x170] sm:$0xf] %v363_v28 }
  0x58   : > { %366 = vst [vmem:[%s10097_s11 + $0x174] sm:$0xf] %v365_v29  ;;  %368 = vst [vmem:[%s10097_s11 + $0x178] sm:$0xf] %v367_v30  ;;  %v369_v31 = vld [vmem:[%s10090_s10 + $0x5f0] sm:$0xf] }
  0x59   : > { %v371_v32 = vld [vmem:[%s10090_s10 + $0x600] sm:$0xf]  ;;  %v373_v33 = vld [vmem:[%s10090_s10 + $0x610] sm:$0xf]  ;;  %370 = vst [vmem:[%s10097_s11 + $0x17c] sm:$0xf] %v369_v31 }
  0x5a   : > { %372 = vst [vmem:[%s10097_s11 + $0x180] sm:$0xf] %v371_v32  ;;  %374 = vst [vmem:[%s10097_s11 + $0x184] sm:$0xf] %v373_v33  ;;  %v375_v34 = vld [vmem:[%s10090_s10 + $0x620] sm:$0xf] }
  0x5b   : > { %v377_v35 = vld [vmem:[%s10090_s10 + $0x630] sm:$0xf]  ;;  %v379_v36 = vld [vmem:[%s10090_s10 + $0x640] sm:$0xf]  ;;  %376 = vst [vmem:[%s10097_s11 + $0x188] sm:$0xf] %v375_v34 }
  0x5c   : > { %378 = vst [vmem:[%s10097_s11 + $0x18c] sm:$0xf] %v377_v35  ;;  %380 = vst [vmem:[%s10097_s11 + $0x190] sm:$0xf] %v379_v36  ;;  %v381_v37 = vld [vmem:[%s10090_s10 + $0x650] sm:$0xf] }
  0x5d   : > { %v383_v38 = vld [vmem:[%s10090_s10 + $0x660] sm:$0xf]  ;;  %v385_v39 = vld [vmem:[%s10090_s10 + $0x670] sm:$0xf]  ;;  %382 = vst [vmem:[%s10097_s11 + $0x194] sm:$0xf] %v381_v37 }
  0x5e   : > { %384 = vst [vmem:[%s10097_s11 + $0x198] sm:$0xf] %v383_v38  ;;  %386 = vst [vmem:[%s10097_s11 + $0x19c] sm:$0xf] %v385_v39  ;;  %v387_v40 = vld [vmem:[%s10090_s10 + $0x680] sm:$0xf] }
  0x5f   : > { %v389_v41 = vld [vmem:[%s10090_s10 + $0x690] sm:$0xf]  ;;  %v391_v42 = vld [vmem:[%s10090_s10 + $0x6a0] sm:$0xf]  ;;  %388 = vst [vmem:[%s10097_s11 + $0x1a0] sm:$0xf] %v387_v40 }
  0x60   : > { %390 = vst [vmem:[%s10097_s11 + $0x1a4] sm:$0xf] %v389_v41  ;;  %392 = vst [vmem:[%s10097_s11 + $0x1a8] sm:$0xf] %v391_v42  ;;  %v393_v43 = vld [vmem:[%s10090_s10 + $0x6b0] sm:$0xf] }
  0x61   : > { %v395_v44 = vld [vmem:[%s10090_s10 + $0x6c0] sm:$0xf]  ;;  %v397_v45 = vld [vmem:[%s10090_s10 + $0x6d0] sm:$0xf]  ;;  %394 = vst [vmem:[%s10097_s11 + $0x1ac] sm:$0xf] %v393_v43 }
  0x62   : > { %396 = vst [vmem:[%s10097_s11 + $0x1b0] sm:$0xf] %v395_v44  ;;  %398 = vst [vmem:[%s10097_s11 + $0x1b4] sm:$0xf] %v397_v45  ;;  %v399_v46 = vld [vmem:[%s10090_s10 + $0x6e0] sm:$0xf] }
  0x63   : > { %v401_v47 = vld [vmem:[%s10090_s10 + $0x6f0] sm:$0xf]  ;;  %v403_v48 = vld [vmem:[%s10090_s10 + $0x700] sm:$0xf]  ;;  %400 = vst [vmem:[%s10097_s11 + $0x1b8] sm:$0xf] %v399_v46 }
  0x64   : > { %402 = vst [vmem:[%s10097_s11 + $0x1bc] sm:$0xf] %v401_v47  ;;  %404 = vst [vmem:[%s10097_s11 + $0x1c0] sm:$0xf] %v403_v48  ;;  %v405_v49 = vld [vmem:[%s10090_s10 + $0x710] sm:$0xf] }
  0x65   : > { %v407_v50 = vld [vmem:[%s10090_s10 + $0x720] sm:$0xf]  ;;  %v409_v51 = vld [vmem:[%s10090_s10 + $0x730] sm:$0xf]  ;;  %406 = vst [vmem:[%s10097_s11 + $0x1c4] sm:$0xf] %v405_v49 }
  0x66   : > { %408 = vst [vmem:[%s10097_s11 + $0x1c8] sm:$0xf] %v407_v50  ;;  %410 = vst [vmem:[%s10097_s11 + $0x1cc] sm:$0xf] %v409_v51  ;;  %v411_v52 = vld [vmem:[%s10090_s10 + $0x740] sm:$0xf] }
  0x67   : > { %v413_v53 = vld [vmem:[%s10090_s10 + $0x750] sm:$0xf]  ;;  %v415_v54 = vld [vmem:[%s10090_s10 + $0x760] sm:$0xf]  ;;  %412 = vst [vmem:[%s10097_s11 + $0x1d0] sm:$0xf] %v411_v52 }
  0x68   : > { %414 = vst [vmem:[%s10097_s11 + $0x1d4] sm:$0xf] %v413_v53  ;;  %416 = vst [vmem:[%s10097_s11 + $0x1d8] sm:$0xf] %v415_v54  ;;  %v417_v55 = vld [vmem:[%s10090_s10 + $0x770] sm:$0xf] }
  0x69   : > { %v419_v56 = vld [vmem:[%s10090_s10 + $0x780] sm:$0xf]  ;;  %v421_v57 = vld [vmem:[%s10090_s10 + $0x790] sm:$0xf]  ;;  %418 = vst [vmem:[%s10097_s11 + $0x1dc] sm:$0xf] %v417_v55 }
  0x6a   : > { %420 = vst [vmem:[%s10097_s11 + $0x1e0] sm:$0xf] %v419_v56  ;;  %422 = vst [vmem:[%s10097_s11 + $0x1e4] sm:$0xf] %v421_v57  ;;  %v423_v58 = vld [vmem:[%s10090_s10 + $0x7a0] sm:$0xf] }
  0x6b   : > { %v425_v59 = vld [vmem:[%s10090_s10 + $0x7b0] sm:$0xf]  ;;  %v427_v60 = vld [vmem:[%s10090_s10 + $0x7c0] sm:$0xf]  ;;  %424 = vst [vmem:[%s10097_s11 + $0x1e8] sm:$0xf] %v423_v58 }
  0x6c   : > { %426 = vst [vmem:[%s10097_s11 + $0x1ec] sm:$0xf] %v425_v59  ;;  %428 = vst [vmem:[%s10097_s11 + $0x1f0] sm:$0xf] %v427_v60  ;;  %v429_v61 = vld [vmem:[%s10090_s10 + $0x7d0] sm:$0xf] }
  0x6d   : > { %v431_v62 = vld [vmem:[%s10090_s10 + $0x7e0] sm:$0xf]  ;;  %v433_v63 = vld [vmem:[%s10090_s10 + $0x7f0] sm:$0xf]  ;;  %430 = vst [vmem:[%s10097_s11 + $0x1f4] sm:$0xf] %v429_v61 }
  0x6e   : > { %432 = vst [vmem:[%s10097_s11 + $0x1f8] sm:$0xf] %v431_v62  ;;  %434 = vst [vmem:[%s10097_s11 + $0x1fc] sm:$0xf] %v433_v63  ;;  %v435_v0 = vld [vmem:[%s10090_s10 + $0x800] sm:$0xf] }
  0x6f   : > { %v437_v1 = vld [vmem:[%s10090_s10 + $0x810] sm:$0xf]  ;;  %v439_v2 = vld [vmem:[%s10090_s10 + $0x820] sm:$0xf]  ;;  %436 = vst [vmem:[%s10097_s11 + $0x200] sm:$0xf] %v435_v0 }
  0x70   : > { %438 = vst [vmem:[%s10097_s11 + $0x204] sm:$0xf] %v437_v1  ;;  %440 = vst [vmem:[%s10097_s11 + $0x208] sm:$0xf] %v439_v2  ;;  %v441_v3 = vld [vmem:[%s10090_s10 + $0x830] sm:$0xf] }
  0x71   : > { %v443_v4 = vld [vmem:[%s10090_s10 + $0x840] sm:$0xf]  ;;  %v445_v5 = vld [vmem:[%s10090_s10 + $0x850] sm:$0xf]  ;;  %442 = vst [vmem:[%s10097_s11 + $0x20c] sm:$0xf] %v441_v3 }
  0x72   : > { %444 = vst [vmem:[%s10097_s11 + $0x210] sm:$0xf] %v443_v4  ;;  %446 = vst [vmem:[%s10097_s11 + $0x214] sm:$0xf] %v445_v5  ;;  %v447_v6 = vld [vmem:[%s10090_s10 + $0x860] sm:$0xf] }
  0x73   : > { %v449_v7 = vld [vmem:[%s10090_s10 + $0x870] sm:$0xf]  ;;  %v451_v8 = vld [vmem:[%s10090_s10 + $0x880] sm:$0xf]  ;;  %448 = vst [vmem:[%s10097_s11 + $0x218] sm:$0xf] %v447_v6 }
  0x74   : > { %450 = vst [vmem:[%s10097_s11 + $0x21c] sm:$0xf] %v449_v7  ;;  %452 = vst [vmem:[%s10097_s11 + $0x220] sm:$0xf] %v451_v8  ;;  %v453_v9 = vld [vmem:[%s10090_s10 + $0x890] sm:$0xf] }
  0x75   : > { %v455_v10 = vld [vmem:[%s10090_s10 + $0x8a0] sm:$0xf]  ;;  %v457_v11 = vld [vmem:[%s10090_s10 + $0x8b0] sm:$0xf]  ;;  %454 = vst [vmem:[%s10097_s11 + $0x224] sm:$0xf] %v453_v9 }
  0x76   : > { %456 = vst [vmem:[%s10097_s11 + $0x228] sm:$0xf] %v455_v10  ;;  %458 = vst [vmem:[%s10097_s11 + $0x22c] sm:$0xf] %v457_v11  ;;  %v459_v12 = vld [vmem:[%s10090_s10 + $0x8c0] sm:$0xf] }
  0x77   : > { %v461_v13 = vld [vmem:[%s10090_s10 + $0x8d0] sm:$0xf]  ;;  %v463_v14 = vld [vmem:[%s10090_s10 + $0x8e0] sm:$0xf]  ;;  %460 = vst [vmem:[%s10097_s11 + $0x230] sm:$0xf] %v459_v12 }
  0x78   : > { %462 = vst [vmem:[%s10097_s11 + $0x234] sm:$0xf] %v461_v13  ;;  %464 = vst [vmem:[%s10097_s11 + $0x238] sm:$0xf] %v463_v14  ;;  %v465_v15 = vld [vmem:[%s10090_s10 + $0x8f0] sm:$0xf] }
  0x79   : > { %v467_v16 = vld [vmem:[%s10090_s10 + $0x900] sm:$0xf]  ;;  %v469_v17 = vld [vmem:[%s10090_s10 + $0x910] sm:$0xf]  ;;  %466 = vst [vmem:[%s10097_s11 + $0x23c] sm:$0xf] %v465_v15 }
  0x7a   : > { %468 = vst [vmem:[%s10097_s11 + $0x240] sm:$0xf] %v467_v16  ;;  %470 = vst [vmem:[%s10097_s11 + $0x244] sm:$0xf] %v469_v17  ;;  %v471_v18 = vld [vmem:[%s10090_s10 + $0x920] sm:$0xf] }
  0x7b   : > { %v473_v19 = vld [vmem:[%s10090_s10 + $0x930] sm:$0xf]  ;;  %v475_v20 = vld [vmem:[%s10090_s10 + $0x940] sm:$0xf]  ;;  %472 = vst [vmem:[%s10097_s11 + $0x248] sm:$0xf] %v471_v18 }
  0x7c   : > { %474 = vst [vmem:[%s10097_s11 + $0x24c] sm:$0xf] %v473_v19  ;;  %476 = vst [vmem:[%s10097_s11 + $0x250] sm:$0xf] %v475_v20  ;;  %v477_v21 = vld [vmem:[%s10090_s10 + $0x950] sm:$0xf] }
  0x7d   : > { %v479_v22 = vld [vmem:[%s10090_s10 + $0x960] sm:$0xf]  ;;  %v481_v23 = vld [vmem:[%s10090_s10 + $0x970] sm:$0xf]  ;;  %478 = vst [vmem:[%s10097_s11 + $0x254] sm:$0xf] %v477_v21 }
  0x7e   : > { %480 = vst [vmem:[%s10097_s11 + $0x258] sm:$0xf] %v479_v22  ;;  %482 = vst [vmem:[%s10097_s11 + $0x25c] sm:$0xf] %v481_v23  ;;  %v483_v24 = vld [vmem:[%s10090_s10 + $0x980] sm:$0xf] }
  0x7f   : > { %v485_v25 = vld [vmem:[%s10090_s10 + $0x990] sm:$0xf]  ;;  %v487_v26 = vld [vmem:[%s10090_s10 + $0x9a0] sm:$0xf]  ;;  %484 = vst [vmem:[%s10097_s11 + $0x260] sm:$0xf] %v483_v24 }
  0x80   : > { %486 = vst [vmem:[%s10097_s11 + $0x264] sm:$0xf] %v485_v25  ;;  %488 = vst [vmem:[%s10097_s11 + $0x268] sm:$0xf] %v487_v26  ;;  %v489_v27 = vld [vmem:[%s10090_s10 + $0x9b0] sm:$0xf] }
  0x81   : > { %v491_v28 = vld [vmem:[%s10090_s10 + $0x9c0] sm:$0xf]  ;;  %v493_v29 = vld [vmem:[%s10090_s10 + $0x9d0] sm:$0xf]  ;;  %490 = vst [vmem:[%s10097_s11 + $0x26c] sm:$0xf] %v489_v27 }
  0x82   : > { %492 = vst [vmem:[%s10097_s11 + $0x270] sm:$0xf] %v491_v28  ;;  %494 = vst [vmem:[%s10097_s11 + $0x274] sm:$0xf] %v493_v29  ;;  %v495_v30 = vld [vmem:[%s10090_s10 + $0x9e0] sm:$0xf] }
  0x83   : > { %v497_v31 = vld [vmem:[%s10090_s10 + $0x9f0] sm:$0xf]  ;;  %v499_v32 = vld [vmem:[%s10090_s10 + $0xa00] sm:$0xf]  ;;  %496 = vst [vmem:[%s10097_s11 + $0x278] sm:$0xf] %v495_v30 }
  0x84   : > { %498 = vst [vmem:[%s10097_s11 + $0x27c] sm:$0xf] %v497_v31  ;;  %500 = vst [vmem:[%s10097_s11 + $0x280] sm:$0xf] %v499_v32  ;;  %v501_v33 = vld [vmem:[%s10090_s10 + $0xa10] sm:$0xf] }
  0x85   : > { %v503_v34 = vld [vmem:[%s10090_s10 + $0xa20] sm:$0xf]  ;;  %v505_v35 = vld [vmem:[%s10090_s10 + $0xa30] sm:$0xf]  ;;  %502 = vst [vmem:[%s10097_s11 + $0x284] sm:$0xf] %v501_v33 }
  0x86   : > { %504 = vst [vmem:[%s10097_s11 + $0x288] sm:$0xf] %v503_v34  ;;  %506 = vst [vmem:[%s10097_s11 + $0x28c] sm:$0xf] %v505_v35  ;;  %v507_v36 = vld [vmem:[%s10090_s10 + $0xa40] sm:$0xf] }
  0x87   : > { %v509_v37 = vld [vmem:[%s10090_s10 + $0xa50] sm:$0xf]  ;;  %v511_v38 = vld [vmem:[%s10090_s10 + $0xa60] sm:$0xf]  ;;  %508 = vst [vmem:[%s10097_s11 + $0x290] sm:$0xf] %v507_v36 }
  0x88   : > { %510 = vst [vmem:[%s10097_s11 + $0x294] sm:$0xf] %v509_v37  ;;  %512 = vst [vmem:[%s10097_s11 + $0x298] sm:$0xf] %v511_v38  ;;  %v513_v39 = vld [vmem:[%s10090_s10 + $0xa70] sm:$0xf] }
  0x89   : > { %v515_v40 = vld [vmem:[%s10090_s10 + $0xa80] sm:$0xf]  ;;  %v517_v41 = vld [vmem:[%s10090_s10 + $0xa90] sm:$0xf]  ;;  %514 = vst [vmem:[%s10097_s11 + $0x29c] sm:$0xf] %v513_v39 }
  0x8a   : > { %516 = vst [vmem:[%s10097_s11 + $0x2a0] sm:$0xf] %v515_v40  ;;  %518 = vst [vmem:[%s10097_s11 + $0x2a4] sm:$0xf] %v517_v41  ;;  %v519_v42 = vld [vmem:[%s10090_s10 + $0xaa0] sm:$0xf] }
  0x8b   : > { %v521_v43 = vld [vmem:[%s10090_s10 + $0xab0] sm:$0xf]  ;;  %v523_v44 = vld [vmem:[%s10090_s10 + $0xac0] sm:$0xf]  ;;  %520 = vst [vmem:[%s10097_s11 + $0x2a8] sm:$0xf] %v519_v42 }
  0x8c   : > { %522 = vst [vmem:[%s10097_s11 + $0x2ac] sm:$0xf] %v521_v43  ;;  %524 = vst [vmem:[%s10097_s11 + $0x2b0] sm:$0xf] %v523_v44  ;;  %v525_v45 = vld [vmem:[%s10090_s10 + $0xad0] sm:$0xf] }
  0x8d   : > { %v527_v46 = vld [vmem:[%s10090_s10 + $0xae0] sm:$0xf]  ;;  %v529_v47 = vld [vmem:[%s10090_s10 + $0xaf0] sm:$0xf]  ;;  %526 = vst [vmem:[%s10097_s11 + $0x2b4] sm:$0xf] %v525_v45 }
  0x8e   : > { %528 = vst [vmem:[%s10097_s11 + $0x2b8] sm:$0xf] %v527_v46  ;;  %530 = vst [vmem:[%s10097_s11 + $0x2bc] sm:$0xf] %v529_v47  ;;  %v531_v48 = vld [vmem:[%s10090_s10 + $0xb00] sm:$0xf] }
  0x8f   : > { %v533_v49 = vld [vmem:[%s10090_s10 + $0xb10] sm:$0xf]  ;;  %v535_v50 = vld [vmem:[%s10090_s10 + $0xb20] sm:$0xf]  ;;  %532 = vst [vmem:[%s10097_s11 + $0x2c0] sm:$0xf] %v531_v48 }
  0x90   : > { %534 = vst [vmem:[%s10097_s11 + $0x2c4] sm:$0xf] %v533_v49  ;;  %536 = vst [vmem:[%s10097_s11 + $0x2c8] sm:$0xf] %v535_v50  ;;  %v537_v51 = vld [vmem:[%s10090_s10 + $0xb30] sm:$0xf] }
  0x91   : > { %v539_v52 = vld [vmem:[%s10090_s10 + $0xb40] sm:$0xf]  ;;  %v541_v53 = vld [vmem:[%s10090_s10 + $0xb50] sm:$0xf]  ;;  %538 = vst [vmem:[%s10097_s11 + $0x2cc] sm:$0xf] %v537_v51 }
  0x92   : > { %540 = vst [vmem:[%s10097_s11 + $0x2d0] sm:$0xf] %v539_v52  ;;  %542 = vst [vmem:[%s10097_s11 + $0x2d4] sm:$0xf] %v541_v53  ;;  %v543_v54 = vld [vmem:[%s10090_s10 + $0xb60] sm:$0xf] }
  0x93   : > { %v545_v55 = vld [vmem:[%s10090_s10 + $0xb70] sm:$0xf]  ;;  %v547_v56 = vld [vmem:[%s10090_s10 + $0xb80] sm:$0xf]  ;;  %544 = vst [vmem:[%s10097_s11 + $0x2d8] sm:$0xf] %v543_v54 }
  0x94   : > { %546 = vst [vmem:[%s10097_s11 + $0x2dc] sm:$0xf] %v545_v55  ;;  %548 = vst [vmem:[%s10097_s11 + $0x2e0] sm:$0xf] %v547_v56  ;;  %v549_v57 = vld [vmem:[%s10090_s10 + $0xb90] sm:$0xf] }
  0x95   : > { %v551_v58 = vld [vmem:[%s10090_s10 + $0xba0] sm:$0xf]  ;;  %v553_v59 = vld [vmem:[%s10090_s10 + $0xbb0] sm:$0xf]  ;;  %550 = vst [vmem:[%s10097_s11 + $0x2e4] sm:$0xf] %v549_v57 }
  0x96   : > { %552 = vst [vmem:[%s10097_s11 + $0x2e8] sm:$0xf] %v551_v58  ;;  %554 = vst [vmem:[%s10097_s11 + $0x2ec] sm:$0xf] %v553_v59  ;;  %v555_v60 = vld [vmem:[%s10090_s10 + $0xbc0] sm:$0xf] }
  0x97   : > { %v557_v61 = vld [vmem:[%s10090_s10 + $0xbd0] sm:$0xf]  ;;  %v559_v62 = vld [vmem:[%s10090_s10 + $0xbe0] sm:$0xf]  ;;  %556 = vst [vmem:[%s10097_s11 + $0x2f0] sm:$0xf] %v555_v60 }
  0x98   : > { %558 = vst [vmem:[%s10097_s11 + $0x2f4] sm:$0xf] %v557_v61  ;;  %560 = vst [vmem:[%s10097_s11 + $0x2f8] sm:$0xf] %v559_v62  ;;  %v561_v63 = vld [vmem:[%s10090_s10 + $0xbf0] sm:$0xf] }
  0x99   : > { %v563_v0 = vld [vmem:[%s10090_s10 + $0xc00] sm:$0xf]  ;;  %v565_v1 = vld [vmem:[%s10090_s10 + $0xc10] sm:$0xf]  ;;  %562 = vst [vmem:[%s10097_s11 + $0x2fc] sm:$0xf] %v561_v63 }
  0x9a   : > { %564 = vst [vmem:[%s10097_s11 + $0x300] sm:$0xf] %v563_v0  ;;  %566 = vst [vmem:[%s10097_s11 + $0x304] sm:$0xf] %v565_v1  ;;  %v567_v2 = vld [vmem:[%s10090_s10 + $0xc20] sm:$0xf] }
  0x9b   : > { %v569_v3 = vld [vmem:[%s10090_s10 + $0xc30] sm:$0xf]  ;;  %v571_v4 = vld [vmem:[%s10090_s10 + $0xc40] sm:$0xf]  ;;  %568 = vst [vmem:[%s10097_s11 + $0x308] sm:$0xf] %v567_v2 }
  0x9c   : > { %570 = vst [vmem:[%s10097_s11 + $0x30c] sm:$0xf] %v569_v3  ;;  %572 = vst [vmem:[%s10097_s11 + $0x310] sm:$0xf] %v571_v4  ;;  %v573_v5 = vld [vmem:[%s10090_s10 + $0xc50] sm:$0xf] }
  0x9d   : > { %v575_v6 = vld [vmem:[%s10090_s10 + $0xc60] sm:$0xf]  ;;  %v577_v7 = vld [vmem:[%s10090_s10 + $0xc70] sm:$0xf]  ;;  %574 = vst [vmem:[%s10097_s11 + $0x314] sm:$0xf] %v573_v5 }
  0x9e   : > { %576 = vst [vmem:[%s10097_s11 + $0x318] sm:$0xf] %v575_v6  ;;  %578 = vst [vmem:[%s10097_s11 + $0x31c] sm:$0xf] %v577_v7  ;;  %v579_v8 = vld [vmem:[%s10090_s10 + $0xc80] sm:$0xf] }
  0x9f   : > { %v581_v9 = vld [vmem:[%s10090_s10 + $0xc90] sm:$0xf]  ;;  %v583_v10 = vld [vmem:[%s10090_s10 + $0xca0] sm:$0xf]  ;;  %580 = vst [vmem:[%s10097_s11 + $0x320] sm:$0xf] %v579_v8 }
  0xa0   : > { %582 = vst [vmem:[%s10097_s11 + $0x324] sm:$0xf] %v581_v9  ;;  %584 = vst [vmem:[%s10097_s11 + $0x328] sm:$0xf] %v583_v10  ;;  %v585_v11 = vld [vmem:[%s10090_s10 + $0xcb0] sm:$0xf] }
  0xa1   : > { %v587_v12 = vld [vmem:[%s10090_s10 + $0xcc0] sm:$0xf]  ;;  %v589_v13 = vld [vmem:[%s10090_s10 + $0xcd0] sm:$0xf]  ;;  %586 = vst [vmem:[%s10097_s11 + $0x32c] sm:$0xf] %v585_v11 }
  0xa2   : > { %588 = vst [vmem:[%s10097_s11 + $0x330] sm:$0xf] %v587_v12  ;;  %590 = vst [vmem:[%s10097_s11 + $0x334] sm:$0xf] %v589_v13  ;;  %v591_v14 = vld [vmem:[%s10090_s10 + $0xce0] sm:$0xf] }
  0xa3   : > { %v593_v15 = vld [vmem:[%s10090_s10 + $0xcf0] sm:$0xf]  ;;  %v595_v16 = vld [vmem:[%s10090_s10 + $0xd00] sm:$0xf]  ;;  %592 = vst [vmem:[%s10097_s11 + $0x338] sm:$0xf] %v591_v14 }
  0xa4   : > { %594 = vst [vmem:[%s10097_s11 + $0x33c] sm:$0xf] %v593_v15  ;;  %596 = vst [vmem:[%s10097_s11 + $0x340] sm:$0xf] %v595_v16  ;;  %v597_v17 = vld [vmem:[%s10090_s10 + $0xd10] sm:$0xf] }
  0xa5   : > { %v599_v18 = vld [vmem:[%s10090_s10 + $0xd20] sm:$0xf]  ;;  %v601_v19 = vld [vmem:[%s10090_s10 + $0xd30] sm:$0xf]  ;;  %598 = vst [vmem:[%s10097_s11 + $0x344] sm:$0xf] %v597_v17 }
  0xa6   : > { %600 = vst [vmem:[%s10097_s11 + $0x348] sm:$0xf] %v599_v18  ;;  %602 = vst [vmem:[%s10097_s11 + $0x34c] sm:$0xf] %v601_v19  ;;  %v603_v20 = vld [vmem:[%s10090_s10 + $0xd40] sm:$0xf] }
  0xa7   : > { %v605_v21 = vld [vmem:[%s10090_s10 + $0xd50] sm:$0xf]  ;;  %v607_v22 = vld [vmem:[%s10090_s10 + $0xd60] sm:$0xf]  ;;  %604 = vst [vmem:[%s10097_s11 + $0x350] sm:$0xf] %v603_v20 }
  0xa8   : > { %606 = vst [vmem:[%s10097_s11 + $0x354] sm:$0xf] %v605_v21  ;;  %608 = vst [vmem:[%s10097_s11 + $0x358] sm:$0xf] %v607_v22  ;;  %v609_v23 = vld [vmem:[%s10090_s10 + $0xd70] sm:$0xf] }
  0xa9   : > { %v611_v24 = vld [vmem:[%s10090_s10 + $0xd80] sm:$0xf]  ;;  %v613_v25 = vld [vmem:[%s10090_s10 + $0xd90] sm:$0xf]  ;;  %610 = vst [vmem:[%s10097_s11 + $0x35c] sm:$0xf] %v609_v23 }
  0xaa   : > { %612 = vst [vmem:[%s10097_s11 + $0x360] sm:$0xf] %v611_v24  ;;  %614 = vst [vmem:[%s10097_s11 + $0x364] sm:$0xf] %v613_v25  ;;  %v615_v26 = vld [vmem:[%s10090_s10 + $0xda0] sm:$0xf] }
  0xab   : > { %v617_v27 = vld [vmem:[%s10090_s10 + $0xdb0] sm:$0xf]  ;;  %v619_v28 = vld [vmem:[%s10090_s10 + $0xdc0] sm:$0xf]  ;;  %616 = vst [vmem:[%s10097_s11 + $0x368] sm:$0xf] %v615_v26 }
  0xac   : > { %618 = vst [vmem:[%s10097_s11 + $0x36c] sm:$0xf] %v617_v27  ;;  %620 = vst [vmem:[%s10097_s11 + $0x370] sm:$0xf] %v619_v28  ;;  %v621_v29 = vld [vmem:[%s10090_s10 + $0xdd0] sm:$0xf] }
  0xad   : > { %v623_v30 = vld [vmem:[%s10090_s10 + $0xde0] sm:$0xf]  ;;  %v625_v31 = vld [vmem:[%s10090_s10 + $0xdf0] sm:$0xf]  ;;  %622 = vst [vmem:[%s10097_s11 + $0x374] sm:$0xf] %v621_v29 }
  0xae   : > { %624 = vst [vmem:[%s10097_s11 + $0x378] sm:$0xf] %v623_v30  ;;  %626 = vst [vmem:[%s10097_s11 + $0x37c] sm:$0xf] %v625_v31  ;;  %v627_v32 = vld [vmem:[%s10090_s10 + $0xe00] sm:$0xf] }
  0xaf   : > { %v629_v33 = vld [vmem:[%s10090_s10 + $0xe10] sm:$0xf]  ;;  %v631_v34 = vld [vmem:[%s10090_s10 + $0xe20] sm:$0xf]  ;;  %628 = vst [vmem:[%s10097_s11 + $0x380] sm:$0xf] %v627_v32 }
  0xb0   : > { %630 = vst [vmem:[%s10097_s11 + $0x384] sm:$0xf] %v629_v33  ;;  %632 = vst [vmem:[%s10097_s11 + $0x388] sm:$0xf] %v631_v34  ;;  %v633_v35 = vld [vmem:[%s10090_s10 + $0xe30] sm:$0xf] }
  0xb1   : > { %v635_v36 = vld [vmem:[%s10090_s10 + $0xe40] sm:$0xf]  ;;  %v637_v37 = vld [vmem:[%s10090_s10 + $0xe50] sm:$0xf]  ;;  %634 = vst [vmem:[%s10097_s11 + $0x38c] sm:$0xf] %v633_v35 }
  0xb2   : > { %636 = vst [vmem:[%s10097_s11 + $0x390] sm:$0xf] %v635_v36  ;;  %638 = vst [vmem:[%s10097_s11 + $0x394] sm:$0xf] %v637_v37  ;;  %v639_v38 = vld [vmem:[%s10090_s10 + $0xe60] sm:$0xf] }
  0xb3   : > { %v641_v39 = vld [vmem:[%s10090_s10 + $0xe70] sm:$0xf]  ;;  %v643_v40 = vld [vmem:[%s10090_s10 + $0xe80] sm:$0xf]  ;;  %640 = vst [vmem:[%s10097_s11 + $0x398] sm:$0xf] %v639_v38 }
  0xb4   : > { %642 = vst [vmem:[%s10097_s11 + $0x39c] sm:$0xf] %v641_v39  ;;  %644 = vst [vmem:[%s10097_s11 + $0x3a0] sm:$0xf] %v643_v40  ;;  %v645_v41 = vld [vmem:[%s10090_s10 + $0xe90] sm:$0xf] }
  0xb5   : > { %v647_v42 = vld [vmem:[%s10090_s10 + $0xea0] sm:$0xf]  ;;  %v649_v43 = vld [vmem:[%s10090_s10 + $0xeb0] sm:$0xf]  ;;  %646 = vst [vmem:[%s10097_s11 + $0x3a4] sm:$0xf] %v645_v41 }
  0xb6   : > { %648 = vst [vmem:[%s10097_s11 + $0x3a8] sm:$0xf] %v647_v42  ;;  %650 = vst [vmem:[%s10097_s11 + $0x3ac] sm:$0xf] %v649_v43  ;;  %v651_v44 = vld [vmem:[%s10090_s10 + $0xec0] sm:$0xf] }
  0xb7   : > { %v653_v45 = vld [vmem:[%s10090_s10 + $0xed0] sm:$0xf]  ;;  %v655_v46 = vld [vmem:[%s10090_s10 + $0xee0] sm:$0xf]  ;;  %652 = vst [vmem:[%s10097_s11 + $0x3b0] sm:$0xf] %v651_v44 }
  0xb8   : > { %654 = vst [vmem:[%s10097_s11 + $0x3b4] sm:$0xf] %v653_v45  ;;  %656 = vst [vmem:[%s10097_s11 + $0x3b8] sm:$0xf] %v655_v46  ;;  %v657_v47 = vld [vmem:[%s10090_s10 + $0xef0] sm:$0xf] }
  0xb9   : > { %v659_v48 = vld [vmem:[%s10090_s10 + $0xf00] sm:$0xf]  ;;  %v661_v49 = vld [vmem:[%s10090_s10 + $0xf10] sm:$0xf]  ;;  %658 = vst [vmem:[%s10097_s11 + $0x3bc] sm:$0xf] %v657_v47 }
  0xba   : > { %660 = vst [vmem:[%s10097_s11 + $0x3c0] sm:$0xf] %v659_v48  ;;  %662 = vst [vmem:[%s10097_s11 + $0x3c4] sm:$0xf] %v661_v49  ;;  %v663_v50 = vld [vmem:[%s10090_s10 + $0xf20] sm:$0xf] }
  0xbb   : > { %v665_v51 = vld [vmem:[%s10090_s10 + $0xf30] sm:$0xf]  ;;  %v667_v52 = vld [vmem:[%s10090_s10 + $0xf40] sm:$0xf]  ;;  %664 = vst [vmem:[%s10097_s11 + $0x3c8] sm:$0xf] %v663_v50 }
  0xbc   : > { %666 = vst [vmem:[%s10097_s11 + $0x3cc] sm:$0xf] %v665_v51  ;;  %668 = vst [vmem:[%s10097_s11 + $0x3d0] sm:$0xf] %v667_v52  ;;  %v669_v53 = vld [vmem:[%s10090_s10 + $0xf50] sm:$0xf] }
  0xbd   : > { %v671_v54 = vld [vmem:[%s10090_s10 + $0xf60] sm:$0xf]  ;;  %v673_v55 = vld [vmem:[%s10090_s10 + $0xf70] sm:$0xf]  ;;  %670 = vst [vmem:[%s10097_s11 + $0x3d4] sm:$0xf] %v669_v53 }
  0xbe   : > { %672 = vst [vmem:[%s10097_s11 + $0x3d8] sm:$0xf] %v671_v54  ;;  %674 = vst [vmem:[%s10097_s11 + $0x3dc] sm:$0xf] %v673_v55  ;;  %v675_v56 = vld [vmem:[%s10090_s10 + $0xf80] sm:$0xf] }
  0xbf   : > { %v677_v57 = vld [vmem:[%s10090_s10 + $0xf90] sm:$0xf]  ;;  %v679_v58 = vld [vmem:[%s10090_s10 + $0xfa0] sm:$0xf]  ;;  %676 = vst [vmem:[%s10097_s11 + $0x3e0] sm:$0xf] %v675_v56 }
  0xc0   : > { %678 = vst [vmem:[%s10097_s11 + $0x3e4] sm:$0xf] %v677_v57  ;;  %680 = vst [vmem:[%s10097_s11 + $0x3e8] sm:$0xf] %v679_v58  ;;  %v681_v59 = vld [vmem:[%s10090_s10 + $0xfb0] sm:$0xf] }
  0xc1   : > { %v683_v60 = vld [vmem:[%s10090_s10 + $0xfc0] sm:$0xf]  ;;  %v685_v61 = vld [vmem:[%s10090_s10 + $0xfd0] sm:$0xf]  ;;  %682 = vst [vmem:[%s10097_s11 + $0x3ec] sm:$0xf] %v681_v59 }
  0xc2   : > { %684 = vst [vmem:[%s10097_s11 + $0x3f0] sm:$0xf] %v683_v60  ;;  %686 = vst [vmem:[%s10097_s11 + $0x3f4] sm:$0xf] %v685_v61  ;;  %v687_v62 = vld [vmem:[%s10090_s10 + $0xfe0] sm:$0xf] }
  0xc3   : > { %v689_v63 = vld [vmem:[%s10090_s10 + $0xff0] sm:$0xf]  ;;  %v691_v0 = vld [vmem:[%s10090_s10 + $0x1000] sm:$0xf]  ;;  %688 = vst [vmem:[%s10097_s11 + $0x3f8] sm:$0xf] %v687_v62 }
  0xc4   : > { %690 = vst [vmem:[%s10097_s11 + $0x3fc] sm:$0xf] %v689_v63  ;;  %692 = vst [vmem:[%s10097_s11 + $0x400] sm:$0xf] %v691_v0  ;;  %v693_v1 = vld [vmem:[%s10090_s10 + $0x1010] sm:$0xf] }
  0xc5   : > { %v695_v2 = vld [vmem:[%s10090_s10 + $0x1020] sm:$0xf]  ;;  %v697_v3 = vld [vmem:[%s10090_s10 + $0x1030] sm:$0xf]  ;;  %694 = vst [vmem:[%s10097_s11 + $0x404] sm:$0xf] %v693_v1 }
  0xc6   : > { %696 = vst [vmem:[%s10097_s11 + $0x408] sm:$0xf] %v695_v2  ;;  %698 = vst [vmem:[%s10097_s11 + $0x40c] sm:$0xf] %v697_v3  ;;  %v699_v4 = vld [vmem:[%s10090_s10 + $0x1040] sm:$0xf] }
  0xc7   : > { %v701_v5 = vld [vmem:[%s10090_s10 + $0x1050] sm:$0xf]  ;;  %v703_v6 = vld [vmem:[%s10090_s10 + $0x1060] sm:$0xf]  ;;  %700 = vst [vmem:[%s10097_s11 + $0x410] sm:$0xf] %v699_v4 }
  0xc8   : > { %702 = vst [vmem:[%s10097_s11 + $0x414] sm:$0xf] %v701_v5  ;;  %704 = vst [vmem:[%s10097_s11 + $0x418] sm:$0xf] %v703_v6  ;;  %v705_v7 = vld [vmem:[%s10090_s10 + $0x1070] sm:$0xf] }
  0xc9   : > { %v707_v8 = vld [vmem:[%s10090_s10 + $0x1080] sm:$0xf]  ;;  %v709_v9 = vld [vmem:[%s10090_s10 + $0x1090] sm:$0xf]  ;;  %706 = vst [vmem:[%s10097_s11 + $0x41c] sm:$0xf] %v705_v7 }
  0xca   : > { %708 = vst [vmem:[%s10097_s11 + $0x420] sm:$0xf] %v707_v8  ;;  %710 = vst [vmem:[%s10097_s11 + $0x424] sm:$0xf] %v709_v9  ;;  %v711_v10 = vld [vmem:[%s10090_s10 + $0x10a0] sm:$0xf] }
  0xcb   : > { %v713_v11 = vld [vmem:[%s10090_s10 + $0x10b0] sm:$0xf]  ;;  %v715_v12 = vld [vmem:[%s10090_s10 + $0x10c0] sm:$0xf]  ;;  %712 = vst [vmem:[%s10097_s11 + $0x428] sm:$0xf] %v711_v10 }
  0xcc   : > { %714 = vst [vmem:[%s10097_s11 + $0x42c] sm:$0xf] %v713_v11  ;;  %716 = vst [vmem:[%s10097_s11 + $0x430] sm:$0xf] %v715_v12  ;;  %v717_v13 = vld [vmem:[%s10090_s10 + $0x10d0] sm:$0xf] }
  0xcd   : > { %v719_v14 = vld [vmem:[%s10090_s10 + $0x10e0] sm:$0xf]  ;;  %v721_v15 = vld [vmem:[%s10090_s10 + $0x10f0] sm:$0xf]  ;;  %718 = vst [vmem:[%s10097_s11 + $0x434] sm:$0xf] %v717_v13 }
  0xce   : > { %720 = vst [vmem:[%s10097_s11 + $0x438] sm:$0xf] %v719_v14  ;;  %722 = vst [vmem:[%s10097_s11 + $0x43c] sm:$0xf] %v721_v15  ;;  %v723_v16 = vld [vmem:[%s10090_s10 + $0x1100] sm:$0xf] }
  0xcf   : > { %v725_v17 = vld [vmem:[%s10090_s10 + $0x1110] sm:$0xf]  ;;  %v727_v18 = vld [vmem:[%s10090_s10 + $0x1120] sm:$0xf]  ;;  %724 = vst [vmem:[%s10097_s11 + $0x440] sm:$0xf] %v723_v16 }
  0xd0   : > { %726 = vst [vmem:[%s10097_s11 + $0x444] sm:$0xf] %v725_v17  ;;  %728 = vst [vmem:[%s10097_s11 + $0x448] sm:$0xf] %v727_v18  ;;  %v729_v19 = vld [vmem:[%s10090_s10 + $0x1130] sm:$0xf] }
  0xd1   : > { %v731_v20 = vld [vmem:[%s10090_s10 + $0x1140] sm:$0xf]  ;;  %v733_v21 = vld [vmem:[%s10090_s10 + $0x1150] sm:$0xf]  ;;  %730 = vst [vmem:[%s10097_s11 + $0x44c] sm:$0xf] %v729_v19 }
  0xd2   : > { %732 = vst [vmem:[%s10097_s11 + $0x450] sm:$0xf] %v731_v20  ;;  %734 = vst [vmem:[%s10097_s11 + $0x454] sm:$0xf] %v733_v21  ;;  %v735_v22 = vld [vmem:[%s10090_s10 + $0x1160] sm:$0xf] }
  0xd3   : > { %v737_v23 = vld [vmem:[%s10090_s10 + $0x1170] sm:$0xf]  ;;  %v739_v24 = vld [vmem:[%s10090_s10 + $0x1180] sm:$0xf]  ;;  %736 = vst [vmem:[%s10097_s11 + $0x458] sm:$0xf] %v735_v22 }
  0xd4   : > { %738 = vst [vmem:[%s10097_s11 + $0x45c] sm:$0xf] %v737_v23  ;;  %740 = vst [vmem:[%s10097_s11 + $0x460] sm:$0xf] %v739_v24  ;;  %v741_v25 = vld [vmem:[%s10090_s10 + $0x1190] sm:$0xf] }
  0xd5   : > { %v743_v26 = vld [vmem:[%s10090_s10 + $0x11a0] sm:$0xf]  ;;  %v745_v27 = vld [vmem:[%s10090_s10 + $0x11b0] sm:$0xf]  ;;  %742 = vst [vmem:[%s10097_s11 + $0x464] sm:$0xf] %v741_v25 }
  0xd6   : > { %744 = vst [vmem:[%s10097_s11 + $0x468] sm:$0xf] %v743_v26  ;;  %746 = vst [vmem:[%s10097_s11 + $0x46c] sm:$0xf] %v745_v27  ;;  %v747_v28 = vld [vmem:[%s10090_s10 + $0x11c0] sm:$0xf] }
  0xd7   : > { %v749_v29 = vld [vmem:[%s10090_s10 + $0x11d0] sm:$0xf]  ;;  %v751_v30 = vld [vmem:[%s10090_s10 + $0x11e0] sm:$0xf]  ;;  %748 = vst [vmem:[%s10097_s11 + $0x470] sm:$0xf] %v747_v28 }
  0xd8   : > { %750 = vst [vmem:[%s10097_s11 + $0x474] sm:$0xf] %v749_v29  ;;  %752 = vst [vmem:[%s10097_s11 + $0x478] sm:$0xf] %v751_v30  ;;  %v753_v31 = vld [vmem:[%s10090_s10 + $0x11f0] sm:$0xf] }
  0xd9   : > { %v755_v32 = vld [vmem:[%s10090_s10 + $0x1200] sm:$0xf]  ;;  %v757_v33 = vld [vmem:[%s10090_s10 + $0x1210] sm:$0xf]  ;;  %754 = vst [vmem:[%s10097_s11 + $0x47c] sm:$0xf] %v753_v31 }
  0xda   : > { %756 = vst [vmem:[%s10097_s11 + $0x480] sm:$0xf] %v755_v32  ;;  %758 = vst [vmem:[%s10097_s11 + $0x484] sm:$0xf] %v757_v33  ;;  %v759_v34 = vld [vmem:[%s10090_s10 + $0x1220] sm:$0xf] }
  0xdb   : > { %v761_v35 = vld [vmem:[%s10090_s10 + $0x1230] sm:$0xf]  ;;  %v763_v36 = vld [vmem:[%s10090_s10 + $0x1240] sm:$0xf]  ;;  %760 = vst [vmem:[%s10097_s11 + $0x488] sm:$0xf] %v759_v34 }
  0xdc   : > { %762 = vst [vmem:[%s10097_s11 + $0x48c] sm:$0xf] %v761_v35  ;;  %764 = vst [vmem:[%s10097_s11 + $0x490] sm:$0xf] %v763_v36  ;;  %v765_v37 = vld [vmem:[%s10090_s10 + $0x1250] sm:$0xf] }
  0xdd   : > { %v767_v38 = vld [vmem:[%s10090_s10 + $0x1260] sm:$0xf]  ;;  %v769_v39 = vld [vmem:[%s10090_s10 + $0x1270] sm:$0xf]  ;;  %766 = vst [vmem:[%s10097_s11 + $0x494] sm:$0xf] %v765_v37 }
  0xde   : > { %768 = vst [vmem:[%s10097_s11 + $0x498] sm:$0xf] %v767_v38  ;;  %770 = vst [vmem:[%s10097_s11 + $0x49c] sm:$0xf] %v769_v39  ;;  %v771_v40 = vld [vmem:[%s10090_s10 + $0x1280] sm:$0xf] }
  0xdf   : > { %v773_v41 = vld [vmem:[%s10090_s10 + $0x1290] sm:$0xf]  ;;  %v775_v42 = vld [vmem:[%s10090_s10 + $0x12a0] sm:$0xf]  ;;  %772 = vst [vmem:[%s10097_s11 + $0x4a0] sm:$0xf] %v771_v40 }
  0xe0   : > { %774 = vst [vmem:[%s10097_s11 + $0x4a4] sm:$0xf] %v773_v41  ;;  %776 = vst [vmem:[%s10097_s11 + $0x4a8] sm:$0xf] %v775_v42  ;;  %v777_v43 = vld [vmem:[%s10090_s10 + $0x12b0] sm:$0xf] }
  0xe1   : > { %v779_v44 = vld [vmem:[%s10090_s10 + $0x12c0] sm:$0xf]  ;;  %v781_v45 = vld [vmem:[%s10090_s10 + $0x12d0] sm:$0xf]  ;;  %778 = vst [vmem:[%s10097_s11 + $0x4ac] sm:$0xf] %v777_v43 }
  0xe2   : > { %780 = vst [vmem:[%s10097_s11 + $0x4b0] sm:$0xf] %v779_v44  ;;  %782 = vst [vmem:[%s10097_s11 + $0x4b4] sm:$0xf] %v781_v45  ;;  %v783_v46 = vld [vmem:[%s10090_s10 + $0x12e0] sm:$0xf] }
  0xe3   : > { %v785_v47 = vld [vmem:[%s10090_s10 + $0x12f0] sm:$0xf]  ;;  %v787_v48 = vld [vmem:[%s10090_s10 + $0x1300] sm:$0xf]  ;;  %784 = vst [vmem:[%s10097_s11 + $0x4b8] sm:$0xf] %v783_v46 }
  0xe4   : > { %786 = vst [vmem:[%s10097_s11 + $0x4bc] sm:$0xf] %v785_v47  ;;  %788 = vst [vmem:[%s10097_s11 + $0x4c0] sm:$0xf] %v787_v48  ;;  %v789_v49 = vld [vmem:[%s10090_s10 + $0x1310] sm:$0xf] }
  0xe5   : > { %v791_v50 = vld [vmem:[%s10090_s10 + $0x1320] sm:$0xf]  ;;  %v793_v51 = vld [vmem:[%s10090_s10 + $0x1330] sm:$0xf]  ;;  %790 = vst [vmem:[%s10097_s11 + $0x4c4] sm:$0xf] %v789_v49 }
  0xe6   : > { %792 = vst [vmem:[%s10097_s11 + $0x4c8] sm:$0xf] %v791_v50  ;;  %794 = vst [vmem:[%s10097_s11 + $0x4cc] sm:$0xf] %v793_v51  ;;  %v795_v52 = vld [vmem:[%s10090_s10 + $0x1340] sm:$0xf] }
  0xe7   : > { %v797_v53 = vld [vmem:[%s10090_s10 + $0x1350] sm:$0xf]  ;;  %v799_v54 = vld [vmem:[%s10090_s10 + $0x1360] sm:$0xf]  ;;  %796 = vst [vmem:[%s10097_s11 + $0x4d0] sm:$0xf] %v795_v52 }
  0xe8   : > { %798 = vst [vmem:[%s10097_s11 + $0x4d4] sm:$0xf] %v797_v53  ;;  %800 = vst [vmem:[%s10097_s11 + $0x4d8] sm:$0xf] %v799_v54  ;;  %v801_v55 = vld [vmem:[%s10090_s10 + $0x1370] sm:$0xf] }
  0xe9   : > { %v803_v56 = vld [vmem:[%s10090_s10 + $0x1380] sm:$0xf]  ;;  %v805_v57 = vld [vmem:[%s10090_s10 + $0x1390] sm:$0xf]  ;;  %802 = vst [vmem:[%s10097_s11 + $0x4dc] sm:$0xf] %v801_v55 }
  0xea   : > { %804 = vst [vmem:[%s10097_s11 + $0x4e0] sm:$0xf] %v803_v56  ;;  %806 = vst [vmem:[%s10097_s11 + $0x4e4] sm:$0xf] %v805_v57  ;;  %v807_v58 = vld [vmem:[%s10090_s10 + $0x13a0] sm:$0xf] }
  0xeb   : > { %v809_v59 = vld [vmem:[%s10090_s10 + $0x13b0] sm:$0xf]  ;;  %v811_v60 = vld [vmem:[%s10090_s10 + $0x13c0] sm:$0xf]  ;;  %808 = vst [vmem:[%s10097_s11 + $0x4e8] sm:$0xf] %v807_v58 }
  0xec   : > { %810 = vst [vmem:[%s10097_s11 + $0x4ec] sm:$0xf] %v809_v59  ;;  %812 = vst [vmem:[%s10097_s11 + $0x4f0] sm:$0xf] %v811_v60  ;;  %v813_v61 = vld [vmem:[%s10090_s10 + $0x13d0] sm:$0xf] }
  0xed   : > { %v815_v62 = vld [vmem:[%s10090_s10 + $0x13e0] sm:$0xf]  ;;  %v817_v63 = vld [vmem:[%s10090_s10 + $0x13f0] sm:$0xf]  ;;  %814 = vst [vmem:[%s10097_s11 + $0x4f4] sm:$0xf] %v813_v61 }
  0xee   : > { %816 = vst [vmem:[%s10097_s11 + $0x4f8] sm:$0xf] %v815_v62  ;;  %818 = vst [vmem:[%s10097_s11 + $0x4fc] sm:$0xf] %v817_v63  ;;  %v819_v0 = vld [vmem:[%s10090_s10 + $0x1400] sm:$0xf] }
  0xef   : > { %v821_v1 = vld [vmem:[%s10090_s10 + $0x1410] sm:$0xf]  ;;  %v823_v2 = vld [vmem:[%s10090_s10 + $0x1420] sm:$0xf]  ;;  %820 = vst [vmem:[%s10097_s11 + $0x500] sm:$0xf] %v819_v0 }
  0xf0   : > { %822 = vst [vmem:[%s10097_s11 + $0x504] sm:$0xf] %v821_v1  ;;  %824 = vst [vmem:[%s10097_s11 + $0x508] sm:$0xf] %v823_v2  ;;  %v825_v3 = vld [vmem:[%s10090_s10 + $0x1430] sm:$0xf] }
  0xf1   : > { %v827_v4 = vld [vmem:[%s10090_s10 + $0x1440] sm:$0xf]  ;;  %v829_v5 = vld [vmem:[%s10090_s10 + $0x1450] sm:$0xf]  ;;  %826 = vst [vmem:[%s10097_s11 + $0x50c] sm:$0xf] %v825_v3 }
  0xf2   : > { %828 = vst [vmem:[%s10097_s11 + $0x510] sm:$0xf] %v827_v4  ;;  %830 = vst [vmem:[%s10097_s11 + $0x514] sm:$0xf] %v829_v5  ;;  %v831_v6 = vld [vmem:[%s10090_s10 + $0x1460] sm:$0xf] }
  0xf3   : > { %v833_v7 = vld [vmem:[%s10090_s10 + $0x1470] sm:$0xf]  ;;  %v835_v8 = vld [vmem:[%s10090_s10 + $0x1480] sm:$0xf]  ;;  %832 = vst [vmem:[%s10097_s11 + $0x518] sm:$0xf] %v831_v6 }
  0xf4   : > { %834 = vst [vmem:[%s10097_s11 + $0x51c] sm:$0xf] %v833_v7  ;;  %836 = vst [vmem:[%s10097_s11 + $0x520] sm:$0xf] %v835_v8  ;;  %v837_v9 = vld [vmem:[%s10090_s10 + $0x1490] sm:$0xf] }
  0xf5   : > { %v839_v10 = vld [vmem:[%s10090_s10 + $0x14a0] sm:$0xf]  ;;  %v841_v11 = vld [vmem:[%s10090_s10 + $0x14b0] sm:$0xf]  ;;  %838 = vst [vmem:[%s10097_s11 + $0x524] sm:$0xf] %v837_v9 }
  0xf6   : > { %840 = vst [vmem:[%s10097_s11 + $0x528] sm:$0xf] %v839_v10  ;;  %842 = vst [vmem:[%s10097_s11 + $0x52c] sm:$0xf] %v841_v11  ;;  %v843_v12 = vld [vmem:[%s10090_s10 + $0x14c0] sm:$0xf] }
  0xf7   : > { %v845_v13 = vld [vmem:[%s10090_s10 + $0x14d0] sm:$0xf]  ;;  %v847_v14 = vld [vmem:[%s10090_s10 + $0x14e0] sm:$0xf]  ;;  %844 = vst [vmem:[%s10097_s11 + $0x530] sm:$0xf] %v843_v12 }
  0xf8   : > { %846 = vst [vmem:[%s10097_s11 + $0x534] sm:$0xf] %v845_v13  ;;  %848 = vst [vmem:[%s10097_s11 + $0x538] sm:$0xf] %v847_v14  ;;  %v849_v15 = vld [vmem:[%s10090_s10 + $0x14f0] sm:$0xf] }
  0xf9   : > { %v851_v16 = vld [vmem:[%s10090_s10 + $0x1500] sm:$0xf]  ;;  %v853_v17 = vld [vmem:[%s10090_s10 + $0x1510] sm:$0xf]  ;;  %850 = vst [vmem:[%s10097_s11 + $0x53c] sm:$0xf] %v849_v15 }
  0xfa   : > { %852 = vst [vmem:[%s10097_s11 + $0x540] sm:$0xf] %v851_v16  ;;  %854 = vst [vmem:[%s10097_s11 + $0x544] sm:$0xf] %v853_v17  ;;  %v855_v18 = vld [vmem:[%s10090_s10 + $0x1520] sm:$0xf] }
  0xfb   : > { %v857_v19 = vld [vmem:[%s10090_s10 + $0x1530] sm:$0xf]  ;;  %v859_v20 = vld [vmem:[%s10090_s10 + $0x1540] sm:$0xf]  ;;  %856 = vst [vmem:[%s10097_s11 + $0x548] sm:$0xf] %v855_v18 }
  0xfc   : > { %858 = vst [vmem:[%s10097_s11 + $0x54c] sm:$0xf] %v857_v19  ;;  %860 = vst [vmem:[%s10097_s11 + $0x550] sm:$0xf] %v859_v20  ;;  %v861_v21 = vld [vmem:[%s10090_s10 + $0x1550] sm:$0xf] }
  0xfd   : > { %v863_v22 = vld [vmem:[%s10090_s10 + $0x1560] sm:$0xf]  ;;  %v865_v23 = vld [vmem:[%s10090_s10 + $0x1570] sm:$0xf]  ;;  %862 = vst [vmem:[%s10097_s11 + $0x554] sm:$0xf] %v861_v21 }
  0xfe   : > { %864 = vst [vmem:[%s10097_s11 + $0x558] sm:$0xf] %v863_v22  ;;  %866 = vst [vmem:[%s10097_s11 + $0x55c] sm:$0xf] %v865_v23  ;;  %v867_v24 = vld [vmem:[%s10090_s10 + $0x1580] sm:$0xf] }
  0xff   : > { %v869_v25 = vld [vmem:[%s10090_s10 + $0x1590] sm:$0xf]  ;;  %v871_v26 = vld [vmem:[%s10090_s10 + $0x15a0] sm:$0xf]  ;;  %868 = vst [vmem:[%s10097_s11 + $0x560] sm:$0xf] %v867_v24 }
 0x100   : > { %870 = vst [vmem:[%s10097_s11 + $0x564] sm:$0xf] %v869_v25  ;;  %872 = vst [vmem:[%s10097_s11 + $0x568] sm:$0xf] %v871_v26  ;;  %v873_v27 = vld [vmem:[%s10090_s10 + $0x15b0] sm:$0xf] }
 0x101   : > { %v875_v28 = vld [vmem:[%s10090_s10 + $0x15c0] sm:$0xf]  ;;  %v877_v29 = vld [vmem:[%s10090_s10 + $0x15d0] sm:$0xf]  ;;  %874 = vst [vmem:[%s10097_s11 + $0x56c] sm:$0xf] %v873_v27 }
 0x102   : > { %876 = vst [vmem:[%s10097_s11 + $0x570] sm:$0xf] %v875_v28  ;;  %878 = vst [vmem:[%s10097_s11 + $0x574] sm:$0xf] %v877_v29  ;;  %v879_v30 = vld [vmem:[%s10090_s10 + $0x15e0] sm:$0xf] }
 0x103   : > { %v881_v31 = vld [vmem:[%s10090_s10 + $0x15f0] sm:$0xf]  ;;  %v883_v32 = vld [vmem:[%s10090_s10 + $0x1600] sm:$0xf]  ;;  %880 = vst [vmem:[%s10097_s11 + $0x578] sm:$0xf] %v879_v30 }
 0x104   : > { %882 = vst [vmem:[%s10097_s11 + $0x57c] sm:$0xf] %v881_v31  ;;  %884 = vst [vmem:[%s10097_s11 + $0x580] sm:$0xf] %v883_v32  ;;  %v885_v33 = vld [vmem:[%s10090_s10 + $0x1610] sm:$0xf] }
 0x105   : > { %v887_v34 = vld [vmem:[%s10090_s10 + $0x1620] sm:$0xf]  ;;  %v889_v35 = vld [vmem:[%s10090_s10 + $0x1630] sm:$0xf]  ;;  %886 = vst [vmem:[%s10097_s11 + $0x584] sm:$0xf] %v885_v33 }
 0x106   : > { %888 = vst [vmem:[%s10097_s11 + $0x588] sm:$0xf] %v887_v34  ;;  %890 = vst [vmem:[%s10097_s11 + $0x58c] sm:$0xf] %v889_v35  ;;  %v891_v36 = vld [vmem:[%s10090_s10 + $0x1640] sm:$0xf] }
 0x107   : > { %v893_v37 = vld [vmem:[%s10090_s10 + $0x1650] sm:$0xf]  ;;  %v895_v38 = vld [vmem:[%s10090_s10 + $0x1660] sm:$0xf]  ;;  %892 = vst [vmem:[%s10097_s11 + $0x590] sm:$0xf] %v891_v36 }
 0x108   : > { %894 = vst [vmem:[%s10097_s11 + $0x594] sm:$0xf] %v893_v37  ;;  %896 = vst [vmem:[%s10097_s11 + $0x598] sm:$0xf] %v895_v38  ;;  %v897_v39 = vld [vmem:[%s10090_s10 + $0x1670] sm:$0xf] }
 0x109   : > { %v899_v40 = vld [vmem:[%s10090_s10 + $0x1680] sm:$0xf]  ;;  %v901_v41 = vld [vmem:[%s10090_s10 + $0x1690] sm:$0xf]  ;;  %898 = vst [vmem:[%s10097_s11 + $0x59c] sm:$0xf] %v897_v39 }
 0x10a   : > { %900 = vst [vmem:[%s10097_s11 + $0x5a0] sm:$0xf] %v899_v40  ;;  %902 = vst [vmem:[%s10097_s11 + $0x5a4] sm:$0xf] %v901_v41  ;;  %v903_v42 = vld [vmem:[%s10090_s10 + $0x16a0] sm:$0xf] }
 0x10b   : > { %v905_v43 = vld [vmem:[%s10090_s10 + $0x16b0] sm:$0xf]  ;;  %v907_v44 = vld [vmem:[%s10090_s10 + $0x16c0] sm:$0xf]  ;;  %904 = vst [vmem:[%s10097_s11 + $0x5a8] sm:$0xf] %v903_v42 }
 0x10c   : > { %906 = vst [vmem:[%s10097_s11 + $0x5ac] sm:$0xf] %v905_v43  ;;  %908 = vst [vmem:[%s10097_s11 + $0x5b0] sm:$0xf] %v907_v44  ;;  %v909_v45 = vld [vmem:[%s10090_s10 + $0x16d0] sm:$0xf] }
 0x10d   : > { %v911_v46 = vld [vmem:[%s10090_s10 + $0x16e0] sm:$0xf]  ;;  %v913_v47 = vld [vmem:[%s10090_s10 + $0x16f0] sm:$0xf]  ;;  %910 = vst [vmem:[%s10097_s11 + $0x5b4] sm:$0xf] %v909_v45 }
 0x10e   : > { %912 = vst [vmem:[%s10097_s11 + $0x5b8] sm:$0xf] %v911_v46  ;;  %914 = vst [vmem:[%s10097_s11 + $0x5bc] sm:$0xf] %v913_v47  ;;  %v915_v48 = vld [vmem:[%s10090_s10 + $0x1700] sm:$0xf] }
 0x10f   : > { %v917_v49 = vld [vmem:[%s10090_s10 + $0x1710] sm:$0xf]  ;;  %v919_v50 = vld [vmem:[%s10090_s10 + $0x1720] sm:$0xf]  ;;  %916 = vst [vmem:[%s10097_s11 + $0x5c0] sm:$0xf] %v915_v48 }
 0x110   : > { %918 = vst [vmem:[%s10097_s11 + $0x5c4] sm:$0xf] %v917_v49  ;;  %920 = vst [vmem:[%s10097_s11 + $0x5c8] sm:$0xf] %v919_v50  ;;  %v921_v51 = vld [vmem:[%s10090_s10 + $0x1730] sm:$0xf] }
 0x111   : > { %v923_v52 = vld [vmem:[%s10090_s10 + $0x1740] sm:$0xf]  ;;  %v925_v53 = vld [vmem:[%s10090_s10 + $0x1750] sm:$0xf]  ;;  %922 = vst [vmem:[%s10097_s11 + $0x5cc] sm:$0xf] %v921_v51 }
 0x112   : > { %924 = vst [vmem:[%s10097_s11 + $0x5d0] sm:$0xf] %v923_v52  ;;  %926 = vst [vmem:[%s10097_s11 + $0x5d4] sm:$0xf] %v925_v53  ;;  %v927_v54 = vld [vmem:[%s10090_s10 + $0x1760] sm:$0xf] }
 0x113   : > { %v929_v55 = vld [vmem:[%s10090_s10 + $0x1770] sm:$0xf]  ;;  %v931_v56 = vld [vmem:[%s10090_s10 + $0x1780] sm:$0xf]  ;;  %928 = vst [vmem:[%s10097_s11 + $0x5d8] sm:$0xf] %v927_v54 }
 0x114   : > { %930 = vst [vmem:[%s10097_s11 + $0x5dc] sm:$0xf] %v929_v55  ;;  %932 = vst [vmem:[%s10097_s11 + $0x5e0] sm:$0xf] %v931_v56  ;;  %v933_v57 = vld [vmem:[%s10090_s10 + $0x1790] sm:$0xf] }
 0x115   : > { %v935_v58 = vld [vmem:[%s10090_s10 + $0x17a0] sm:$0xf]  ;;  %v937_v59 = vld [vmem:[%s10090_s10 + $0x17b0] sm:$0xf]  ;;  %934 = vst [vmem:[%s10097_s11 + $0x5e4] sm:$0xf] %v933_v57 }
 0x116   : > { %936 = vst [vmem:[%s10097_s11 + $0x5e8] sm:$0xf] %v935_v58  ;;  %938 = vst [vmem:[%s10097_s11 + $0x5ec] sm:$0xf] %v937_v59  ;;  %v939_v60 = vld [vmem:[%s10090_s10 + $0x17c0] sm:$0xf] }
 0x117   : > { %v941_v61 = vld [vmem:[%s10090_s10 + $0x17d0] sm:$0xf]  ;;  %v943_v62 = vld [vmem:[%s10090_s10 + $0x17e0] sm:$0xf]  ;;  %940 = vst [vmem:[%s10097_s11 + $0x5f0] sm:$0xf] %v939_v60 }
 0x118   : > { %942 = vst [vmem:[%s10097_s11 + $0x5f4] sm:$0xf] %v941_v61  ;;  %944 = vst [vmem:[%s10097_s11 + $0x5f8] sm:$0xf] %v943_v62  ;;  %v945_v63 = vld [vmem:[%s10090_s10 + $0x17f0] sm:$0xf] }
 0x119   : > { %v947_v0 = vld [vmem:[%s10090_s10 + $0x1800] sm:$0xf]  ;;  %v949_v1 = vld [vmem:[%s10090_s10 + $0x1810] sm:$0xf]  ;;  %946 = vst [vmem:[%s10097_s11 + $0x5fc] sm:$0xf] %v945_v63 }
 0x11a   : > { %948 = vst [vmem:[%s10097_s11 + $0x600] sm:$0xf] %v947_v0  ;;  %950 = vst [vmem:[%s10097_s11 + $0x604] sm:$0xf] %v949_v1  ;;  %v951_v2 = vld [vmem:[%s10090_s10 + $0x1820] sm:$0xf] }
 0x11b   : > { %v953_v3 = vld [vmem:[%s10090_s10 + $0x1830] sm:$0xf]  ;;  %v955_v4 = vld [vmem:[%s10090_s10 + $0x1840] sm:$0xf]  ;;  %952 = vst [vmem:[%s10097_s11 + $0x608] sm:$0xf] %v951_v2 }
 0x11c   : > { %954 = vst [vmem:[%s10097_s11 + $0x60c] sm:$0xf] %v953_v3  ;;  %956 = vst [vmem:[%s10097_s11 + $0x610] sm:$0xf] %v955_v4  ;;  %v957_v5 = vld [vmem:[%s10090_s10 + $0x1850] sm:$0xf] }
 0x11d   : > { %v959_v6 = vld [vmem:[%s10090_s10 + $0x1860] sm:$0xf]  ;;  %v961_v7 = vld [vmem:[%s10090_s10 + $0x1870] sm:$0xf]  ;;  %958 = vst [vmem:[%s10097_s11 + $0x614] sm:$0xf] %v957_v5 }
 0x11e   : > { %960 = vst [vmem:[%s10097_s11 + $0x618] sm:$0xf] %v959_v6  ;;  %962 = vst [vmem:[%s10097_s11 + $0x61c] sm:$0xf] %v961_v7  ;;  %v963_v8 = vld [vmem:[%s10090_s10 + $0x1880] sm:$0xf] }
 0x11f   : > { %v965_v9 = vld [vmem:[%s10090_s10 + $0x1890] sm:$0xf]  ;;  %v967_v10 = vld [vmem:[%s10090_s10 + $0x18a0] sm:$0xf]  ;;  %964 = vst [vmem:[%s10097_s11 + $0x620] sm:$0xf] %v963_v8 }
 0x120   : > { %966 = vst [vmem:[%s10097_s11 + $0x624] sm:$0xf] %v965_v9  ;;  %968 = vst [vmem:[%s10097_s11 + $0x628] sm:$0xf] %v967_v10  ;;  %v969_v11 = vld [vmem:[%s10090_s10 + $0x18b0] sm:$0xf] }
 0x121   : > { %v971_v12 = vld [vmem:[%s10090_s10 + $0x18c0] sm:$0xf]  ;;  %v973_v13 = vld [vmem:[%s10090_s10 + $0x18d0] sm:$0xf]  ;;  %970 = vst [vmem:[%s10097_s11 + $0x62c] sm:$0xf] %v969_v11 }
 0x122   : > { %972 = vst [vmem:[%s10097_s11 + $0x630] sm:$0xf] %v971_v12  ;;  %974 = vst [vmem:[%s10097_s11 + $0x634] sm:$0xf] %v973_v13  ;;  %v975_v14 = vld [vmem:[%s10090_s10 + $0x18e0] sm:$0xf] }
 0x123   : > { %v977_v15 = vld [vmem:[%s10090_s10 + $0x18f0] sm:$0xf]  ;;  %v979_v16 = vld [vmem:[%s10090_s10 + $0x1900] sm:$0xf]  ;;  %976 = vst [vmem:[%s10097_s11 + $0x638] sm:$0xf] %v975_v14 }
 0x124   : > { %978 = vst [vmem:[%s10097_s11 + $0x63c] sm:$0xf] %v977_v15  ;;  %980 = vst [vmem:[%s10097_s11 + $0x640] sm:$0xf] %v979_v16  ;;  %v981_v17 = vld [vmem:[%s10090_s10 + $0x1910] sm:$0xf] }
 0x125   : > { %v983_v18 = vld [vmem:[%s10090_s10 + $0x1920] sm:$0xf]  ;;  %v985_v19 = vld [vmem:[%s10090_s10 + $0x1930] sm:$0xf]  ;;  %982 = vst [vmem:[%s10097_s11 + $0x644] sm:$0xf] %v981_v17 }
 0x126   : > { %984 = vst [vmem:[%s10097_s11 + $0x648] sm:$0xf] %v983_v18  ;;  %986 = vst [vmem:[%s10097_s11 + $0x64c] sm:$0xf] %v985_v19  ;;  %v987_v20 = vld [vmem:[%s10090_s10 + $0x1940] sm:$0xf] }
 0x127   : > { %v989_v21 = vld [vmem:[%s10090_s10 + $0x1950] sm:$0xf]  ;;  %v991_v22 = vld [vmem:[%s10090_s10 + $0x1960] sm:$0xf]  ;;  %988 = vst [vmem:[%s10097_s11 + $0x650] sm:$0xf] %v987_v20 }
 0x128   : > { %990 = vst [vmem:[%s10097_s11 + $0x654] sm:$0xf] %v989_v21  ;;  %992 = vst [vmem:[%s10097_s11 + $0x658] sm:$0xf] %v991_v22  ;;  %v993_v23 = vld [vmem:[%s10090_s10 + $0x1970] sm:$0xf] }
 0x129   : > { %v995_v24 = vld [vmem:[%s10090_s10 + $0x1980] sm:$0xf]  ;;  %v997_v25 = vld [vmem:[%s10090_s10 + $0x1990] sm:$0xf]  ;;  %994 = vst [vmem:[%s10097_s11 + $0x65c] sm:$0xf] %v993_v23 }
 0x12a   : > { %996 = vst [vmem:[%s10097_s11 + $0x660] sm:$0xf] %v995_v24  ;;  %998 = vst [vmem:[%s10097_s11 + $0x664] sm:$0xf] %v997_v25  ;;  %v999_v26 = vld [vmem:[%s10090_s10 + $0x19a0] sm:$0xf] }
 0x12b   : > { %v1001_v27 = vld [vmem:[%s10090_s10 + $0x19b0] sm:$0xf]  ;;  %v1003_v28 = vld [vmem:[%s10090_s10 + $0x19c0] sm:$0xf]  ;;  %1000 = vst [vmem:[%s10097_s11 + $0x668] sm:$0xf] %v999_v26 }
 0x12c   : > { %1002 = vst [vmem:[%s10097_s11 + $0x66c] sm:$0xf] %v1001_v27  ;;  %1004 = vst [vmem:[%s10097_s11 + $0x670] sm:$0xf] %v1003_v28  ;;  %v1005_v29 = vld [vmem:[%s10090_s10 + $0x19d0] sm:$0xf] }
 0x12d   : > { %v1007_v30 = vld [vmem:[%s10090_s10 + $0x19e0] sm:$0xf]  ;;  %v1009_v31 = vld [vmem:[%s10090_s10 + $0x19f0] sm:$0xf]  ;;  %1006 = vst [vmem:[%s10097_s11 + $0x674] sm:$0xf] %v1005_v29 }
 0x12e   : > { %1008 = vst [vmem:[%s10097_s11 + $0x678] sm:$0xf] %v1007_v30  ;;  %1010 = vst [vmem:[%s10097_s11 + $0x67c] sm:$0xf] %v1009_v31  ;;  %v1011_v32 = vld [vmem:[%s10090_s10 + $0x1a00] sm:$0xf] }
 0x12f   : > { %v1013_v33 = vld [vmem:[%s10090_s10 + $0x1a10] sm:$0xf]  ;;  %v1015_v34 = vld [vmem:[%s10090_s10 + $0x1a20] sm:$0xf]  ;;  %1012 = vst [vmem:[%s10097_s11 + $0x680] sm:$0xf] %v1011_v32 }
 0x130   : > { %1014 = vst [vmem:[%s10097_s11 + $0x684] sm:$0xf] %v1013_v33  ;;  %1016 = vst [vmem:[%s10097_s11 + $0x688] sm:$0xf] %v1015_v34  ;;  %v1017_v35 = vld [vmem:[%s10090_s10 + $0x1a30] sm:$0xf] }
 0x131   : > { %v1019_v36 = vld [vmem:[%s10090_s10 + $0x1a40] sm:$0xf]  ;;  %v1021_v37 = vld [vmem:[%s10090_s10 + $0x1a50] sm:$0xf]  ;;  %1018 = vst [vmem:[%s10097_s11 + $0x68c] sm:$0xf] %v1017_v35 }
 0x132   : > { %1020 = vst [vmem:[%s10097_s11 + $0x690] sm:$0xf] %v1019_v36  ;;  %1022 = vst [vmem:[%s10097_s11 + $0x694] sm:$0xf] %v1021_v37  ;;  %v1023_v38 = vld [vmem:[%s10090_s10 + $0x1a60] sm:$0xf] }
 0x133   : > { %v1025_v39 = vld [vmem:[%s10090_s10 + $0x1a70] sm:$0xf]  ;;  %v1027_v40 = vld [vmem:[%s10090_s10 + $0x1a80] sm:$0xf]  ;;  %1024 = vst [vmem:[%s10097_s11 + $0x698] sm:$0xf] %v1023_v38 }
 0x134   : > { %1026 = vst [vmem:[%s10097_s11 + $0x69c] sm:$0xf] %v1025_v39  ;;  %1028 = vst [vmem:[%s10097_s11 + $0x6a0] sm:$0xf] %v1027_v40  ;;  %v1029_v41 = vld [vmem:[%s10090_s10 + $0x1a90] sm:$0xf] }
 0x135   : > { %v1031_v42 = vld [vmem:[%s10090_s10 + $0x1aa0] sm:$0xf]  ;;  %v1033_v43 = vld [vmem:[%s10090_s10 + $0x1ab0] sm:$0xf]  ;;  %1030 = vst [vmem:[%s10097_s11 + $0x6a4] sm:$0xf] %v1029_v41 }
 0x136   : > { %1032 = vst [vmem:[%s10097_s11 + $0x6a8] sm:$0xf] %v1031_v42  ;;  %1034 = vst [vmem:[%s10097_s11 + $0x6ac] sm:$0xf] %v1033_v43  ;;  %v1035_v44 = vld [vmem:[%s10090_s10 + $0x1ac0] sm:$0xf] }
 0x137   : > { %v1037_v45 = vld [vmem:[%s10090_s10 + $0x1ad0] sm:$0xf]  ;;  %v1039_v46 = vld [vmem:[%s10090_s10 + $0x1ae0] sm:$0xf]  ;;  %1036 = vst [vmem:[%s10097_s11 + $0x6b0] sm:$0xf] %v1035_v44 }
 0x138   : > { %1038 = vst [vmem:[%s10097_s11 + $0x6b4] sm:$0xf] %v1037_v45  ;;  %1040 = vst [vmem:[%s10097_s11 + $0x6b8] sm:$0xf] %v1039_v46  ;;  %v1041_v47 = vld [vmem:[%s10090_s10 + $0x1af0] sm:$0xf] }
 0x139   : > { %v1043_v48 = vld [vmem:[%s10090_s10 + $0x1b00] sm:$0xf]  ;;  %v1045_v49 = vld [vmem:[%s10090_s10 + $0x1b10] sm:$0xf]  ;;  %1042 = vst [vmem:[%s10097_s11 + $0x6bc] sm:$0xf] %v1041_v47 }
 0x13a   : > { %1044 = vst [vmem:[%s10097_s11 + $0x6c0] sm:$0xf] %v1043_v48  ;;  %1046 = vst [vmem:[%s10097_s11 + $0x6c4] sm:$0xf] %v1045_v49  ;;  %v1047_v50 = vld [vmem:[%s10090_s10 + $0x1b20] sm:$0xf] }
 0x13b   : > { %v1049_v51 = vld [vmem:[%s10090_s10 + $0x1b30] sm:$0xf]  ;;  %v1051_v52 = vld [vmem:[%s10090_s10 + $0x1b40] sm:$0xf]  ;;  %1048 = vst [vmem:[%s10097_s11 + $0x6c8] sm:$0xf] %v1047_v50 }
 0x13c   : > { %1050 = vst [vmem:[%s10097_s11 + $0x6cc] sm:$0xf] %v1049_v51  ;;  %1052 = vst [vmem:[%s10097_s11 + $0x6d0] sm:$0xf] %v1051_v52  ;;  %v1053_v53 = vld [vmem:[%s10090_s10 + $0x1b50] sm:$0xf] }
 0x13d   : > { %v1055_v54 = vld [vmem:[%s10090_s10 + $0x1b60] sm:$0xf]  ;;  %v1057_v55 = vld [vmem:[%s10090_s10 + $0x1b70] sm:$0xf]  ;;  %1054 = vst [vmem:[%s10097_s11 + $0x6d4] sm:$0xf] %v1053_v53 }
 0x13e   : > { %1056 = vst [vmem:[%s10097_s11 + $0x6d8] sm:$0xf] %v1055_v54  ;;  %1058 = vst [vmem:[%s10097_s11 + $0x6dc] sm:$0xf] %v1057_v55  ;;  %v1059_v56 = vld [vmem:[%s10090_s10 + $0x1b80] sm:$0xf] }
 0x13f   : > { %v1061_v57 = vld [vmem:[%s10090_s10 + $0x1b90] sm:$0xf]  ;;  %v1063_v58 = vld [vmem:[%s10090_s10 + $0x1ba0] sm:$0xf]  ;;  %1060 = vst [vmem:[%s10097_s11 + $0x6e0] sm:$0xf] %v1059_v56 }
 0x140   : > { %1062 = vst [vmem:[%s10097_s11 + $0x6e4] sm:$0xf] %v1061_v57  ;;  %1064 = vst [vmem:[%s10097_s11 + $0x6e8] sm:$0xf] %v1063_v58  ;;  %v1065_v59 = vld [vmem:[%s10090_s10 + $0x1bb0] sm:$0xf] }
 0x141   : > { %v1067_v60 = vld [vmem:[%s10090_s10 + $0x1bc0] sm:$0xf]  ;;  %v1069_v61 = vld [vmem:[%s10090_s10 + $0x1bd0] sm:$0xf]  ;;  %1066 = vst [vmem:[%s10097_s11 + $0x6ec] sm:$0xf] %v1065_v59 }
 0x142   : > { %1068 = vst [vmem:[%s10097_s11 + $0x6f0] sm:$0xf] %v1067_v60  ;;  %1070 = vst [vmem:[%s10097_s11 + $0x6f4] sm:$0xf] %v1069_v61  ;;  %v1071_v62 = vld [vmem:[%s10090_s10 + $0x1be0] sm:$0xf] }
 0x143   : > { %v1073_v63 = vld [vmem:[%s10090_s10 + $0x1bf0] sm:$0xf]  ;;  %v1075_v0 = vld [vmem:[%s10090_s10 + $0x1c00] sm:$0xf]  ;;  %1072 = vst [vmem:[%s10097_s11 + $0x6f8] sm:$0xf] %v1071_v62 }
 0x144   : > { %1074 = vst [vmem:[%s10097_s11 + $0x6fc] sm:$0xf] %v1073_v63  ;;  %1076 = vst [vmem:[%s10097_s11 + $0x700] sm:$0xf] %v1075_v0  ;;  %v1077_v1 = vld [vmem:[%s10090_s10 + $0x1c10] sm:$0xf] }
 0x145   : > { %v1079_v2 = vld [vmem:[%s10090_s10 + $0x1c20] sm:$0xf]  ;;  %v1081_v3 = vld [vmem:[%s10090_s10 + $0x1c30] sm:$0xf]  ;;  %1078 = vst [vmem:[%s10097_s11 + $0x704] sm:$0xf] %v1077_v1 }
 0x146   : > { %1080 = vst [vmem:[%s10097_s11 + $0x708] sm:$0xf] %v1079_v2  ;;  %1082 = vst [vmem:[%s10097_s11 + $0x70c] sm:$0xf] %v1081_v3  ;;  %v1083_v4 = vld [vmem:[%s10090_s10 + $0x1c40] sm:$0xf] }
 0x147   : > { %v1085_v5 = vld [vmem:[%s10090_s10 + $0x1c50] sm:$0xf]  ;;  %v1087_v6 = vld [vmem:[%s10090_s10 + $0x1c60] sm:$0xf]  ;;  %1084 = vst [vmem:[%s10097_s11 + $0x710] sm:$0xf] %v1083_v4 }
 0x148   : > { %1086 = vst [vmem:[%s10097_s11 + $0x714] sm:$0xf] %v1085_v5  ;;  %1088 = vst [vmem:[%s10097_s11 + $0x718] sm:$0xf] %v1087_v6  ;;  %v1089_v7 = vld [vmem:[%s10090_s10 + $0x1c70] sm:$0xf] }
 0x149   : > { %v1091_v8 = vld [vmem:[%s10090_s10 + $0x1c80] sm:$0xf]  ;;  %v1093_v9 = vld [vmem:[%s10090_s10 + $0x1c90] sm:$0xf]  ;;  %1090 = vst [vmem:[%s10097_s11 + $0x71c] sm:$0xf] %v1089_v7 }
 0x14a   : > { %1092 = vst [vmem:[%s10097_s11 + $0x720] sm:$0xf] %v1091_v8  ;;  %1094 = vst [vmem:[%s10097_s11 + $0x724] sm:$0xf] %v1093_v9  ;;  %v1095_v10 = vld [vmem:[%s10090_s10 + $0x1ca0] sm:$0xf] }
 0x14b   : > { %v1097_v11 = vld [vmem:[%s10090_s10 + $0x1cb0] sm:$0xf]  ;;  %v1099_v12 = vld [vmem:[%s10090_s10 + $0x1cc0] sm:$0xf]  ;;  %1096 = vst [vmem:[%s10097_s11 + $0x728] sm:$0xf] %v1095_v10 }
 0x14c   : > { %1098 = vst [vmem:[%s10097_s11 + $0x72c] sm:$0xf] %v1097_v11  ;;  %1100 = vst [vmem:[%s10097_s11 + $0x730] sm:$0xf] %v1099_v12  ;;  %v1101_v13 = vld [vmem:[%s10090_s10 + $0x1cd0] sm:$0xf] }
 0x14d   : > { %v1103_v14 = vld [vmem:[%s10090_s10 + $0x1ce0] sm:$0xf]  ;;  %v1105_v15 = vld [vmem:[%s10090_s10 + $0x1cf0] sm:$0xf]  ;;  %1102 = vst [vmem:[%s10097_s11 + $0x734] sm:$0xf] %v1101_v13 }
 0x14e   : > { %1104 = vst [vmem:[%s10097_s11 + $0x738] sm:$0xf] %v1103_v14  ;;  %1106 = vst [vmem:[%s10097_s11 + $0x73c] sm:$0xf] %v1105_v15  ;;  %v1107_v16 = vld [vmem:[%s10090_s10 + $0x1d00] sm:$0xf] }
 0x14f   : > { %v1109_v17 = vld [vmem:[%s10090_s10 + $0x1d10] sm:$0xf]  ;;  %v1111_v18 = vld [vmem:[%s10090_s10 + $0x1d20] sm:$0xf]  ;;  %1108 = vst [vmem:[%s10097_s11 + $0x740] sm:$0xf] %v1107_v16 }
 0x150   : > { %1110 = vst [vmem:[%s10097_s11 + $0x744] sm:$0xf] %v1109_v17  ;;  %1112 = vst [vmem:[%s10097_s11 + $0x748] sm:$0xf] %v1111_v18  ;;  %v1113_v19 = vld [vmem:[%s10090_s10 + $0x1d30] sm:$0xf] }
 0x151   : > { %v1115_v20 = vld [vmem:[%s10090_s10 + $0x1d40] sm:$0xf]  ;;  %v1117_v21 = vld [vmem:[%s10090_s10 + $0x1d50] sm:$0xf]  ;;  %1114 = vst [vmem:[%s10097_s11 + $0x74c] sm:$0xf] %v1113_v19 }
 0x152   : > { %1116 = vst [vmem:[%s10097_s11 + $0x750] sm:$0xf] %v1115_v20  ;;  %1118 = vst [vmem:[%s10097_s11 + $0x754] sm:$0xf] %v1117_v21  ;;  %v1119_v22 = vld [vmem:[%s10090_s10 + $0x1d60] sm:$0xf] }
 0x153   : > { %v1121_v23 = vld [vmem:[%s10090_s10 + $0x1d70] sm:$0xf]  ;;  %v1123_v24 = vld [vmem:[%s10090_s10 + $0x1d80] sm:$0xf]  ;;  %1120 = vst [vmem:[%s10097_s11 + $0x758] sm:$0xf] %v1119_v22 }
 0x154   : > { %1122 = vst [vmem:[%s10097_s11 + $0x75c] sm:$0xf] %v1121_v23  ;;  %1124 = vst [vmem:[%s10097_s11 + $0x760] sm:$0xf] %v1123_v24  ;;  %v1125_v25 = vld [vmem:[%s10090_s10 + $0x1d90] sm:$0xf] }
 0x155   : > { %v1127_v26 = vld [vmem:[%s10090_s10 + $0x1da0] sm:$0xf]  ;;  %v1129_v27 = vld [vmem:[%s10090_s10 + $0x1db0] sm:$0xf]  ;;  %1126 = vst [vmem:[%s10097_s11 + $0x764] sm:$0xf] %v1125_v25 }
 0x156   : > { %1128 = vst [vmem:[%s10097_s11 + $0x768] sm:$0xf] %v1127_v26  ;;  %1130 = vst [vmem:[%s10097_s11 + $0x76c] sm:$0xf] %v1129_v27  ;;  %v1131_v28 = vld [vmem:[%s10090_s10 + $0x1dc0] sm:$0xf] }
 0x157   : > { %v1133_v29 = vld [vmem:[%s10090_s10 + $0x1dd0] sm:$0xf]  ;;  %v1135_v30 = vld [vmem:[%s10090_s10 + $0x1de0] sm:$0xf]  ;;  %1132 = vst [vmem:[%s10097_s11 + $0x770] sm:$0xf] %v1131_v28 }
 0x158   : > { %1134 = vst [vmem:[%s10097_s11 + $0x774] sm:$0xf] %v1133_v29  ;;  %1136 = vst [vmem:[%s10097_s11 + $0x778] sm:$0xf] %v1135_v30  ;;  %v1137_v31 = vld [vmem:[%s10090_s10 + $0x1df0] sm:$0xf] }
 0x159   : > { %v1139_v32 = vld [vmem:[%s10090_s10 + $0x1e00] sm:$0xf]  ;;  %v1141_v33 = vld [vmem:[%s10090_s10 + $0x1e10] sm:$0xf]  ;;  %1138 = vst [vmem:[%s10097_s11 + $0x77c] sm:$0xf] %v1137_v31 }
 0x15a   : > { %1140 = vst [vmem:[%s10097_s11 + $0x780] sm:$0xf] %v1139_v32  ;;  %1142 = vst [vmem:[%s10097_s11 + $0x784] sm:$0xf] %v1141_v33  ;;  %v1143_v34 = vld [vmem:[%s10090_s10 + $0x1e20] sm:$0xf] }
 0x15b   : > { %v1145_v35 = vld [vmem:[%s10090_s10 + $0x1e30] sm:$0xf]  ;;  %v1147_v36 = vld [vmem:[%s10090_s10 + $0x1e40] sm:$0xf]  ;;  %1144 = vst [vmem:[%s10097_s11 + $0x788] sm:$0xf] %v1143_v34 }
 0x15c   : > { %1146 = vst [vmem:[%s10097_s11 + $0x78c] sm:$0xf] %v1145_v35  ;;  %1148 = vst [vmem:[%s10097_s11 + $0x790] sm:$0xf] %v1147_v36  ;;  %v1149_v37 = vld [vmem:[%s10090_s10 + $0x1e50] sm:$0xf] }
 0x15d   : > { %v1151_v38 = vld [vmem:[%s10090_s10 + $0x1e60] sm:$0xf]  ;;  %v1153_v39 = vld [vmem:[%s10090_s10 + $0x1e70] sm:$0xf]  ;;  %1150 = vst [vmem:[%s10097_s11 + $0x794] sm:$0xf] %v1149_v37 }
 0x15e   : > { %1152 = vst [vmem:[%s10097_s11 + $0x798] sm:$0xf] %v1151_v38  ;;  %1154 = vst [vmem:[%s10097_s11 + $0x79c] sm:$0xf] %v1153_v39  ;;  %v1155_v40 = vld [vmem:[%s10090_s10 + $0x1e80] sm:$0xf] }
 0x15f   : > { %v1157_v41 = vld [vmem:[%s10090_s10 + $0x1e90] sm:$0xf]  ;;  %v1159_v42 = vld [vmem:[%s10090_s10 + $0x1ea0] sm:$0xf]  ;;  %1156 = vst [vmem:[%s10097_s11 + $0x7a0] sm:$0xf] %v1155_v40 }
 0x160   : > { %1158 = vst [vmem:[%s10097_s11 + $0x7a4] sm:$0xf] %v1157_v41  ;;  %1160 = vst [vmem:[%s10097_s11 + $0x7a8] sm:$0xf] %v1159_v42  ;;  %v1161_v43 = vld [vmem:[%s10090_s10 + $0x1eb0] sm:$0xf] }
 0x161   : > { %v1163_v44 = vld [vmem:[%s10090_s10 + $0x1ec0] sm:$0xf]  ;;  %v1165_v45 = vld [vmem:[%s10090_s10 + $0x1ed0] sm:$0xf]  ;;  %1162 = vst [vmem:[%s10097_s11 + $0x7ac] sm:$0xf] %v1161_v43 }
 0x162   : > { %1164 = vst [vmem:[%s10097_s11 + $0x7b0] sm:$0xf] %v1163_v44  ;;  %1166 = vst [vmem:[%s10097_s11 + $0x7b4] sm:$0xf] %v1165_v45  ;;  %v1167_v46 = vld [vmem:[%s10090_s10 + $0x1ee0] sm:$0xf] }
 0x163   : > { %v1169_v47 = vld [vmem:[%s10090_s10 + $0x1ef0] sm:$0xf]  ;;  %v1171_v48 = vld [vmem:[%s10090_s10 + $0x1f00] sm:$0xf]  ;;  %1168 = vst [vmem:[%s10097_s11 + $0x7b8] sm:$0xf] %v1167_v46 }
 0x164   : > { %1170 = vst [vmem:[%s10097_s11 + $0x7bc] sm:$0xf] %v1169_v47  ;;  %1172 = vst [vmem:[%s10097_s11 + $0x7c0] sm:$0xf] %v1171_v48  ;;  %v1173_v49 = vld [vmem:[%s10090_s10 + $0x1f10] sm:$0xf] }
 0x165   : > { %v1175_v50 = vld [vmem:[%s10090_s10 + $0x1f20] sm:$0xf]  ;;  %v1177_v51 = vld [vmem:[%s10090_s10 + $0x1f30] sm:$0xf]  ;;  %1174 = vst [vmem:[%s10097_s11 + $0x7c4] sm:$0xf] %v1173_v49 }
 0x166   : > { %1176 = vst [vmem:[%s10097_s11 + $0x7c8] sm:$0xf] %v1175_v50  ;;  %1178 = vst [vmem:[%s10097_s11 + $0x7cc] sm:$0xf] %v1177_v51  ;;  %v1179_v52 = vld [vmem:[%s10090_s10 + $0x1f40] sm:$0xf] }
 0x167   : > { %v1181_v53 = vld [vmem:[%s10090_s10 + $0x1f50] sm:$0xf]  ;;  %v1183_v54 = vld [vmem:[%s10090_s10 + $0x1f60] sm:$0xf]  ;;  %1180 = vst [vmem:[%s10097_s11 + $0x7d0] sm:$0xf] %v1179_v52 }
 0x168   : > { %1182 = vst [vmem:[%s10097_s11 + $0x7d4] sm:$0xf] %v1181_v53  ;;  %1184 = vst [vmem:[%s10097_s11 + $0x7d8] sm:$0xf] %v1183_v54  ;;  %v1185_v55 = vld [vmem:[%s10090_s10 + $0x1f70] sm:$0xf] }
 0x169   : > { %v1187_v56 = vld [vmem:[%s10090_s10 + $0x1f80] sm:$0xf]  ;;  %v1189_v57 = vld [vmem:[%s10090_s10 + $0x1f90] sm:$0xf]  ;;  %1186 = vst [vmem:[%s10097_s11 + $0x7dc] sm:$0xf] %v1185_v55 }
 0x16a   : > { %1188 = vst [vmem:[%s10097_s11 + $0x7e0] sm:$0xf] %v1187_v56  ;;  %1190 = vst [vmem:[%s10097_s11 + $0x7e4] sm:$0xf] %v1189_v57  ;;  %v1191_v58 = vld [vmem:[%s10090_s10 + $0x1fa0] sm:$0xf] }
 0x16b   : > { %v1193_v59 = vld [vmem:[%s10090_s10 + $0x1fb0] sm:$0xf]  ;;  %v1195_v60 = vld [vmem:[%s10090_s10 + $0x1fc0] sm:$0xf]  ;;  %1192 = vst [vmem:[%s10097_s11 + $0x7e8] sm:$0xf] %v1191_v58 }
 0x16c   : > { %1194 = vst [vmem:[%s10097_s11 + $0x7ec] sm:$0xf] %v1193_v59  ;;  %1196 = vst [vmem:[%s10097_s11 + $0x7f0] sm:$0xf] %v1195_v60  ;;  %v1197_v61 = vld [vmem:[%s10090_s10 + $0x1fd0] sm:$0xf] }
 0x16d   : > { %v1199_v62 = vld [vmem:[%s10090_s10 + $0x1fe0] sm:$0xf]  ;;  %v1201_v63 = vld [vmem:[%s10090_s10 + $0x1ff0] sm:$0xf]  ;;  %1198 = vst [vmem:[%s10097_s11 + $0x7f4] sm:$0xf] %v1197_v61 }
 0x16e   : > { %1200 = vst [vmem:[%s10097_s11 + $0x7f8] sm:$0xf] %v1199_v62  ;;  %1202 = vst [vmem:[%s10097_s11 + $0x7fc] sm:$0xf] %v1201_v63  ;;  %v1203_v0 = vld [vmem:[%s10090_s10 + $0x2000] sm:$0xf] }
 0x16f   : > { %v1205_v1 = vld [vmem:[%s10090_s10 + $0x2010] sm:$0xf]  ;;  %v1207_v2 = vld [vmem:[%s10090_s10 + $0x2020] sm:$0xf]  ;;  %1204 = vst [vmem:[%s10097_s11 + $0x800] sm:$0xf] %v1203_v0 }
 0x170   : > { %1206 = vst [vmem:[%s10097_s11 + $0x804] sm:$0xf] %v1205_v1  ;;  %1208 = vst [vmem:[%s10097_s11 + $0x808] sm:$0xf] %v1207_v2  ;;  %v1209_v3 = vld [vmem:[%s10090_s10 + $0x2030] sm:$0xf] }
 0x171   : > { %v1211_v4 = vld [vmem:[%s10090_s10 + $0x2040] sm:$0xf]  ;;  %v1213_v5 = vld [vmem:[%s10090_s10 + $0x2050] sm:$0xf]  ;;  %1210 = vst [vmem:[%s10097_s11 + $0x80c] sm:$0xf] %v1209_v3 }
 0x172   : > { %1212 = vst [vmem:[%s10097_s11 + $0x810] sm:$0xf] %v1211_v4  ;;  %1214 = vst [vmem:[%s10097_s11 + $0x814] sm:$0xf] %v1213_v5  ;;  %v1215_v6 = vld [vmem:[%s10090_s10 + $0x2060] sm:$0xf] }
 0x173   : > { %v1217_v7 = vld [vmem:[%s10090_s10 + $0x2070] sm:$0xf]  ;;  %v1219_v8 = vld [vmem:[%s10090_s10 + $0x2080] sm:$0xf]  ;;  %1216 = vst [vmem:[%s10097_s11 + $0x818] sm:$0xf] %v1215_v6 }
 0x174   : > { %1218 = vst [vmem:[%s10097_s11 + $0x81c] sm:$0xf] %v1217_v7  ;;  %1220 = vst [vmem:[%s10097_s11 + $0x820] sm:$0xf] %v1219_v8  ;;  %v1221_v9 = vld [vmem:[%s10090_s10 + $0x2090] sm:$0xf] }
 0x175   : > { %v1223_v10 = vld [vmem:[%s10090_s10 + $0x20a0] sm:$0xf]  ;;  %v1225_v11 = vld [vmem:[%s10090_s10 + $0x20b0] sm:$0xf]  ;;  %1222 = vst [vmem:[%s10097_s11 + $0x824] sm:$0xf] %v1221_v9 }
 0x176   : > { %1224 = vst [vmem:[%s10097_s11 + $0x828] sm:$0xf] %v1223_v10  ;;  %1226 = vst [vmem:[%s10097_s11 + $0x82c] sm:$0xf] %v1225_v11  ;;  %v1227_v12 = vld [vmem:[%s10090_s10 + $0x20c0] sm:$0xf] }
 0x177   : > { %v1229_v13 = vld [vmem:[%s10090_s10 + $0x20d0] sm:$0xf]  ;;  %v1231_v14 = vld [vmem:[%s10090_s10 + $0x20e0] sm:$0xf]  ;;  %1228 = vst [vmem:[%s10097_s11 + $0x830] sm:$0xf] %v1227_v12 }
 0x178   : > { %1230 = vst [vmem:[%s10097_s11 + $0x834] sm:$0xf] %v1229_v13  ;;  %1232 = vst [vmem:[%s10097_s11 + $0x838] sm:$0xf] %v1231_v14  ;;  %v1233_v15 = vld [vmem:[%s10090_s10 + $0x20f0] sm:$0xf] }
 0x179   : > { %v1235_v16 = vld [vmem:[%s10090_s10 + $0x2100] sm:$0xf]  ;;  %v1237_v17 = vld [vmem:[%s10090_s10 + $0x2110] sm:$0xf]  ;;  %1234 = vst [vmem:[%s10097_s11 + $0x83c] sm:$0xf] %v1233_v15 }
 0x17a   : > { %1236 = vst [vmem:[%s10097_s11 + $0x840] sm:$0xf] %v1235_v16  ;;  %1238 = vst [vmem:[%s10097_s11 + $0x844] sm:$0xf] %v1237_v17  ;;  %v1239_v18 = vld [vmem:[%s10090_s10 + $0x2120] sm:$0xf] }
 0x17b   : > { %v1241_v19 = vld [vmem:[%s10090_s10 + $0x2130] sm:$0xf]  ;;  %v1243_v20 = vld [vmem:[%s10090_s10 + $0x2140] sm:$0xf]  ;;  %1240 = vst [vmem:[%s10097_s11 + $0x848] sm:$0xf] %v1239_v18 }
 0x17c   : > { %1242 = vst [vmem:[%s10097_s11 + $0x84c] sm:$0xf] %v1241_v19  ;;  %1244 = vst [vmem:[%s10097_s11 + $0x850] sm:$0xf] %v1243_v20  ;;  %v1245_v21 = vld [vmem:[%s10090_s10 + $0x2150] sm:$0xf] }
 0x17d   : > { %v1247_v22 = vld [vmem:[%s10090_s10 + $0x2160] sm:$0xf]  ;;  %v1249_v23 = vld [vmem:[%s10090_s10 + $0x2170] sm:$0xf]  ;;  %1246 = vst [vmem:[%s10097_s11 + $0x854] sm:$0xf] %v1245_v21 }
 0x17e   : > { %1248 = vst [vmem:[%s10097_s11 + $0x858] sm:$0xf] %v1247_v22  ;;  %1250 = vst [vmem:[%s10097_s11 + $0x85c] sm:$0xf] %v1249_v23  ;;  %v1251_v24 = vld [vmem:[%s10090_s10 + $0x2180] sm:$0xf] }
 0x17f   : > { %v1253_v25 = vld [vmem:[%s10090_s10 + $0x2190] sm:$0xf]  ;;  %v1255_v26 = vld [vmem:[%s10090_s10 + $0x21a0] sm:$0xf]  ;;  %1252 = vst [vmem:[%s10097_s11 + $0x860] sm:$0xf] %v1251_v24 }
 0x180   : > { %1254 = vst [vmem:[%s10097_s11 + $0x864] sm:$0xf] %v1253_v25  ;;  %1256 = vst [vmem:[%s10097_s11 + $0x868] sm:$0xf] %v1255_v26  ;;  %v1257_v27 = vld [vmem:[%s10090_s10 + $0x21b0] sm:$0xf] }
 0x181   : > { %v1259_v28 = vld [vmem:[%s10090_s10 + $0x21c0] sm:$0xf]  ;;  %v1261_v29 = vld [vmem:[%s10090_s10 + $0x21d0] sm:$0xf]  ;;  %1258 = vst [vmem:[%s10097_s11 + $0x86c] sm:$0xf] %v1257_v27 }
 0x182   : > { %1260 = vst [vmem:[%s10097_s11 + $0x870] sm:$0xf] %v1259_v28  ;;  %1262 = vst [vmem:[%s10097_s11 + $0x874] sm:$0xf] %v1261_v29  ;;  %v1263_v30 = vld [vmem:[%s10090_s10 + $0x21e0] sm:$0xf] }
 0x183   : > { %v1265_v31 = vld [vmem:[%s10090_s10 + $0x21f0] sm:$0xf]  ;;  %v1267_v32 = vld [vmem:[%s10090_s10 + $0x2200] sm:$0xf]  ;;  %1264 = vst [vmem:[%s10097_s11 + $0x878] sm:$0xf] %v1263_v30 }
 0x184   : > { %1266 = vst [vmem:[%s10097_s11 + $0x87c] sm:$0xf] %v1265_v31  ;;  %1268 = vst [vmem:[%s10097_s11 + $0x880] sm:$0xf] %v1267_v32  ;;  %v1269_v33 = vld [vmem:[%s10090_s10 + $0x2210] sm:$0xf] }
 0x185   : > { %v1271_v34 = vld [vmem:[%s10090_s10 + $0x2220] sm:$0xf]  ;;  %v1273_v35 = vld [vmem:[%s10090_s10 + $0x2230] sm:$0xf]  ;;  %1270 = vst [vmem:[%s10097_s11 + $0x884] sm:$0xf] %v1269_v33 }
 0x186   : > { %1272 = vst [vmem:[%s10097_s11 + $0x888] sm:$0xf] %v1271_v34  ;;  %1274 = vst [vmem:[%s10097_s11 + $0x88c] sm:$0xf] %v1273_v35  ;;  %v1275_v36 = vld [vmem:[%s10090_s10 + $0x2240] sm:$0xf] }
 0x187   : > { %v1277_v37 = vld [vmem:[%s10090_s10 + $0x2250] sm:$0xf]  ;;  %v1279_v38 = vld [vmem:[%s10090_s10 + $0x2260] sm:$0xf]  ;;  %1276 = vst [vmem:[%s10097_s11 + $0x890] sm:$0xf] %v1275_v36 }
 0x188   : > { %1278 = vst [vmem:[%s10097_s11 + $0x894] sm:$0xf] %v1277_v37  ;;  %1280 = vst [vmem:[%s10097_s11 + $0x898] sm:$0xf] %v1279_v38  ;;  %v1281_v39 = vld [vmem:[%s10090_s10 + $0x2270] sm:$0xf] }
 0x189   : > { %v1283_v40 = vld [vmem:[%s10090_s10 + $0x2280] sm:$0xf]  ;;  %v1285_v41 = vld [vmem:[%s10090_s10 + $0x2290] sm:$0xf]  ;;  %1282 = vst [vmem:[%s10097_s11 + $0x89c] sm:$0xf] %v1281_v39 }
 0x18a   : > { %1284 = vst [vmem:[%s10097_s11 + $0x8a0] sm:$0xf] %v1283_v40  ;;  %1286 = vst [vmem:[%s10097_s11 + $0x8a4] sm:$0xf] %v1285_v41  ;;  %v1287_v42 = vld [vmem:[%s10090_s10 + $0x22a0] sm:$0xf] }
 0x18b   : > { %v1289_v43 = vld [vmem:[%s10090_s10 + $0x22b0] sm:$0xf]  ;;  %v1291_v44 = vld [vmem:[%s10090_s10 + $0x22c0] sm:$0xf]  ;;  %1288 = vst [vmem:[%s10097_s11 + $0x8a8] sm:$0xf] %v1287_v42 }
 0x18c   : > { %1290 = vst [vmem:[%s10097_s11 + $0x8ac] sm:$0xf] %v1289_v43  ;;  %1292 = vst [vmem:[%s10097_s11 + $0x8b0] sm:$0xf] %v1291_v44  ;;  %v1293_v45 = vld [vmem:[%s10090_s10 + $0x22d0] sm:$0xf] }
 0x18d   : > { %v1295_v46 = vld [vmem:[%s10090_s10 + $0x22e0] sm:$0xf]  ;;  %v1297_v47 = vld [vmem:[%s10090_s10 + $0x22f0] sm:$0xf]  ;;  %1294 = vst [vmem:[%s10097_s11 + $0x8b4] sm:$0xf] %v1293_v45 }
 0x18e   : > { %1296 = vst [vmem:[%s10097_s11 + $0x8b8] sm:$0xf] %v1295_v46  ;;  %1298 = vst [vmem:[%s10097_s11 + $0x8bc] sm:$0xf] %v1297_v47  ;;  %v1299_v48 = vld [vmem:[%s10090_s10 + $0x2300] sm:$0xf] }
 0x18f   : > { %v1301_v49 = vld [vmem:[%s10090_s10 + $0x2310] sm:$0xf]  ;;  %v1303_v50 = vld [vmem:[%s10090_s10 + $0x2320] sm:$0xf]  ;;  %1300 = vst [vmem:[%s10097_s11 + $0x8c0] sm:$0xf] %v1299_v48 }
 0x190   : > { %1302 = vst [vmem:[%s10097_s11 + $0x8c4] sm:$0xf] %v1301_v49  ;;  %1304 = vst [vmem:[%s10097_s11 + $0x8c8] sm:$0xf] %v1303_v50  ;;  %v1305_v51 = vld [vmem:[%s10090_s10 + $0x2330] sm:$0xf] }
 0x191   : > { %v1307_v52 = vld [vmem:[%s10090_s10 + $0x2340] sm:$0xf]  ;;  %v1309_v53 = vld [vmem:[%s10090_s10 + $0x2350] sm:$0xf]  ;;  %1306 = vst [vmem:[%s10097_s11 + $0x8cc] sm:$0xf] %v1305_v51 }
 0x192   : > { %1308 = vst [vmem:[%s10097_s11 + $0x8d0] sm:$0xf] %v1307_v52  ;;  %1310 = vst [vmem:[%s10097_s11 + $0x8d4] sm:$0xf] %v1309_v53  ;;  %v1311_v54 = vld [vmem:[%s10090_s10 + $0x2360] sm:$0xf] }
 0x193   : > { %v1313_v55 = vld [vmem:[%s10090_s10 + $0x2370] sm:$0xf]  ;;  %v1315_v56 = vld [vmem:[%s10090_s10 + $0x2380] sm:$0xf]  ;;  %1312 = vst [vmem:[%s10097_s11 + $0x8d8] sm:$0xf] %v1311_v54 }
 0x194   : > { %1314 = vst [vmem:[%s10097_s11 + $0x8dc] sm:$0xf] %v1313_v55  ;;  %1316 = vst [vmem:[%s10097_s11 + $0x8e0] sm:$0xf] %v1315_v56  ;;  %v1317_v57 = vld [vmem:[%s10090_s10 + $0x2390] sm:$0xf] }
 0x195   : > { %v1319_v58 = vld [vmem:[%s10090_s10 + $0x23a0] sm:$0xf]  ;;  %v1321_v59 = vld [vmem:[%s10090_s10 + $0x23b0] sm:$0xf]  ;;  %1318 = vst [vmem:[%s10097_s11 + $0x8e4] sm:$0xf] %v1317_v57 }
 0x196   : > { %1320 = vst [vmem:[%s10097_s11 + $0x8e8] sm:$0xf] %v1319_v58  ;;  %1322 = vst [vmem:[%s10097_s11 + $0x8ec] sm:$0xf] %v1321_v59  ;;  %v1323_v60 = vld [vmem:[%s10090_s10 + $0x23c0] sm:$0xf] }
 0x197   : > { %v1325_v61 = vld [vmem:[%s10090_s10 + $0x23d0] sm:$0xf]  ;;  %v1327_v62 = vld [vmem:[%s10090_s10 + $0x23e0] sm:$0xf]  ;;  %1324 = vst [vmem:[%s10097_s11 + $0x8f0] sm:$0xf] %v1323_v60 }
 0x198   : > { %1326 = vst [vmem:[%s10097_s11 + $0x8f4] sm:$0xf] %v1325_v61  ;;  %1328 = vst [vmem:[%s10097_s11 + $0x8f8] sm:$0xf] %v1327_v62  ;;  %v1329_v63 = vld [vmem:[%s10090_s10 + $0x23f0] sm:$0xf] }
 0x199   : > { %1330 = vst [vmem:[%s10097_s11 + $0x8fc] sm:$0xf] %v1329_v63 }
 0x19a PF: > { %p8419_p11 = scmp.ge.s32.totalorder %s9987_s20, 1  ;;  %p4845_p12 = scmp.lt.s32.totalorder %s9987_s20, 9 }
 0x19c   : > { %p4846_p13 = pnand %p8419_p11, %p4845_p12 }
 0x19e   : > { %4849 = sbr.rel (%p4846_p13) target bundleno = 935 (0x3a7), region = 80 }
 0x1a3   : > { %s4852_s21 = sand.u32 1, %s9963_s14   ;;  %p4882_p0 = scmp.lt.s32.totalorder %s9975_s17, 1  ;;  %v9989_v35 = vmov 0   ;;  %vm5414_vm0 = vcmask 1045504  }
 0x1a4   : > { %s9554_s24 = smul.u32 2304, %s4852_s21  ;;  %p4887_p1 = scmp.lt.s32.totalorder %s9971_s16, 3 }
 0x1a5   : > { %s4883_s14 = scalar_select %p4882_p0, %s9975_s17, 1 }
 0x1a6   : > { %s11249_s25 = scalar_lea.vmem [#allocation2], %s9554_s24  ;;  %s4879_s10 = sand.u32 1, %s9955_s12  }
 0x1a7   : > { %v9629_v0 = vld [vmem:[%s11249_s25 + $0x378] sm:$0xff]   ;;  %v9633_v4 = vld [vmem:[%s11249_s25 + $0x370] sm:$0xff]   ;;  %v9637_v8 = vld [vmem:[%s11249_s25 + $0x368] sm:$0xff]   ;;  %s9555_s26 = smul.u32 144, %s4883_s14  ;;  %s8420_s11 = sshll.u32 %s4879_s10, 3 }
 0x1a8   : > { %v9630_v1 = vld [vmem:[%s11249_s25 + $0x3f8] sm:$0xff]   ;;  %9157 = vmatprep.subr.bf16.mxu0 %v9629_v0  ;;  %v9634_v5 = vld [vmem:[%s11249_s25 + $0x3f0] sm:$0xff]   ;;  %v9638_v9 = vld [vmem:[%s11249_s25 + $0x3e8] sm:$0xff]   ;;  %s4888_s6 = scalar_select %p4887_p1, %s9971_s16, 3 }
 0x1a9   : > { %v9631_v2 = vld [vmem:[%s11249_s25 + $0x338] sm:$0xff]   ;;  %9179 = vmatprep.subr.bf16.mxu1 %v9630_v1  ;;  %v9635_v6 = vld [vmem:[%s11249_s25 + $0x330] sm:$0xff]   ;;  %v9639_v10 = vld [vmem:[%s11249_s25 + $0x328] sm:$0xff]   ;;  %s11286_s5 = scalar_lea.vmem %s11741_s0, %s9555_s26  ;;  %s4881_s21 = scalar_lea.vmem [#allocation3], %s8420_s11 }
 0x1aa   : > { %v9632_v3 = vld [vmem:[%s11249_s25 + $0x3b8] sm:$0xff]   ;;  %9158 = vmatpush3.bf16.msra.mxu0 %v9631_v2  ;;  %v9636_v7 = vld [vmem:[%s11249_s25 + $0x3b0] sm:$0xff]   ;;  %v9640_v11 = vld [vmem:[%s11249_s25 + $0x3a8] sm:$0xff]   ;;  %s4889_s9 = scalar_lea.vmem %s11743_s2, %s4888_s6  ;;  %s9146_s24 = sshll.u32 (%p10077_p9), %s9975_s17, 3 }
 0x1ab   : > { %9180 = vmatpush3.bf16.msra.mxu1 %v9632_v3  ;;  %9159 = vmatprep.subr.bf16.mxu0 %v9633_v4  ;;  %v9641_v12 = vld [vmem:[%s11249_s25 + $0x360] sm:$0xff]   ;;  %v9645_v16 = vld [vmem:[%s11249_s25 + $0x358] sm:$0xff]   ;;  %v9649_v20 = vld [vmem:[%s11249_s25 + $0x350] sm:$0xff]  }
 0x1ac   : > { %9181 = vmatprep.subr.bf16.mxu1 %v9634_v5  ;;  %v9642_v13 = vld [vmem:[%s11249_s25 + $0x3e0] sm:$0xff]   ;;  %v9646_v17 = vld [vmem:[%s11249_s25 + $0x3d8] sm:$0xff]   ;;  %v9650_v21 = vld [vmem:[%s11249_s25 + $0x3d0] sm:$0xff]  }
 0x1ad   : > { %v9643_v14 = vld [vmem:[%s11249_s25 + $0x320] sm:$0xff]   ;;  %v9647_v18 = vld [vmem:[%s11249_s25 + $0x318] sm:$0xff]   ;;  %v9651_v22 = vld [vmem:[%s11249_s25 + $0x310] sm:$0xff]  }
 0x1ae   : > { %9160 = vmatpush3.bf16.msra.mxu0 %v9635_v6  ;;  %v9644_v15 = vld [vmem:[%s11249_s25 + $0x3a0] sm:$0xff]   ;;  %v9648_v19 = vld [vmem:[%s11249_s25 + $0x398] sm:$0xff]   ;;  %v9652_v23 = vld [vmem:[%s11249_s25 + $0x390] sm:$0xff]  }
 0x1af   : > { %9182 = vmatpush3.bf16.msra.mxu1 %v9636_v7  ;;  %9161 = vmatprep.subr.bf16.mxu0 %v9637_v8  ;;  %v9653_v24 = vld [vmem:[%s11249_s25 + $0x348] sm:$0xff]   ;;  %v9657_v28 = vld [vmem:[%s11249_s25 + $0x340] sm:$0xff]   ;;  %v5113_v33 = vld [vmem:[%s11286_s5 + $0x30] sm:$0xff] }
 0x1b0   : > { %9183 = vmatprep.subr.bf16.mxu1 %v9638_v9  ;;  %v9654_v25 = vld [vmem:[%s11249_s25 + $0x3c8] sm:$0xff]   ;;  %v9658_v29 = vld [vmem:[%s11249_s25 + $0x3c0] sm:$0xff]   ;;  %v11295_v37 = vmax.bf16 %v9989_v35, %v5113_v33  ;;  %v5114_v40 = vld [vmem:[%s11286_s5 + $0x38] sm:$0xff] }
 0x1b1   : > { %v9655_v26 = vld [vmem:[%s11249_s25 + $0x308] sm:$0xff]   ;;  %v9659_v30 = vld [vmem:[%s11249_s25 + $0x300] sm:$0xff]   ;;  %v11303_v43 = vmax.bf16 %v9989_v35, %v5114_v40  ;;  %v9661_v45 = vld [vmem:[%s11249_s25 + $0x478] sm:$0xff]  }
 0x1b2   : > { %9162 = vmatpush3.bf16.msra.mxu0 %v9639_v10  ;;  %v9656_v27 = vld [vmem:[%s11249_s25 + $0x388] sm:$0xff]   ;;  %v9660_v31 = vld [vmem:[%s11249_s25 + $0x380] sm:$0xff]   ;;  %v9662_v50 = vld [vmem:[%s11249_s25 + $0x4f8] sm:$0xff]  }
 0x1b3   : > { %9184 = vmatpush3.bf16.msra.mxu1 %v9640_v11  ;;  %9163 = vmatprep.subr.bf16.mxu0 %v9641_v12  ;;  %v5107_v32 = vld [vmem:[%s11286_s5] sm:$0xcc]  ;;  %v5119_v34 = vld [vmem:[%s11286_s5 + $0x60] sm:$0x33]  ;;  %v5108_v39 = vld [vmem:[%s11286_s5 + $0x8] sm:$0xcc] }
 0x1b4   : > { %9185 = vmatprep.subr.bf16.mxu1 %v9642_v13  ;;  %v5125_v36 = vmax.bf16 %v9989_v35, %v5107_v32  ;;  %v5137_v38 = vmax.bf16 %v9989_v35, %v5119_v34  ;;  %v5120_v41 = vld [vmem:[%s11286_s5 + $0x68] sm:$0x33]  ;;  %v5126_v42 = vmax.bf16 %v9989_v35, %v5108_v39  ;;  %v9663_v55 = vld [vmem:[%s11249_s25 + $0x438] sm:$0xff]   ;;  %v9665_v5 = vld [vmem:[%s11249_s25 + $0x470] sm:$0xff]  }
 0x1b5   : > { %v5138_v44 = vmax.bf16 %v9989_v35, %v5120_v41  ;;  %v9664_v2 = vld [vmem:[%s11249_s25 + $0x4b8] sm:$0xff]   ;;  %v9666_v6 = vld [vmem:[%s11249_s25 + $0x4f0] sm:$0xff]   ;;  %v9669_v9 = vld [vmem:[%s11249_s25 + $0x468] sm:$0xff]  }
 0x1b6   : > { %9164 = vmatpush3.bf16.msra.mxu0 %v9643_v14  ;;  %v8615_v46 = vcombine.high %v5125_v36, %v11295_v37  ;;  %v8627_v47 = vcombine.high %v5137_v38, %v5137_v38  ;;  %v8614_v48 = vcombine.low %v5125_v36, %v11295_v37  ;;  %v8626_v49 = vcombine.low %v5137_v38, %v5137_v38  ;;  %v9667_v7 = vld [vmem:[%s11249_s25 + $0x430] sm:$0xff]   ;;  %v9670_v10 = vld [vmem:[%s11249_s25 + $0x4e8] sm:$0xff]   ;;  %v9673_v13 = vld [vmem:[%s11249_s25 + $0x460] sm:$0xff]  }
 0x1b7   : > { %9186 = vmatpush3.bf16.msra.mxu1 %v9644_v15  ;;  %9165 = vmatprep.subr.bf16.mxu0 %v9645_v16  ;;  %v8617_v51 = vcombine.high %v5126_v42, %v11303_v43  ;;  %v8629_v52 = vcombine.high %v5138_v44, %v5138_v44  ;;  %v8616_v53 = vcombine.low %v5126_v42, %v11303_v43  ;;  %v9668_v8 = vld [vmem:[%s11249_s25 + $0x4b0] sm:$0xff]   ;;  %v9671_v11 = vld [vmem:[%s11249_s25 + $0x428] sm:$0xff]   ;;  %v9674_v14 = vld [vmem:[%s11249_s25 + $0x4e0] sm:$0xff]  }
 0x1b8   : > { %9187 = vmatprep.subr.bf16.mxu1 %v9646_v17  ;;  %v8628_v54 = vcombine.low %v5138_v44, %v5138_v44  ;;  %v5418_v56 = vrot.slane %v8615_v46, 2  ;;  %v5419_v57 = vrot.slane %v8627_v47, 2  ;;  %v5415_v58 = vrot.slane %v8614_v48, 2  ;;  %v9672_v12 = vld [vmem:[%s11249_s25 + $0x4a8] sm:$0xff]   ;;  %v9675_v15 = vld [vmem:[%s11249_s25 + $0x420] sm:$0xff]   ;;  %v9677_v17 = vld [vmem:[%s11249_s25 + $0x458] sm:$0xff]  }
 0x1b9   : > { %v5416_v59 = vrot.slane %v8626_v49, 2  ;;  %v5424_v60 = vrot.slane %v8617_v51, 2  ;;  %v5425_v61 = vrot.slane %v8629_v52, 2  ;;  %v5421_v62 = vrot.slane %v8616_v53, 2  ;;  %v9676_v16 = vld [vmem:[%s11249_s25 + $0x4a0] sm:$0xff]   ;;  %v5116_v41 = vld [vmem:[%s11286_s5 + $0x48] sm:$0xff] }
 0x1ba   : > { %9166 = vmatpush3.bf16.msra.mxu0 %v9647_v18  ;;  %v5422_v63 = vrot.slane %v8628_v54, 2  ;;  %v5420_v0 = vsel %vm5414_vm0, %v5418_v56, %v5419_v57  ;;  %v9678_v18 = vld [vmem:[%s11249_s25 + $0x4d8] sm:$0xff]   ;;  %v9692_v32 = vld [vmem:[%s11249_s25 + $0x480] sm:$0xff]   ;;  %v5109_v33 = vld [vmem:[%s11286_s5 + $0x10] sm:$0xcc]  ;;  %v11359_v46 = vmax.bf16 %v9989_v35, %v5116_v41 }
 0x1bb   : > { %9188 = vmatpush3.bf16.msra.mxu1 %v9648_v19  ;;  %9167 = vmatprep.subr.bf16.mxu0 %v9649_v20  ;;  %v5417_v1 = vsel %vm5414_vm0, %v5415_v58, %v5416_v59  ;;  %v5426_v3 = vsel %vm5414_vm0, %v5424_v60, %v5425_v61  ;;  %v9679_v19 = vld [vmem:[%s11249_s25 + $0x418] sm:$0xff]   ;;  %v5115_v34 = vld [vmem:[%s11286_s5 + $0x40] sm:$0xff]  ;;  %v5121_v36 = vld [vmem:[%s11286_s5 + $0x70] sm:$0x33]  ;;  %v5127_v38 = vmax.bf16 %v9989_v35, %v5109_v33 }
 0x1bc   : > { %9189 = vmatprep.subr.bf16.mxu1 %v9650_v21  ;;  %6071 = vmatprep.mubr.bf16.mxu0 %v5420_v0  ;;  %v5423_v4 = vsel %vm5414_vm0, %v5421_v62, %v5422_v63  ;;  %v9680_v20 = vld [vmem:[%s11249_s25 + $0x498] sm:$0xff]   ;;  %v9681_v21 = vld [vmem:[%s11249_s25 + $0x450] sm:$0xff]   ;;  %v11351_v39 = vmax.bf16 %v9989_v35, %v5115_v34  ;;  %v5139_v42 = vmax.bf16 %v9989_v35, %v5121_v36  ;;  %v9722_v33 = vld [vmem:[%s11249_s25 + $0x5c0] sm:$0xff]  }
 0x1bd   : > { %6112 = vmatprep.mubr.bf16.mxu1 %v5426_v3  ;;  %v5110_v40 = vld [vmem:[%s11286_s5 + $0x18] sm:$0xcc]  ;;  %v5122_v44 = vld [vmem:[%s11286_s5 + $0x78] sm:$0x33]  ;;  %v9723_v34 = vld [vmem:[%s11249_s25 + $0x500] sm:$0xff]  }
 0x1be   : > { %9168 = vmatpush3.bf16.msra.mxu0 %v9651_v22  ;;  %v9682_v22 = vld [vmem:[%s11249_s25 + $0x4d0] sm:$0xff]   ;;  %v8619_v47 = vcombine.high %v5127_v38, %v11351_v39  ;;  %v5140_v48 = vmax.bf16 %v9989_v35, %v5122_v44  ;;  %v8618_v49 = vcombine.low %v5127_v38, %v11351_v39  ;;  %v8631_v51 = vcombine.high %v5139_v42, %v5139_v42  ;;  %v9695_v60 = vld [vmem:[%s11249_s25 + $0x538] sm:$0xff]   ;;  %v9724_v36 = vld [vmem:[%s11249_s25 + $0x580] sm:$0xff]  }
 0x1bf   : > { %9190 = vmatpush3.bf16.msra.mxu1 %v9652_v23  ;;  %9169 = vmatprep.subr.bf16.mxu0 %v9653_v24  ;;  %v9683_v23 = vld [vmem:[%s11249_s25 + $0x410] sm:$0xff]   ;;  %v8630_v53 = vcombine.low %v5139_v42, %v5139_v42  ;;  %v5111_v38 = vld [vmem:[%s11286_s5 + $0x20] sm:$0xcc]  ;;  %v5123_v41 = vld [vmem:[%s11286_s5 + $0x80] sm:$0x33] }
 0x1c0   : > { %9191 = vmatprep.subr.bf16.mxu1 %v9654_v25  ;;  %v9684_v24 = vld [vmem:[%s11249_s25 + $0x490] sm:$0xff]   ;;  %v9685_v25 = vld [vmem:[%s11249_s25 + $0x448] sm:$0xff]   ;;  %v5430_v56 = vrot.slane %v8619_v47, 2  ;;  %v8633_v57 = vcombine.high %v5140_v48, %v5140_v48  ;;  %v5427_v58 = vrot.slane %v8618_v49, 2  ;;  %v8632_v59 = vcombine.low %v5140_v48, %v5140_v48  ;;  %v5118_v47 = vld [vmem:[%s11286_s5 + $0x58] sm:$0xff] }
 0x1c1   : > { %v5431_v61 = vrot.slane %v8631_v51, 2  ;;  %v5428_v63 = vrot.slane %v8630_v53, 2  ;;  %v5129_v42 = vmax.bf16 %v9989_v35, %v5111_v38  ;;  %v5141_v48 = vmax.bf16 %v9989_v35, %v5123_v41  ;;  %v5124_v49 = vld [vmem:[%s11286_s5 + $0x88] sm:$0x33]  ;;  %v9754_v41 = vld [vmem:[%s11249_s25 + $0xc0] sm:$0xff]  }
 0x1c2   : > { %9170 = vmatpush3.bf16.msra.mxu0 %v9655_v26  ;;  %v9686_v26 = vld [vmem:[%s11249_s25 + $0x4c8] sm:$0xff]   ;;  %v5434_v3 = vrot.slane %v8632_v59, 2  ;;  %v11415_v51 = vmax.bf16 %v9989_v35, %v5118_v47  ;;  %v5142_v53 = vmax.bf16 %v9989_v35, %v5124_v49  ;;  %v4891_v47 = vld [vmem:[%s11286_s5] sm:$0xff] }
 0x1c3   : > { %9192 = vmatpush3.bf16.msra.mxu1 %v9656_v27  ;;  %9171 = vmatprep.subr.bf16.mxu0 %v9657_v28  ;;  %v9687_v27 = vld [vmem:[%s11249_s25 + $0x408] sm:$0xff]   ;;  %v4903_v49 = vmax.bf16 %v9989_v35, %v4891_v47 }
 0x1c4   : > { %9193 = vmatprep.subr.bf16.mxu1 %v9658_v29  ;;  %v9688_v28 = vld [vmem:[%s11249_s25 + $0x488] sm:$0xff]   ;;  %v9689_v29 = vld [vmem:[%s11249_s25 + $0x440] sm:$0xff]  }
 0x1c5   : > { %v9752_v38 = vld [vmem:[%s11249_s25 + $0x88] sm:$0xff]  }
 0x1c6   : > { %9172 = vmatpush3.bf16.msra.mxu0 %v9659_v30  ;;  %v9690_v30 = vld [vmem:[%s11249_s25 + $0x4c0] sm:$0xff]   ;;  %v9798_v47 = vld [vmem:[%s11249_s25 + $0x2e8] sm:$0xff]  }
 0x1c7   : > { %9194 = vmatpush3.bf16.msra.mxu1 %v9660_v31  ;;  %9201 = vmatprep.subr.bf16.mxu0 %v9661_v45  ;;  %v9691_v31 = vld [vmem:[%s11249_s25 + $0x400] sm:$0xff]   ;;  %v5128_v45 = vmax.bf16 %v9989_v35, %v5110_v40  ;;  %v5117_v40 = vld [vmem:[%s11286_s5 + $0x50] sm:$0xff] }
 0x1c8   : > { %9223 = vmatprep.subr.bf16.mxu1 %v9662_v50  ;;  %v9693_v50 = vld [vmem:[%s11249_s25 + $0x578] sm:$0xff]   ;;  %v11407_v44 = vmax.bf16 %v9989_v35, %v5117_v40  ;;  %v9753_v40 = vld [vmem:[%s11249_s25 + $0x40] sm:$0xff]  }
 0x1c9   : > { %6072 = vmatmul.mubr.bf16.vlgmr.msra.gmra.mxu0 %v5417_v1  ;;  %v8621_v52 = vcombine.high %v5128_v45, %v11359_v46  ;;  %v8620_v54 = vcombine.low %v5128_v45, %v11359_v46  ;;  %v9696_v1 = vld [vmem:[%s11249_s25 + $0x5b8] sm:$0xff]   ;;  %v5112_v45 = vld [vmem:[%s11286_s5 + $0x28] sm:$0xcc] }
 0x1ca   : > { %6113 = vmatmul.mubr.bf16.vlgmr.msra.gmra.mxu1 %v5423_v4  ;;  %9202 = vmatpush3.bf16.msra.mxu0 %v9663_v55  ;;  %v9694_v55 = vld [vmem:[%s11249_s25 + $0x5f8] sm:$0xff]   ;;  %v5432_v4 = vsel %vm5414_vm0, %v5430_v56, %v5431_v61  ;;  %v8635_v56 = vcombine.high %v5141_v48, %v5141_v48 }
 0x1cb   : > { %9224 = vmatpush3.bf16.msra.mxu1 %v9664_v2  ;;  %9203 = vmatprep.subr.bf16.mxu0 %v9665_v5  ;;  %v5436_v62 = vrot.slane %v8621_v52, 2  ;;  %v5433_v0 = vrot.slane %v8620_v54, 2  ;;  %v5437_v2 = vrot.slane %v8633_v57, 2  ;;  %v5429_v5 = vsel %vm5414_vm0, %v5427_v58, %v5428_v63 }
 0x1cc   : > { %9225 = vmatprep.subr.bf16.mxu1 %v9666_v6  ;;  %v9697_v6 = vld [vmem:[%s11249_s25 + $0x570] sm:$0xff]   ;;  %6153 = vmatprep.mubr.bf16.mxu0 %v5432_v4  ;;  %v8623_v52 = vcombine.high %v5129_v42, %v11407_v44  ;;  %v8622_v54 = vcombine.low %v5129_v42, %v11407_v44  ;;  %v8634_v58 = vcombine.low %v5141_v48, %v5141_v48  ;;  %v9755_v42 = vld [vmem:[%s11249_s25] sm:$0xff]   ;;  %v4892_v48 = vld [vmem:[%s11286_s5 + $0x8] sm:$0xff] }
 0x1ce   : > { %9204 = vmatpush3.bf16.msra.mxu0 %v9667_v7  ;;  %v5438_v7 = vsel %vm5414_vm0, %v5436_v62, %v5437_v2  ;;  %v5442_v61 = vrot.slane %v8623_v52, 2  ;;  %v8637_v62 = vcombine.high %v5142_v53, %v5142_v53  ;;  %v5439_v63 = vrot.slane %v8622_v54, 2  ;;  %v9757_v52 = vld [vmem:[%s11249_s25 + $0x178] sm:$0xff]  }
 0x1cf   : > { %9226 = vmatpush3.bf16.msra.mxu1 %v9668_v8  ;;  %9205 = vmatprep.subr.bf16.mxu0 %v9669_v9  ;;  %v5435_v8 = vsel %vm5414_vm0, %v5433_v0, %v5434_v3  ;;  %v9698_v9 = vld [vmem:[%s11249_s25 + $0x5f0] sm:$0xff]   ;;  %v8636_v0 = vcombine.low %v5142_v53, %v5142_v53  ;;  %v5443_v2 = vrot.slane %v8635_v56, 2  ;;  %v5440_v4 = vrot.slane %v8634_v58, 2  ;;  %v9758_v53 = vld [vmem:[%s11249_s25 + $0x1f8] sm:$0xff]  }
 0x1d0   : > { %9227 = vmatprep.subr.bf16.mxu1 %v9670_v10  ;;  %6194 = vmatprep.mubr.bf16.mxu1 %v5438_v7  ;;  %v9699_v10 = vld [vmem:[%s11249_s25 + $0x530] sm:$0xff]   ;;  %v5449_v7 = vrot.slane %v8637_v62, 2  ;;  %v8735_v54 = vcombine.high %v4903_v49, %v11295_v37  ;;  %v8734_v56 = vcombine.low %v4903_v49, %v11295_v37  ;;  %v9800_v49 = vld [vmem:[%s11249_s25 + $0x2a8] sm:$0xff]  }
 0x1d1   : > { %v9763_v62 = vld [vmem:[%s11249_s25 + $0x130] sm:$0xff]  }
 0x1d2   : > { %9206 = vmatpush3.bf16.msra.mxu0 %v9671_v11  ;;  %v9700_v11 = vld [vmem:[%s11249_s25 + $0x5b0] sm:$0xff]  }
 0x1d3   : > { %9228 = vmatpush3.bf16.msra.mxu1 %v9672_v12  ;;  %9207 = vmatprep.subr.bf16.mxu0 %v9673_v13  ;;  %v9701_v12 = vld [vmem:[%s11249_s25 + $0x568] sm:$0xff]  }
 0x1d4   : > { %9229 = vmatprep.subr.bf16.mxu1 %v9674_v14  ;;  %v9702_v13 = vld [vmem:[%s11249_s25 + $0x5e8] sm:$0xff]  }
 0x1d5   : > { %v9703_v14 = vld [vmem:[%s11249_s25 + $0x528] sm:$0xff]  }
 0x1d6   : > { %9208 = vmatpush3.bf16.msra.mxu0 %v9675_v15  ;;  %v9704_v15 = vld [vmem:[%s11249_s25 + $0x5a8] sm:$0xff]  }
 0x1d7   : > { %9230 = vmatpush3.bf16.msra.mxu1 %v9676_v16  ;;  %9209 = vmatprep.subr.bf16.mxu0 %v9677_v17  ;;  %v9705_v16 = vld [vmem:[%s11249_s25 + $0x560] sm:$0xff]  }
 0x1d8   : > { %9231 = vmatprep.subr.bf16.mxu1 %v9678_v18  ;;  %v9706_v17 = vld [vmem:[%s11249_s25 + $0x5e0] sm:$0xff]  }
 0x1d9   : > { %v9707_v18 = vld [vmem:[%s11249_s25 + $0x520] sm:$0xff]  }
 0x1da   : > { %9210 = vmatpush3.bf16.msra.mxu0 %v9679_v19  ;;  %v9708_v19 = vld [vmem:[%s11249_s25 + $0x5a0] sm:$0xff]  }
 0x1db   : > { %9232 = vmatpush3.bf16.msra.mxu1 %v9680_v20  ;;  %9211 = vmatprep.subr.bf16.mxu0 %v9681_v21  ;;  %v9709_v20 = vld [vmem:[%s11249_s25 + $0x558] sm:$0xff]  }
 0x1dc   : > { %9233 = vmatprep.subr.bf16.mxu1 %v9682_v22  ;;  %v9710_v21 = vld [vmem:[%s11249_s25 + $0x5d8] sm:$0xff]  }
 0x1dd   : > { %v9711_v22 = vld [vmem:[%s11249_s25 + $0x518] sm:$0xff]  }
 0x1de   : > { %9212 = vmatpush3.bf16.msra.mxu0 %v9683_v23  ;;  %v9712_v23 = vld [vmem:[%s11249_s25 + $0x598] sm:$0xff]  }
 0x1df   : > { %9234 = vmatpush3.bf16.msra.mxu1 %v9684_v24  ;;  %9213 = vmatprep.subr.bf16.mxu0 %v9685_v25  ;;  %v9713_v24 = vld [vmem:[%s11249_s25 + $0x550] sm:$0xff]  }
 0x1e0   : > { %9235 = vmatprep.subr.bf16.mxu1 %v9686_v26  ;;  %v9714_v25 = vld [vmem:[%s11249_s25 + $0x5d0] sm:$0xff]  }
 0x1e1   : > { %v9715_v26 = vld [vmem:[%s11249_s25 + $0x510] sm:$0xff]  }
 0x1e2   : > { %9214 = vmatpush3.bf16.msra.mxu0 %v9687_v27  ;;  %v9716_v27 = vld [vmem:[%s11249_s25 + $0x590] sm:$0xff]  }
 0x1e3   : > { %9236 = vmatpush3.bf16.msra.mxu1 %v9688_v28  ;;  %9215 = vmatprep.subr.bf16.mxu0 %v9689_v29  ;;  %v9717_v28 = vld [vmem:[%s11249_s25 + $0x548] sm:$0xff]  }
 0x1e4   : > { %9237 = vmatprep.subr.bf16.mxu1 %v9690_v30  ;;  %v9718_v29 = vld [vmem:[%s11249_s25 + $0x5c8] sm:$0xff]  }
 0x1e5   : > { %v9719_v30 = vld [vmem:[%s11249_s25 + $0x508] sm:$0xff]  }
 0x1e6   : > { %9216 = vmatpush3.bf16.msra.mxu0 %v9691_v31  ;;  %v9720_v31 = vld [vmem:[%s11249_s25 + $0x588] sm:$0xff]  }
 0x1e7   : > { %9238 = vmatpush3.bf16.msra.mxu1 %v9692_v32  ;;  %9245 = vmatprep.subr.bf16.mxu0 %v9693_v50  ;;  %v9721_v32 = vld [vmem:[%s11249_s25 + $0x540] sm:$0xff]   ;;  %v5130_v50 = vmax.bf16 %v9989_v35, %v5112_v45 }
 0x1e8   : > { %9267 = vmatprep.subr.bf16.mxu1 %v9694_v55  ;;  %v9725_v55 = vld [vmem:[%s11249_s25 + $0x78] sm:$0xff]   ;;  %v9756_v45 = vld [vmem:[%s11249_s25 + $0x80] sm:$0xff]  }
 0x1e9   : > { %6154 = vmatmul.mubr.bf16.vlgmr.msra.gmra.mxu0 %v5429_v5  ;;  %v8625_v57 = vcombine.high %v5130_v50, %v11415_v51  ;;  %v8624_v59 = vcombine.low %v5130_v50, %v11415_v51  ;;  %v4904_v50 = vmax.bf16 %v9989_v35, %v4892_v48  ;;  %v9799_v48 = vld [vmem:[%s11249_s25 + $0x228] sm:$0xff]  }
 0x1ea   : > { %6195 = vmatmul.mubr.bf16.vlgmr.msra.gmra.mxu1 %v5435_v8  ;;  %9246 = vmatpush3.bf16.msra.mxu0 %v9695_v60  ;;  %v9726_v60 = vld [vmem:[%s11249_s25 + $0xf8] sm:$0xff]   ;;  %v5446_v8 = vrot.slane %v8636_v0, 2  ;;  %v9765_v0 = vld [vmem:[%s11249_s25 + $0x168] sm:$0xff]  }
 0x1eb   : > { %9268 = vmatpush3.bf16.msra.mxu1 %v9696_v1  ;;  %9247 = vmatprep.subr.bf16.mxu0 %v9697_v6  ;;  %v9727_v1 = vld [vmem:[%s11249_s25 + $0x38] sm:$0xff]   ;;  %v5448_v3 = vrot.slane %v8625_v57, 2  ;;  %v5445_v5 = vrot.slane %v8624_v59, 2  ;;  %v8736_v58 = vcombine.low %v4904_v50, %v11303_v43 }
 0x1ec   : > { %9269 = vmatprep.subr.bf16.mxu1 %v9698_v9  ;;  %v9728_v6 = vld [vmem:[%s11249_s25 + $0xb8] sm:$0xff]   ;;  %v5444_v9 = vsel %vm5414_vm0, %v5442_v61, %v5443_v2  ;;  %v9762_v61 = vld [vmem:[%s11249_s25 + $0x1f0] sm:$0xff]   ;;  %v9767_v2 = vld [vmem:[%s11249_s25 + $0x128] sm:$0xff]  }
 0x1ed   : > { %6235 = vmatprep.mubr.bf16.mxu0 %v5444_v9  ;;  %v9759_v57 = vld [vmem:[%s11249_s25 + $0x138] sm:$0xff]  }
 0x1ee   : > { %9248 = vmatpush3.bf16.msra.mxu0 %v9699_v10  ;;  %v5441_v10 = vsel %vm5414_vm0, %v5439_v63, %v5440_v4  ;;  %v9760_v59 = vld [vmem:[%s11249_s25 + $0x1b8] sm:$0xff]   ;;  %v9764_v63 = vld [vmem:[%s11249_s25 + $0x1b0] sm:$0xff]   ;;  %v9769_v4 = vld [vmem:[%s11249_s25 + $0x160] sm:$0xff]  }
 0x1ef   : > { %9270 = vmatpush3.bf16.msra.mxu1 %v9700_v11  ;;  %9249 = vmatprep.subr.bf16.mxu0 %v9701_v12  ;;  %v9729_v11 = vld [vmem:[%s11249_s25 + $0x70] sm:$0xff]   ;;  %v5450_v12 = vsel %vm5414_vm0, %v5448_v3, %v5449_v7  ;;  %v9768_v3 = vld [vmem:[%s11249_s25 + $0x1a8] sm:$0xff]   ;;  %v9772_v7 = vld [vmem:[%s11249_s25 + $0x1a0] sm:$0xff]  }
 0x1f0   : > { %9271 = vmatprep.subr.bf16.mxu1 %v9702_v13  ;;  %v5447_v13 = vsel %vm5414_vm0, %v5445_v5, %v5446_v8  ;;  %6276 = vmatprep.mubr.bf16.mxu1 %v5450_v12  ;;  %v9770_v5 = vld [vmem:[%s11249_s25 + $0x1e0] sm:$0xff]   ;;  %v9773_v8 = vld [vmem:[%s11249_s25 + $0x158] sm:$0xff]   ;;  %v9777_v12 = vld [vmem:[%s11249_s25 + $0x150] sm:$0xff]  }
 0x1f1   : > { %v9774_v9 = vld [vmem:[%s11249_s25 + $0x1d8] sm:$0xff]  }
 0x1f2   : > { %9250 = vmatpush3.bf16.msra.mxu0 %v9703_v14  ;;  %v9730_v14 = vld [vmem:[%s11249_s25 + $0xf0] sm:$0xff]  }
 0x1f3   : > { %9272 = vmatpush3.bf16.msra.mxu1 %v9704_v15  ;;  %9251 = vmatprep.subr.bf16.mxu0 %v9705_v16  ;;  %v9731_v15 = vld [vmem:[%s11249_s25 + $0x30] sm:$0xff]  }
 0x1f4   : > { %9273 = vmatprep.subr.bf16.mxu1 %v9706_v17  ;;  %v9732_v16 = vld [vmem:[%s11249_s25 + $0xb0] sm:$0xff]   ;;  %v9733_v17 = vld [vmem:[%s11249_s25 + $0x68] sm:$0xff]  }
 0x1f6   : > { %9252 = vmatpush3.bf16.msra.mxu0 %v9707_v18  ;;  %v9734_v18 = vld [vmem:[%s11249_s25 + $0xe8] sm:$0xff]  }
 0x1f7   : > { %9274 = vmatpush3.bf16.msra.mxu1 %v9708_v19  ;;  %9253 = vmatprep.subr.bf16.mxu0 %v9709_v20  ;;  %v9735_v19 = vld [vmem:[%s11249_s25 + $0x28] sm:$0xff]  }
 0x1f8   : > { %9275 = vmatprep.subr.bf16.mxu1 %v9710_v21  ;;  %v9736_v20 = vld [vmem:[%s11249_s25 + $0xa8] sm:$0xff]   ;;  %v9737_v21 = vld [vmem:[%s11249_s25 + $0x60] sm:$0xff]  }
 0x1fa   : > { %9254 = vmatpush3.bf16.msra.mxu0 %v9711_v22  ;;  %v9738_v22 = vld [vmem:[%s11249_s25 + $0xe0] sm:$0xff]  }
 0x1fb   : > { %9276 = vmatpush3.bf16.msra.mxu1 %v9712_v23  ;;  %9255 = vmatprep.subr.bf16.mxu0 %v9713_v24  ;;  %v9739_v23 = vld [vmem:[%s11249_s25 + $0x20] sm:$0xff]  }
 0x1fc   : > { %9277 = vmatprep.subr.bf16.mxu1 %v9714_v25  ;;  %v9740_v24 = vld [vmem:[%s11249_s25 + $0xa0] sm:$0xff]   ;;  %v9741_v25 = vld [vmem:[%s11249_s25 + $0x58] sm:$0xff]  }
 0x1fe   : > { %9256 = vmatpush3.bf16.msra.mxu0 %v9715_v26  ;;  %v9742_v26 = vld [vmem:[%s11249_s25 + $0xd8] sm:$0xff]  }
 0x1ff   : > { %9278 = vmatpush3.bf16.msra.mxu1 %v9716_v27  ;;  %9257 = vmatprep.subr.bf16.mxu0 %v9717_v28  ;;  %v9743_v27 = vld [vmem:[%s11249_s25 + $0x18] sm:$0xff]  }
 0x200   : > { %9279 = vmatprep.subr.bf16.mxu1 %v9718_v29  ;;  %v9744_v28 = vld [vmem:[%s11249_s25 + $0x98] sm:$0xff]   ;;  %v9745_v29 = vld [vmem:[%s11249_s25 + $0x50] sm:$0xff]  }
 0x202   : > { %9258 = vmatpush3.bf16.msra.mxu0 %v9719_v30  ;;  %v9746_v30 = vld [vmem:[%s11249_s25 + $0xd0] sm:$0xff]  }
 0x203   : > { %9280 = vmatpush3.bf16.msra.mxu1 %v9720_v31  ;;  %9259 = vmatprep.subr.bf16.mxu0 %v9721_v32  ;;  %v9747_v31 = vld [vmem:[%s11249_s25 + $0x10] sm:$0xff]  }
 0x204   : > { %9281 = vmatprep.subr.bf16.mxu1 %v9722_v33  ;;  %v9748_v32 = vld [vmem:[%s11249_s25 + $0x90] sm:$0xff]   ;;  %v9749_v33 = vld [vmem:[%s11249_s25 + $0x48] sm:$0xff]  }
 0x206   : > { %9260 = vmatpush3.bf16.msra.mxu0 %v9723_v34  ;;  %v9750_v34 = vld [vmem:[%s11249_s25 + $0xc8] sm:$0xff]  }
 0x207   : > { %9282 = vmatpush3.bf16.msra.mxu1 %v9724_v36  ;;  %9289 = vmatprep.subr.bf16.mxu0 %v9725_v55  ;;  %v9751_v36 = vld [vmem:[%s11249_s25 + $0x8] sm:$0xff]   ;;  %v8737_v55 = vcombine.high %v4904_v50, %v11303_v43  ;;  %v9801_v50 = vld [vmem:[%s11249_s25 + $0x260] sm:$0xff]  }
 0x208   : > { %9311 = vmatprep.subr.bf16.mxu1 %v9726_v60  ;;  %v9761_v60 = vld [vmem:[%s11249_s25 + $0x170] sm:$0xff]  }
 0x209   : > { %6236 = vmatmul.mubr.bf16.vlgmr.msra.gmra.mxu0 %v5441_v10  ;;  %v9775_v10 = vld [vmem:[%s11249_s25 + $0x118] sm:$0xff]  }
 0x20a   : > { %6277 = vmatmul.mubr.bf16.vlgmr.msra.gmra.mxu1 %v5447_v13  ;;  %9290 = vmatpush3.bf16.msra.mxu0 %v9727_v1  ;;  %v9766_v1 = vld [vmem:[%s11249_s25 + $0x1e8] sm:$0xff]   ;;  %v9778_v13 = vld [vmem:[%s11249_s25 + $0x1d0] sm:$0xff]  }
 0x20b   : > { %9312 = vmatpush3.bf16.msra.mxu1 %v9728_v6  ;;  %9291 = vmatprep.subr.bf16.mxu0 %v9729_v11  ;;  %v9771_v6 = vld [vmem:[%s11249_s25 + $0x120] sm:$0xff]   ;;  %v9776_v11 = vld [vmem:[%s11249_s25 + $0x198] sm:$0xff]  }
 0x20c   : > { %9313 = vmatprep.subr.bf16.mxu1 %v9730_v14  ;;  %6953 = vmatprep.mubr.bf16.mxu0 %v8735_v54  ;;  %v9779_v14 = vld [vmem:[%s11249_s25 + $0x110] sm:$0xff]   ;;  %v9804_v54 = vld [vmem:[%s11249_s25 + $0x2a0] sm:$0xff]  }
 0x20d   : > { %6994 = vmatprep.mubr.bf16.mxu1 %v8737_v55  ;;  %v9805_v55 = vld [vmem:[%s11249_s25 + $0x258] sm:$0xff]  }
 0x20e   : > { %9292 = vmatpush3.bf16.msra.mxu0 %v9731_v15  ;;  %v9780_v15 = vld [vmem:[%s11249_s25 + $0x190] sm:$0xff]  }
 0x20f   : > { %9314 = vmatpush3.bf16.msra.mxu1 %v9732_v16  ;;  %9293 = vmatprep.subr.bf16.mxu0 %v9733_v17  ;;  %v9781_v16 = vld [vmem:[%s11249_s25 + $0x148] sm:$0xff]  }
 0x210   : > { %9315 = vmatprep.subr.bf16.mxu1 %v9734_v18  ;;  %v9782_v17 = vld [vmem:[%s11249_s25 + $0x1c8] sm:$0xff]  }
 0x211   : > { %v9783_v18 = vld [vmem:[%s11249_s25 + $0x108] sm:$0xff]  }
 0x212   : > { %9294 = vmatpush3.bf16.msra.mxu0 %v9735_v19  ;;  %v9784_v19 = vld [vmem:[%s11249_s25 + $0x188] sm:$0xff]  }
 0x213   : > { %9316 = vmatpush3.bf16.msra.mxu1 %v9736_v20  ;;  %9295 = vmatprep.subr.bf16.mxu0 %v9737_v21  ;;  %v9785_v20 = vld [vmem:[%s11249_s25 + $0x140] sm:$0xff]  }
 0x214   : > { %9317 = vmatprep.subr.bf16.mxu1 %v9738_v22  ;;  %v9786_v21 = vld [vmem:[%s11249_s25 + $0x1c0] sm:$0xff]  }
 0x215   : > { %v9787_v22 = vld [vmem:[%s11249_s25 + $0x100] sm:$0xff]  }
 0x216   : > { %9296 = vmatpush3.bf16.msra.mxu0 %v9739_v23  ;;  %v9788_v23 = vld [vmem:[%s11249_s25 + $0x180] sm:$0xff]  }
 0x217   : > { %9318 = vmatpush3.bf16.msra.mxu1 %v9740_v24  ;;  %9297 = vmatprep.subr.bf16.mxu0 %v9741_v25  ;;  %v4893_v24 = vld [vmem:[%s11286_s5 + $0x10] sm:$0xff]  ;;  %v4894_v25 = vld [vmem:[%s11286_s5 + $0x18] sm:$0xff] }
 0x218   : > { %9319 = vmatprep.subr.bf16.mxu1 %v9742_v26  ;;  %v4905_v26 = vmax.bf16 %v9989_v35, %v4893_v24  ;;  %v9830_v24 = vld [vmem:[%s11249_s25 + $0x6e8] sm:$0xff]  }
 0x21a   : > { %9298 = vmatpush3.bf16.msra.mxu0 %v9743_v27  ;;  %v4906_v27 = vmax.bf16 %v9989_v35, %v4894_v25  ;;  %v9831_v25 = vld [vmem:[%s11249_s25 + $0x628] sm:$0xff]  }
 0x21b   : > { %9320 = vmatpush3.bf16.msra.mxu1 %v9744_v28  ;;  %9299 = vmatprep.subr.bf16.mxu0 %v9745_v29  ;;  %v9789_v28 = vld [vmem:[%s11249_s25 + $0x278] sm:$0xff]  }
 0x21c   : > { %9321 = vmatprep.subr.bf16.mxu1 %v9746_v30  ;;  %v9790_v29 = vld [vmem:[%s11249_s25 + $0x2f8] sm:$0xff]   ;;  %v8739_v30 = vcombine.high %v4905_v26, %v11351_v39 }
 0x21e   : > { %9300 = vmatpush3.bf16.msra.mxu0 %v9747_v31  ;;  %v8741_v31 = vcombine.high %v4906_v27, %v11359_v46 }
 0x21f   : > { %9322 = vmatpush3.bf16.msra.mxu1 %v9748_v32  ;;  %9301 = vmatprep.subr.bf16.mxu0 %v9749_v33  ;;  %v8738_v32 = vcombine.low %v4905_v26, %v11351_v39  ;;  %v8740_v33 = vcombine.low %v4906_v27, %v11359_v46  ;;  %v9832_v26 = vld [vmem:[%s11249_s25 + $0x6a8] sm:$0xff]   ;;  %v9833_v27 = vld [vmem:[%s11249_s25 + $0x660] sm:$0xff]  }
 0x220   : > { %9323 = vmatprep.subr.bf16.mxu1 %v9750_v34  ;;  %v9791_v34 = vld [vmem:[%s11249_s25 + $0x238] sm:$0xff]  }
 0x222   : > { %9302 = vmatpush3.bf16.msra.mxu0 %v9751_v36  ;;  %v9792_v36 = vld [vmem:[%s11249_s25 + $0x2b8] sm:$0xff]  }
 0x223   : > { %9324 = vmatpush3.bf16.msra.mxu1 %v9752_v38  ;;  %9303 = vmatprep.subr.bf16.mxu0 %v9753_v40  ;;  %v9793_v38 = vld [vmem:[%s11249_s25 + $0x270] sm:$0xff]  }
 0x224   : > { %9325 = vmatprep.subr.bf16.mxu1 %v9754_v41  ;;  %v9794_v40 = vld [vmem:[%s11249_s25 + $0x2f0] sm:$0xff]  }
 0x225   : > { %v9795_v41 = vld [vmem:[%s11249_s25 + $0x230] sm:$0xff]  }
 0x226   : > { %9304 = vmatpush3.bf16.msra.mxu0 %v9755_v42  ;;  %v9796_v42 = vld [vmem:[%s11249_s25 + $0x2b0] sm:$0xff]  }
 0x227   : > { %9326 = vmatpush3.bf16.msra.mxu1 %v9756_v45  ;;  %9333 = vmatprep.subr.bf16.mxu0 %v9757_v52  ;;  %v9797_v45 = vld [vmem:[%s11249_s25 + $0x268] sm:$0xff]   ;;  %v9802_v52 = vld [vmem:[%s11249_s25 + $0x2e0] sm:$0xff]  }
 0x228   : > { %9355 = vmatprep.subr.bf16.mxu1 %v9758_v53  ;;  %v9803_v53 = vld [vmem:[%s11249_s25 + $0x220] sm:$0xff]  }
 0x229   : > { %6954 = vmatmul.mubr.bf16.vlgmr.msra.gmra.mxu0 %v8734_v56  ;;  %v9806_v56 = vld [vmem:[%s11249_s25 + $0x2d8] sm:$0xff]  }
 0x22a   : > { %6995 = vmatmul.mubr.bf16.vlgmr.msra.gmra.mxu1 %v8736_v58  ;;  %9334 = vmatpush3.bf16.msra.mxu0 %v9759_v57  ;;  %v9807_v57 = vld [vmem:[%s11249_s25 + $0x218] sm:$0xff]  }
 0x22b   : > { %9356 = vmatpush3.bf16.msra.mxu1 %v9760_v59  ;;  %9335 = vmatprep.subr.bf16.mxu0 %v9761_v60  ;;  %v9808_v58 = vld [vmem:[%s11249_s25 + $0x298] sm:$0xff]   ;;  %v9809_v59 = vld [vmem:[%s11249_s25 + $0x250] sm:$0xff]  }
 0x22c   : > { %9357 = vmatprep.subr.bf16.mxu1 %v9762_v61  ;;  %7035 = vmatprep.mubr.bf16.mxu0 %v8739_v30  ;;  %v9810_v60 = vld [vmem:[%s11249_s25 + $0x2d0] sm:$0xff]   ;;  %v9836_v30 = vld [vmem:[%s11249_s25 + $0x6a0] sm:$0xff]  }
 0x22d   : > { %7076 = vmatprep.mubr.bf16.mxu1 %v8741_v31  ;;  %v9811_v61 = vld [vmem:[%s11249_s25 + $0x210] sm:$0xff]   ;;  %v9837_v31 = vld [vmem:[%s11249_s25 + $0x658] sm:$0xff]  }
 0x22e   : > { %9336 = vmatpush3.bf16.msra.mxu0 %v9763_v62  ;;  %v9812_v62 = vld [vmem:[%s11249_s25 + $0x290] sm:$0xff]  }
 0x22f   : > { %9358 = vmatpush3.bf16.msra.mxu1 %v9764_v63  ;;  %9337 = vmatprep.subr.bf16.mxu0 %v9765_v0  ;;  %v9813_v63 = vld [vmem:[%s11249_s25 + $0x248] sm:$0xff]  }
 0x230   : > { %9359 = vmatprep.subr.bf16.mxu1 %v9766_v1  ;;  %v9814_v0 = vld [vmem:[%s11249_s25 + $0x2c8] sm:$0xff]  }
 0x231   : > { %v9815_v1 = vld [vmem:[%s11249_s25 + $0x208] sm:$0xff]  }
 0x232   : > { %9338 = vmatpush3.bf16.msra.mxu0 %v9767_v2  ;;  %v9816_v2 = vld [vmem:[%s11249_s25 + $0x288] sm:$0xff]  }
 0x233   : > { %9360 = vmatpush3.bf16.msra.mxu1 %v9768_v3  ;;  %9339 = vmatprep.subr.bf16.mxu0 %v9769_v4  ;;  %v9817_v3 = vld [vmem:[%s11249_s25 + $0x240] sm:$0xff]  }
 0x234   : > { %9361 = vmatprep.subr.bf16.mxu1 %v9770_v5  ;;  %v9818_v4 = vld [vmem:[%s11249_s25 + $0x2c0] sm:$0xff]  }
 0x235   : > { %v9819_v5 = vld [vmem:[%s11249_s25 + $0x200] sm:$0xff]  }
 0x236   : > { %9340 = vmatpush3.bf16.msra.mxu0 %v9771_v6  ;;  %v9820_v6 = vld [vmem:[%s11249_s25 + $0x280] sm:$0xff]  }
 0x237   : > { %9362 = vmatpush3.bf16.msra.mxu1 %v9772_v7  ;;  %9341 = vmatprep.subr.bf16.mxu0 %v9773_v8  ;;  %v4895_v7 = vld [vmem:[%s11286_s5 + $0x20] sm:$0xff] }
 0x238   : > { %9363 = vmatprep.subr.bf16.mxu1 %v9774_v9  ;;  %v4907_v8 = vmax.bf16 %v9989_v35, %v4895_v7  ;;  %v4896_v9 = vld [vmem:[%s11286_s5 + $0x28] sm:$0xff] }
 0x239   : > { %v9864_v7 = vld [vmem:[%s11249_s25 + $0x7a8] sm:$0xff]  }
 0x23a   : > { %9342 = vmatpush3.bf16.msra.mxu0 %v9775_v10  ;;  %v4908_v10 = vmax.bf16 %v9989_v35, %v4896_v9  ;;  %v9866_v9 = vld [vmem:[%s11249_s25 + $0x7e0] sm:$0xff]  }
 0x23b   : > { %9364 = vmatpush3.bf16.msra.mxu1 %v9776_v11  ;;  %9343 = vmatprep.subr.bf16.mxu0 %v9777_v12  ;;  %v9821_v11 = vld [vmem:[%s11249_s25 + $0x678] sm:$0xff]   ;;  %v8743_v12 = vcombine.high %v4907_v8, %v11407_v44 }
 0x23c   : > { %9365 = vmatprep.subr.bf16.mxu1 %v9778_v13  ;;  %v8742_v13 = vcombine.low %v4907_v8, %v11407_v44  ;;  %v9865_v8 = vld [vmem:[%s11249_s25 + $0x760] sm:$0xff]  }
 0x23e   : > { %9344 = vmatpush3.bf16.msra.mxu0 %v9779_v14  ;;  %v9822_v14 = vld [vmem:[%s11249_s25 + $0x6f8] sm:$0xff]  }
 0x23f   : > { %9366 = vmatpush3.bf16.msra.mxu1 %v9780_v15  ;;  %9345 = vmatprep.subr.bf16.mxu0 %v9781_v16  ;;  %v8745_v15 = vcombine.high %v4908_v10, %v11415_v51  ;;  %v8744_v16 = vcombine.low %v4908_v10, %v11415_v51  ;;  %v9867_v10 = vld [vmem:[%s11249_s25 + $0x720] sm:$0xff]  }
 0x240   : > { %9367 = vmatprep.subr.bf16.mxu1 %v9782_v17  ;;  %v9823_v17 = vld [vmem:[%s11249_s25 + $0x638] sm:$0xff]  }
 0x242   : > { %9346 = vmatpush3.bf16.msra.mxu0 %v9783_v18  ;;  %v9824_v18 = vld [vmem:[%s11249_s25 + $0x6b8] sm:$0xff]  }
 0x243   : > { %9368 = vmatpush3.bf16.msra.mxu1 %v9784_v19  ;;  %9347 = vmatprep.subr.bf16.mxu0 %v9785_v20  ;;  %v9825_v19 = vld [vmem:[%s11249_s25 + $0x670] sm:$0xff]  }
 0x244   : > { %9369 = vmatprep.subr.bf16.mxu1 %v9786_v21  ;;  %v9826_v20 = vld [vmem:[%s11249_s25 + $0x6f0] sm:$0xff]  }
 0x245   : > { %v9827_v21 = vld [vmem:[%s11249_s25 + $0x630] sm:$0xff]  }
 0x246   : > { %9348 = vmatpush3.bf16.msra.mxu0 %v9787_v22  ;;  %v9828_v22 = vld [vmem:[%s11249_s25 + $0x6b0] sm:$0xff]  }
 0x247   : > { %9370 = vmatpush3.bf16.msra.mxu1 %v9788_v23  ;;  %9377 = vmatprep.subr.bf16.mxu0 %v9789_v28  ;;  %v9829_v23 = vld [vmem:[%s11249_s25 + $0x668] sm:$0xff]   ;;  %v9834_v28 = vld [vmem:[%s11249_s25 + $0x6e0] sm:$0xff]  }
 0x248   : > { %9399 = vmatprep.subr.bf16.mxu1 %v9790_v29  ;;  %v9835_v29 = vld [vmem:[%s11249_s25 + $0x620] sm:$0xff]  }
 0x249   : > { %7036 = vmatmul.mubr.bf16.vlgmr.msra.gmra.mxu0 %v8738_v32  ;;  %v9838_v32 = vld [vmem:[%s11249_s25 + $0x6d8] sm:$0xff]  }
 0x24a   : > { %7077 = vmatmul.mubr.bf16.vlgmr.msra.gmra.mxu1 %v8740_v33  ;;  %9378 = vmatpush3.bf16.msra.mxu0 %v9791_v34  ;;  %v9839_v33 = vld [vmem:[%s11249_s25 + $0x618] sm:$0xff]  }
 0x24b   : > { %9400 = vmatpush3.bf16.msra.mxu1 %v9792_v36  ;;  %9379 = vmatprep.subr.bf16.mxu0 %v9793_v38  ;;  %v9840_v34 = vld [vmem:[%s11249_s25 + $0x698] sm:$0xff]   ;;  %v9841_v36 = vld [vmem:[%s11249_s25 + $0x650] sm:$0xff]  }
 0x24c   : > { %9401 = vmatprep.subr.bf16.mxu1 %v9794_v40  ;;  %7117 = vmatprep.mubr.bf16.mxu0 %v8743_v12  ;;  %v9842_v38 = vld [vmem:[%s11249_s25 + $0x6d0] sm:$0xff]   ;;  %v9869_v12 = vld [vmem:[%s11249_s25 + $0x758] sm:$0xff]  }
 0x24d   : > { %7158 = vmatprep.mubr.bf16.mxu1 %v8745_v15  ;;  %v9843_v40 = vld [vmem:[%s11249_s25 + $0x610] sm:$0xff]   ;;  %v9872_v15 = vld [vmem:[%s11249_s25 + $0x798] sm:$0xff]  }
 0x24e   : > { %9380 = vmatpush3.bf16.msra.mxu0 %v9795_v41  ;;  %v9844_v41 = vld [vmem:[%s11249_s25 + $0x690] sm:$0xff]  }
 0x24f   : > { %9402 = vmatpush3.bf16.msra.mxu1 %v9796_v42  ;;  %9381 = vmatprep.subr.bf16.mxu0 %v9797_v45  ;;  %v9845_v42 = vld [vmem:[%s11249_s25 + $0x648] sm:$0xff]  }
 0x250   : > { %9403 = vmatprep.subr.bf16.mxu1 %v9798_v47  ;;  %v9846_v45 = vld [vmem:[%s11249_s25 + $0x6c8] sm:$0xff]  }
 0x251   : > { %v9847_v47 = vld [vmem:[%s11249_s25 + $0x608] sm:$0xff]  }
 0x252   : > { %9382 = vmatpush3.bf16.msra.mxu0 %v9799_v48  ;;  %v9848_v48 = vld [vmem:[%s11249_s25 + $0x688] sm:$0xff]  }
 0x253   : > { %9404 = vmatpush3.bf16.msra.mxu1 %v9800_v49  ;;  %9383 = vmatprep.subr.bf16.mxu0 %v9801_v50  ;;  %v9849_v49 = vld [vmem:[%s11249_s25 + $0x640] sm:$0xff]  }
 0x254   : > { %9405 = vmatprep.subr.bf16.mxu1 %v9802_v52  ;;  %v9850_v50 = vld [vmem:[%s11249_s25 + $0x6c0] sm:$0xff]  }
 0x255   : > { %v9851_v52 = vld [vmem:[%s11249_s25 + $0x600] sm:$0xff]  }
 0x256   : > { %9384 = vmatpush3.bf16.msra.mxu0 %v9803_v53  ;;  %v9852_v53 = vld [vmem:[%s11249_s25 + $0x680] sm:$0xff]  }
 0x257   : > { %9406 = vmatpush3.bf16.msra.mxu1 %v9804_v54  ;;  %9385 = vmatprep.subr.bf16.mxu0 %v9805_v55  ;;  %v7167_v54 = vld [vmem:[%s11286_s5 + $0x60] sm:$0xff]  ;;  %v7168_v55 = vld [vmem:[%s11286_s5 + $0x68] sm:$0xff] }
 0x258   : > { %9407 = vmatprep.subr.bf16.mxu1 %v9806_v56  ;;  %v7173_v56 = vmax.bf16 %v9989_v35, %v7167_v54  ;;  %v9898_v54 = vld [vmem:[%s11249_s25 + $0x8e0] sm:$0xff]  }
 0x25a   : > { %9386 = vmatpush3.bf16.msra.mxu0 %v9807_v57  ;;  %v7174_v57 = vmax.bf16 %v9989_v35, %v7168_v55  ;;  %v9899_v55 = vld [vmem:[%s11249_s25 + $0x820] sm:$0xff]  }
 0x25b   : > { %9408 = vmatpush3.bf16.msra.mxu1 %v9808_v58  ;;  %9387 = vmatprep.subr.bf16.mxu0 %v9809_v59  ;;  %v9853_v58 = vld [vmem:[%s11249_s25 + $0x778] sm:$0xff]  }
 0x25c   : > { %9409 = vmatprep.subr.bf16.mxu1 %v9810_v60  ;;  %v9854_v59 = vld [vmem:[%s11249_s25 + $0x7f8] sm:$0xff]   ;;  %v9035_v60 = vcombine.high %v11295_v37, %v7173_v56 }
 0x25e   : > { %9388 = vmatpush3.bf16.msra.mxu0 %v9811_v61  ;;  %v9037_v61 = vcombine.high %v11303_v43, %v7174_v57 }
 0x25f   : > { %9410 = vmatpush3.bf16.msra.mxu1 %v9812_v62  ;;  %9389 = vmatprep.subr.bf16.mxu0 %v9813_v63  ;;  %v9034_v62 = vcombine.low %v11295_v37, %v7173_v56  ;;  %v9036_v63 = vcombine.low %v11303_v43, %v7174_v57  ;;  %v9859_v37 = vld [vmem:[%s11249_s25 + $0x730] sm:$0xff]   ;;  %v9900_v56 = vld [vmem:[%s11249_s25 + $0x8a0] sm:$0xff]   ;;  %v9901_v57 = vld [vmem:[%s11249_s25 + $0x858] sm:$0xff]  }
 0x260   : > { %9411 = vmatprep.subr.bf16.mxu1 %v9814_v0  ;;  %v9855_v0 = vld [vmem:[%s11249_s25 + $0x738] sm:$0xff]   ;;  %v9860_v43 = vld [vmem:[%s11249_s25 + $0x7b0] sm:$0xff]  }
 0x262   : > { %9390 = vmatpush3.bf16.msra.mxu0 %v9815_v1  ;;  %v9856_v1 = vld [vmem:[%s11249_s25 + $0x7b8] sm:$0xff]  }
 0x263   : > { %9412 = vmatpush3.bf16.msra.mxu1 %v9816_v2  ;;  %9391 = vmatprep.subr.bf16.mxu0 %v9817_v3  ;;  %v9857_v2 = vld [vmem:[%s11249_s25 + $0x770] sm:$0xff]  }
 0x264   : > { %9413 = vmatprep.subr.bf16.mxu1 %v9818_v4  ;;  %v9858_v3 = vld [vmem:[%s11249_s25 + $0x7f0] sm:$0xff]   ;;  %v9861_v4 = vld [vmem:[%s11249_s25 + $0x768] sm:$0xff]  }
 0x266   : > { %9392 = vmatpush3.bf16.msra.mxu0 %v9819_v5  ;;  %v9862_v5 = vld [vmem:[%s11249_s25 + $0x7e8] sm:$0xff]  }
 0x267   : > { %9414 = vmatpush3.bf16.msra.mxu1 %v9820_v6  ;;  %9421 = vmatprep.subr.bf16.mxu0 %v9821_v11  ;;  %v9863_v6 = vld [vmem:[%s11249_s25 + $0x728] sm:$0xff]   ;;  %v9868_v11 = vld [vmem:[%s11249_s25 + $0x7a0] sm:$0xff]  }
 0x268   : > { %9443 = vmatprep.subr.bf16.mxu1 %v9822_v14  ;;  %v9871_v14 = vld [vmem:[%s11249_s25 + $0x718] sm:$0xff]  }
 0x269   : > { %7118 = vmatmul.mubr.bf16.vlgmr.msra.gmra.mxu0 %v8742_v13  ;;  %v9870_v13 = vld [vmem:[%s11249_s25 + $0x7d8] sm:$0xff]  }
 0x26a   : > { %7159 = vmatmul.mubr.bf16.vlgmr.msra.gmra.mxu1 %v8744_v16  ;;  %9422 = vmatpush3.bf16.msra.mxu0 %v9823_v17  ;;  %v9873_v16 = vld [vmem:[%s11249_s25 + $0x750] sm:$0xff]  }
 0x26b   : > { %9444 = vmatpush3.bf16.msra.mxu1 %v9824_v18  ;;  %9423 = vmatprep.subr.bf16.mxu0 %v9825_v19  ;;  %v9874_v17 = vld [vmem:[%s11249_s25 + $0x7d0] sm:$0xff]  }
 0x26c   : > { %9445 = vmatprep.subr.bf16.mxu1 %v9826_v20  ;;  %8022 = vmatprep.mubr.bf16.mxu0 %v9035_v60  ;;  %v9875_v18 = vld [vmem:[%s11249_s25 + $0x710] sm:$0xff]   ;;  %v9877_v20 = vld [vmem:[%s11249_s25 + $0x748] sm:$0xff]   ;;  %v9904_v60 = vld [vmem:[%s11249_s25 + $0x898] sm:$0xff]  }
 0x26d   : > { %8063 = vmatprep.mubr.bf16.mxu1 %v9037_v61  ;;  %v9876_v19 = vld [vmem:[%s11249_s25 + $0x790] sm:$0xff]  }
 0x26e   : > { %9424 = vmatpush3.bf16.msra.mxu0 %v9827_v21  ;;  %v9878_v21 = vld [vmem:[%s11249_s25 + $0x7c8] sm:$0xff]   ;;  %v9905_v61 = vld [vmem:[%s11249_s25 + $0x850] sm:$0xff]  }
 0x26f   : > { %9446 = vmatpush3.bf16.msra.mxu1 %v9828_v22  ;;  %9425 = vmatprep.subr.bf16.mxu0 %v9829_v23  ;;  %v9879_v22 = vld [vmem:[%s11249_s25 + $0x708] sm:$0xff]  }
 0x270   : > { %9447 = vmatprep.subr.bf16.mxu1 %v9830_v24  ;;  %v9880_v23 = vld [vmem:[%s11249_s25 + $0x788] sm:$0xff]   ;;  %v9881_v24 = vld [vmem:[%s11249_s25 + $0x740] sm:$0xff]  }
 0x272   : > { %9426 = vmatpush3.bf16.msra.mxu0 %v9831_v25  ;;  %v9882_v25 = vld [vmem:[%s11249_s25 + $0x7c0] sm:$0xff]  }
 0x273   : > { %9448 = vmatpush3.bf16.msra.mxu1 %v9832_v26  ;;  %9427 = vmatprep.subr.bf16.mxu0 %v9833_v27  ;;  %v9883_v26 = vld [vmem:[%s11249_s25 + $0x700] sm:$0xff]  }
 0x274   : > { %9449 = vmatprep.subr.bf16.mxu1 %v9834_v28  ;;  %v9884_v27 = vld [vmem:[%s11249_s25 + $0x780] sm:$0xff]   ;;  %v7169_v28 = vld [vmem:[%s11286_s5 + $0x70] sm:$0xff] }
 0x276   : > { %9428 = vmatpush3.bf16.msra.mxu0 %v9835_v29  ;;  %v7170_v29 = vld [vmem:[%s11286_s5 + $0x78] sm:$0xff] }
 0x277   : > { %9450 = vmatpush3.bf16.msra.mxu1 %v9836_v30  ;;  %9429 = vmatprep.subr.bf16.mxu0 %v9837_v31  ;;  %v7175_v30 = vmax.bf16 %v9989_v35, %v7169_v28  ;;  %v7176_v31 = vmax.bf16 %v9989_v35, %v7170_v29 }
 0x278   : > { %9451 = vmatprep.subr.bf16.mxu1 %v9838_v32  ;;  %v9885_v32 = vld [vmem:[%s11249_s25 + $0x878] sm:$0xff]  }
 0x27a   : > { %9430 = vmatpush3.bf16.msra.mxu0 %v9839_v33  ;;  %v9886_v33 = vld [vmem:[%s11249_s25 + $0x8f8] sm:$0xff]  }
 0x27b   : > { %9452 = vmatpush3.bf16.msra.mxu1 %v9840_v34  ;;  %9431 = vmatprep.subr.bf16.mxu0 %v9841_v36  ;;  %v9039_v34 = vcombine.high %v11351_v39, %v7175_v30  ;;  %v9041_v36 = vcombine.high %v11359_v46, %v7176_v31 }
 0x27c   : > { %9453 = vmatprep.subr.bf16.mxu1 %v9842_v38  ;;  %v9038_v38 = vcombine.low %v11351_v39, %v7175_v30  ;;  %v9891_v39 = vld [vmem:[%s11249_s25 + $0x830] sm:$0xff]  }
 0x27e   : > { %9432 = vmatpush3.bf16.msra.mxu0 %v9843_v40  ;;  %v9040_v40 = vcombine.low %v11359_v46, %v7176_v31  ;;  %v9892_v46 = vld [vmem:[%s11249_s25 + $0x8b0] sm:$0xff]  }
 0x27f   : > { %9454 = vmatpush3.bf16.msra.mxu1 %v9844_v41  ;;  %9433 = vmatprep.subr.bf16.mxu0 %v9845_v42  ;;  %v9887_v41 = vld [vmem:[%s11249_s25 + $0x838] sm:$0xff]  }
 0x280   : > { %9455 = vmatprep.subr.bf16.mxu1 %v9846_v45  ;;  %v9888_v42 = vld [vmem:[%s11249_s25 + $0x8b8] sm:$0xff]   ;;  %v9889_v45 = vld [vmem:[%s11249_s25 + $0x870] sm:$0xff]  }
 0x282   : > { %9434 = vmatpush3.bf16.msra.mxu0 %v9847_v47  ;;  %v9890_v47 = vld [vmem:[%s11249_s25 + $0x8f0] sm:$0xff]  }
 0x283   : > { %9456 = vmatpush3.bf16.msra.mxu1 %v9848_v48  ;;  %9435 = vmatprep.subr.bf16.mxu0 %v9849_v49  ;;  %v9893_v48 = vld [vmem:[%s11249_s25 + $0x868] sm:$0xff]  }
 0x284   : > { %9457 = vmatprep.subr.bf16.mxu1 %v9850_v50  ;;  %v9894_v49 = vld [vmem:[%s11249_s25 + $0x8e8] sm:$0xff]  }
 0x285   : > { %v9895_v50 = vld [vmem:[%s11249_s25 + $0x828] sm:$0xff]  }
 0x286   : > { %9436 = vmatpush3.bf16.msra.mxu0 %v9851_v52  ;;  %v9896_v52 = vld [vmem:[%s11249_s25 + $0x8a8] sm:$0xff]  }
 0x287   : > { %9458 = vmatpush3.bf16.msra.mxu1 %v9852_v53  ;;  %9465 = vmatprep.subr.bf16.mxu0 %v9853_v58  ;;  %v9897_v53 = vld [vmem:[%s11249_s25 + $0x860] sm:$0xff]   ;;  %v9902_v58 = vld [vmem:[%s11249_s25 + $0x8d8] sm:$0xff]  }
 0x288   : > { %9487 = vmatprep.subr.bf16.mxu1 %v9854_v59  ;;  %v9903_v59 = vld [vmem:[%s11249_s25 + $0x818] sm:$0xff]  }
 0x289   : > { %8023 = vmatmul.mubr.bf16.vlgmr.msra.gmra.mxu0 %v9034_v62  ;;  %v9906_v62 = vld [vmem:[%s11249_s25 + $0x8d0] sm:$0xff]  }
 0x28a   : > { %8064 = vmatmul.mubr.bf16.vlgmr.msra.gmra.mxu1 %v9036_v63  ;;  %9466 = vmatpush3.bf16.msra.mxu0 %v9855_v0  ;;  %v9907_v63 = vld [vmem:[%s11249_s25 + $0x810] sm:$0xff]  }
 0x28b   : > { %9488 = vmatpush3.bf16.msra.mxu1 %v9856_v1  ;;  %9467 = vmatprep.subr.bf16.mxu0 %v9857_v2  ;;  %v9908_v0 = vld [vmem:[%s11249_s25 + $0x890] sm:$0xff]   ;;  %v9909_v1 = vld [vmem:[%s11249_s25 + $0x848] sm:$0xff]  }
 0x28c   : > { %9489 = vmatprep.subr.bf16.mxu1 %v9858_v3  ;;  %8104 = vmatprep.mubr.bf16.mxu0 %v9039_v34  ;;  %v9910_v2 = vld [vmem:[%s11249_s25 + $0x8c8] sm:$0xff]  }
 0x28d   : > { %8145 = vmatprep.mubr.bf16.mxu1 %v9041_v36  ;;  %v9911_v3 = vld [vmem:[%s11249_s25 + $0x808] sm:$0xff]  }
 0x28e   : > { %9468 = vmatpush3.bf16.msra.mxu0 %v9859_v37  ;;  %v9912_v37 = vld [vmem:[%s11249_s25 + $0x888] sm:$0xff]  }
 0x28f   : > { %9490 = vmatpush3.bf16.msra.mxu1 %v9860_v43  ;;  %9469 = vmatprep.subr.bf16.mxu0 %v9861_v4  ;;  %v9913_v43 = vld [vmem:[%s11249_s25 + $0x840] sm:$0xff]  }
 0x290   : > { %9491 = vmatprep.subr.bf16.mxu1 %v9862_v5  ;;  %v9914_v4 = vld [vmem:[%s11249_s25 + $0x8c0] sm:$0xff]  }
 0x291   : > { %v9915_v5 = vld [vmem:[%s11249_s25 + $0x800] sm:$0xff]  }
 0x292   : > { %9470 = vmatpush3.bf16.msra.mxu0 %v9863_v6  ;;  %v9916_v6 = vld [vmem:[%s11249_s25 + $0x880] sm:$0xff]   ;;  %s8267_s25 = sadd.s32 (%p10077_p9), %s9971_s16, %s9146_s24 }
 0x293   : > { %9492 = vmatpush3.bf16.msra.mxu1 %v9864_v7  ;;  %9471 = vmatprep.subr.bf16.mxu0 %v9865_v8  ;;  %v7171_v7 = vld [vmem:[%s11286_s5 + $0x80] sm:$0xff]  ;;  %s9147_s14 = sshll.u32 (%p10077_p9), %s8267_s25, 2 }
 0x294   : > { %9493 = vmatprep.subr.bf16.mxu1 %v9866_v9  ;;  %v7177_v8 = vmax.bf16 %v9989_v35, %v7171_v7  ;;  %v7172_v9 = vld [vmem:[%s11286_s5 + $0x88] sm:$0xff]  ;;  %s8269_s28 = scalar_lea.vmem (%p10077_p9), %s11744_s3, %s9147_s14 }
 0x296   : > { %9472 = vmatpush3.bf16.msra.mxu0 %v9867_v10  ;;  %v7178_v10 = vmax.bf16 %v9989_v35, %v7172_v9 }
 0x297   : > { %9494 = vmatpush3.bf16.msra.mxu1 %v9868_v11  ;;  %9473 = vmatprep.subr.bf16.mxu0 %v9869_v12  ;;  %v9043_v11 = vcombine.high %v11407_v44, %v7177_v8  ;;  %v9042_v12 = vcombine.low %v11407_v44, %v7177_v8 }
 0x298   : > { %9495 = vmatprep.subr.bf16.mxu1 %v9870_v13  ;;  %v9045_v13 = vcombine.high %v11415_v51, %v7178_v10 }
 0x29a   : > { %9474 = vmatpush3.bf16.msra.mxu0 %v9871_v14  ;;  %v9044_v14 = vcombine.low %v11415_v51, %v7178_v10 }
 0x29b   : > { %9496 = vmatpush3.bf16.msra.mxu1 %v9872_v15  ;;  %9475 = vmatprep.subr.bf16.mxu0 %v9873_v16  ;;  %v9173_v15 = vpop.f32.mrf.mxu0  ;;  %v9195_v16 = vpop.f32.mrf.mxu1 }
 0x29c   : > { %9497 = vmatprep.subr.bf16.mxu1 %v9874_v17 }
 0x29d   : > { %v9174_v17 = vpop.f32.mrf.mxu0 }
 0x29e   : > { %9476 = vmatpush3.bf16.msra.mxu0 %v9875_v18  ;;  %v9196_v18 = vpop.f32.mrf.mxu1 }
 0x29f   : > { %9498 = vmatpush3.bf16.msra.mxu1 %v9876_v19  ;;  %9477 = vmatprep.subr.bf16.mxu0 %v9877_v20  ;;  %v9176_v19 = vpop.f32.mrf.mxu0 }
 0x2a0   : > { %9499 = vmatprep.subr.bf16.mxu1 %v9878_v21  ;;  %v9198_v35 = vpop.f32.mrf.mxu1 }
 0x2a1   : > { %v9177_v20 = vpop.f32.mrf.mxu0 }
 0x2a2   : > { %9478 = vmatpush3.bf16.msra.mxu0 %v9879_v22  ;;  %v9199_v22 = vpop.f32.mrf.mxu1 }
 0x2a3   : > { %9500 = vmatpush3.bf16.msra.mxu1 %v9880_v23  ;;  %9479 = vmatprep.subr.bf16.mxu0 %v9881_v24  ;;  %v9200_v7 = vadd.f32 %v9199_v22, %v9198_v35 }
 0x2a4   : > { %9501 = vmatprep.subr.bf16.mxu1 %v9882_v25 }
 0x2a6   : > { %9480 = vmatpush3.bf16.msra.mxu0 %v9883_v26 }
 0x2a7   : > { %9502 = vmatpush3.bf16.msra.mxu1 %v9884_v27  ;;  %9509 = vmatprep.subr.bf16.mxu0 %v9885_v32 }
 0x2a8   : > { %9531 = vmatprep.subr.bf16.mxu1 %v9886_v33 }
 0x2a9   : > { %8105 = vmatmul.mubr.bf16.vlgmr.msra.gmra.mxu0 %v9038_v38  ;;  %v9217_v21 = vpop.f32.mrf.mxu0 }
 0x2aa   : > { %8146 = vmatmul.mubr.bf16.vlgmr.msra.gmra.mxu1 %v9040_v40  ;;  %9510 = vmatpush3.bf16.msra.mxu0 %v9887_v41  ;;  %v9239_v23 = vpop.f32.mrf.mxu1 }
 0x2ab   : > { %9532 = vmatpush3.bf16.msra.mxu1 %v9888_v42  ;;  %9511 = vmatprep.subr.bf16.mxu0 %v9889_v45  ;;  %v9218_v24 = vpop.f32.mrf.mxu0 }
 0x2ac   : > { %9533 = vmatprep.subr.bf16.mxu1 %v9890_v47  ;;  %8186 = vmatprep.mubr.bf16.mxu0 %v9043_v11  ;;  %v9240_v44 = vpop.f32.mrf.mxu1 }
 0x2ad   : > { %8227 = vmatprep.mubr.bf16.mxu1 %v9045_v13  ;;  %v9220_v25 = vpop.f32.mrf.mxu0  ;;  %v9241_v10 = vadd.f32 %v9240_v44, %v9239_v23 }
 0x2ae   : > { %9512 = vmatpush3.bf16.msra.mxu0 %v9891_v39  ;;  %v9242_v26 = vpop.f32.mrf.mxu1 }
 0x2af   : > { %9534 = vmatpush3.bf16.msra.mxu1 %v9892_v46  ;;  %9513 = vmatprep.subr.bf16.mxu0 %v9893_v48  ;;  %v9221_v27 = vpop.f32.mrf.mxu0 }
 0x2b0   : > { %9535 = vmatprep.subr.bf16.mxu1 %v9894_v49  ;;  %v9243_v28 = vpop.f32.mrf.mxu1 }
 0x2b2   : > { %9514 = vmatpush3.bf16.msra.mxu0 %v9895_v50 }
 0x2b3   : > { %9536 = vmatpush3.bf16.msra.mxu1 %v9896_v52  ;;  %9515 = vmatprep.subr.bf16.mxu0 %v9897_v53 }
 0x2b4   : > { %9537 = vmatprep.subr.bf16.mxu1 %v9898_v54 }
 0x2b6   : > { %9516 = vmatpush3.bf16.msra.mxu0 %v9899_v55 }
 0x2b7   : > { %9538 = vmatpush3.bf16.msra.mxu1 %v9900_v56  ;;  %9517 = vmatprep.subr.bf16.mxu0 %v9901_v57 }
 0x2b8   : > { %9539 = vmatprep.subr.bf16.mxu1 %v9902_v58 }
 0x2ba   : > { %9518 = vmatpush3.bf16.msra.mxu0 %v9903_v59 }
 0x2bb   : > { %9540 = vmatpush3.bf16.msra.mxu1 %v9904_v60  ;;  %9519 = vmatprep.subr.bf16.mxu0 %v9905_v61 }
 0x2bc   : > { %9541 = vmatprep.subr.bf16.mxu1 %v9906_v62 }
 0x2be   : > { %9520 = vmatpush3.bf16.msra.mxu0 %v9907_v63 }
 0x2bf   : > { %9542 = vmatpush3.bf16.msra.mxu1 %v9908_v0  ;;  %9521 = vmatprep.subr.bf16.mxu0 %v9909_v1 }
 0x2c0   : > { %9543 = vmatprep.subr.bf16.mxu1 %v9910_v2  ;;  %v9175_v2 = vadd.f32 %v9174_v17, %v9173_v15  ;;  %v9244_v17 = vadd.f32 %v9243_v28, %v9242_v26 }
 0x2c2   : > { %9522 = vmatpush3.bf16.msra.mxu0 %v9911_v3  ;;  %v9197_v3 = vadd.f32 %v9196_v18, %v9195_v16 }
 0x2c3   : > { %9544 = vmatpush3.bf16.msra.mxu1 %v9912_v37  ;;  %9523 = vmatprep.subr.bf16.mxu0 %v9913_v43  ;;  %v9219_v43 = vadd.f32 %v9218_v24, %v9217_v21 }
 0x2c4   : > { %9545 = vmatprep.subr.bf16.mxu1 %v9914_v4 }
 0x2c6   : > { %9524 = vmatpush3.bf16.msra.mxu0 %v9915_v5  ;;  %v6115_v5 = vadd.f32 %v9197_v3, %v9175_v2 }
 0x2c7   : > { %9546 = vmatpush3.bf16.msra.mxu1 %v9916_v6  ;;  %v9178_v6 = vadd.f32 %v9177_v20, %v9176_v19 }
 0x2c8   : > { %v6156_v9 = vadd.f32 %v9219_v43, %v6115_v5 }
 0x2c9   : > { %8187 = vmatmul.mubr.bf16.vlgmr.msra.gmra.mxu0 %v9042_v12  ;;  %v9261_v51 = vpop.f32.mrf.mxu0  ;;  %v9222_v12 = vadd.f32 %v9221_v27, %v9220_v25 }
 0x2ca   : > { %8228 = vmatmul.mubr.bf16.vlgmr.msra.gmra.mxu1 %v9044_v14  ;;  %v9283_v29 = vpop.f32.mrf.mxu1  ;;  %v6118_v14 = vadd.f32 %v9200_v7, %v9178_v6 }
 0x2cb   : > { %v9262_v30 = vpop.f32.mrf.mxu0 }
 0x2cc   : > { %v9284_v31 = vpop.f32.mrf.mxu1  ;;  %v9263_v13 = vadd.f32 %v9262_v30, %v9261_v51 }
 0x2cd   : > { %v9264_v32 = vpop.f32.mrf.mxu0  ;;  %v9285_v15 = vadd.f32 %v9284_v31, %v9283_v29 }
 0x2ce   : > { %v9286_v33 = vpop.f32.mrf.mxu1 }
 0x2cf   : > { %v9265_v34 = vpop.f32.mrf.mxu0 }
 0x2d0   : > { %v9287_v38 = vpop.f32.mrf.mxu1  ;;  %v9266_v18 = vadd.f32 %v9265_v34, %v9264_v32 }
 0x2d1   : > { %v9288_v27 = vadd.f32 %v9287_v38, %v9286_v33 }
 0x2e9   : > { %v9305_v36 = vpop.f32.mrf.mxu0 }
 0x2ea   : > { %v9327_v40 = vpop.f32.mrf.mxu1 }
 0x2eb   : > { %v9306_v41 = vpop.f32.mrf.mxu0 }
 0x2ec   : > { %v9328_v42 = vpop.f32.mrf.mxu1  ;;  %v9307_v24 = vadd.f32 %v9306_v41, %v9305_v36 }
 0x2ed   : > { %v9308_v45 = vpop.f32.mrf.mxu0  ;;  %v9329_v25 = vadd.f32 %v9328_v42, %v9327_v40 }
 0x2ee   : > { %v11666_v47 = vpop.f32.mrf.mxu1 }
 0x2ef   : > { %v9309_v39 = vpop.f32.mrf.mxu0 }
 0x2f0   : > { %v9331_v48 = vpop.f32.mrf.mxu1  ;;  %v9310_v51 = vadd.f32 %v9309_v39, %v9308_v45 }
 0x2f1   : > { %v9332_v34 = vadd.f32 %v9331_v48, %v11666_v47 }
 0x309   : > { %v9349_v46 = vpop.f32.mrf.mxu0 }
 0x30a   : > { %v11668_v49 = vpop.f32.mrf.mxu1 }
 0x30b   : > { %v9350_v50 = vpop.f32.mrf.mxu0 }
 0x30c   : > { %v9372_v52 = vpop.f32.mrf.mxu1  ;;  %v9351_v2 = vadd.f32 %v9350_v50, %v9349_v46 }
 0x30d   : > { %v9352_v53 = vpop.f32.mrf.mxu0  ;;  %v9373_v41 = vadd.f32 %v9372_v52, %v11668_v49 }
 0x30e   : > { %v11670_v54 = vpop.f32.mrf.mxu1 }
 0x30f   : > { %v9353_v55 = vpop.f32.mrf.mxu0 }
 0x310   : > { %v11674_v57 = vpop.f32.mrf.mxu1  ;;  %v9354_v40 = vadd.f32 %v9353_v55, %v9352_v53 }
 0x311   : > { %v9376_v52 = vadd.f32 %v11674_v57, %v11670_v54 }
 0x329   : > { %v11672_v56 = vpop.f32.mrf.mxu0 }
 0x32a   : > { %v11676_v58 = vpop.f32.mrf.mxu1 }
 0x32b   : > { %v9394_v59 = vpop.f32.mrf.mxu0 }
 0x32c   : > { %v11678_v60 = vpop.f32.mrf.mxu1  ;;  %v9395_v45 = vadd.f32 %v9394_v59, %v11672_v56 }
 0x32d   : > { %11746 = vst [vmem:[#allocation4_spill] sm:$0xff] %v11678_v60  ;;  %v11680_v61 = vpop.f32.mrf.mxu0  ;;  %v6159_v60 = vadd.f32 %v9222_v12, %v6118_v14 }
 0x32e   : > { %11747 = vst [vmem:[#allocation5_spill] sm:$0xff] %v11680_v61  ;;  %v11682_v62 = vpop.f32.mrf.mxu1 }
 0x32f   : > { %11748 = vst [vmem:[#allocation6_spill] sm:$0xff] %v11682_v62  ;;  %v11684_v63 = vpop.f32.mrf.mxu0  ;;  %v6200_v19 = vadd.f32 %v9244_v17, %v6159_v60 }
 0x330   : > { %11749 = vst [vmem:[#allocation7_spill] sm:$0xff] %v11684_v63  ;;  %v11686_v1 = vpop.f32.mrf.mxu1  ;;  %v6197_v63 = vadd.f32 %v9241_v10, %v6156_v9 }
 0x331   : > { %11750 = vst [vmem:[#allocation8_spill] sm:$0xff] %v11686_v1  ;;  %v6241_v23 = vadd.f32 %v9266_v18, %v6200_v19 }
 0x332   : > { %v6238_v1 = vadd.f32 %v9263_v13, %v6197_v63 }
 0x333   : > { %v6282_v43 = vadd.f32 %v9288_v27, %v6241_v23 }
 0x334   : > { %v6279_v20 = vadd.f32 %v9285_v15, %v6238_v1  ;;  %v11751_v55 = vld [vmem:[#allocation4_spill] sm:$0xff] }
 0x335   : > { %v6959_v26 = vadd.f32 %v9310_v51, %v6282_v43  ;;  %v9417_v56 = vadd.f32 %v11751_v55, %v11676_v58 }
 0x336   : > { %v6956_v44 = vadd.f32 %v9307_v24, %v6279_v20  ;;  %v11754_v24 = vld [vmem:[#allocation6_spill] sm:$0xff] }
 0x337   : > { %v7000_v39 = vadd.f32 %v9332_v34, %v6959_v26 }
 0x338   : > { %v6997_v31 = vadd.f32 %v9329_v25, %v6956_v44  ;;  %v11755_v19 = vld [vmem:[#allocation8_spill] sm:$0xff]  ;;  %v9142_v44 = vld [vmem:[%s4889_s9] ss:$0 sm:$0xff] }
 0x339   : > { %v7041_v48 = vadd.f32 %v9354_v40, %v7000_v39 }
 0x33a   : > { %v7038_v36 = vadd.f32 %v9351_v2, %v6997_v31 }
 0x349   : > { %v9437_v0 = vpop.f32.mrf.mxu0 }
 0x34a   : > { %v9459_v37 = vpop.f32.mrf.mxu1 }
 0x34b   : > { %v9438_v4 = vpop.f32.mrf.mxu0 }
 0x34c   : > { %v9460_v8 = vpop.f32.mrf.mxu1  ;;  %v9439_v63 = vadd.f32 %v9438_v4, %v9437_v0 }
 0x34d   : > { %v9440_v11 = vpop.f32.mrf.mxu0  ;;  %v9461_v29 = vadd.f32 %v9460_v8, %v9459_v37  ;;  %v7079_v37 = vadd.f32 %v9373_v41, %v7038_v36 }
 0x34e   : > { %v9462_v62 = vpop.f32.mrf.mxu1 }
 0x34f   : > { %v9441_v61 = vpop.f32.mrf.mxu0  ;;  %v8066_v33 = vadd.f32 %v9461_v29, %v9439_v63  ;;  %v7120_v53 = vadd.f32 %v9395_v45, %v7079_v37 }
 0x350   : > { %v9463_v21 = vpop.f32.mrf.mxu1  ;;  %v9442_v38 = vadd.f32 %v9441_v61, %v9440_v11  ;;  %v11752_v61 = vld [vmem:[#allocation5_spill] sm:$0xff]  ;;  %v7082_v11 = vadd.f32 %v9376_v52, %v7041_v48 }
 0x351   : > { %v9464_v42 = vadd.f32 %v9463_v21, %v9462_v62  ;;  %v11753_v62 = vld [vmem:[#allocation7_spill] sm:$0xff]  ;;  %v7161_v57 = vadd.f32 %v9417_v56, %v7120_v53 }
 0x352   : > { %v9398_v5 = vadd.f32 %v11753_v62, %v11752_v61 }
 0x353   : > { %v8069_v4 = vadd.f32 %v9464_v42, %v9442_v38 }
 0x354   : > { %v7123_v58 = vadd.f32 %v9398_v5, %v7082_v11 }
 0x369   : > { %v9481_v16 = vpop.f32.mrf.mxu0 }
 0x36a   : > { %v9503_v35 = vpop.f32.mrf.mxu1 }
 0x36b   : > { %v9482_v22 = vpop.f32.mrf.mxu0 }
 0x36c   : > { %v9504_v30 = vpop.f32.mrf.mxu1  ;;  %v9483_v28 = vadd.f32 %v9482_v22, %v9481_v16 }
 0x36d   : > { %v9484_v3 = vpop.f32.mrf.mxu0  ;;  %v9505_v50 = vadd.f32 %v9504_v30, %v9503_v35  ;;  %v9420_v35 = vadd.f32 %v11755_v19, %v11754_v24 }
 0x36e   : > { %v9506_v32 = vpop.f32.mrf.mxu1  ;;  %v8107_v46 = vadd.f32 %v9483_v28, %v8066_v33 }
 0x36f   : > { %v9485_v60 = vpop.f32.mrf.mxu0  ;;  %v7164_v25 = vadd.f32 %v9420_v35, %v7123_v58 }
 0x370   : > { %v9486_v0 = vadd.f32 %v9485_v60, %v9484_v3  ;;  %v9507_v1 = vpop.f32.mrf.mxu1  ;;  %v8148_v6 = vadd.f32 %v9505_v50, %v8107_v46 }
 0x371   : > { %v9508_v12 = vadd.f32 %v9507_v1, %v9506_v32 }
 0x372   : > { %v8110_v7 = vadd.f32 %v9486_v0, %v8069_v4 }
 0x374   : > { %v8151_v16 = vadd.f32 %v9508_v12, %v8110_v7 }
 0x389   : > { %v9525_v47 = vpop.f32.mrf.mxu0 }
 0x38a   : > { %v9547_v49 = vpop.f32.mrf.mxu1 }
 0x38b   : > { %v9526_v59 = vpop.f32.mrf.mxu0 }
 0x38c   : > { %v9527_v8 = vadd.f32 %v9526_v59, %v9525_v47  ;;  %v9548_v9 = vpop.f32.mrf.mxu1 }
 0x38d   : > { %v9528_v10 = vpop.f32.mrf.mxu0  ;;  %v9549_v14 = vadd.f32 %v9548_v9, %v9547_v49 }
 0x38e   : > { %v8189_v13 = vadd.f32 %v9527_v8, %v8148_v6  ;;  %v9550_v54 = vpop.f32.mrf.mxu1 }
 0x38f   : > { %v9529_v15 = vpop.f32.mrf.mxu0 }
 0x390   : > { %v8230_v17 = vadd.f32 %v9549_v14, %v8189_v13  ;;  %v9530_v18 = vadd.f32 %v9529_v15, %v9528_v10  ;;  %v9551_v21 = vpop.f32.mrf.mxu1 }
 0x391   : > { %v9552_v23 = vadd.f32 %v9551_v21, %v9550_v54 }
 0x392   : > { %v8236_v20 = vadd.f32 %v8230_v17, %v7161_v57  ;;  %v8192_v22 = vadd.f32 %v9530_v18, %v8151_v16 }
 0x394   : > { %v8233_v27 = vadd.f32 %v9552_v23, %v8192_v22  ;;  %v8245_v51 = vadd.f32 %v9142_v44, %v8236_v20 }
 0x396   : > { %v8237_v30 = vadd.f32 %v8233_v27, %v7164_v25  ;;  %v8247_v3 = vmax.f32 %v8245_v51, 0.0 }
 0x398   : > { %v8246_v2 = vadd.f32 %v9142_v44, %v8237_v30 }
 0x39a   : > { %v8248_v43 = vmax.f32 %v8246_v2, 0.0  ;;  %8265 = sbr.rel (!%p10077_p9) target bundleno = 935 (0x3a7), region = 88 }
 0x39c   : > { %v9155_v63 = vpack.c.bf16 %v8248_v43, %v8247_v3 }
 0x39e   : > { %9156 = vst [vmem:[%s4881_s21] sm:$0xff] %v9155_v63  }
 0x3a5   : > { %v8286_v29 = vld [vmem:[%s4881_s21] sm:$0xf]  ;;  %v8288_v31 = vld [vmem:[%s4881_s21 + $0x4] sm:$0xf] }
 0x3a6   : > { %8287 = vst [vmem:[%s8269_s28] sm:$0xf] %v8286_v29  ;;  %8289 = vst [vmem:[%s8269_s28 + $0x10] sm:$0xf] %v8288_v31 }
 0x3a7 PF: > { %s13_s20 = sadd.s32 1, %s9987_s20   ;;  %s11756_s12 = smov %s9959_s13 }
 0x3a8   : > { %p10_p2 = scmp.ge.s32.totalorder %s13_s20, 10   ;;  %s11757_s13 = smov %s10082_s4 }
 0x3a9   : > { %s11758_s14 = smov %s9967_s15  ;;  %s11759_s15 = smov %s10071_s27 }
 0x3aa   : > { %s11760_s16 = smov %s9979_s18  ;;  %s11761_s17 = smov %s9983_s19 }
 0x3ab   : > { %s11762_s18 = smov %s11765_s22  ;;  %s11763_s19 = smov %s11769_s23 }
 0x3ac   :  { %12 = sbr.rel (!%p10_p2) target bundleno = 5 (0x5), region = 172 }

</bundles_post_ra>
